<compile_context>
chip_gen: v7x
topology: tpu7x:2x2x1
jax: 0.10.0
libtpu: 0.0.40
codegen_flags: <defaults>
</compile_context>

<pallas_src>
import jax
import jax.numpy as jnp
from jax.experimental import pallas as pl
from jax.experimental.pallas import tpu as pltpu

# ---- small synthetic sizes (lane-aligned hidden/vocab so gate slices are
# ---- 128-aligned inside the kernel) ---------------------------------------
B = 16     # total batch
BB = 8     # batch rows per grid step ("parallel" axis)
T = 8      # number of video frames
F = 16     # video feature dim
H = 128    # GRU hidden size
E = 128    # word-embedding dim
V = 128    # vocab size
L = 8      # max decoded caption length
BOS_ID = 1
H3 = 3 * H


# --------------------- fused encoder + greedy decoder ----------------------
def s2vt_kernel(feat_ref,
                enc_wp_ref, enc_bp_ref, enc_wih_ref, enc_whh_ref,
                enc_bih_ref, enc_bhh_ref,
                dec_win_ref, dec_bih_ref, dec_whv_ref, dec_bhv_ref,
                logp_ref, pred_ref):
    f32 = jnp.float32
    bf16 = jnp.bfloat16

    # ============================ encoder ==================================
    feat = feat_ref[...]                                       # (T, BB, F)
    # Input-side work for ALL timesteps in two matmuls (off the recurrence).
    # Time-major layout -> per-step slices below are whole sublane tiles.
    x_all = jnp.tanh(
        jnp.dot(feat.reshape(T * BB, F).astype(bf16), enc_wp_ref[...],
                preferred_element_type=f32) + enc_bp_ref[...])        # (T*BB, H)
    gi_all = (jnp.dot(x_all.astype(bf16), enc_wih_ref[...],
                      preferred_element_type=f32) + enc_bih_ref[...])  # (T*BB, 3H)

    enc_whh = enc_whh_ref[...]                                   # (H, 3H) bf16
    enc_bhh = jnp.broadcast_to(enc_bhh_ref[...], (BB, H3))       # hoisted bcast

    h = jnp.zeros((BB, H), f32)
    hs = []                                   # encoder outputs, register-resident
    for t in range(T):                        # static, fully unrolled
        gi = gi_all[t * BB:(t + 1) * BB, :]                      # (BB, 3H)
        gh = jnp.dot(h.astype(bf16), enc_whh, preferred_element_type=f32) + enc_bhh
        r = jax.nn.sigmoid(gi[:, 0:H] + gh[:, 0:H])
        z = jax.nn.sigmoid(gi[:, H:2 * H] + gh[:, H:2 * H])
        n = jnp.tanh(gi[:, 2 * H:H3] + r * gh[:, 2 * H:H3])
        h = (1.0 - z) * n + z * h
        hs.append(h)

    # ============================ decoder ==================================
    # gate order r,z,n (torch.nn.GRU).  Decoder initial hidden = encoder final.
    dec_win = dec_win_ref[...]            # (V+H, 3H) bf16: [emb_proj ; Wih_ctx]
    dec_whv = dec_whv_ref[...]            # (H, 3H+V) bf16: [Whh | Wout]
    dec_bih = jnp.broadcast_to(dec_bih_ref[...], (BB, H3))
    dec_bhv = jnp.broadcast_to(dec_bhv_ref[...], (BB, H3 + V))

    vocab_iota = jax.lax.broadcasted_iota(jnp.int32, (BB, V), 1)
    vocab_iota_f = vocab_iota.astype(f32)
    step_iota = jax.lax.broadcasted_iota(jnp.int32, (BB, L), 1)

    onehot_prev = (vocab_iota == BOS_ID).astype(f32)             # BOS feedback

    # Fused h -> [gh_next | logits]; the pre-loop call only uses the gh slice.
    hv = jnp.dot(h.astype(bf16), dec_whv, preferred_element_type=f32) + dec_bhv
    gh = hv[:, 0:H3]

    logps = []
    preds = jnp.zeros((BB, L), jnp.int32)

    # TODO(synk): at real vocab sizes (e.g. 30k) the [Whh|Wout] / emb_proj
    # weights need a trailing vocab-tiled grid axis + running log-softmax,
    # especially on v7x (64 MiB VMEM).
    for t in range(L):                        # static, fully unrolled
        # ---- exact dot-product attention over the T encoder states ----
        sc = [jnp.sum(hs[k] * h, axis=1, keepdims=True) for k in range(T)]  # (BB,1)
        m = sc[0]
        for k in range(1, T):
            m = jnp.maximum(m, sc[k])
        ex = [jnp.exp(s - m) for s in sc]
        den = ex[0]
        for k in range(1, T):
            den = den + ex[k]
        inv = 1.0 / den                                           # exact softmax
        ctx = (ex[0] * inv) * hs[0]
        for k in range(1, T):
            ctx = ctx + (ex[k] * inv) * hs[k]                     # (BB, H)

        # ---- GRU input gates: single K-fused matmul ----
        xin = jnp.concatenate([onehot_prev, ctx], axis=1)         # (BB, V+H)
        gi = jnp.dot(xin.astype(bf16), dec_win, preferred_element_type=f32) + dec_bih
        r = jax.nn.sigmoid(gi[:, 0:H] + gh[:, 0:H])
        z = jax.nn.sigmoid(gi[:, H:2 * H] + gh[:, H:2 * H])
        n = jnp.tanh(gi[:, 2 * H:H3] + r * gh[:, 2 * H:H3])
        h = (1.0 - z) * n + z * h

        # ---- N-fused output projection + next-step hidden projection ----
        hv = jnp.dot(h.astype(bf16), dec_whv, preferred_element_type=f32) + dec_bhv
        gh = hv[:, 0:H3]                                          # for step t+1
        logits = hv[:, H3:H3 + V]                                 # (BB, V)

        # ---- single-pass log-softmax ----
        mx = jnp.max(logits, axis=1, keepdims=True)
        e = jnp.exp(logits - mx)
        logp = logits - mx - jnp.log(jnp.sum(e, axis=1, keepdims=True))

        # ---- greedy argmax (NaN-guarded) + embedding-side gate feedback ----
        pred_f = jnp.min(jnp.where(logits >= mx, vocab_iota_f, float(V)),
                         axis=1, keepdims=True)
        pred = jnp.minimum(pred_f, float(V - 1)).astype(jnp.int32)  # (BB, 1)
        onehot_prev = (vocab_iota == pred).astype(f32)

        logps.append(logp)
        preds = jnp.where(step_iota == t, pred, preds)            # register-resident

    # single dense stores (lane-dense (BB, L*V) for logP)
    logp_ref[...] = jnp.concatenate(logps, axis=1)                # (BB, L*V)
    pred_ref[...] = preds                                         # (BB, L)


# ------------------------------ wrapper -------------------------------------
def models_forward(params, video_feat, mode="prediction"):
    """video_feat: (B, T, F) float32 (batch-first like the PyTorch module)."""
    if mode == "train":
        # TODO(synk): teacher-forced / scheduled-sampling train path needs
        # target_sentences + tr_steps; only the greedy prediction path is
        # implemented here.
        raise NotImplementedError("train mode not implemented")

    p = params
    f32, bf16 = jnp.float32, jnp.bfloat16
    Btot = video_feat.shape[0]
    assert Btot % BB == 0

    # time-major layout for the kernel (whole-sublane-tile per-step slices)
    feat_t = jnp.transpose(video_feat.astype(f32), (1, 0, 2))     # (T, B, F)

    # hoisted, input-independent weight fusions (done outside the kernel):
    emb_proj = jnp.dot(p["embed"], p["dec_wih_emb"])              # (V, 3H)
    dec_win = jnp.concatenate([emb_proj, p["dec_wih_ctx"]], axis=0).astype(bf16)
    dec_whv = jnp.concatenate([p["dec_whh"], p["dec_wout"]], axis=1).astype(bf16)
    dec_bhv = jnp.concatenate([p["dec_bhh"], p["dec_bout"]], axis=1)

    def wspec(shape):  # weights: constant index_map -> stay VMEM-resident
        return pl.BlockSpec(shape, lambda i: (0, 0))

    logp_flat, pred = pl.pallas_call(
        s2vt_kernel,
        grid=(Btot // BB,),
        out_shape=(jax.ShapeDtypeStruct((Btot, L * V), jnp.float32),
                   jax.ShapeDtypeStruct((Btot, L), jnp.int32)),
        in_specs=[
            pl.BlockSpec((T, BB, F), lambda i: (0, i, 0)),        # feat chunk
            wspec((F, H)), wspec((1, H)),                         # enc_wp, enc_bp
            wspec((H, H3)), wspec((H, H3)),                       # enc_wih, enc_whh
            wspec((1, H3)), wspec((1, H3)),                       # enc_bih, enc_bhh
            wspec((V + H, H3)), wspec((1, H3)),                   # dec_win, dec_bih
            wspec((H, H3 + V)), wspec((1, H3 + V)),               # dec_whv, dec_bhv
        ],
        out_specs=(pl.BlockSpec((BB, L * V), lambda i: (i, 0)),
                   pl.BlockSpec((BB, L), lambda i: (i, 0))),
        compiler_params=pltpu.CompilerParams(
            dimension_semantics=("parallel",)),
    )(feat_t,
      p["enc_wp"].astype(bf16), p["enc_bp"],
      p["enc_wih"].astype(bf16), p["enc_whh"].astype(bf16),
      p["enc_bih"], p["enc_bhh"],
      dec_win, p["dec_bih"], dec_whv, dec_bhv)

    # contiguous (free) reshape of the lane-dense slab back to (B, L, V)
    return logp_flat.reshape(Btot, L, V), pred


def init_params(key):
    ks = jax.random.split(key, 13)

    def nrm(k, shape, fan_in):
        return jax.random.normal(k, shape, jnp.float32) / jnp.sqrt(float(fan_in))

    return {
        # encoder: feature projection + GRU
        "enc_wp": nrm(ks[0], (F, H), F),
        "enc_bp": jnp.zeros((1, H), jnp.float32),
        "enc_wih": nrm(ks[1], (H, H3), H),
        "enc_whh": nrm(ks[2], (H, H3), H),
        "enc_bih": 0.01 * jax.random.normal(ks[3], (1, H3), jnp.float32),
        "enc_bhh": 0.01 * jax.random.normal(ks[4], (1, H3), jnp.float32),
        # decoder: embedding + attention-GRU + output projection
        # (dec_wih split into embedding-side / context-side blocks so the
        #  wrapper can fuse embed @ dec_wih_emb once per call)
        "embed": nrm(ks[5], (V, E), E),
        "dec_wih_emb": nrm(ks[6], (E, H3), E + H),
        "dec_wih_ctx": nrm(ks[12], (H, H3), E + H),
        "dec_whh": nrm(ks[7], (H, H3), H),
        "dec_bih": 0.01 * jax.random.normal(ks[8], (1, H3), jnp.float32),
        "dec_bhh": 0.01 * jax.random.normal(ks[9], (1, H3), jnp.float32),
        "dec_wout": nrm(ks[10], (H, V), H),
        "dec_bout": 0.01 * jax.random.normal(ks[11], (1, V), jnp.float32),
    }


if __name__ == "__main__":
    key = jax.random.PRNGKey(0)
    kp, kx = jax.random.split(key)
    params = init_params(kp)
    video_feat = jax.random.normal(kx, (B, T, F), jnp.float32)

    logP_sequence, predicted_sequence = jax.jit(
        lambda p, x: models_forward(p, x, mode="prediction"))(params, video_feat)
    jax.block_until_ready((logP_sequence, predicted_sequence))

    assert logP_sequence.shape == (B, L, V)
    assert predicted_sequence.shape == (B, L)
    assert predicted_sequence.dtype == jnp.int32
    # log-probs should sum (in prob space) to ~1 per step
    assert jnp.allclose(jnp.exp(logP_sequence).sum(-1), 1.0, atol=1e-3)
    # predicted ids must be valid vocab indices
    assert int(predicted_sequence.min()) >= 0 and int(predicted_sequence.max()) < V
    print("KERNEL_OK")
</pallas_src>

<mosaic_0001>
module attributes {stable_mosaic.version = 11 : i64} {
  func.func @s2vt_kernel(%arg0: i32, %arg1: memref<8x8x16xf32, #tpu.memory_space<vmem>>, %arg2: memref<16x128xbf16, #tpu.memory_space<vmem>>, %arg3: memref<1x128xf32, #tpu.memory_space<vmem>>, %arg4: memref<128x384xbf16, #tpu.memory_space<vmem>>, %arg5: memref<128x384xbf16, #tpu.memory_space<vmem>>, %arg6: memref<1x384xf32, #tpu.memory_space<vmem>>, %arg7: memref<1x384xf32, #tpu.memory_space<vmem>>, %arg8: memref<256x384xbf16, #tpu.memory_space<vmem>>, %arg9: memref<1x384xf32, #tpu.memory_space<vmem>>, %arg10: memref<128x512xbf16, #tpu.memory_space<vmem>>, %arg11: memref<1x512xf32, #tpu.memory_space<vmem>>, %arg12: memref<8x1024xf32, #tpu.memory_space<vmem>>, %arg13: memref<8x8xi32, #tpu.memory_space<vmem>>) attributes {dimension_semantics = [#tpu.dimension_semantics<parallel>], iteration_bounds = array<i64: 2>, scalar_prefetch = 0 : i64, scratch_operands = 0 : i64, tpu.core_type = #tpu.core_type<tc>, window_params = [{transform_indices = @transform_0, window_bounds = array<i64: 8, 8, 16>}, {pipeline_mode = #tpu.pipeline_mode<synchronous>, transform_indices = @transform_1, window_bounds = array<i64: 16, 128>}, {pipeline_mode = #tpu.pipeline_mode<synchronous>, transform_indices = @transform_2, window_bounds = array<i64: 1, 128>}, {pipeline_mode = #tpu.pipeline_mode<synchronous>, transform_indices = @transform_3, window_bounds = array<i64: 128, 384>}, {pipeline_mode = #tpu.pipeline_mode<synchronous>, transform_indices = @transform_4, window_bounds = array<i64: 128, 384>}, {pipeline_mode = #tpu.pipeline_mode<synchronous>, transform_indices = @transform_5, window_bounds = array<i64: 1, 384>}, {pipeline_mode = #tpu.pipeline_mode<synchronous>, transform_indices = @transform_6, window_bounds = array<i64: 1, 384>}, {pipeline_mode = #tpu.pipeline_mode<synchronous>, transform_indices = @transform_7, window_bounds = array<i64: 256, 384>}, {pipeline_mode = #tpu.pipeline_mode<synchronous>, transform_indices = @transform_8, window_bounds = array<i64: 1, 384>}, {pipeline_mode = #tpu.pipeline_mode<synchronous>, transform_indices = @transform_9, window_bounds = array<i64: 128, 512>}, {pipeline_mode = #tpu.pipeline_mode<synchronous>, transform_indices = @transform_10, window_bounds = array<i64: 1, 512>}, {transform_indices = @transform_11, window_bounds = array<i64: 8, 1024>}, {transform_indices = @transform_12, window_bounds = array<i64: 8, 8>}]} {
    %c0 = arith.constant 0 : index
    %c0_0 = arith.constant 0 : index
    %c0_1 = arith.constant 0 : index
    %0 = vector.load %arg1[%c0, %c0_0, %c0_1] : memref<8x8x16xf32, #tpu.memory_space<vmem>>, vector<8x8x16xf32>
    %1 = vector.shape_cast %0 : vector<8x8x16xf32> to vector<64x16xf32>
    %2 = arith.truncf %1 : vector<64x16xf32> to vector<64x16xbf16>
    %c0_2 = arith.constant 0 : index
    %c0_3 = arith.constant 0 : index
    %3 = vector.load %arg2[%c0_2, %c0_3] : memref<16x128xbf16, #tpu.memory_space<vmem>>, vector<16x128xbf16>
    %cst = arith.constant dense<0.000000e+00> : vector<64x128xf32>
    %4 = tpu.matmul %2, %3, %cst {dimension_numbers = #tpu.dot_dimension_numbers<[1], [0], [0], [1], [0, 0, 1, 1], [], []>} : vector<64x16xbf16>, vector<16x128xbf16>, vector<64x128xf32> -> vector<64x128xf32>
    %c0_4 = arith.constant 0 : index
    %c0_5 = arith.constant 0 : index
    %5 = vector.load %arg3[%c0_4, %c0_5] : memref<1x128xf32, #tpu.memory_space<vmem>>, vector<1x128xf32>
    %6 = vector.broadcast %5 : vector<1x128xf32> to vector<64x128xf32>
    %7 = arith.addf %4, %6 : vector<64x128xf32>
    %8 = math.tanh %7 : vector<64x128xf32>
    %9 = arith.truncf %8 : vector<64x128xf32> to vector<64x128xbf16>
    %c0_6 = arith.constant 0 : index
    %c0_7 = arith.constant 0 : index
    %10 = vector.load %arg4[%c0_6, %c0_7] : memref<128x384xbf16, #tpu.memory_space<vmem>>, vector<128x384xbf16>
    %cst_8 = arith.constant dense<0.000000e+00> : vector<64x384xf32>
    %11 = tpu.matmul %9, %10, %cst_8 {dimension_numbers = #tpu.dot_dimension_numbers<[1], [0], [0], [1], [0, 0, 1, 1], [], []>} : vector<64x128xbf16>, vector<128x384xbf16>, vector<64x384xf32> -> vector<64x384xf32>
    %c0_9 = arith.constant 0 : index
    %c0_10 = arith.constant 0 : index
    %12 = vector.load %arg6[%c0_9, %c0_10] : memref<1x384xf32, #tpu.memory_space<vmem>>, vector<1x384xf32>
    %13 = vector.broadcast %12 : vector<1x384xf32> to vector<64x384xf32>
    %14 = arith.addf %11, %13 : vector<64x384xf32>
    %c0_11 = arith.constant 0 : index
    %c0_12 = arith.constant 0 : index
    %15 = vector.load %arg5[%c0_11, %c0_12] : memref<128x384xbf16, #tpu.memory_space<vmem>>, vector<128x384xbf16>
    %c0_13 = arith.constant 0 : index
    %c0_14 = arith.constant 0 : index
    %16 = vector.load %arg7[%c0_13, %c0_14] : memref<1x384xf32, #tpu.memory_space<vmem>>, vector<1x384xf32>
    %17 = vector.shape_cast %16 : vector<1x384xf32> to vector<1x384xf32>
    %18 = vector.broadcast %17 : vector<1x384xf32> to vector<8x384xf32>
    %cst_15 = arith.constant 0.000000e+00 : f32
    %19 = vector.broadcast %cst_15 : f32 to vector<8x128xf32>
    %20 = vector.extract_strided_slice %14 {offsets = [0, 0], sizes = [8, 384], strides = [1, 1]} : vector<64x384xf32> to vector<8x384xf32>
    %21 = arith.truncf %19 : vector<8x128xf32> to vector<8x128xbf16>
    %cst_16 = arith.constant dense<0.000000e+00> : vector<8x384xf32>
    %22 = tpu.matmul %21, %15, %cst_16 {dimension_numbers = #tpu.dot_dimension_numbers<[1], [0], [0], [1], [0, 0, 1, 1], [], []>} : vector<8x128xbf16>, vector<128x384xbf16>, vector<8x384xf32> -> vector<8x384xf32>
    %23 = arith.addf %22, %18 : vector<8x384xf32>
    %24 = vector.extract_strided_slice %20 {offsets = [0, 0], sizes = [8, 128], strides = [1, 1]} : vector<8x384xf32> to vector<8x128xf32>
    %25 = vector.extract_strided_slice %23 {offsets = [0, 0], sizes = [8, 128], strides = [1, 1]} : vector<8x384xf32> to vector<8x128xf32>
    %26 = arith.addf %24, %25 : vector<8x128xf32>
    %27 = arith.negf %26 : vector<8x128xf32>
    %28 = math.exp %27 : vector<8x128xf32>
    %cst_17 = arith.constant 1.000000e+00 : f32
    %29 = vector.broadcast %cst_17 : f32 to vector<8x128xf32>
    %30 = arith.addf %29, %28 : vector<8x128xf32>
    %31 = arith.divf %29, %30 : vector<8x128xf32>
    %32 = vector.extract_strided_slice %20 {offsets = [0, 128], sizes = [8, 128], strides = [1, 1]} : vector<8x384xf32> to vector<8x128xf32>
    %33 = vector.extract_strided_slice %23 {offsets = [0, 128], sizes = [8, 128], strides = [1, 1]} : vector<8x384xf32> to vector<8x128xf32>
    %34 = arith.addf %32, %33 : vector<8x128xf32>
    %35 = arith.negf %34 : vector<8x128xf32>
    %36 = math.exp %35 : vector<8x128xf32>
    %cst_18 = arith.constant 1.000000e+00 : f32
    %37 = vector.broadcast %cst_18 : f32 to vector<8x128xf32>
    %38 = arith.addf %37, %36 : vector<8x128xf32>
    %39 = arith.divf %37, %38 : vector<8x128xf32>
    %40 = vector.extract_strided_slice %20 {offsets = [0, 256], sizes = [8, 128], strides = [1, 1]} : vector<8x384xf32> to vector<8x128xf32>
    %41 = vector.extract_strided_slice %23 {offsets = [0, 256], sizes = [8, 128], strides = [1, 1]} : vector<8x384xf32> to vector<8x128xf32>
    %42 = arith.mulf %31, %41 : vector<8x128xf32>
    %43 = arith.addf %40, %42 : vector<8x128xf32>
    %44 = math.tanh %43 : vector<8x128xf32>
    %cst_19 = arith.constant 1.000000e+00 : f32
    %45 = vector.broadcast %cst_19 : f32 to vector<8x128xf32>
    %46 = arith.subf %45, %39 : vector<8x128xf32>
    %47 = arith.mulf %46, %44 : vector<8x128xf32>
    %48 = arith.mulf %39, %19 : vector<8x128xf32>
    %49 = arith.addf %47, %48 : vector<8x128xf32>
    %50 = vector.extract_strided_slice %14 {offsets = [8, 0], sizes = [8, 384], strides = [1, 1]} : vector<64x384xf32> to vector<8x384xf32>
    %51 = arith.truncf %49 : vector<8x128xf32> to vector<8x128xbf16>
    %cst_20 = arith.constant dense<0.000000e+00> : vector<8x384xf32>
    %52 = tpu.matmul %51, %15, %cst_20 {dimension_numbers = #tpu.dot_dimension_numbers<[1], [0], [0], [1], [0, 0, 1, 1], [], []>} : vector<8x128xbf16>, vector<128x384xbf16>, vector<8x384xf32> -> vector<8x384xf32>
    %53 = arith.addf %52, %18 : vector<8x384xf32>
    %54 = vector.extract_strided_slice %50 {offsets = [0, 0], sizes = [8, 128], strides = [1, 1]} : vector<8x384xf32> to vector<8x128xf32>
    %55 = vector.extract_strided_slice %53 {offsets = [0, 0], sizes = [8, 128], strides = [1, 1]} : vector<8x384xf32> to vector<8x128xf32>
    %56 = arith.addf %54, %55 : vector<8x128xf32>
    %57 = arith.negf %56 : vector<8x128xf32>
    %58 = math.exp %57 : vector<8x128xf32>
    %cst_21 = arith.constant 1.000000e+00 : f32
    %59 = vector.broadcast %cst_21 : f32 to vector<8x128xf32>
    %60 = arith.addf %59, %58 : vector<8x128xf32>
    %61 = arith.divf %59, %60 : vector<8x128xf32>
    %62 = vector.extract_strided_slice %50 {offsets = [0, 128], sizes = [8, 128], strides = [1, 1]} : vector<8x384xf32> to vector<8x128xf32>
    %63 = vector.extract_strided_slice %53 {offsets = [0, 128], sizes = [8, 128], strides = [1, 1]} : vector<8x384xf32> to vector<8x128xf32>
    %64 = arith.addf %62, %63 : vector<8x128xf32>
    %65 = arith.negf %64 : vector<8x128xf32>
    %66 = math.exp %65 : vector<8x128xf32>
    %cst_22 = arith.constant 1.000000e+00 : f32
    %67 = vector.broadcast %cst_22 : f32 to vector<8x128xf32>
    %68 = arith.addf %67, %66 : vector<8x128xf32>
    %69 = arith.divf %67, %68 : vector<8x128xf32>
    %70 = vector.extract_strided_slice %50 {offsets = [0, 256], sizes = [8, 128], strides = [1, 1]} : vector<8x384xf32> to vector<8x128xf32>
    %71 = vector.extract_strided_slice %53 {offsets = [0, 256], sizes = [8, 128], strides = [1, 1]} : vector<8x384xf32> to vector<8x128xf32>
    %72 = arith.mulf %61, %71 : vector<8x128xf32>
    %73 = arith.addf %70, %72 : vector<8x128xf32>
    %74 = math.tanh %73 : vector<8x128xf32>
    %cst_23 = arith.constant 1.000000e+00 : f32
    %75 = vector.broadcast %cst_23 : f32 to vector<8x128xf32>
    %76 = arith.subf %75, %69 : vector<8x128xf32>
    %77 = arith.mulf %76, %74 : vector<8x128xf32>
    %78 = arith.mulf %69, %49 : vector<8x128xf32>
    %79 = arith.addf %77, %78 : vector<8x128xf32>
    %80 = vector.extract_strided_slice %14 {offsets = [16, 0], sizes = [8, 384], strides = [1, 1]} : vector<64x384xf32> to vector<8x384xf32>
    %81 = arith.truncf %79 : vector<8x128xf32> to vector<8x128xbf16>
    %cst_24 = arith.constant dense<0.000000e+00> : vector<8x384xf32>
    %82 = tpu.matmul %81, %15, %cst_24 {dimension_numbers = #tpu.dot_dimension_numbers<[1], [0], [0], [1], [0, 0, 1, 1], [], []>} : vector<8x128xbf16>, vector<128x384xbf16>, vector<8x384xf32> -> vector<8x384xf32>
    %83 = arith.addf %82, %18 : vector<8x384xf32>
    %84 = vector.extract_strided_slice %80 {offsets = [0, 0], sizes = [8, 128], strides = [1, 1]} : vector<8x384xf32> to vector<8x128xf32>
    %85 = vector.extract_strided_slice %83 {offsets = [0, 0], sizes = [8, 128], strides = [1, 1]} : vector<8x384xf32> to vector<8x128xf32>
    %86 = arith.addf %84, %85 : vector<8x128xf32>
    %87 = arith.negf %86 : vector<8x128xf32>
    %88 = math.exp %87 : vector<8x128xf32>
    %cst_25 = arith.constant 1.000000e+00 : f32
    %89 = vector.broadcast %cst_25 : f32 to vector<8x128xf32>
    %90 = arith.addf %89, %88 : vector<8x128xf32>
    %91 = arith.divf %89, %90 : vector<8x128xf32>
    %92 = vector.extract_strided_slice %80 {offsets = [0, 128], sizes = [8, 128], strides = [1, 1]} : vector<8x384xf32> to vector<8x128xf32>
    %93 = vector.extract_strided_slice %83 {offsets = [0, 128], sizes = [8, 128], strides = [1, 1]} : vector<8x384xf32> to vector<8x128xf32>
    %94 = arith.addf %92, %93 : vector<8x128xf32>
    %95 = arith.negf %94 : vector<8x128xf32>
    %96 = math.exp %95 : vector<8x128xf32>
    %cst_26 = arith.constant 1.000000e+00 : f32
    %97 = vector.broadcast %cst_26 : f32 to vector<8x128xf32>
    %98 = arith.addf %97, %96 : vector<8x128xf32>
    %99 = arith.divf %97, %98 : vector<8x128xf32>
    %100 = vector.extract_strided_slice %80 {offsets = [0, 256], sizes = [8, 128], strides = [1, 1]} : vector<8x384xf32> to vector<8x128xf32>
    %101 = vector.extract_strided_slice %83 {offsets = [0, 256], sizes = [8, 128], strides = [1, 1]} : vector<8x384xf32> to vector<8x128xf32>
    %102 = arith.mulf %91, %101 : vector<8x128xf32>
    %103 = arith.addf %100, %102 : vector<8x128xf32>
    %104 = math.tanh %103 : vector<8x128xf32>
    %cst_27 = arith.constant 1.000000e+00 : f32
    %105 = vector.broadcast %cst_27 : f32 to vector<8x128xf32>
    %106 = arith.subf %105, %99 : vector<8x128xf32>
    %107 = arith.mulf %106, %104 : vector<8x128xf32>
    %108 = arith.mulf %99, %79 : vector<8x128xf32>
    %109 = arith.addf %107, %108 : vector<8x128xf32>
    %110 = vector.extract_strided_slice %14 {offsets = [24, 0], sizes = [8, 384], strides = [1, 1]} : vector<64x384xf32> to vector<8x384xf32>
    %111 = arith.truncf %109 : vector<8x128xf32> to vector<8x128xbf16>
    %cst_28 = arith.constant dense<0.000000e+00> : vector<8x384xf32>
    %112 = tpu.matmul %111, %15, %cst_28 {dimension_numbers = #tpu.dot_dimension_numbers<[1], [0], [0], [1], [0, 0, 1, 1], [], []>} : vector<8x128xbf16>, vector<128x384xbf16>, vector<8x384xf32> -> vector<8x384xf32>
    %113 = arith.addf %112, %18 : vector<8x384xf32>
    %114 = vector.extract_strided_slice %110 {offsets = [0, 0], sizes = [8, 128], strides = [1, 1]} : vector<8x384xf32> to vector<8x128xf32>
    %115 = vector.extract_strided_slice %113 {offsets = [0, 0], sizes = [8, 128], strides = [1, 1]} : vector<8x384xf32> to vector<8x128xf32>
    %116 = arith.addf %114, %115 : vector<8x128xf32>
    %117 = arith.negf %116 : vector<8x128xf32>
    %118 = math.exp %117 : vector<8x128xf32>
    %cst_29 = arith.constant 1.000000e+00 : f32
    %119 = vector.broadcast %cst_29 : f32 to vector<8x128xf32>
    %120 = arith.addf %119, %118 : vector<8x128xf32>
    %121 = arith.divf %119, %120 : vector<8x128xf32>
    %122 = vector.extract_strided_slice %110 {offsets = [0, 128], sizes = [8, 128], strides = [1, 1]} : vector<8x384xf32> to vector<8x128xf32>
    %123 = vector.extract_strided_slice %113 {offsets = [0, 128], sizes = [8, 128], strides = [1, 1]} : vector<8x384xf32> to vector<8x128xf32>
    %124 = arith.addf %122, %123 : vector<8x128xf32>
    %125 = arith.negf %124 : vector<8x128xf32>
    %126 = math.exp %125 : vector<8x128xf32>
    %cst_30 = arith.constant 1.000000e+00 : f32
    %127 = vector.broadcast %cst_30 : f32 to vector<8x128xf32>
    %128 = arith.addf %127, %126 : vector<8x128xf32>
    %129 = arith.divf %127, %128 : vector<8x128xf32>
    %130 = vector.extract_strided_slice %110 {offsets = [0, 256], sizes = [8, 128], strides = [1, 1]} : vector<8x384xf32> to vector<8x128xf32>
    %131 = vector.extract_strided_slice %113 {offsets = [0, 256], sizes = [8, 128], strides = [1, 1]} : vector<8x384xf32> to vector<8x128xf32>
    %132 = arith.mulf %121, %131 : vector<8x128xf32>
    %133 = arith.addf %130, %132 : vector<8x128xf32>
    %134 = math.tanh %133 : vector<8x128xf32>
    %cst_31 = arith.constant 1.000000e+00 : f32
    %135 = vector.broadcast %cst_31 : f32 to vector<8x128xf32>
    %136 = arith.subf %135, %129 : vector<8x128xf32>
    %137 = arith.mulf %136, %134 : vector<8x128xf32>
    %138 = arith.mulf %129, %109 : vector<8x128xf32>
    %139 = arith.addf %137, %138 : vector<8x128xf32>
    %140 = vector.extract_strided_slice %14 {offsets = [32, 0], sizes = [8, 384], strides = [1, 1]} : vector<64x384xf32> to vector<8x384xf32>
    %141 = arith.truncf %139 : vector<8x128xf32> to vector<8x128xbf16>
    %cst_32 = arith.constant dense<0.000000e+00> : vector<8x384xf32>
    %142 = tpu.matmul %141, %15, %cst_32 {dimension_numbers = #tpu.dot_dimension_numbers<[1], [0], [0], [1], [0, 0, 1, 1], [], []>} : vector<8x128xbf16>, vector<128x384xbf16>, vector<8x384xf32> -> vector<8x384xf32>
    %143 = arith.addf %142, %18 : vector<8x384xf32>
    %144 = vector.extract_strided_slice %140 {offsets = [0, 0], sizes = [8, 128], strides = [1, 1]} : vector<8x384xf32> to vector<8x128xf32>
    %145 = vector.extract_strided_slice %143 {offsets = [0, 0], sizes = [8, 128], strides = [1, 1]} : vector<8x384xf32> to vector<8x128xf32>
    %146 = arith.addf %144, %145 : vector<8x128xf32>
    %147 = arith.negf %146 : vector<8x128xf32>
    %148 = math.exp %147 : vector<8x128xf32>
    %cst_33 = arith.constant 1.000000e+00 : f32
    %149 = vector.broadcast %cst_33 : f32 to vector<8x128xf32>
    %150 = arith.addf %149, %148 : vector<8x128xf32>
    %151 = arith.divf %149, %150 : vector<8x128xf32>
    %152 = vector.extract_strided_slice %140 {offsets = [0, 128], sizes = [8, 128], strides = [1, 1]} : vector<8x384xf32> to vector<8x128xf32>
    %153 = vector.extract_strided_slice %143 {offsets = [0, 128], sizes = [8, 128], strides = [1, 1]} : vector<8x384xf32> to vector<8x128xf32>
    %154 = arith.addf %152, %153 : vector<8x128xf32>
    %155 = arith.negf %154 : vector<8x128xf32>
    %156 = math.exp %155 : vector<8x128xf32>
    %cst_34 = arith.constant 1.000000e+00 : f32
    %157 = vector.broadcast %cst_34 : f32 to vector<8x128xf32>
    %158 = arith.addf %157, %156 : vector<8x128xf32>
    %159 = arith.divf %157, %158 : vector<8x128xf32>
    %160 = vector.extract_strided_slice %140 {offsets = [0, 256], sizes = [8, 128], strides = [1, 1]} : vector<8x384xf32> to vector<8x128xf32>
    %161 = vector.extract_strided_slice %143 {offsets = [0, 256], sizes = [8, 128], strides = [1, 1]} : vector<8x384xf32> to vector<8x128xf32>
    %162 = arith.mulf %151, %161 : vector<8x128xf32>
    %163 = arith.addf %160, %162 : vector<8x128xf32>
    %164 = math.tanh %163 : vector<8x128xf32>
    %cst_35 = arith.constant 1.000000e+00 : f32
    %165 = vector.broadcast %cst_35 : f32 to vector<8x128xf32>
    %166 = arith.subf %165, %159 : vector<8x128xf32>
    %167 = arith.mulf %166, %164 : vector<8x128xf32>
    %168 = arith.mulf %159, %139 : vector<8x128xf32>
    %169 = arith.addf %167, %168 : vector<8x128xf32>
    %170 = vector.extract_strided_slice %14 {offsets = [40, 0], sizes = [8, 384], strides = [1, 1]} : vector<64x384xf32> to vector<8x384xf32>
    %171 = arith.truncf %169 : vector<8x128xf32> to vector<8x128xbf16>
    %cst_36 = arith.constant dense<0.000000e+00> : vector<8x384xf32>
    %172 = tpu.matmul %171, %15, %cst_36 {dimension_numbers = #tpu.dot_dimension_numbers<[1], [0], [0], [1], [0, 0, 1, 1], [], []>} : vector<8x128xbf16>, vector<128x384xbf16>, vector<8x384xf32> -> vector<8x384xf32>
    %173 = arith.addf %172, %18 : vector<8x384xf32>
    %174 = vector.extract_strided_slice %170 {offsets = [0, 0], sizes = [8, 128], strides = [1, 1]} : vector<8x384xf32> to vector<8x128xf32>
    %175 = vector.extract_strided_slice %173 {offsets = [0, 0], sizes = [8, 128], strides = [1, 1]} : vector<8x384xf32> to vector<8x128xf32>
    %176 = arith.addf %174, %175 : vector<8x128xf32>
    %177 = arith.negf %176 : vector<8x128xf32>
    %178 = math.exp %177 : vector<8x128xf32>
    %cst_37 = arith.constant 1.000000e+00 : f32
    %179 = vector.broadcast %cst_37 : f32 to vector<8x128xf32>
    %180 = arith.addf %179, %178 : vector<8x128xf32>
    %181 = arith.divf %179, %180 : vector<8x128xf32>
    %182 = vector.extract_strided_slice %170 {offsets = [0, 128], sizes = [8, 128], strides = [1, 1]} : vector<8x384xf32> to vector<8x128xf32>
    %183 = vector.extract_strided_slice %173 {offsets = [0, 128], sizes = [8, 128], strides = [1, 1]} : vector<8x384xf32> to vector<8x128xf32>
    %184 = arith.addf %182, %183 : vector<8x128xf32>
    %185 = arith.negf %184 : vector<8x128xf32>
    %186 = math.exp %185 : vector<8x128xf32>
    %cst_38 = arith.constant 1.000000e+00 : f32
    %187 = vector.broadcast %cst_38 : f32 to vector<8x128xf32>
    %188 = arith.addf %187, %186 : vector<8x128xf32>
    %189 = arith.divf %187, %188 : vector<8x128xf32>
    %190 = vector.extract_strided_slice %170 {offsets = [0, 256], sizes = [8, 128], strides = [1, 1]} : vector<8x384xf32> to vector<8x128xf32>
    %191 = vector.extract_strided_slice %173 {offsets = [0, 256], sizes = [8, 128], strides = [1, 1]} : vector<8x384xf32> to vector<8x128xf32>
    %192 = arith.mulf %181, %191 : vector<8x128xf32>
    %193 = arith.addf %190, %192 : vector<8x128xf32>
    %194 = math.tanh %193 : vector<8x128xf32>
    %cst_39 = arith.constant 1.000000e+00 : f32
    %195 = vector.broadcast %cst_39 : f32 to vector<8x128xf32>
    %196 = arith.subf %195, %189 : vector<8x128xf32>
    %197 = arith.mulf %196, %194 : vector<8x128xf32>
    %198 = arith.mulf %189, %169 : vector<8x128xf32>
    %199 = arith.addf %197, %198 : vector<8x128xf32>
    %200 = vector.extract_strided_slice %14 {offsets = [48, 0], sizes = [8, 384], strides = [1, 1]} : vector<64x384xf32> to vector<8x384xf32>
    %201 = arith.truncf %199 : vector<8x128xf32> to vector<8x128xbf16>
    %cst_40 = arith.constant dense<0.000000e+00> : vector<8x384xf32>
    %202 = tpu.matmul %201, %15, %cst_40 {dimension_numbers = #tpu.dot_dimension_numbers<[1], [0], [0], [1], [0, 0, 1, 1], [], []>} : vector<8x128xbf16>, vector<128x384xbf16>, vector<8x384xf32> -> vector<8x384xf32>
    %203 = arith.addf %202, %18 : vector<8x384xf32>
    %204 = vector.extract_strided_slice %200 {offsets = [0, 0], sizes = [8, 128], strides = [1, 1]} : vector<8x384xf32> to vector<8x128xf32>
    %205 = vector.extract_strided_slice %203 {offsets = [0, 0], sizes = [8, 128], strides = [1, 1]} : vector<8x384xf32> to vector<8x128xf32>
    %206 = arith.addf %204, %205 : vector<8x128xf32>
    %207 = arith.negf %206 : vector<8x128xf32>
    %208 = math.exp %207 : vector<8x128xf32>
    %cst_41 = arith.constant 1.000000e+00 : f32
    %209 = vector.broadcast %cst_41 : f32 to vector<8x128xf32>
    %210 = arith.addf %209, %208 : vector<8x128xf32>
    %211 = arith.divf %209, %210 : vector<8x128xf32>
    %212 = vector.extract_strided_slice %200 {offsets = [0, 128], sizes = [8, 128], strides = [1, 1]} : vector<8x384xf32> to vector<8x128xf32>
    %213 = vector.extract_strided_slice %203 {offsets = [0, 128], sizes = [8, 128], strides = [1, 1]} : vector<8x384xf32> to vector<8x128xf32>
    %214 = arith.addf %212, %213 : vector<8x128xf32>
    %215 = arith.negf %214 : vector<8x128xf32>
    %216 = math.exp %215 : vector<8x128xf32>
    %cst_42 = arith.constant 1.000000e+00 : f32
    %217 = vector.broadcast %cst_42 : f32 to vector<8x128xf32>
    %218 = arith.addf %217, %216 : vector<8x128xf32>
    %219 = arith.divf %217, %218 : vector<8x128xf32>
    %220 = vector.extract_strided_slice %200 {offsets = [0, 256], sizes = [8, 128], strides = [1, 1]} : vector<8x384xf32> to vector<8x128xf32>
    %221 = vector.extract_strided_slice %203 {offsets = [0, 256], sizes = [8, 128], strides = [1, 1]} : vector<8x384xf32> to vector<8x128xf32>
    %222 = arith.mulf %211, %221 : vector<8x128xf32>
    %223 = arith.addf %220, %222 : vector<8x128xf32>
    %224 = math.tanh %223 : vector<8x128xf32>
    %cst_43 = arith.constant 1.000000e+00 : f32
    %225 = vector.broadcast %cst_43 : f32 to vector<8x128xf32>
    %226 = arith.subf %225, %219 : vector<8x128xf32>
    %227 = arith.mulf %226, %224 : vector<8x128xf32>
    %228 = arith.mulf %219, %199 : vector<8x128xf32>
    %229 = arith.addf %227, %228 : vector<8x128xf32>
    %230 = vector.extract_strided_slice %14 {offsets = [56, 0], sizes = [8, 384], strides = [1, 1]} : vector<64x384xf32> to vector<8x384xf32>
    %231 = arith.truncf %229 : vector<8x128xf32> to vector<8x128xbf16>
    %cst_44 = arith.constant dense<0.000000e+00> : vector<8x384xf32>
    %232 = tpu.matmul %231, %15, %cst_44 {dimension_numbers = #tpu.dot_dimension_numbers<[1], [0], [0], [1], [0, 0, 1, 1], [], []>} : vector<8x128xbf16>, vector<128x384xbf16>, vector<8x384xf32> -> vector<8x384xf32>
    %233 = arith.addf %232, %18 : vector<8x384xf32>
    %234 = vector.extract_strided_slice %230 {offsets = [0, 0], sizes = [8, 128], strides = [1, 1]} : vector<8x384xf32> to vector<8x128xf32>
    %235 = vector.extract_strided_slice %233 {offsets = [0, 0], sizes = [8, 128], strides = [1, 1]} : vector<8x384xf32> to vector<8x128xf32>
    %236 = arith.addf %234, %235 : vector<8x128xf32>
    %237 = arith.negf %236 : vector<8x128xf32>
    %238 = math.exp %237 : vector<8x128xf32>
    %cst_45 = arith.constant 1.000000e+00 : f32
    %239 = vector.broadcast %cst_45 : f32 to vector<8x128xf32>
    %240 = arith.addf %239, %238 : vector<8x128xf32>
    %241 = arith.divf %239, %240 : vector<8x128xf32>
    %242 = vector.extract_strided_slice %230 {offsets = [0, 128], sizes = [8, 128], strides = [1, 1]} : vector<8x384xf32> to vector<8x128xf32>
    %243 = vector.extract_strided_slice %233 {offsets = [0, 128], sizes = [8, 128], strides = [1, 1]} : vector<8x384xf32> to vector<8x128xf32>
    %244 = arith.addf %242, %243 : vector<8x128xf32>
    %245 = arith.negf %244 : vector<8x128xf32>
    %246 = math.exp %245 : vector<8x128xf32>
    %cst_46 = arith.constant 1.000000e+00 : f32
    %247 = vector.broadcast %cst_46 : f32 to vector<8x128xf32>
    %248 = arith.addf %247, %246 : vector<8x128xf32>
    %249 = arith.divf %247, %248 : vector<8x128xf32>
    %250 = vector.extract_strided_slice %230 {offsets = [0, 256], sizes = [8, 128], strides = [1, 1]} : vector<8x384xf32> to vector<8x128xf32>
    %251 = vector.extract_strided_slice %233 {offsets = [0, 256], sizes = [8, 128], strides = [1, 1]} : vector<8x384xf32> to vector<8x128xf32>
    %252 = arith.mulf %241, %251 : vector<8x128xf32>
    %253 = arith.addf %250, %252 : vector<8x128xf32>
    %254 = math.tanh %253 : vector<8x128xf32>
    %cst_47 = arith.constant 1.000000e+00 : f32
    %255 = vector.broadcast %cst_47 : f32 to vector<8x128xf32>
    %256 = arith.subf %255, %249 : vector<8x128xf32>
    %257 = arith.mulf %256, %254 : vector<8x128xf32>
    %258 = arith.mulf %249, %229 : vector<8x128xf32>
    %259 = arith.addf %257, %258 : vector<8x128xf32>
    %c0_48 = arith.constant 0 : index
    %c0_49 = arith.constant 0 : index
    %260 = vector.load %arg8[%c0_48, %c0_49] : memref<256x384xbf16, #tpu.memory_space<vmem>>, vector<256x384xbf16>
    %c0_50 = arith.constant 0 : index
    %c0_51 = arith.constant 0 : index
    %261 = vector.load %arg10[%c0_50, %c0_51] : memref<128x512xbf16, #tpu.memory_space<vmem>>, vector<128x512xbf16>
    %c0_52 = arith.constant 0 : index
    %c0_53 = arith.constant 0 : index
    %262 = vector.load %arg9[%c0_52, %c0_53] : memref<1x384xf32, #tpu.memory_space<vmem>>, vector<1x384xf32>
    %263 = vector.shape_cast %262 : vector<1x384xf32> to vector<1x384xf32>
    %264 = vector.broadcast %263 : vector<1x384xf32> to vector<8x384xf32>
    %c0_54 = arith.constant 0 : index
    %c0_55 = arith.constant 0 : index
    %265 = vector.load %arg11[%c0_54, %c0_55] : memref<1x512xf32, #tpu.memory_space<vmem>>, vector<1x512xf32>
    %266 = vector.shape_cast %265 : vector<1x512xf32> to vector<1x512xf32>
    %267 = vector.broadcast %266 : vector<1x512xf32> to vector<8x512xf32>
    %268 = tpu.iota {dimensions = array<i32: 1>} : vector<8x128xi32>
    %269 = arith.sitofp %268 : vector<8x128xi32> to vector<8x128xf32>
    %270 = tpu.iota {dimensions = array<i32: 1>} : vector<8x8xi32>
    %c1_i32 = arith.constant 1 : i32
    %271 = vector.broadcast %c1_i32 : i32 to vector<8x128xi32>
    %272 = arith.cmpi eq, %268, %271 : vector<8x128xi32>
    %273 = arith.extui %272 : vector<8x128xi1> to vector<8x128xi32>
    %274 = arith.sitofp %273 : vector<8x128xi32> to vector<8x128xf32>
    %275 = arith.truncf %259 : vector<8x128xf32> to vector<8x128xbf16>
    %cst_56 = arith.constant dense<0.000000e+00> : vector<8x512xf32>
    %276 = tpu.matmul %275, %261, %cst_56 {dimension_numbers = #tpu.dot_dimension_numbers<[1], [0], [0], [1], [0, 0, 1, 1], [], []>} : vector<8x128xbf16>, vector<128x512xbf16>, vector<8x512xf32> -> vector<8x512xf32>
    %277 = arith.addf %276, %267 : vector<8x512xf32>
    %278 = vector.extract_strided_slice %277 {offsets = [0, 0], sizes = [8, 384], strides = [1, 1]} : vector<8x512xf32> to vector<8x384xf32>
    %c0_i32 = arith.constant 0 : i32
    %279 = vector.broadcast %c0_i32 : i32 to vector<8x8xi32>
    %280 = arith.mulf %49, %259 : vector<8x128xf32>
    %cst_57 = arith.constant dense<0.000000e+00> : vector<8xf32>
    %281 = vector.multi_reduction <add>, %280, %cst_57 [1] : vector<8x128xf32> to vector<8xf32>
    %282 = vector.shape_cast %281 : vector<8xf32> to vector<8x1xf32>
    %283 = arith.mulf %79, %259 : vector<8x128xf32>
    %cst_58 = arith.constant dense<0.000000e+00> : vector<8xf32>
    %284 = vector.multi_reduction <add>, %283, %cst_58 [1] : vector<8x128xf32> to vector<8xf32>
    %285 = vector.shape_cast %284 : vector<8xf32> to vector<8x1xf32>
    %286 = arith.mulf %109, %259 : vector<8x128xf32>
    %cst_59 = arith.constant dense<0.000000e+00> : vector<8xf32>
    %287 = vector.multi_reduction <add>, %286, %cst_59 [1] : vector<8x128xf32> to vector<8xf32>
    %288 = vector.shape_cast %287 : vector<8xf32> to vector<8x1xf32>
    %289 = arith.mulf %139, %259 : vector<8x128xf32>
    %cst_60 = arith.constant dense<0.000000e+00> : vector<8xf32>
    %290 = vector.multi_reduction <add>, %289, %cst_60 [1] : vector<8x128xf32> to vector<8xf32>
    %291 = vector.shape_cast %290 : vector<8xf32> to vector<8x1xf32>
    %292 = arith.mulf %169, %259 : vector<8x128xf32>
    %cst_61 = arith.constant dense<0.000000e+00> : vector<8xf32>
    %293 = vector.multi_reduction <add>, %292, %cst_61 [1] : vector<8x128xf32> to vector<8xf32>
    %294 = vector.shape_cast %293 : vector<8xf32> to vector<8x1xf32>
    %295 = arith.mulf %199, %259 : vector<8x128xf32>
    %cst_62 = arith.constant dense<0.000000e+00> : vector<8xf32>
    %296 = vector.multi_reduction <add>, %295, %cst_62 [1] : vector<8x128xf32> to vector<8xf32>
    %297 = vector.shape_cast %296 : vector<8xf32> to vector<8x1xf32>
    %298 = arith.mulf %229, %259 : vector<8x128xf32>
    %cst_63 = arith.constant dense<0.000000e+00> : vector<8xf32>
    %299 = vector.multi_reduction <add>, %298, %cst_63 [1] : vector<8x128xf32> to vector<8xf32>
    %300 = vector.shape_cast %299 : vector<8xf32> to vector<8x1xf32>
    %301 = arith.mulf %259, %259 : vector<8x128xf32>
    %cst_64 = arith.constant dense<0.000000e+00> : vector<8xf32>
    %302 = vector.multi_reduction <add>, %301, %cst_64 [1] : vector<8x128xf32> to vector<8xf32>
    %303 = vector.shape_cast %302 : vector<8xf32> to vector<8x1xf32>
    %304 = arith.maximumf %282, %285 : vector<8x1xf32>
    %305 = arith.maximumf %304, %288 : vector<8x1xf32>
    %306 = arith.maximumf %305, %291 : vector<8x1xf32>
    %307 = arith.maximumf %306, %294 : vector<8x1xf32>
    %308 = arith.maximumf %307, %297 : vector<8x1xf32>
    %309 = arith.maximumf %308, %300 : vector<8x1xf32>
    %310 = arith.maximumf %309, %303 : vector<8x1xf32>
    %311 = arith.subf %282, %310 : vector<8x1xf32>
    %312 = math.exp %311 : vector<8x1xf32>
    %313 = arith.subf %285, %310 : vector<8x1xf32>
    %314 = math.exp %313 : vector<8x1xf32>
    %315 = arith.subf %288, %310 : vector<8x1xf32>
    %316 = math.exp %315 : vector<8x1xf32>
    %317 = arith.subf %291, %310 : vector<8x1xf32>
    %318 = math.exp %317 : vector<8x1xf32>
    %319 = arith.subf %294, %310 : vector<8x1xf32>
    %320 = math.exp %319 : vector<8x1xf32>
    %321 = arith.subf %297, %310 : vector<8x1xf32>
    %322 = math.exp %321 : vector<8x1xf32>
    %323 = arith.subf %300, %310 : vector<8x1xf32>
    %324 = math.exp %323 : vector<8x1xf32>
    %325 = arith.subf %303, %310 : vector<8x1xf32>
    %326 = math.exp %325 : vector<8x1xf32>
    %327 = arith.addf %312, %314 : vector<8x1xf32>
    %328 = arith.addf %327, %316 : vector<8x1xf32>
    %329 = arith.addf %328, %318 : vector<8x1xf32>
    %330 = arith.addf %329, %320 : vector<8x1xf32>
    %331 = arith.addf %330, %322 : vector<8x1xf32>
    %332 = arith.addf %331, %324 : vector<8x1xf32>
    %333 = arith.addf %332, %326 : vector<8x1xf32>
    %cst_65 = arith.constant 1.000000e+00 : f32
    %334 = vector.broadcast %cst_65 : f32 to vector<8x1xf32>
    %335 = arith.divf %334, %333 : vector<8x1xf32>
    %336 = arith.mulf %312, %335 : vector<8x1xf32>
    %337 = vector.broadcast %336 : vector<8x1xf32> to vector<8x128xf32>
    %338 = arith.mulf %337, %49 : vector<8x128xf32>
    %339 = arith.mulf %314, %335 : vector<8x1xf32>
    %340 = vector.broadcast %339 : vector<8x1xf32> to vector<8x128xf32>
    %341 = arith.mulf %340, %79 : vector<8x128xf32>
    %342 = arith.addf %338, %341 : vector<8x128xf32>
    %343 = arith.mulf %316, %335 : vector<8x1xf32>
    %344 = vector.broadcast %343 : vector<8x1xf32> to vector<8x128xf32>
    %345 = arith.mulf %344, %109 : vector<8x128xf32>
    %346 = arith.addf %342, %345 : vector<8x128xf32>
    %347 = arith.mulf %318, %335 : vector<8x1xf32>
    %348 = vector.broadcast %347 : vector<8x1xf32> to vector<8x128xf32>
    %349 = arith.mulf %348, %139 : vector<8x128xf32>
    %350 = arith.addf %346, %349 : vector<8x128xf32>
    %351 = arith.mulf %320, %335 : vector<8x1xf32>
    %352 = vector.broadcast %351 : vector<8x1xf32> to vector<8x128xf32>
    %353 = arith.mulf %352, %169 : vector<8x128xf32>
    %354 = arith.addf %350, %353 : vector<8x128xf32>
    %355 = arith.mulf %322, %335 : vector<8x1xf32>
    %356 = vector.broadcast %355 : vector<8x1xf32> to vector<8x128xf32>
    %357 = arith.mulf %356, %199 : vector<8x128xf32>
    %358 = arith.addf %354, %357 : vector<8x128xf32>
    %359 = arith.mulf %324, %335 : vector<8x1xf32>
    %360 = vector.broadcast %359 : vector<8x1xf32> to vector<8x128xf32>
    %361 = arith.mulf %360, %229 : vector<8x128xf32>
    %362 = arith.addf %358, %361 : vector<8x128xf32>
    %363 = arith.mulf %326, %335 : vector<8x1xf32>
    %364 = vector.broadcast %363 : vector<8x1xf32> to vector<8x128xf32>
    %365 = arith.mulf %364, %259 : vector<8x128xf32>
    %366 = arith.addf %362, %365 : vector<8x128xf32>
    %367 = tpu.concatenate %274, %366 in 1 : vector<8x128xf32>, vector<8x128xf32> -> vector<8x256xf32>
    %368 = arith.truncf %367 : vector<8x256xf32> to vector<8x256xbf16>
    %cst_66 = arith.constant dense<0.000000e+00> : vector<8x384xf32>
    %369 = tpu.matmul %368, %260, %cst_66 {dimension_numbers = #tpu.dot_dimension_numbers<[1], [0], [0], [1], [0, 0, 1, 1], [], []>} : vector<8x256xbf16>, vector<256x384xbf16>, vector<8x384xf32> -> vector<8x384xf32>
    %370 = arith.addf %369, %264 : vector<8x384xf32>
    %371 = vector.extract_strided_slice %370 {offsets = [0, 0], sizes = [8, 128], strides = [1, 1]} : vector<8x384xf32> to vector<8x128xf32>
    %372 = vector.extract_strided_slice %278 {offsets = [0, 0], sizes = [8, 128], strides = [1, 1]} : vector<8x384xf32> to vector<8x128xf32>
    %373 = arith.addf %371, %372 : vector<8x128xf32>
    %374 = arith.negf %373 : vector<8x128xf32>
    %375 = math.exp %374 : vector<8x128xf32>
    %cst_67 = arith.constant 1.000000e+00 : f32
    %376 = vector.broadcast %cst_67 : f32 to vector<8x128xf32>
    %377 = arith.addf %376, %375 : vector<8x128xf32>
    %378 = arith.divf %376, %377 : vector<8x128xf32>
    %379 = vector.extract_strided_slice %370 {offsets = [0, 128], sizes = [8, 128], strides = [1, 1]} : vector<8x384xf32> to vector<8x128xf32>
    %380 = vector.extract_strided_slice %278 {offsets = [0, 128], sizes = [8, 128], strides = [1, 1]} : vector<8x384xf32> to vector<8x128xf32>
    %381 = arith.addf %379, %380 : vector<8x128xf32>
    %382 = arith.negf %381 : vector<8x128xf32>
    %383 = math.exp %382 : vector<8x128xf32>
    %cst_68 = arith.constant 1.000000e+00 : f32
    %384 = vector.broadcast %cst_68 : f32 to vector<8x128xf32>
    %385 = arith.addf %384, %383 : vector<8x128xf32>
    %386 = arith.divf %384, %385 : vector<8x128xf32>
    %387 = vector.extract_strided_slice %370 {offsets = [0, 256], sizes = [8, 128], strides = [1, 1]} : vector<8x384xf32> to vector<8x128xf32>
    %388 = vector.extract_strided_slice %278 {offsets = [0, 256], sizes = [8, 128], strides = [1, 1]} : vector<8x384xf32> to vector<8x128xf32>
    %389 = arith.mulf %378, %388 : vector<8x128xf32>
    %390 = arith.addf %387, %389 : vector<8x128xf32>
    %391 = math.tanh %390 : vector<8x128xf32>
    %cst_69 = arith.constant 1.000000e+00 : f32
    %392 = vector.broadcast %cst_69 : f32 to vector<8x128xf32>
    %393 = arith.subf %392, %386 : vector<8x128xf32>
    %394 = arith.mulf %393, %391 : vector<8x128xf32>
    %395 = arith.mulf %386, %259 : vector<8x128xf32>
    %396 = arith.addf %394, %395 : vector<8x128xf32>
    %397 = arith.truncf %396 : vector<8x128xf32> to vector<8x128xbf16>
    %cst_70 = arith.constant dense<0.000000e+00> : vector<8x512xf32>
    %398 = tpu.matmul %397, %261, %cst_70 {dimension_numbers = #tpu.dot_dimension_numbers<[1], [0], [0], [1], [0, 0, 1, 1], [], []>} : vector<8x128xbf16>, vector<128x512xbf16>, vector<8x512xf32> -> vector<8x512xf32>
    %399 = arith.addf %398, %267 : vector<8x512xf32>
    %400 = vector.extract_strided_slice %399 {offsets = [0, 0], sizes = [8, 384], strides = [1, 1]} : vector<8x512xf32> to vector<8x384xf32>
    %401 = vector.extract_strided_slice %399 {offsets = [0, 384], sizes = [8, 128], strides = [1, 1]} : vector<8x512xf32> to vector<8x128xf32>
    %cst_71 = arith.constant dense<0xFF800000> : vector<8xf32>
    %402 = vector.multi_reduction <maximumf>, %401, %cst_71 [1] : vector<8x128xf32> to vector<8xf32>
    %403 = vector.shape_cast %402 : vector<8xf32> to vector<8x1xf32>
    %404 = vector.broadcast %403 : vector<8x1xf32> to vector<8x128xf32>
    %405 = arith.subf %401, %404 : vector<8x128xf32>
    %406 = math.exp %405 : vector<8x128xf32>
    %407 = vector.broadcast %403 : vector<8x1xf32> to vector<8x128xf32>
    %408 = arith.subf %401, %407 : vector<8x128xf32>
    %cst_72 = arith.constant dense<0.000000e+00> : vector<8xf32>
    %409 = vector.multi_reduction <add>, %406, %cst_72 [1] : vector<8x128xf32> to vector<8xf32>
    %410 = vector.shape_cast %409 : vector<8xf32> to vector<8x1xf32>
    %411 = math.log %410 : vector<8x1xf32>
    %412 = vector.broadcast %411 : vector<8x1xf32> to vector<8x128xf32>
    %413 = arith.subf %408, %412 : vector<8x128xf32>
    %414 = vector.broadcast %403 : vector<8x1xf32> to vector<8x128xf32>
    %415 = arith.cmpf oge, %401, %414 : vector<8x128xf32>
    %cst_73 = arith.constant 1.280000e+02 : f32
    %416 = vector.broadcast %cst_73 : f32 to vector<8x128xf32>
    %417 = arith.select %415, %269, %416 : vector<8x128xi1>, vector<8x128xf32>
    %cst_74 = arith.constant dense<0x7F800000> : vector<8xf32>
    %418 = vector.multi_reduction <minimumf>, %417, %cst_74 [1] : vector<8x128xf32> to vector<8xf32>
    %419 = vector.shape_cast %418 : vector<8xf32> to vector<8x1xf32>
    %cst_75 = arith.constant 1.270000e+02 : f32
    %420 = vector.broadcast %cst_75 : f32 to vector<8x1xf32>
    %421 = arith.minimumf %419, %420 : vector<8x1xf32>
    %422 = arith.fptosi %421 : vector<8x1xf32> to vector<8x1xi32>
    %423 = vector.broadcast %422 : vector<8x1xi32> to vector<8x128xi32>
    %424 = arith.cmpi eq, %268, %423 : vector<8x128xi32>
    %425 = arith.extui %424 : vector<8x128xi1> to vector<8x128xi32>
    %426 = arith.sitofp %425 : vector<8x128xi32> to vector<8x128xf32>
    %c0_i32_76 = arith.constant 0 : i32
    %427 = vector.broadcast %c0_i32_76 : i32 to vector<8x8xi32>
    %428 = arith.cmpi eq, %270, %427 : vector<8x8xi32>
    %429 = vector.shape_cast %422 : vector<8x1xi32> to vector<8x1xi32>
    %430 = vector.broadcast %429 : vector<8x1xi32> to vector<8x8xi32>
    %431 = arith.select %428, %430, %279 : vector<8x8xi1>, vector<8x8xi32>
    %432 = arith.mulf %49, %396 : vector<8x128xf32>
    %cst_77 = arith.constant dense<0.000000e+00> : vector<8xf32>
    %433 = vector.multi_reduction <add>, %432, %cst_77 [1] : vector<8x128xf32> to vector<8xf32>
    %434 = vector.shape_cast %433 : vector<8xf32> to vector<8x1xf32>
    %435 = arith.mulf %79, %396 : vector<8x128xf32>
    %cst_78 = arith.constant dense<0.000000e+00> : vector<8xf32>
    %436 = vector.multi_reduction <add>, %435, %cst_78 [1] : vector<8x128xf32> to vector<8xf32>
    %437 = vector.shape_cast %436 : vector<8xf32> to vector<8x1xf32>
    %438 = arith.mulf %109, %396 : vector<8x128xf32>
    %cst_79 = arith.constant dense<0.000000e+00> : vector<8xf32>
    %439 = vector.multi_reduction <add>, %438, %cst_79 [1] : vector<8x128xf32> to vector<8xf32>
    %440 = vector.shape_cast %439 : vector<8xf32> to vector<8x1xf32>
    %441 = arith.mulf %139, %396 : vector<8x128xf32>
    %cst_80 = arith.constant dense<0.000000e+00> : vector<8xf32>
    %442 = vector.multi_reduction <add>, %441, %cst_80 [1] : vector<8x128xf32> to vector<8xf32>
    %443 = vector.shape_cast %442 : vector<8xf32> to vector<8x1xf32>
    %444 = arith.mulf %169, %396 : vector<8x128xf32>
    %cst_81 = arith.constant dense<0.000000e+00> : vector<8xf32>
    %445 = vector.multi_reduction <add>, %444, %cst_81 [1] : vector<8x128xf32> to vector<8xf32>
    %446 = vector.shape_cast %445 : vector<8xf32> to vector<8x1xf32>
    %447 = arith.mulf %199, %396 : vector<8x128xf32>
    %cst_82 = arith.constant dense<0.000000e+00> : vector<8xf32>
    %448 = vector.multi_reduction <add>, %447, %cst_82 [1] : vector<8x128xf32> to vector<8xf32>
    %449 = vector.shape_cast %448 : vector<8xf32> to vector<8x1xf32>
    %450 = arith.mulf %229, %396 : vector<8x128xf32>
    %cst_83 = arith.constant dense<0.000000e+00> : vector<8xf32>
    %451 = vector.multi_reduction <add>, %450, %cst_83 [1] : vector<8x128xf32> to vector<8xf32>
    %452 = vector.shape_cast %451 : vector<8xf32> to vector<8x1xf32>
    %453 = arith.mulf %259, %396 : vector<8x128xf32>
    %cst_84 = arith.constant dense<0.000000e+00> : vector<8xf32>
    %454 = vector.multi_reduction <add>, %453, %cst_84 [1] : vector<8x128xf32> to vector<8xf32>
    %455 = vector.shape_cast %454 : vector<8xf32> to vector<8x1xf32>
    %456 = arith.maximumf %434, %437 : vector<8x1xf32>
    %457 = arith.maximumf %456, %440 : vector<8x1xf32>
    %458 = arith.maximumf %457, %443 : vector<8x1xf32>
    %459 = arith.maximumf %458, %446 : vector<8x1xf32>
    %460 = arith.maximumf %459, %449 : vector<8x1xf32>
    %461 = arith.maximumf %460, %452 : vector<8x1xf32>
    %462 = arith.maximumf %461, %455 : vector<8x1xf32>
    %463 = arith.subf %434, %462 : vector<8x1xf32>
    %464 = math.exp %463 : vector<8x1xf32>
    %465 = arith.subf %437, %462 : vector<8x1xf32>
    %466 = math.exp %465 : vector<8x1xf32>
    %467 = arith.subf %440, %462 : vector<8x1xf32>
    %468 = math.exp %467 : vector<8x1xf32>
    %469 = arith.subf %443, %462 : vector<8x1xf32>
    %470 = math.exp %469 : vector<8x1xf32>
    %471 = arith.subf %446, %462 : vector<8x1xf32>
    %472 = math.exp %471 : vector<8x1xf32>
    %473 = arith.subf %449, %462 : vector<8x1xf32>
    %474 = math.exp %473 : vector<8x1xf32>
    %475 = arith.subf %452, %462 : vector<8x1xf32>
    %476 = math.exp %475 : vector<8x1xf32>
    %477 = arith.subf %455, %462 : vector<8x1xf32>
    %478 = math.exp %477 : vector<8x1xf32>
    %479 = arith.addf %464, %466 : vector<8x1xf32>
    %480 = arith.addf %479, %468 : vector<8x1xf32>
    %481 = arith.addf %480, %470 : vector<8x1xf32>
    %482 = arith.addf %481, %472 : vector<8x1xf32>
    %483 = arith.addf %482, %474 : vector<8x1xf32>
    %484 = arith.addf %483, %476 : vector<8x1xf32>
    %485 = arith.addf %484, %478 : vector<8x1xf32>
    %cst_85 = arith.constant 1.000000e+00 : f32
    %486 = vector.broadcast %cst_85 : f32 to vector<8x1xf32>
    %487 = arith.divf %486, %485 : vector<8x1xf32>
    %488 = arith.mulf %464, %487 : vector<8x1xf32>
    %489 = vector.broadcast %488 : vector<8x1xf32> to vector<8x128xf32>
    %490 = arith.mulf %489, %49 : vector<8x128xf32>
    %491 = arith.mulf %466, %487 : vector<8x1xf32>
    %492 = vector.broadcast %491 : vector<8x1xf32> to vector<8x128xf32>
    %493 = arith.mulf %492, %79 : vector<8x128xf32>
    %494 = arith.addf %490, %493 : vector<8x128xf32>
    %495 = arith.mulf %468, %487 : vector<8x1xf32>
    %496 = vector.broadcast %495 : vector<8x1xf32> to vector<8x128xf32>
    %497 = arith.mulf %496, %109 : vector<8x128xf32>
    %498 = arith.addf %494, %497 : vector<8x128xf32>
    %499 = arith.mulf %470, %487 : vector<8x1xf32>
    %500 = vector.broadcast %499 : vector<8x1xf32> to vector<8x128xf32>
    %501 = arith.mulf %500, %139 : vector<8x128xf32>
    %502 = arith.addf %498, %501 : vector<8x128xf32>
    %503 = arith.mulf %472, %487 : vector<8x1xf32>
    %504 = vector.broadcast %503 : vector<8x1xf32> to vector<8x128xf32>
    %505 = arith.mulf %504, %169 : vector<8x128xf32>
    %506 = arith.addf %502, %505 : vector<8x128xf32>
    %507 = arith.mulf %474, %487 : vector<8x1xf32>
    %508 = vector.broadcast %507 : vector<8x1xf32> to vector<8x128xf32>
    %509 = arith.mulf %508, %199 : vector<8x128xf32>
    %510 = arith.addf %506, %509 : vector<8x128xf32>
    %511 = arith.mulf %476, %487 : vector<8x1xf32>
    %512 = vector.broadcast %511 : vector<8x1xf32> to vector<8x128xf32>
    %513 = arith.mulf %512, %229 : vector<8x128xf32>
    %514 = arith.addf %510, %513 : vector<8x128xf32>
    %515 = arith.mulf %478, %487 : vector<8x1xf32>
    %516 = vector.broadcast %515 : vector<8x1xf32> to vector<8x128xf32>
    %517 = arith.mulf %516, %259 : vector<8x128xf32>
    %518 = arith.addf %514, %517 : vector<8x128xf32>
    %519 = tpu.concatenate %426, %518 in 1 : vector<8x128xf32>, vector<8x128xf32> -> vector<8x256xf32>
    %520 = arith.truncf %519 : vector<8x256xf32> to vector<8x256xbf16>
    %cst_86 = arith.constant dense<0.000000e+00> : vector<8x384xf32>
    %521 = tpu.matmul %520, %260, %cst_86 {dimension_numbers = #tpu.dot_dimension_numbers<[1], [0], [0], [1], [0, 0, 1, 1], [], []>} : vector<8x256xbf16>, vector<256x384xbf16>, vector<8x384xf32> -> vector<8x384xf32>
    %522 = arith.addf %521, %264 : vector<8x384xf32>
    %523 = vector.extract_strided_slice %522 {offsets = [0, 0], sizes = [8, 128], strides = [1, 1]} : vector<8x384xf32> to vector<8x128xf32>
    %524 = vector.extract_strided_slice %400 {offsets = [0, 0], sizes = [8, 128], strides = [1, 1]} : vector<8x384xf32> to vector<8x128xf32>
    %525 = arith.addf %523, %524 : vector<8x128xf32>
    %526 = arith.negf %525 : vector<8x128xf32>
    %527 = math.exp %526 : vector<8x128xf32>
    %cst_87 = arith.constant 1.000000e+00 : f32
    %528 = vector.broadcast %cst_87 : f32 to vector<8x128xf32>
    %529 = arith.addf %528, %527 : vector<8x128xf32>
    %530 = arith.divf %528, %529 : vector<8x128xf32>
    %531 = vector.extract_strided_slice %522 {offsets = [0, 128], sizes = [8, 128], strides = [1, 1]} : vector<8x384xf32> to vector<8x128xf32>
    %532 = vector.extract_strided_slice %400 {offsets = [0, 128], sizes = [8, 128], strides = [1, 1]} : vector<8x384xf32> to vector<8x128xf32>
    %533 = arith.addf %531, %532 : vector<8x128xf32>
    %534 = arith.negf %533 : vector<8x128xf32>
    %535 = math.exp %534 : vector<8x128xf32>
    %cst_88 = arith.constant 1.000000e+00 : f32
    %536 = vector.broadcast %cst_88 : f32 to vector<8x128xf32>
    %537 = arith.addf %536, %535 : vector<8x128xf32>
    %538 = arith.divf %536, %537 : vector<8x128xf32>
    %539 = vector.extract_strided_slice %522 {offsets = [0, 256], sizes = [8, 128], strides = [1, 1]} : vector<8x384xf32> to vector<8x128xf32>
    %540 = vector.extract_strided_slice %400 {offsets = [0, 256], sizes = [8, 128], strides = [1, 1]} : vector<8x384xf32> to vector<8x128xf32>
    %541 = arith.mulf %530, %540 : vector<8x128xf32>
    %542 = arith.addf %539, %541 : vector<8x128xf32>
    %543 = math.tanh %542 : vector<8x128xf32>
    %cst_89 = arith.constant 1.000000e+00 : f32
    %544 = vector.broadcast %cst_89 : f32 to vector<8x128xf32>
    %545 = arith.subf %544, %538 : vector<8x128xf32>
    %546 = arith.mulf %545, %543 : vector<8x128xf32>
    %547 = arith.mulf %538, %396 : vector<8x128xf32>
    %548 = arith.addf %546, %547 : vector<8x128xf32>
    %549 = arith.truncf %548 : vector<8x128xf32> to vector<8x128xbf16>
    %cst_90 = arith.constant dense<0.000000e+00> : vector<8x512xf32>
    %550 = tpu.matmul %549, %261, %cst_90 {dimension_numbers = #tpu.dot_dimension_numbers<[1], [0], [0], [1], [0, 0, 1, 1], [], []>} : vector<8x128xbf16>, vector<128x512xbf16>, vector<8x512xf32> -> vector<8x512xf32>
    %551 = arith.addf %550, %267 : vector<8x512xf32>
    %552 = vector.extract_strided_slice %551 {offsets = [0, 0], sizes = [8, 384], strides = [1, 1]} : vector<8x512xf32> to vector<8x384xf32>
    %553 = vector.extract_strided_slice %551 {offsets = [0, 384], sizes = [8, 128], strides = [1, 1]} : vector<8x512xf32> to vector<8x128xf32>
    %cst_91 = arith.constant dense<0xFF800000> : vector<8xf32>
    %554 = vector.multi_reduction <maximumf>, %553, %cst_91 [1] : vector<8x128xf32> to vector<8xf32>
    %555 = vector.shape_cast %554 : vector<8xf32> to vector<8x1xf32>
    %556 = vector.broadcast %555 : vector<8x1xf32> to vector<8x128xf32>
    %557 = arith.subf %553, %556 : vector<8x128xf32>
    %558 = math.exp %557 : vector<8x128xf32>
    %559 = vector.broadcast %555 : vector<8x1xf32> to vector<8x128xf32>
    %560 = arith.subf %553, %559 : vector<8x128xf32>
    %cst_92 = arith.constant dense<0.000000e+00> : vector<8xf32>
    %561 = vector.multi_reduction <add>, %558, %cst_92 [1] : vector<8x128xf32> to vector<8xf32>
    %562 = vector.shape_cast %561 : vector<8xf32> to vector<8x1xf32>
    %563 = math.log %562 : vector<8x1xf32>
    %564 = vector.broadcast %563 : vector<8x1xf32> to vector<8x128xf32>
    %565 = arith.subf %560, %564 : vector<8x128xf32>
    %566 = vector.broadcast %555 : vector<8x1xf32> to vector<8x128xf32>
    %567 = arith.cmpf oge, %553, %566 : vector<8x128xf32>
    %cst_93 = arith.constant 1.280000e+02 : f32
    %568 = vector.broadcast %cst_93 : f32 to vector<8x128xf32>
    %569 = arith.select %567, %269, %568 : vector<8x128xi1>, vector<8x128xf32>
    %cst_94 = arith.constant dense<0x7F800000> : vector<8xf32>
    %570 = vector.multi_reduction <minimumf>, %569, %cst_94 [1] : vector<8x128xf32> to vector<8xf32>
    %571 = vector.shape_cast %570 : vector<8xf32> to vector<8x1xf32>
    %cst_95 = arith.constant 1.270000e+02 : f32
    %572 = vector.broadcast %cst_95 : f32 to vector<8x1xf32>
    %573 = arith.minimumf %571, %572 : vector<8x1xf32>
    %574 = arith.fptosi %573 : vector<8x1xf32> to vector<8x1xi32>
    %575 = vector.broadcast %574 : vector<8x1xi32> to vector<8x128xi32>
    %576 = arith.cmpi eq, %268, %575 : vector<8x128xi32>
    %577 = arith.extui %576 : vector<8x128xi1> to vector<8x128xi32>
    %578 = arith.sitofp %577 : vector<8x128xi32> to vector<8x128xf32>
    %c1_i32_96 = arith.constant 1 : i32
    %579 = vector.broadcast %c1_i32_96 : i32 to vector<8x8xi32>
    %580 = arith.cmpi eq, %270, %579 : vector<8x8xi32>
    %581 = vector.shape_cast %574 : vector<8x1xi32> to vector<8x1xi32>
    %582 = vector.broadcast %581 : vector<8x1xi32> to vector<8x8xi32>
    %583 = arith.select %580, %582, %431 : vector<8x8xi1>, vector<8x8xi32>
    %584 = arith.mulf %49, %548 : vector<8x128xf32>
    %cst_97 = arith.constant dense<0.000000e+00> : vector<8xf32>
    %585 = vector.multi_reduction <add>, %584, %cst_97 [1] : vector<8x128xf32> to vector<8xf32>
    %586 = vector.shape_cast %585 : vector<8xf32> to vector<8x1xf32>
    %587 = arith.mulf %79, %548 : vector<8x128xf32>
    %cst_98 = arith.constant dense<0.000000e+00> : vector<8xf32>
    %588 = vector.multi_reduction <add>, %587, %cst_98 [1] : vector<8x128xf32> to vector<8xf32>
    %589 = vector.shape_cast %588 : vector<8xf32> to vector<8x1xf32>
    %590 = arith.mulf %109, %548 : vector<8x128xf32>
    %cst_99 = arith.constant dense<0.000000e+00> : vector<8xf32>
    %591 = vector.multi_reduction <add>, %590, %cst_99 [1] : vector<8x128xf32> to vector<8xf32>
    %592 = vector.shape_cast %591 : vector<8xf32> to vector<8x1xf32>
    %593 = arith.mulf %139, %548 : vector<8x128xf32>
    %cst_100 = arith.constant dense<0.000000e+00> : vector<8xf32>
    %594 = vector.multi_reduction <add>, %593, %cst_100 [1] : vector<8x128xf32> to vector<8xf32>
    %595 = vector.shape_cast %594 : vector<8xf32> to vector<8x1xf32>
    %596 = arith.mulf %169, %548 : vector<8x128xf32>
    %cst_101 = arith.constant dense<0.000000e+00> : vector<8xf32>
    %597 = vector.multi_reduction <add>, %596, %cst_101 [1] : vector<8x128xf32> to vector<8xf32>
    %598 = vector.shape_cast %597 : vector<8xf32> to vector<8x1xf32>
    %599 = arith.mulf %199, %548 : vector<8x128xf32>
    %cst_102 = arith.constant dense<0.000000e+00> : vector<8xf32>
    %600 = vector.multi_reduction <add>, %599, %cst_102 [1] : vector<8x128xf32> to vector<8xf32>
    %601 = vector.shape_cast %600 : vector<8xf32> to vector<8x1xf32>
    %602 = arith.mulf %229, %548 : vector<8x128xf32>
    %cst_103 = arith.constant dense<0.000000e+00> : vector<8xf32>
    %603 = vector.multi_reduction <add>, %602, %cst_103 [1] : vector<8x128xf32> to vector<8xf32>
    %604 = vector.shape_cast %603 : vector<8xf32> to vector<8x1xf32>
    %605 = arith.mulf %259, %548 : vector<8x128xf32>
    %cst_104 = arith.constant dense<0.000000e+00> : vector<8xf32>
    %606 = vector.multi_reduction <add>, %605, %cst_104 [1] : vector<8x128xf32> to vector<8xf32>
    %607 = vector.shape_cast %606 : vector<8xf32> to vector<8x1xf32>
    %608 = arith.maximumf %586, %589 : vector<8x1xf32>
    %609 = arith.maximumf %608, %592 : vector<8x1xf32>
    %610 = arith.maximumf %609, %595 : vector<8x1xf32>
    %611 = arith.maximumf %610, %598 : vector<8x1xf32>
    %612 = arith.maximumf %611, %601 : vector<8x1xf32>
    %613 = arith.maximumf %612, %604 : vector<8x1xf32>
    %614 = arith.maximumf %613, %607 : vector<8x1xf32>
    %615 = arith.subf %586, %614 : vector<8x1xf32>
    %616 = math.exp %615 : vector<8x1xf32>
    %617 = arith.subf %589, %614 : vector<8x1xf32>
    %618 = math.exp %617 : vector<8x1xf32>
    %619 = arith.subf %592, %614 : vector<8x1xf32>
    %620 = math.exp %619 : vector<8x1xf32>
    %621 = arith.subf %595, %614 : vector<8x1xf32>
    %622 = math.exp %621 : vector<8x1xf32>
    %623 = arith.subf %598, %614 : vector<8x1xf32>
    %624 = math.exp %623 : vector<8x1xf32>
    %625 = arith.subf %601, %614 : vector<8x1xf32>
    %626 = math.exp %625 : vector<8x1xf32>
    %627 = arith.subf %604, %614 : vector<8x1xf32>
    %628 = math.exp %627 : vector<8x1xf32>
    %629 = arith.subf %607, %614 : vector<8x1xf32>
    %630 = math.exp %629 : vector<8x1xf32>
    %631 = arith.addf %616, %618 : vector<8x1xf32>
    %632 = arith.addf %631, %620 : vector<8x1xf32>
    %633 = arith.addf %632, %622 : vector<8x1xf32>
    %634 = arith.addf %633, %624 : vector<8x1xf32>
    %635 = arith.addf %634, %626 : vector<8x1xf32>
    %636 = arith.addf %635, %628 : vector<8x1xf32>
    %637 = arith.addf %636, %630 : vector<8x1xf32>
    %cst_105 = arith.constant 1.000000e+00 : f32
    %638 = vector.broadcast %cst_105 : f32 to vector<8x1xf32>
    %639 = arith.divf %638, %637 : vector<8x1xf32>
    %640 = arith.mulf %616, %639 : vector<8x1xf32>
    %641 = vector.broadcast %640 : vector<8x1xf32> to vector<8x128xf32>
    %642 = arith.mulf %641, %49 : vector<8x128xf32>
    %643 = arith.mulf %618, %639 : vector<8x1xf32>
    %644 = vector.broadcast %643 : vector<8x1xf32> to vector<8x128xf32>
    %645 = arith.mulf %644, %79 : vector<8x128xf32>
    %646 = arith.addf %642, %645 : vector<8x128xf32>
    %647 = arith.mulf %620, %639 : vector<8x1xf32>
    %648 = vector.broadcast %647 : vector<8x1xf32> to vector<8x128xf32>
    %649 = arith.mulf %648, %109 : vector<8x128xf32>
    %650 = arith.addf %646, %649 : vector<8x128xf32>
    %651 = arith.mulf %622, %639 : vector<8x1xf32>
    %652 = vector.broadcast %651 : vector<8x1xf32> to vector<8x128xf32>
    %653 = arith.mulf %652, %139 : vector<8x128xf32>
    %654 = arith.addf %650, %653 : vector<8x128xf32>
    %655 = arith.mulf %624, %639 : vector<8x1xf32>
    %656 = vector.broadcast %655 : vector<8x1xf32> to vector<8x128xf32>
    %657 = arith.mulf %656, %169 : vector<8x128xf32>
    %658 = arith.addf %654, %657 : vector<8x128xf32>
    %659 = arith.mulf %626, %639 : vector<8x1xf32>
    %660 = vector.broadcast %659 : vector<8x1xf32> to vector<8x128xf32>
    %661 = arith.mulf %660, %199 : vector<8x128xf32>
    %662 = arith.addf %658, %661 : vector<8x128xf32>
    %663 = arith.mulf %628, %639 : vector<8x1xf32>
    %664 = vector.broadcast %663 : vector<8x1xf32> to vector<8x128xf32>
    %665 = arith.mulf %664, %229 : vector<8x128xf32>
    %666 = arith.addf %662, %665 : vector<8x128xf32>
    %667 = arith.mulf %630, %639 : vector<8x1xf32>
    %668 = vector.broadcast %667 : vector<8x1xf32> to vector<8x128xf32>
    %669 = arith.mulf %668, %259 : vector<8x128xf32>
    %670 = arith.addf %666, %669 : vector<8x128xf32>
    %671 = tpu.concatenate %578, %670 in 1 : vector<8x128xf32>, vector<8x128xf32> -> vector<8x256xf32>
    %672 = arith.truncf %671 : vector<8x256xf32> to vector<8x256xbf16>
    %cst_106 = arith.constant dense<0.000000e+00> : vector<8x384xf32>
    %673 = tpu.matmul %672, %260, %cst_106 {dimension_numbers = #tpu.dot_dimension_numbers<[1], [0], [0], [1], [0, 0, 1, 1], [], []>} : vector<8x256xbf16>, vector<256x384xbf16>, vector<8x384xf32> -> vector<8x384xf32>
    %674 = arith.addf %673, %264 : vector<8x384xf32>
    %675 = vector.extract_strided_slice %674 {offsets = [0, 0], sizes = [8, 128], strides = [1, 1]} : vector<8x384xf32> to vector<8x128xf32>
    %676 = vector.extract_strided_slice %552 {offsets = [0, 0], sizes = [8, 128], strides = [1, 1]} : vector<8x384xf32> to vector<8x128xf32>
    %677 = arith.addf %675, %676 : vector<8x128xf32>
    %678 = arith.negf %677 : vector<8x128xf32>
    %679 = math.exp %678 : vector<8x128xf32>
    %cst_107 = arith.constant 1.000000e+00 : f32
    %680 = vector.broadcast %cst_107 : f32 to vector<8x128xf32>
    %681 = arith.addf %680, %679 : vector<8x128xf32>
    %682 = arith.divf %680, %681 : vector<8x128xf32>
    %683 = vector.extract_strided_slice %674 {offsets = [0, 128], sizes = [8, 128], strides = [1, 1]} : vector<8x384xf32> to vector<8x128xf32>
    %684 = vector.extract_strided_slice %552 {offsets = [0, 128], sizes = [8, 128], strides = [1, 1]} : vector<8x384xf32> to vector<8x128xf32>
    %685 = arith.addf %683, %684 : vector<8x128xf32>
    %686 = arith.negf %685 : vector<8x128xf32>
    %687 = math.exp %686 : vector<8x128xf32>
    %cst_108 = arith.constant 1.000000e+00 : f32
    %688 = vector.broadcast %cst_108 : f32 to vector<8x128xf32>
    %689 = arith.addf %688, %687 : vector<8x128xf32>
    %690 = arith.divf %688, %689 : vector<8x128xf32>
    %691 = vector.extract_strided_slice %674 {offsets = [0, 256], sizes = [8, 128], strides = [1, 1]} : vector<8x384xf32> to vector<8x128xf32>
    %692 = vector.extract_strided_slice %552 {offsets = [0, 256], sizes = [8, 128], strides = [1, 1]} : vector<8x384xf32> to vector<8x128xf32>
    %693 = arith.mulf %682, %692 : vector<8x128xf32>
    %694 = arith.addf %691, %693 : vector<8x128xf32>
    %695 = math.tanh %694 : vector<8x128xf32>
    %cst_109 = arith.constant 1.000000e+00 : f32
    %696 = vector.broadcast %cst_109 : f32 to vector<8x128xf32>
    %697 = arith.subf %696, %690 : vector<8x128xf32>
    %698 = arith.mulf %697, %695 : vector<8x128xf32>
    %699 = arith.mulf %690, %548 : vector<8x128xf32>
    %700 = arith.addf %698, %699 : vector<8x128xf32>
    %701 = arith.truncf %700 : vector<8x128xf32> to vector<8x128xbf16>
    %cst_110 = arith.constant dense<0.000000e+00> : vector<8x512xf32>
    %702 = tpu.matmul %701, %261, %cst_110 {dimension_numbers = #tpu.dot_dimension_numbers<[1], [0], [0], [1], [0, 0, 1, 1], [], []>} : vector<8x128xbf16>, vector<128x512xbf16>, vector<8x512xf32> -> vector<8x512xf32>
    %703 = arith.addf %702, %267 : vector<8x512xf32>
    %704 = vector.extract_strided_slice %703 {offsets = [0, 0], sizes = [8, 384], strides = [1, 1]} : vector<8x512xf32> to vector<8x384xf32>
    %705 = vector.extract_strided_slice %703 {offsets = [0, 384], sizes = [8, 128], strides = [1, 1]} : vector<8x512xf32> to vector<8x128xf32>
    %cst_111 = arith.constant dense<0xFF800000> : vector<8xf32>
    %706 = vector.multi_reduction <maximumf>, %705, %cst_111 [1] : vector<8x128xf32> to vector<8xf32>
    %707 = vector.shape_cast %706 : vector<8xf32> to vector<8x1xf32>
    %708 = vector.broadcast %707 : vector<8x1xf32> to vector<8x128xf32>
    %709 = arith.subf %705, %708 : vector<8x128xf32>
    %710 = math.exp %709 : vector<8x128xf32>
    %711 = vector.broadcast %707 : vector<8x1xf32> to vector<8x128xf32>
    %712 = arith.subf %705, %711 : vector<8x128xf32>
    %cst_112 = arith.constant dense<0.000000e+00> : vector<8xf32>
    %713 = vector.multi_reduction <add>, %710, %cst_112 [1] : vector<8x128xf32> to vector<8xf32>
    %714 = vector.shape_cast %713 : vector<8xf32> to vector<8x1xf32>
    %715 = math.log %714 : vector<8x1xf32>
    %716 = vector.broadcast %715 : vector<8x1xf32> to vector<8x128xf32>
    %717 = arith.subf %712, %716 : vector<8x128xf32>
    %718 = vector.broadcast %707 : vector<8x1xf32> to vector<8x128xf32>
    %719 = arith.cmpf oge, %705, %718 : vector<8x128xf32>
    %cst_113 = arith.constant 1.280000e+02 : f32
    %720 = vector.broadcast %cst_113 : f32 to vector<8x128xf32>
    %721 = arith.select %719, %269, %720 : vector<8x128xi1>, vector<8x128xf32>
    %cst_114 = arith.constant dense<0x7F800000> : vector<8xf32>
    %722 = vector.multi_reduction <minimumf>, %721, %cst_114 [1] : vector<8x128xf32> to vector<8xf32>
    %723 = vector.shape_cast %722 : vector<8xf32> to vector<8x1xf32>
    %cst_115 = arith.constant 1.270000e+02 : f32
    %724 = vector.broadcast %cst_115 : f32 to vector<8x1xf32>
    %725 = arith.minimumf %723, %724 : vector<8x1xf32>
    %726 = arith.fptosi %725 : vector<8x1xf32> to vector<8x1xi32>
    %727 = vector.broadcast %726 : vector<8x1xi32> to vector<8x128xi32>
    %728 = arith.cmpi eq, %268, %727 : vector<8x128xi32>
    %729 = arith.extui %728 : vector<8x128xi1> to vector<8x128xi32>
    %730 = arith.sitofp %729 : vector<8x128xi32> to vector<8x128xf32>
    %c2_i32 = arith.constant 2 : i32
    %731 = vector.broadcast %c2_i32 : i32 to vector<8x8xi32>
    %732 = arith.cmpi eq, %270, %731 : vector<8x8xi32>
    %733 = vector.shape_cast %726 : vector<8x1xi32> to vector<8x1xi32>
    %734 = vector.broadcast %733 : vector<8x1xi32> to vector<8x8xi32>
    %735 = arith.select %732, %734, %583 : vector<8x8xi1>, vector<8x8xi32>
    %736 = arith.mulf %49, %700 : vector<8x128xf32>
    %cst_116 = arith.constant dense<0.000000e+00> : vector<8xf32>
    %737 = vector.multi_reduction <add>, %736, %cst_116 [1] : vector<8x128xf32> to vector<8xf32>
    %738 = vector.shape_cast %737 : vector<8xf32> to vector<8x1xf32>
    %739 = arith.mulf %79, %700 : vector<8x128xf32>
    %cst_117 = arith.constant dense<0.000000e+00> : vector<8xf32>
    %740 = vector.multi_reduction <add>, %739, %cst_117 [1] : vector<8x128xf32> to vector<8xf32>
    %741 = vector.shape_cast %740 : vector<8xf32> to vector<8x1xf32>
    %742 = arith.mulf %109, %700 : vector<8x128xf32>
    %cst_118 = arith.constant dense<0.000000e+00> : vector<8xf32>
    %743 = vector.multi_reduction <add>, %742, %cst_118 [1] : vector<8x128xf32> to vector<8xf32>
    %744 = vector.shape_cast %743 : vector<8xf32> to vector<8x1xf32>
    %745 = arith.mulf %139, %700 : vector<8x128xf32>
    %cst_119 = arith.constant dense<0.000000e+00> : vector<8xf32>
    %746 = vector.multi_reduction <add>, %745, %cst_119 [1] : vector<8x128xf32> to vector<8xf32>
    %747 = vector.shape_cast %746 : vector<8xf32> to vector<8x1xf32>
    %748 = arith.mulf %169, %700 : vector<8x128xf32>
    %cst_120 = arith.constant dense<0.000000e+00> : vector<8xf32>
    %749 = vector.multi_reduction <add>, %748, %cst_120 [1] : vector<8x128xf32> to vector<8xf32>
    %750 = vector.shape_cast %749 : vector<8xf32> to vector<8x1xf32>
    %751 = arith.mulf %199, %700 : vector<8x128xf32>
    %cst_121 = arith.constant dense<0.000000e+00> : vector<8xf32>
    %752 = vector.multi_reduction <add>, %751, %cst_121 [1] : vector<8x128xf32> to vector<8xf32>
    %753 = vector.shape_cast %752 : vector<8xf32> to vector<8x1xf32>
    %754 = arith.mulf %229, %700 : vector<8x128xf32>
    %cst_122 = arith.constant dense<0.000000e+00> : vector<8xf32>
    %755 = vector.multi_reduction <add>, %754, %cst_122 [1] : vector<8x128xf32> to vector<8xf32>
    %756 = vector.shape_cast %755 : vector<8xf32> to vector<8x1xf32>
    %757 = arith.mulf %259, %700 : vector<8x128xf32>
    %cst_123 = arith.constant dense<0.000000e+00> : vector<8xf32>
    %758 = vector.multi_reduction <add>, %757, %cst_123 [1] : vector<8x128xf32> to vector<8xf32>
    %759 = vector.shape_cast %758 : vector<8xf32> to vector<8x1xf32>
    %760 = arith.maximumf %738, %741 : vector<8x1xf32>
    %761 = arith.maximumf %760, %744 : vector<8x1xf32>
    %762 = arith.maximumf %761, %747 : vector<8x1xf32>
    %763 = arith.maximumf %762, %750 : vector<8x1xf32>
    %764 = arith.maximumf %763, %753 : vector<8x1xf32>
    %765 = arith.maximumf %764, %756 : vector<8x1xf32>
    %766 = arith.maximumf %765, %759 : vector<8x1xf32>
    %767 = arith.subf %738, %766 : vector<8x1xf32>
    %768 = math.exp %767 : vector<8x1xf32>
    %769 = arith.subf %741, %766 : vector<8x1xf32>
    %770 = math.exp %769 : vector<8x1xf32>
    %771 = arith.subf %744, %766 : vector<8x1xf32>
    %772 = math.exp %771 : vector<8x1xf32>
    %773 = arith.subf %747, %766 : vector<8x1xf32>
    %774 = math.exp %773 : vector<8x1xf32>
    %775 = arith.subf %750, %766 : vector<8x1xf32>
    %776 = math.exp %775 : vector<8x1xf32>
    %777 = arith.subf %753, %766 : vector<8x1xf32>
    %778 = math.exp %777 : vector<8x1xf32>
    %779 = arith.subf %756, %766 : vector<8x1xf32>
    %780 = math.exp %779 : vector<8x1xf32>
    %781 = arith.subf %759, %766 : vector<8x1xf32>
    %782 = math.exp %781 : vector<8x1xf32>
    %783 = arith.addf %768, %770 : vector<8x1xf32>
    %784 = arith.addf %783, %772 : vector<8x1xf32>
    %785 = arith.addf %784, %774 : vector<8x1xf32>
    %786 = arith.addf %785, %776 : vector<8x1xf32>
    %787 = arith.addf %786, %778 : vector<8x1xf32>
    %788 = arith.addf %787, %780 : vector<8x1xf32>
    %789 = arith.addf %788, %782 : vector<8x1xf32>
    %cst_124 = arith.constant 1.000000e+00 : f32
    %790 = vector.broadcast %cst_124 : f32 to vector<8x1xf32>
    %791 = arith.divf %790, %789 : vector<8x1xf32>
    %792 = arith.mulf %768, %791 : vector<8x1xf32>
    %793 = vector.broadcast %792 : vector<8x1xf32> to vector<8x128xf32>
    %794 = arith.mulf %793, %49 : vector<8x128xf32>
    %795 = arith.mulf %770, %791 : vector<8x1xf32>
    %796 = vector.broadcast %795 : vector<8x1xf32> to vector<8x128xf32>
    %797 = arith.mulf %796, %79 : vector<8x128xf32>
    %798 = arith.addf %794, %797 : vector<8x128xf32>
    %799 = arith.mulf %772, %791 : vector<8x1xf32>
    %800 = vector.broadcast %799 : vector<8x1xf32> to vector<8x128xf32>
    %801 = arith.mulf %800, %109 : vector<8x128xf32>
    %802 = arith.addf %798, %801 : vector<8x128xf32>
    %803 = arith.mulf %774, %791 : vector<8x1xf32>
    %804 = vector.broadcast %803 : vector<8x1xf32> to vector<8x128xf32>
    %805 = arith.mulf %804, %139 : vector<8x128xf32>
    %806 = arith.addf %802, %805 : vector<8x128xf32>
    %807 = arith.mulf %776, %791 : vector<8x1xf32>
    %808 = vector.broadcast %807 : vector<8x1xf32> to vector<8x128xf32>
    %809 = arith.mulf %808, %169 : vector<8x128xf32>
    %810 = arith.addf %806, %809 : vector<8x128xf32>
    %811 = arith.mulf %778, %791 : vector<8x1xf32>
    %812 = vector.broadcast %811 : vector<8x1xf32> to vector<8x128xf32>
    %813 = arith.mulf %812, %199 : vector<8x128xf32>
    %814 = arith.addf %810, %813 : vector<8x128xf32>
    %815 = arith.mulf %780, %791 : vector<8x1xf32>
    %816 = vector.broadcast %815 : vector<8x1xf32> to vector<8x128xf32>
    %817 = arith.mulf %816, %229 : vector<8x128xf32>
    %818 = arith.addf %814, %817 : vector<8x128xf32>
    %819 = arith.mulf %782, %791 : vector<8x1xf32>
    %820 = vector.broadcast %819 : vector<8x1xf32> to vector<8x128xf32>
    %821 = arith.mulf %820, %259 : vector<8x128xf32>
    %822 = arith.addf %818, %821 : vector<8x128xf32>
    %823 = tpu.concatenate %730, %822 in 1 : vector<8x128xf32>, vector<8x128xf32> -> vector<8x256xf32>
    %824 = arith.truncf %823 : vector<8x256xf32> to vector<8x256xbf16>
    %cst_125 = arith.constant dense<0.000000e+00> : vector<8x384xf32>
    %825 = tpu.matmul %824, %260, %cst_125 {dimension_numbers = #tpu.dot_dimension_numbers<[1], [0], [0], [1], [0, 0, 1, 1], [], []>} : vector<8x256xbf16>, vector<256x384xbf16>, vector<8x384xf32> -> vector<8x384xf32>
    %826 = arith.addf %825, %264 : vector<8x384xf32>
    %827 = vector.extract_strided_slice %826 {offsets = [0, 0], sizes = [8, 128], strides = [1, 1]} : vector<8x384xf32> to vector<8x128xf32>
    %828 = vector.extract_strided_slice %704 {offsets = [0, 0], sizes = [8, 128], strides = [1, 1]} : vector<8x384xf32> to vector<8x128xf32>
    %829 = arith.addf %827, %828 : vector<8x128xf32>
    %830 = arith.negf %829 : vector<8x128xf32>
    %831 = math.exp %830 : vector<8x128xf32>
    %cst_126 = arith.constant 1.000000e+00 : f32
    %832 = vector.broadcast %cst_126 : f32 to vector<8x128xf32>
    %833 = arith.addf %832, %831 : vector<8x128xf32>
    %834 = arith.divf %832, %833 : vector<8x128xf32>
    %835 = vector.extract_strided_slice %826 {offsets = [0, 128], sizes = [8, 128], strides = [1, 1]} : vector<8x384xf32> to vector<8x128xf32>
    %836 = vector.extract_strided_slice %704 {offsets = [0, 128], sizes = [8, 128], strides = [1, 1]} : vector<8x384xf32> to vector<8x128xf32>
    %837 = arith.addf %835, %836 : vector<8x128xf32>
    %838 = arith.negf %837 : vector<8x128xf32>
    %839 = math.exp %838 : vector<8x128xf32>
    %cst_127 = arith.constant 1.000000e+00 : f32
    %840 = vector.broadcast %cst_127 : f32 to vector<8x128xf32>
    %841 = arith.addf %840, %839 : vector<8x128xf32>
    %842 = arith.divf %840, %841 : vector<8x128xf32>
    %843 = vector.extract_strided_slice %826 {offsets = [0, 256], sizes = [8, 128], strides = [1, 1]} : vector<8x384xf32> to vector<8x128xf32>
    %844 = vector.extract_strided_slice %704 {offsets = [0, 256], sizes = [8, 128], strides = [1, 1]} : vector<8x384xf32> to vector<8x128xf32>
    %845 = arith.mulf %834, %844 : vector<8x128xf32>
    %846 = arith.addf %843, %845 : vector<8x128xf32>
    %847 = math.tanh %846 : vector<8x128xf32>
    %cst_128 = arith.constant 1.000000e+00 : f32
    %848 = vector.broadcast %cst_128 : f32 to vector<8x128xf32>
    %849 = arith.subf %848, %842 : vector<8x128xf32>
    %850 = arith.mulf %849, %847 : vector<8x128xf32>
    %851 = arith.mulf %842, %700 : vector<8x128xf32>
    %852 = arith.addf %850, %851 : vector<8x128xf32>
    %853 = arith.truncf %852 : vector<8x128xf32> to vector<8x128xbf16>
    %cst_129 = arith.constant dense<0.000000e+00> : vector<8x512xf32>
    %854 = tpu.matmul %853, %261, %cst_129 {dimension_numbers = #tpu.dot_dimension_numbers<[1], [0], [0], [1], [0, 0, 1, 1], [], []>} : vector<8x128xbf16>, vector<128x512xbf16>, vector<8x512xf32> -> vector<8x512xf32>
    %855 = arith.addf %854, %267 : vector<8x512xf32>
    %856 = vector.extract_strided_slice %855 {offsets = [0, 0], sizes = [8, 384], strides = [1, 1]} : vector<8x512xf32> to vector<8x384xf32>
    %857 = vector.extract_strided_slice %855 {offsets = [0, 384], sizes = [8, 128], strides = [1, 1]} : vector<8x512xf32> to vector<8x128xf32>
    %cst_130 = arith.constant dense<0xFF800000> : vector<8xf32>
    %858 = vector.multi_reduction <maximumf>, %857, %cst_130 [1] : vector<8x128xf32> to vector<8xf32>
    %859 = vector.shape_cast %858 : vector<8xf32> to vector<8x1xf32>
    %860 = vector.broadcast %859 : vector<8x1xf32> to vector<8x128xf32>
    %861 = arith.subf %857, %860 : vector<8x128xf32>
    %862 = math.exp %861 : vector<8x128xf32>
    %863 = vector.broadcast %859 : vector<8x1xf32> to vector<8x128xf32>
    %864 = arith.subf %857, %863 : vector<8x128xf32>
    %cst_131 = arith.constant dense<0.000000e+00> : vector<8xf32>
    %865 = vector.multi_reduction <add>, %862, %cst_131 [1] : vector<8x128xf32> to vector<8xf32>
    %866 = vector.shape_cast %865 : vector<8xf32> to vector<8x1xf32>
    %867 = math.log %866 : vector<8x1xf32>
    %868 = vector.broadcast %867 : vector<8x1xf32> to vector<8x128xf32>
    %869 = arith.subf %864, %868 : vector<8x128xf32>
    %870 = vector.broadcast %859 : vector<8x1xf32> to vector<8x128xf32>
    %871 = arith.cmpf oge, %857, %870 : vector<8x128xf32>
    %cst_132 = arith.constant 1.280000e+02 : f32
    %872 = vector.broadcast %cst_132 : f32 to vector<8x128xf32>
    %873 = arith.select %871, %269, %872 : vector<8x128xi1>, vector<8x128xf32>
    %cst_133 = arith.constant dense<0x7F800000> : vector<8xf32>
    %874 = vector.multi_reduction <minimumf>, %873, %cst_133 [1] : vector<8x128xf32> to vector<8xf32>
    %875 = vector.shape_cast %874 : vector<8xf32> to vector<8x1xf32>
    %cst_134 = arith.constant 1.270000e+02 : f32
    %876 = vector.broadcast %cst_134 : f32 to vector<8x1xf32>
    %877 = arith.minimumf %875, %876 : vector<8x1xf32>
    %878 = arith.fptosi %877 : vector<8x1xf32> to vector<8x1xi32>
    %879 = vector.broadcast %878 : vector<8x1xi32> to vector<8x128xi32>
    %880 = arith.cmpi eq, %268, %879 : vector<8x128xi32>
    %881 = arith.extui %880 : vector<8x128xi1> to vector<8x128xi32>
    %882 = arith.sitofp %881 : vector<8x128xi32> to vector<8x128xf32>
    %c3_i32 = arith.constant 3 : i32
    %883 = vector.broadcast %c3_i32 : i32 to vector<8x8xi32>
    %884 = arith.cmpi eq, %270, %883 : vector<8x8xi32>
    %885 = vector.shape_cast %878 : vector<8x1xi32> to vector<8x1xi32>
    %886 = vector.broadcast %885 : vector<8x1xi32> to vector<8x8xi32>
    %887 = arith.select %884, %886, %735 : vector<8x8xi1>, vector<8x8xi32>
    %888 = arith.mulf %49, %852 : vector<8x128xf32>
    %cst_135 = arith.constant dense<0.000000e+00> : vector<8xf32>
    %889 = vector.multi_reduction <add>, %888, %cst_135 [1] : vector<8x128xf32> to vector<8xf32>
    %890 = vector.shape_cast %889 : vector<8xf32> to vector<8x1xf32>
    %891 = arith.mulf %79, %852 : vector<8x128xf32>
    %cst_136 = arith.constant dense<0.000000e+00> : vector<8xf32>
    %892 = vector.multi_reduction <add>, %891, %cst_136 [1] : vector<8x128xf32> to vector<8xf32>
    %893 = vector.shape_cast %892 : vector<8xf32> to vector<8x1xf32>
    %894 = arith.mulf %109, %852 : vector<8x128xf32>
    %cst_137 = arith.constant dense<0.000000e+00> : vector<8xf32>
    %895 = vector.multi_reduction <add>, %894, %cst_137 [1] : vector<8x128xf32> to vector<8xf32>
    %896 = vector.shape_cast %895 : vector<8xf32> to vector<8x1xf32>
    %897 = arith.mulf %139, %852 : vector<8x128xf32>
    %cst_138 = arith.constant dense<0.000000e+00> : vector<8xf32>
    %898 = vector.multi_reduction <add>, %897, %cst_138 [1] : vector<8x128xf32> to vector<8xf32>
    %899 = vector.shape_cast %898 : vector<8xf32> to vector<8x1xf32>
    %900 = arith.mulf %169, %852 : vector<8x128xf32>
    %cst_139 = arith.constant dense<0.000000e+00> : vector<8xf32>
    %901 = vector.multi_reduction <add>, %900, %cst_139 [1] : vector<8x128xf32> to vector<8xf32>
    %902 = vector.shape_cast %901 : vector<8xf32> to vector<8x1xf32>
    %903 = arith.mulf %199, %852 : vector<8x128xf32>
    %cst_140 = arith.constant dense<0.000000e+00> : vector<8xf32>
    %904 = vector.multi_reduction <add>, %903, %cst_140 [1] : vector<8x128xf32> to vector<8xf32>
    %905 = vector.shape_cast %904 : vector<8xf32> to vector<8x1xf32>
    %906 = arith.mulf %229, %852 : vector<8x128xf32>
    %cst_141 = arith.constant dense<0.000000e+00> : vector<8xf32>
    %907 = vector.multi_reduction <add>, %906, %cst_141 [1] : vector<8x128xf32> to vector<8xf32>
    %908 = vector.shape_cast %907 : vector<8xf32> to vector<8x1xf32>
    %909 = arith.mulf %259, %852 : vector<8x128xf32>
    %cst_142 = arith.constant dense<0.000000e+00> : vector<8xf32>
    %910 = vector.multi_reduction <add>, %909, %cst_142 [1] : vector<8x128xf32> to vector<8xf32>
    %911 = vector.shape_cast %910 : vector<8xf32> to vector<8x1xf32>
    %912 = arith.maximumf %890, %893 : vector<8x1xf32>
    %913 = arith.maximumf %912, %896 : vector<8x1xf32>
    %914 = arith.maximumf %913, %899 : vector<8x1xf32>
    %915 = arith.maximumf %914, %902 : vector<8x1xf32>
    %916 = arith.maximumf %915, %905 : vector<8x1xf32>
    %917 = arith.maximumf %916, %908 : vector<8x1xf32>
    %918 = arith.maximumf %917, %911 : vector<8x1xf32>
    %919 = arith.subf %890, %918 : vector<8x1xf32>
    %920 = math.exp %919 : vector<8x1xf32>
    %921 = arith.subf %893, %918 : vector<8x1xf32>
    %922 = math.exp %921 : vector<8x1xf32>
    %923 = arith.subf %896, %918 : vector<8x1xf32>
    %924 = math.exp %923 : vector<8x1xf32>
    %925 = arith.subf %899, %918 : vector<8x1xf32>
    %926 = math.exp %925 : vector<8x1xf32>
    %927 = arith.subf %902, %918 : vector<8x1xf32>
    %928 = math.exp %927 : vector<8x1xf32>
    %929 = arith.subf %905, %918 : vector<8x1xf32>
    %930 = math.exp %929 : vector<8x1xf32>
    %931 = arith.subf %908, %918 : vector<8x1xf32>
    %932 = math.exp %931 : vector<8x1xf32>
    %933 = arith.subf %911, %918 : vector<8x1xf32>
    %934 = math.exp %933 : vector<8x1xf32>
    %935 = arith.addf %920, %922 : vector<8x1xf32>
    %936 = arith.addf %935, %924 : vector<8x1xf32>
    %937 = arith.addf %936, %926 : vector<8x1xf32>
    %938 = arith.addf %937, %928 : vector<8x1xf32>
    %939 = arith.addf %938, %930 : vector<8x1xf32>
    %940 = arith.addf %939, %932 : vector<8x1xf32>
    %941 = arith.addf %940, %934 : vector<8x1xf32>
    %cst_143 = arith.constant 1.000000e+00 : f32
    %942 = vector.broadcast %cst_143 : f32 to vector<8x1xf32>
    %943 = arith.divf %942, %941 : vector<8x1xf32>
    %944 = arith.mulf %920, %943 : vector<8x1xf32>
    %945 = vector.broadcast %944 : vector<8x1xf32> to vector<8x128xf32>
    %946 = arith.mulf %945, %49 : vector<8x128xf32>
    %947 = arith.mulf %922, %943 : vector<8x1xf32>
    %948 = vector.broadcast %947 : vector<8x1xf32> to vector<8x128xf32>
    %949 = arith.mulf %948, %79 : vector<8x128xf32>
    %950 = arith.addf %946, %949 : vector<8x128xf32>
    %951 = arith.mulf %924, %943 : vector<8x1xf32>
    %952 = vector.broadcast %951 : vector<8x1xf32> to vector<8x128xf32>
    %953 = arith.mulf %952, %109 : vector<8x128xf32>
    %954 = arith.addf %950, %953 : vector<8x128xf32>
    %955 = arith.mulf %926, %943 : vector<8x1xf32>
    %956 = vector.broadcast %955 : vector<8x1xf32> to vector<8x128xf32>
    %957 = arith.mulf %956, %139 : vector<8x128xf32>
    %958 = arith.addf %954, %957 : vector<8x128xf32>
    %959 = arith.mulf %928, %943 : vector<8x1xf32>
    %960 = vector.broadcast %959 : vector<8x1xf32> to vector<8x128xf32>
    %961 = arith.mulf %960, %169 : vector<8x128xf32>
    %962 = arith.addf %958, %961 : vector<8x128xf32>
    %963 = arith.mulf %930, %943 : vector<8x1xf32>
    %964 = vector.broadcast %963 : vector<8x1xf32> to vector<8x128xf32>
    %965 = arith.mulf %964, %199 : vector<8x128xf32>
    %966 = arith.addf %962, %965 : vector<8x128xf32>
    %967 = arith.mulf %932, %943 : vector<8x1xf32>
    %968 = vector.broadcast %967 : vector<8x1xf32> to vector<8x128xf32>
    %969 = arith.mulf %968, %229 : vector<8x128xf32>
    %970 = arith.addf %966, %969 : vector<8x128xf32>
    %971 = arith.mulf %934, %943 : vector<8x1xf32>
    %972 = vector.broadcast %971 : vector<8x1xf32> to vector<8x128xf32>
    %973 = arith.mulf %972, %259 : vector<8x128xf32>
    %974 = arith.addf %970, %973 : vector<8x128xf32>
    %975 = tpu.concatenate %882, %974 in 1 : vector<8x128xf32>, vector<8x128xf32> -> vector<8x256xf32>
    %976 = arith.truncf %975 : vector<8x256xf32> to vector<8x256xbf16>
    %cst_144 = arith.constant dense<0.000000e+00> : vector<8x384xf32>
    %977 = tpu.matmul %976, %260, %cst_144 {dimension_numbers = #tpu.dot_dimension_numbers<[1], [0], [0], [1], [0, 0, 1, 1], [], []>} : vector<8x256xbf16>, vector<256x384xbf16>, vector<8x384xf32> -> vector<8x384xf32>
    %978 = arith.addf %977, %264 : vector<8x384xf32>
    %979 = vector.extract_strided_slice %978 {offsets = [0, 0], sizes = [8, 128], strides = [1, 1]} : vector<8x384xf32> to vector<8x128xf32>
    %980 = vector.extract_strided_slice %856 {offsets = [0, 0], sizes = [8, 128], strides = [1, 1]} : vector<8x384xf32> to vector<8x128xf32>
    %981 = arith.addf %979, %980 : vector<8x128xf32>
    %982 = arith.negf %981 : vector<8x128xf32>
    %983 = math.exp %982 : vector<8x128xf32>
    %cst_145 = arith.constant 1.000000e+00 : f32
    %984 = vector.broadcast %cst_145 : f32 to vector<8x128xf32>
    %985 = arith.addf %984, %983 : vector<8x128xf32>
    %986 = arith.divf %984, %985 : vector<8x128xf32>
    %987 = vector.extract_strided_slice %978 {offsets = [0, 128], sizes = [8, 128], strides = [1, 1]} : vector<8x384xf32> to vector<8x128xf32>
    %988 = vector.extract_strided_slice %856 {offsets = [0, 128], sizes = [8, 128], strides = [1, 1]} : vector<8x384xf32> to vector<8x128xf32>
    %989 = arith.addf %987, %988 : vector<8x128xf32>
    %990 = arith.negf %989 : vector<8x128xf32>
    %991 = math.exp %990 : vector<8x128xf32>
    %cst_146 = arith.constant 1.000000e+00 : f32
    %992 = vector.broadcast %cst_146 : f32 to vector<8x128xf32>
    %993 = arith.addf %992, %991 : vector<8x128xf32>
    %994 = arith.divf %992, %993 : vector<8x128xf32>
    %995 = vector.extract_strided_slice %978 {offsets = [0, 256], sizes = [8, 128], strides = [1, 1]} : vector<8x384xf32> to vector<8x128xf32>
    %996 = vector.extract_strided_slice %856 {offsets = [0, 256], sizes = [8, 128], strides = [1, 1]} : vector<8x384xf32> to vector<8x128xf32>
    %997 = arith.mulf %986, %996 : vector<8x128xf32>
    %998 = arith.addf %995, %997 : vector<8x128xf32>
    %999 = math.tanh %998 : vector<8x128xf32>
    %cst_147 = arith.constant 1.000000e+00 : f32
    %1000 = vector.broadcast %cst_147 : f32 to vector<8x128xf32>
    %1001 = arith.subf %1000, %994 : vector<8x128xf32>
    %1002 = arith.mulf %1001, %999 : vector<8x128xf32>
    %1003 = arith.mulf %994, %852 : vector<8x128xf32>
    %1004 = arith.addf %1002, %1003 : vector<8x128xf32>
    %1005 = arith.truncf %1004 : vector<8x128xf32> to vector<8x128xbf16>
    %cst_148 = arith.constant dense<0.000000e+00> : vector<8x512xf32>
    %1006 = tpu.matmul %1005, %261, %cst_148 {dimension_numbers = #tpu.dot_dimension_numbers<[1], [0], [0], [1], [0, 0, 1, 1], [], []>} : vector<8x128xbf16>, vector<128x512xbf16>, vector<8x512xf32> -> vector<8x512xf32>
    %1007 = arith.addf %1006, %267 : vector<8x512xf32>
    %1008 = vector.extract_strided_slice %1007 {offsets = [0, 0], sizes = [8, 384], strides = [1, 1]} : vector<8x512xf32> to vector<8x384xf32>
    %1009 = vector.extract_strided_slice %1007 {offsets = [0, 384], sizes = [8, 128], strides = [1, 1]} : vector<8x512xf32> to vector<8x128xf32>
    %cst_149 = arith.constant dense<0xFF800000> : vector<8xf32>
    %1010 = vector.multi_reduction <maximumf>, %1009, %cst_149 [1] : vector<8x128xf32> to vector<8xf32>
    %1011 = vector.shape_cast %1010 : vector<8xf32> to vector<8x1xf32>
    %1012 = vector.broadcast %1011 : vector<8x1xf32> to vector<8x128xf32>
    %1013 = arith.subf %1009, %1012 : vector<8x128xf32>
    %1014 = math.exp %1013 : vector<8x128xf32>
    %1015 = vector.broadcast %1011 : vector<8x1xf32> to vector<8x128xf32>
    %1016 = arith.subf %1009, %1015 : vector<8x128xf32>
    %cst_150 = arith.constant dense<0.000000e+00> : vector<8xf32>
    %1017 = vector.multi_reduction <add>, %1014, %cst_150 [1] : vector<8x128xf32> to vector<8xf32>
    %1018 = vector.shape_cast %1017 : vector<8xf32> to vector<8x1xf32>
    %1019 = math.log %1018 : vector<8x1xf32>
    %1020 = vector.broadcast %1019 : vector<8x1xf32> to vector<8x128xf32>
    %1021 = arith.subf %1016, %1020 : vector<8x128xf32>
    %1022 = vector.broadcast %1011 : vector<8x1xf32> to vector<8x128xf32>
    %1023 = arith.cmpf oge, %1009, %1022 : vector<8x128xf32>
    %cst_151 = arith.constant 1.280000e+02 : f32
    %1024 = vector.broadcast %cst_151 : f32 to vector<8x128xf32>
    %1025 = arith.select %1023, %269, %1024 : vector<8x128xi1>, vector<8x128xf32>
    %cst_152 = arith.constant dense<0x7F800000> : vector<8xf32>
    %1026 = vector.multi_reduction <minimumf>, %1025, %cst_152 [1] : vector<8x128xf32> to vector<8xf32>
    %1027 = vector.shape_cast %1026 : vector<8xf32> to vector<8x1xf32>
    %cst_153 = arith.constant 1.270000e+02 : f32
    %1028 = vector.broadcast %cst_153 : f32 to vector<8x1xf32>
    %1029 = arith.minimumf %1027, %1028 : vector<8x1xf32>
    %1030 = arith.fptosi %1029 : vector<8x1xf32> to vector<8x1xi32>
    %1031 = vector.broadcast %1030 : vector<8x1xi32> to vector<8x128xi32>
    %1032 = arith.cmpi eq, %268, %1031 : vector<8x128xi32>
    %1033 = arith.extui %1032 : vector<8x128xi1> to vector<8x128xi32>
    %1034 = arith.sitofp %1033 : vector<8x128xi32> to vector<8x128xf32>
    %c4_i32 = arith.constant 4 : i32
    %1035 = vector.broadcast %c4_i32 : i32 to vector<8x8xi32>
    %1036 = arith.cmpi eq, %270, %1035 : vector<8x8xi32>
    %1037 = vector.shape_cast %1030 : vector<8x1xi32> to vector<8x1xi32>
    %1038 = vector.broadcast %1037 : vector<8x1xi32> to vector<8x8xi32>
    %1039 = arith.select %1036, %1038, %887 : vector<8x8xi1>, vector<8x8xi32>
    %1040 = arith.mulf %49, %1004 : vector<8x128xf32>
    %cst_154 = arith.constant dense<0.000000e+00> : vector<8xf32>
    %1041 = vector.multi_reduction <add>, %1040, %cst_154 [1] : vector<8x128xf32> to vector<8xf32>
    %1042 = vector.shape_cast %1041 : vector<8xf32> to vector<8x1xf32>
    %1043 = arith.mulf %79, %1004 : vector<8x128xf32>
    %cst_155 = arith.constant dense<0.000000e+00> : vector<8xf32>
    %1044 = vector.multi_reduction <add>, %1043, %cst_155 [1] : vector<8x128xf32> to vector<8xf32>
    %1045 = vector.shape_cast %1044 : vector<8xf32> to vector<8x1xf32>
    %1046 = arith.mulf %109, %1004 : vector<8x128xf32>
    %cst_156 = arith.constant dense<0.000000e+00> : vector<8xf32>
    %1047 = vector.multi_reduction <add>, %1046, %cst_156 [1] : vector<8x128xf32> to vector<8xf32>
    %1048 = vector.shape_cast %1047 : vector<8xf32> to vector<8x1xf32>
    %1049 = arith.mulf %139, %1004 : vector<8x128xf32>
    %cst_157 = arith.constant dense<0.000000e+00> : vector<8xf32>
    %1050 = vector.multi_reduction <add>, %1049, %cst_157 [1] : vector<8x128xf32> to vector<8xf32>
    %1051 = vector.shape_cast %1050 : vector<8xf32> to vector<8x1xf32>
    %1052 = arith.mulf %169, %1004 : vector<8x128xf32>
    %cst_158 = arith.constant dense<0.000000e+00> : vector<8xf32>
    %1053 = vector.multi_reduction <add>, %1052, %cst_158 [1] : vector<8x128xf32> to vector<8xf32>
    %1054 = vector.shape_cast %1053 : vector<8xf32> to vector<8x1xf32>
    %1055 = arith.mulf %199, %1004 : vector<8x128xf32>
    %cst_159 = arith.constant dense<0.000000e+00> : vector<8xf32>
    %1056 = vector.multi_reduction <add>, %1055, %cst_159 [1] : vector<8x128xf32> to vector<8xf32>
    %1057 = vector.shape_cast %1056 : vector<8xf32> to vector<8x1xf32>
    %1058 = arith.mulf %229, %1004 : vector<8x128xf32>
    %cst_160 = arith.constant dense<0.000000e+00> : vector<8xf32>
    %1059 = vector.multi_reduction <add>, %1058, %cst_160 [1] : vector<8x128xf32> to vector<8xf32>
    %1060 = vector.shape_cast %1059 : vector<8xf32> to vector<8x1xf32>
    %1061 = arith.mulf %259, %1004 : vector<8x128xf32>
    %cst_161 = arith.constant dense<0.000000e+00> : vector<8xf32>
    %1062 = vector.multi_reduction <add>, %1061, %cst_161 [1] : vector<8x128xf32> to vector<8xf32>
    %1063 = vector.shape_cast %1062 : vector<8xf32> to vector<8x1xf32>
    %1064 = arith.maximumf %1042, %1045 : vector<8x1xf32>
    %1065 = arith.maximumf %1064, %1048 : vector<8x1xf32>
    %1066 = arith.maximumf %1065, %1051 : vector<8x1xf32>
    %1067 = arith.maximumf %1066, %1054 : vector<8x1xf32>
    %1068 = arith.maximumf %1067, %1057 : vector<8x1xf32>
    %1069 = arith.maximumf %1068, %1060 : vector<8x1xf32>
    %1070 = arith.maximumf %1069, %1063 : vector<8x1xf32>
    %1071 = arith.subf %1042, %1070 : vector<8x1xf32>
    %1072 = math.exp %1071 : vector<8x1xf32>
    %1073 = arith.subf %1045, %1070 : vector<8x1xf32>
    %1074 = math.exp %1073 : vector<8x1xf32>
    %1075 = arith.subf %1048, %1070 : vector<8x1xf32>
    %1076 = math.exp %1075 : vector<8x1xf32>
    %1077 = arith.subf %1051, %1070 : vector<8x1xf32>
    %1078 = math.exp %1077 : vector<8x1xf32>
    %1079 = arith.subf %1054, %1070 : vector<8x1xf32>
    %1080 = math.exp %1079 : vector<8x1xf32>
    %1081 = arith.subf %1057, %1070 : vector<8x1xf32>
    %1082 = math.exp %1081 : vector<8x1xf32>
    %1083 = arith.subf %1060, %1070 : vector<8x1xf32>
    %1084 = math.exp %1083 : vector<8x1xf32>
    %1085 = arith.subf %1063, %1070 : vector<8x1xf32>
    %1086 = math.exp %1085 : vector<8x1xf32>
    %1087 = arith.addf %1072, %1074 : vector<8x1xf32>
    %1088 = arith.addf %1087, %1076 : vector<8x1xf32>
    %1089 = arith.addf %1088, %1078 : vector<8x1xf32>
    %1090 = arith.addf %1089, %1080 : vector<8x1xf32>
    %1091 = arith.addf %1090, %1082 : vector<8x1xf32>
    %1092 = arith.addf %1091, %1084 : vector<8x1xf32>
    %1093 = arith.addf %1092, %1086 : vector<8x1xf32>
    %cst_162 = arith.constant 1.000000e+00 : f32
    %1094 = vector.broadcast %cst_162 : f32 to vector<8x1xf32>
    %1095 = arith.divf %1094, %1093 : vector<8x1xf32>
    %1096 = arith.mulf %1072, %1095 : vector<8x1xf32>
    %1097 = vector.broadcast %1096 : vector<8x1xf32> to vector<8x128xf32>
    %1098 = arith.mulf %1097, %49 : vector<8x128xf32>
    %1099 = arith.mulf %1074, %1095 : vector<8x1xf32>
    %1100 = vector.broadcast %1099 : vector<8x1xf32> to vector<8x128xf32>
    %1101 = arith.mulf %1100, %79 : vector<8x128xf32>
    %1102 = arith.addf %1098, %1101 : vector<8x128xf32>
    %1103 = arith.mulf %1076, %1095 : vector<8x1xf32>
    %1104 = vector.broadcast %1103 : vector<8x1xf32> to vector<8x128xf32>
    %1105 = arith.mulf %1104, %109 : vector<8x128xf32>
    %1106 = arith.addf %1102, %1105 : vector<8x128xf32>
    %1107 = arith.mulf %1078, %1095 : vector<8x1xf32>
    %1108 = vector.broadcast %1107 : vector<8x1xf32> to vector<8x128xf32>
    %1109 = arith.mulf %1108, %139 : vector<8x128xf32>
    %1110 = arith.addf %1106, %1109 : vector<8x128xf32>
    %1111 = arith.mulf %1080, %1095 : vector<8x1xf32>
    %1112 = vector.broadcast %1111 : vector<8x1xf32> to vector<8x128xf32>
    %1113 = arith.mulf %1112, %169 : vector<8x128xf32>
    %1114 = arith.addf %1110, %1113 : vector<8x128xf32>
    %1115 = arith.mulf %1082, %1095 : vector<8x1xf32>
    %1116 = vector.broadcast %1115 : vector<8x1xf32> to vector<8x128xf32>
    %1117 = arith.mulf %1116, %199 : vector<8x128xf32>
    %1118 = arith.addf %1114, %1117 : vector<8x128xf32>
    %1119 = arith.mulf %1084, %1095 : vector<8x1xf32>
    %1120 = vector.broadcast %1119 : vector<8x1xf32> to vector<8x128xf32>
    %1121 = arith.mulf %1120, %229 : vector<8x128xf32>
    %1122 = arith.addf %1118, %1121 : vector<8x128xf32>
    %1123 = arith.mulf %1086, %1095 : vector<8x1xf32>
    %1124 = vector.broadcast %1123 : vector<8x1xf32> to vector<8x128xf32>
    %1125 = arith.mulf %1124, %259 : vector<8x128xf32>
    %1126 = arith.addf %1122, %1125 : vector<8x128xf32>
    %1127 = tpu.concatenate %1034, %1126 in 1 : vector<8x128xf32>, vector<8x128xf32> -> vector<8x256xf32>
    %1128 = arith.truncf %1127 : vector<8x256xf32> to vector<8x256xbf16>
    %cst_163 = arith.constant dense<0.000000e+00> : vector<8x384xf32>
    %1129 = tpu.matmul %1128, %260, %cst_163 {dimension_numbers = #tpu.dot_dimension_numbers<[1], [0], [0], [1], [0, 0, 1, 1], [], []>} : vector<8x256xbf16>, vector<256x384xbf16>, vector<8x384xf32> -> vector<8x384xf32>
    %1130 = arith.addf %1129, %264 : vector<8x384xf32>
    %1131 = vector.extract_strided_slice %1130 {offsets = [0, 0], sizes = [8, 128], strides = [1, 1]} : vector<8x384xf32> to vector<8x128xf32>
    %1132 = vector.extract_strided_slice %1008 {offsets = [0, 0], sizes = [8, 128], strides = [1, 1]} : vector<8x384xf32> to vector<8x128xf32>
    %1133 = arith.addf %1131, %1132 : vector<8x128xf32>
    %1134 = arith.negf %1133 : vector<8x128xf32>
    %1135 = math.exp %1134 : vector<8x128xf32>
    %cst_164 = arith.constant 1.000000e+00 : f32
    %1136 = vector.broadcast %cst_164 : f32 to vector<8x128xf32>
    %1137 = arith.addf %1136, %1135 : vector<8x128xf32>
    %1138 = arith.divf %1136, %1137 : vector<8x128xf32>
    %1139 = vector.extract_strided_slice %1130 {offsets = [0, 128], sizes = [8, 128], strides = [1, 1]} : vector<8x384xf32> to vector<8x128xf32>
    %1140 = vector.extract_strided_slice %1008 {offsets = [0, 128], sizes = [8, 128], strides = [1, 1]} : vector<8x384xf32> to vector<8x128xf32>
    %1141 = arith.addf %1139, %1140 : vector<8x128xf32>
    %1142 = arith.negf %1141 : vector<8x128xf32>
    %1143 = math.exp %1142 : vector<8x128xf32>
    %cst_165 = arith.constant 1.000000e+00 : f32
    %1144 = vector.broadcast %cst_165 : f32 to vector<8x128xf32>
    %1145 = arith.addf %1144, %1143 : vector<8x128xf32>
    %1146 = arith.divf %1144, %1145 : vector<8x128xf32>
    %1147 = vector.extract_strided_slice %1130 {offsets = [0, 256], sizes = [8, 128], strides = [1, 1]} : vector<8x384xf32> to vector<8x128xf32>
    %1148 = vector.extract_strided_slice %1008 {offsets = [0, 256], sizes = [8, 128], strides = [1, 1]} : vector<8x384xf32> to vector<8x128xf32>
    %1149 = arith.mulf %1138, %1148 : vector<8x128xf32>
    %1150 = arith.addf %1147, %1149 : vector<8x128xf32>
    %1151 = math.tanh %1150 : vector<8x128xf32>
    %cst_166 = arith.constant 1.000000e+00 : f32
    %1152 = vector.broadcast %cst_166 : f32 to vector<8x128xf32>
    %1153 = arith.subf %1152, %1146 : vector<8x128xf32>
    %1154 = arith.mulf %1153, %1151 : vector<8x128xf32>
    %1155 = arith.mulf %1146, %1004 : vector<8x128xf32>
    %1156 = arith.addf %1154, %1155 : vector<8x128xf32>
    %1157 = arith.truncf %1156 : vector<8x128xf32> to vector<8x128xbf16>
    %cst_167 = arith.constant dense<0.000000e+00> : vector<8x512xf32>
    %1158 = tpu.matmul %1157, %261, %cst_167 {dimension_numbers = #tpu.dot_dimension_numbers<[1], [0], [0], [1], [0, 0, 1, 1], [], []>} : vector<8x128xbf16>, vector<128x512xbf16>, vector<8x512xf32> -> vector<8x512xf32>
    %1159 = arith.addf %1158, %267 : vector<8x512xf32>
    %1160 = vector.extract_strided_slice %1159 {offsets = [0, 0], sizes = [8, 384], strides = [1, 1]} : vector<8x512xf32> to vector<8x384xf32>
    %1161 = vector.extract_strided_slice %1159 {offsets = [0, 384], sizes = [8, 128], strides = [1, 1]} : vector<8x512xf32> to vector<8x128xf32>
    %cst_168 = arith.constant dense<0xFF800000> : vector<8xf32>
    %1162 = vector.multi_reduction <maximumf>, %1161, %cst_168 [1] : vector<8x128xf32> to vector<8xf32>
    %1163 = vector.shape_cast %1162 : vector<8xf32> to vector<8x1xf32>
    %1164 = vector.broadcast %1163 : vector<8x1xf32> to vector<8x128xf32>
    %1165 = arith.subf %1161, %1164 : vector<8x128xf32>
    %1166 = math.exp %1165 : vector<8x128xf32>
    %1167 = vector.broadcast %1163 : vector<8x1xf32> to vector<8x128xf32>
    %1168 = arith.subf %1161, %1167 : vector<8x128xf32>
    %cst_169 = arith.constant dense<0.000000e+00> : vector<8xf32>
    %1169 = vector.multi_reduction <add>, %1166, %cst_169 [1] : vector<8x128xf32> to vector<8xf32>
    %1170 = vector.shape_cast %1169 : vector<8xf32> to vector<8x1xf32>
    %1171 = math.log %1170 : vector<8x1xf32>
    %1172 = vector.broadcast %1171 : vector<8x1xf32> to vector<8x128xf32>
    %1173 = arith.subf %1168, %1172 : vector<8x128xf32>
    %1174 = vector.broadcast %1163 : vector<8x1xf32> to vector<8x128xf32>
    %1175 = arith.cmpf oge, %1161, %1174 : vector<8x128xf32>
    %cst_170 = arith.constant 1.280000e+02 : f32
    %1176 = vector.broadcast %cst_170 : f32 to vector<8x128xf32>
    %1177 = arith.select %1175, %269, %1176 : vector<8x128xi1>, vector<8x128xf32>
    %cst_171 = arith.constant dense<0x7F800000> : vector<8xf32>
    %1178 = vector.multi_reduction <minimumf>, %1177, %cst_171 [1] : vector<8x128xf32> to vector<8xf32>
    %1179 = vector.shape_cast %1178 : vector<8xf32> to vector<8x1xf32>
    %cst_172 = arith.constant 1.270000e+02 : f32
    %1180 = vector.broadcast %cst_172 : f32 to vector<8x1xf32>
    %1181 = arith.minimumf %1179, %1180 : vector<8x1xf32>
    %1182 = arith.fptosi %1181 : vector<8x1xf32> to vector<8x1xi32>
    %1183 = vector.broadcast %1182 : vector<8x1xi32> to vector<8x128xi32>
    %1184 = arith.cmpi eq, %268, %1183 : vector<8x128xi32>
    %1185 = arith.extui %1184 : vector<8x128xi1> to vector<8x128xi32>
    %1186 = arith.sitofp %1185 : vector<8x128xi32> to vector<8x128xf32>
    %c5_i32 = arith.constant 5 : i32
    %1187 = vector.broadcast %c5_i32 : i32 to vector<8x8xi32>
    %1188 = arith.cmpi eq, %270, %1187 : vector<8x8xi32>
    %1189 = vector.shape_cast %1182 : vector<8x1xi32> to vector<8x1xi32>
    %1190 = vector.broadcast %1189 : vector<8x1xi32> to vector<8x8xi32>
    %1191 = arith.select %1188, %1190, %1039 : vector<8x8xi1>, vector<8x8xi32>
    %1192 = arith.mulf %49, %1156 : vector<8x128xf32>
    %cst_173 = arith.constant dense<0.000000e+00> : vector<8xf32>
    %1193 = vector.multi_reduction <add>, %1192, %cst_173 [1] : vector<8x128xf32> to vector<8xf32>
    %1194 = vector.shape_cast %1193 : vector<8xf32> to vector<8x1xf32>
    %1195 = arith.mulf %79, %1156 : vector<8x128xf32>
    %cst_174 = arith.constant dense<0.000000e+00> : vector<8xf32>
    %1196 = vector.multi_reduction <add>, %1195, %cst_174 [1] : vector<8x128xf32> to vector<8xf32>
    %1197 = vector.shape_cast %1196 : vector<8xf32> to vector<8x1xf32>
    %1198 = arith.mulf %109, %1156 : vector<8x128xf32>
    %cst_175 = arith.constant dense<0.000000e+00> : vector<8xf32>
    %1199 = vector.multi_reduction <add>, %1198, %cst_175 [1] : vector<8x128xf32> to vector<8xf32>
    %1200 = vector.shape_cast %1199 : vector<8xf32> to vector<8x1xf32>
    %1201 = arith.mulf %139, %1156 : vector<8x128xf32>
    %cst_176 = arith.constant dense<0.000000e+00> : vector<8xf32>
    %1202 = vector.multi_reduction <add>, %1201, %cst_176 [1] : vector<8x128xf32> to vector<8xf32>
    %1203 = vector.shape_cast %1202 : vector<8xf32> to vector<8x1xf32>
    %1204 = arith.mulf %169, %1156 : vector<8x128xf32>
    %cst_177 = arith.constant dense<0.000000e+00> : vector<8xf32>
    %1205 = vector.multi_reduction <add>, %1204, %cst_177 [1] : vector<8x128xf32> to vector<8xf32>
    %1206 = vector.shape_cast %1205 : vector<8xf32> to vector<8x1xf32>
    %1207 = arith.mulf %199, %1156 : vector<8x128xf32>
    %cst_178 = arith.constant dense<0.000000e+00> : vector<8xf32>
    %1208 = vector.multi_reduction <add>, %1207, %cst_178 [1] : vector<8x128xf32> to vector<8xf32>
    %1209 = vector.shape_cast %1208 : vector<8xf32> to vector<8x1xf32>
    %1210 = arith.mulf %229, %1156 : vector<8x128xf32>
    %cst_179 = arith.constant dense<0.000000e+00> : vector<8xf32>
    %1211 = vector.multi_reduction <add>, %1210, %cst_179 [1] : vector<8x128xf32> to vector<8xf32>
    %1212 = vector.shape_cast %1211 : vector<8xf32> to vector<8x1xf32>
    %1213 = arith.mulf %259, %1156 : vector<8x128xf32>
    %cst_180 = arith.constant dense<0.000000e+00> : vector<8xf32>
    %1214 = vector.multi_reduction <add>, %1213, %cst_180 [1] : vector<8x128xf32> to vector<8xf32>
    %1215 = vector.shape_cast %1214 : vector<8xf32> to vector<8x1xf32>
    %1216 = arith.maximumf %1194, %1197 : vector<8x1xf32>
    %1217 = arith.maximumf %1216, %1200 : vector<8x1xf32>
    %1218 = arith.maximumf %1217, %1203 : vector<8x1xf32>
    %1219 = arith.maximumf %1218, %1206 : vector<8x1xf32>
    %1220 = arith.maximumf %1219, %1209 : vector<8x1xf32>
    %1221 = arith.maximumf %1220, %1212 : vector<8x1xf32>
    %1222 = arith.maximumf %1221, %1215 : vector<8x1xf32>
    %1223 = arith.subf %1194, %1222 : vector<8x1xf32>
    %1224 = math.exp %1223 : vector<8x1xf32>
    %1225 = arith.subf %1197, %1222 : vector<8x1xf32>
    %1226 = math.exp %1225 : vector<8x1xf32>
    %1227 = arith.subf %1200, %1222 : vector<8x1xf32>
    %1228 = math.exp %1227 : vector<8x1xf32>
    %1229 = arith.subf %1203, %1222 : vector<8x1xf32>
    %1230 = math.exp %1229 : vector<8x1xf32>
    %1231 = arith.subf %1206, %1222 : vector<8x1xf32>
    %1232 = math.exp %1231 : vector<8x1xf32>
    %1233 = arith.subf %1209, %1222 : vector<8x1xf32>
    %1234 = math.exp %1233 : vector<8x1xf32>
    %1235 = arith.subf %1212, %1222 : vector<8x1xf32>
    %1236 = math.exp %1235 : vector<8x1xf32>
    %1237 = arith.subf %1215, %1222 : vector<8x1xf32>
    %1238 = math.exp %1237 : vector<8x1xf32>
    %1239 = arith.addf %1224, %1226 : vector<8x1xf32>
    %1240 = arith.addf %1239, %1228 : vector<8x1xf32>
    %1241 = arith.addf %1240, %1230 : vector<8x1xf32>
    %1242 = arith.addf %1241, %1232 : vector<8x1xf32>
    %1243 = arith.addf %1242, %1234 : vector<8x1xf32>
    %1244 = arith.addf %1243, %1236 : vector<8x1xf32>
    %1245 = arith.addf %1244, %1238 : vector<8x1xf32>
    %cst_181 = arith.constant 1.000000e+00 : f32
    %1246 = vector.broadcast %cst_181 : f32 to vector<8x1xf32>
    %1247 = arith.divf %1246, %1245 : vector<8x1xf32>
    %1248 = arith.mulf %1224, %1247 : vector<8x1xf32>
    %1249 = vector.broadcast %1248 : vector<8x1xf32> to vector<8x128xf32>
    %1250 = arith.mulf %1249, %49 : vector<8x128xf32>
    %1251 = arith.mulf %1226, %1247 : vector<8x1xf32>
    %1252 = vector.broadcast %1251 : vector<8x1xf32> to vector<8x128xf32>
    %1253 = arith.mulf %1252, %79 : vector<8x128xf32>
    %1254 = arith.addf %1250, %1253 : vector<8x128xf32>
    %1255 = arith.mulf %1228, %1247 : vector<8x1xf32>
    %1256 = vector.broadcast %1255 : vector<8x1xf32> to vector<8x128xf32>
    %1257 = arith.mulf %1256, %109 : vector<8x128xf32>
    %1258 = arith.addf %1254, %1257 : vector<8x128xf32>
    %1259 = arith.mulf %1230, %1247 : vector<8x1xf32>
    %1260 = vector.broadcast %1259 : vector<8x1xf32> to vector<8x128xf32>
    %1261 = arith.mulf %1260, %139 : vector<8x128xf32>
    %1262 = arith.addf %1258, %1261 : vector<8x128xf32>
    %1263 = arith.mulf %1232, %1247 : vector<8x1xf32>
    %1264 = vector.broadcast %1263 : vector<8x1xf32> to vector<8x128xf32>
    %1265 = arith.mulf %1264, %169 : vector<8x128xf32>
    %1266 = arith.addf %1262, %1265 : vector<8x128xf32>
    %1267 = arith.mulf %1234, %1247 : vector<8x1xf32>
    %1268 = vector.broadcast %1267 : vector<8x1xf32> to vector<8x128xf32>
    %1269 = arith.mulf %1268, %199 : vector<8x128xf32>
    %1270 = arith.addf %1266, %1269 : vector<8x128xf32>
    %1271 = arith.mulf %1236, %1247 : vector<8x1xf32>
    %1272 = vector.broadcast %1271 : vector<8x1xf32> to vector<8x128xf32>
    %1273 = arith.mulf %1272, %229 : vector<8x128xf32>
    %1274 = arith.addf %1270, %1273 : vector<8x128xf32>
    %1275 = arith.mulf %1238, %1247 : vector<8x1xf32>
    %1276 = vector.broadcast %1275 : vector<8x1xf32> to vector<8x128xf32>
    %1277 = arith.mulf %1276, %259 : vector<8x128xf32>
    %1278 = arith.addf %1274, %1277 : vector<8x128xf32>
    %1279 = tpu.concatenate %1186, %1278 in 1 : vector<8x128xf32>, vector<8x128xf32> -> vector<8x256xf32>
    %1280 = arith.truncf %1279 : vector<8x256xf32> to vector<8x256xbf16>
    %cst_182 = arith.constant dense<0.000000e+00> : vector<8x384xf32>
    %1281 = tpu.matmul %1280, %260, %cst_182 {dimension_numbers = #tpu.dot_dimension_numbers<[1], [0], [0], [1], [0, 0, 1, 1], [], []>} : vector<8x256xbf16>, vector<256x384xbf16>, vector<8x384xf32> -> vector<8x384xf32>
    %1282 = arith.addf %1281, %264 : vector<8x384xf32>
    %1283 = vector.extract_strided_slice %1282 {offsets = [0, 0], sizes = [8, 128], strides = [1, 1]} : vector<8x384xf32> to vector<8x128xf32>
    %1284 = vector.extract_strided_slice %1160 {offsets = [0, 0], sizes = [8, 128], strides = [1, 1]} : vector<8x384xf32> to vector<8x128xf32>
    %1285 = arith.addf %1283, %1284 : vector<8x128xf32>
    %1286 = arith.negf %1285 : vector<8x128xf32>
    %1287 = math.exp %1286 : vector<8x128xf32>
    %cst_183 = arith.constant 1.000000e+00 : f32
    %1288 = vector.broadcast %cst_183 : f32 to vector<8x128xf32>
    %1289 = arith.addf %1288, %1287 : vector<8x128xf32>
    %1290 = arith.divf %1288, %1289 : vector<8x128xf32>
    %1291 = vector.extract_strided_slice %1282 {offsets = [0, 128], sizes = [8, 128], strides = [1, 1]} : vector<8x384xf32> to vector<8x128xf32>
    %1292 = vector.extract_strided_slice %1160 {offsets = [0, 128], sizes = [8, 128], strides = [1, 1]} : vector<8x384xf32> to vector<8x128xf32>
    %1293 = arith.addf %1291, %1292 : vector<8x128xf32>
    %1294 = arith.negf %1293 : vector<8x128xf32>
    %1295 = math.exp %1294 : vector<8x128xf32>
    %cst_184 = arith.constant 1.000000e+00 : f32
    %1296 = vector.broadcast %cst_184 : f32 to vector<8x128xf32>
    %1297 = arith.addf %1296, %1295 : vector<8x128xf32>
    %1298 = arith.divf %1296, %1297 : vector<8x128xf32>
    %1299 = vector.extract_strided_slice %1282 {offsets = [0, 256], sizes = [8, 128], strides = [1, 1]} : vector<8x384xf32> to vector<8x128xf32>
    %1300 = vector.extract_strided_slice %1160 {offsets = [0, 256], sizes = [8, 128], strides = [1, 1]} : vector<8x384xf32> to vector<8x128xf32>
    %1301 = arith.mulf %1290, %1300 : vector<8x128xf32>
    %1302 = arith.addf %1299, %1301 : vector<8x128xf32>
    %1303 = math.tanh %1302 : vector<8x128xf32>
    %cst_185 = arith.constant 1.000000e+00 : f32
    %1304 = vector.broadcast %cst_185 : f32 to vector<8x128xf32>
    %1305 = arith.subf %1304, %1298 : vector<8x128xf32>
    %1306 = arith.mulf %1305, %1303 : vector<8x128xf32>
    %1307 = arith.mulf %1298, %1156 : vector<8x128xf32>
    %1308 = arith.addf %1306, %1307 : vector<8x128xf32>
    %1309 = arith.truncf %1308 : vector<8x128xf32> to vector<8x128xbf16>
    %cst_186 = arith.constant dense<0.000000e+00> : vector<8x512xf32>
    %1310 = tpu.matmul %1309, %261, %cst_186 {dimension_numbers = #tpu.dot_dimension_numbers<[1], [0], [0], [1], [0, 0, 1, 1], [], []>} : vector<8x128xbf16>, vector<128x512xbf16>, vector<8x512xf32> -> vector<8x512xf32>
    %1311 = arith.addf %1310, %267 : vector<8x512xf32>
    %1312 = vector.extract_strided_slice %1311 {offsets = [0, 0], sizes = [8, 384], strides = [1, 1]} : vector<8x512xf32> to vector<8x384xf32>
    %1313 = vector.extract_strided_slice %1311 {offsets = [0, 384], sizes = [8, 128], strides = [1, 1]} : vector<8x512xf32> to vector<8x128xf32>
    %cst_187 = arith.constant dense<0xFF800000> : vector<8xf32>
    %1314 = vector.multi_reduction <maximumf>, %1313, %cst_187 [1] : vector<8x128xf32> to vector<8xf32>
    %1315 = vector.shape_cast %1314 : vector<8xf32> to vector<8x1xf32>
    %1316 = vector.broadcast %1315 : vector<8x1xf32> to vector<8x128xf32>
    %1317 = arith.subf %1313, %1316 : vector<8x128xf32>
    %1318 = math.exp %1317 : vector<8x128xf32>
    %1319 = vector.broadcast %1315 : vector<8x1xf32> to vector<8x128xf32>
    %1320 = arith.subf %1313, %1319 : vector<8x128xf32>
    %cst_188 = arith.constant dense<0.000000e+00> : vector<8xf32>
    %1321 = vector.multi_reduction <add>, %1318, %cst_188 [1] : vector<8x128xf32> to vector<8xf32>
    %1322 = vector.shape_cast %1321 : vector<8xf32> to vector<8x1xf32>
    %1323 = math.log %1322 : vector<8x1xf32>
    %1324 = vector.broadcast %1323 : vector<8x1xf32> to vector<8x128xf32>
    %1325 = arith.subf %1320, %1324 : vector<8x128xf32>
    %1326 = vector.broadcast %1315 : vector<8x1xf32> to vector<8x128xf32>
    %1327 = arith.cmpf oge, %1313, %1326 : vector<8x128xf32>
    %cst_189 = arith.constant 1.280000e+02 : f32
    %1328 = vector.broadcast %cst_189 : f32 to vector<8x128xf32>
    %1329 = arith.select %1327, %269, %1328 : vector<8x128xi1>, vector<8x128xf32>
    %cst_190 = arith.constant dense<0x7F800000> : vector<8xf32>
    %1330 = vector.multi_reduction <minimumf>, %1329, %cst_190 [1] : vector<8x128xf32> to vector<8xf32>
    %1331 = vector.shape_cast %1330 : vector<8xf32> to vector<8x1xf32>
    %cst_191 = arith.constant 1.270000e+02 : f32
    %1332 = vector.broadcast %cst_191 : f32 to vector<8x1xf32>
    %1333 = arith.minimumf %1331, %1332 : vector<8x1xf32>
    %1334 = arith.fptosi %1333 : vector<8x1xf32> to vector<8x1xi32>
    %1335 = vector.broadcast %1334 : vector<8x1xi32> to vector<8x128xi32>
    %1336 = arith.cmpi eq, %268, %1335 : vector<8x128xi32>
    %1337 = arith.extui %1336 : vector<8x128xi1> to vector<8x128xi32>
    %1338 = arith.sitofp %1337 : vector<8x128xi32> to vector<8x128xf32>
    %c6_i32 = arith.constant 6 : i32
    %1339 = vector.broadcast %c6_i32 : i32 to vector<8x8xi32>
    %1340 = arith.cmpi eq, %270, %1339 : vector<8x8xi32>
    %1341 = vector.shape_cast %1334 : vector<8x1xi32> to vector<8x1xi32>
    %1342 = vector.broadcast %1341 : vector<8x1xi32> to vector<8x8xi32>
    %1343 = arith.select %1340, %1342, %1191 : vector<8x8xi1>, vector<8x8xi32>
    %1344 = arith.mulf %49, %1308 : vector<8x128xf32>
    %cst_192 = arith.constant dense<0.000000e+00> : vector<8xf32>
    %1345 = vector.multi_reduction <add>, %1344, %cst_192 [1] : vector<8x128xf32> to vector<8xf32>
    %1346 = vector.shape_cast %1345 : vector<8xf32> to vector<8x1xf32>
    %1347 = arith.mulf %79, %1308 : vector<8x128xf32>
    %cst_193 = arith.constant dense<0.000000e+00> : vector<8xf32>
    %1348 = vector.multi_reduction <add>, %1347, %cst_193 [1] : vector<8x128xf32> to vector<8xf32>
    %1349 = vector.shape_cast %1348 : vector<8xf32> to vector<8x1xf32>
    %1350 = arith.mulf %109, %1308 : vector<8x128xf32>
    %cst_194 = arith.constant dense<0.000000e+00> : vector<8xf32>
    %1351 = vector.multi_reduction <add>, %1350, %cst_194 [1] : vector<8x128xf32> to vector<8xf32>
    %1352 = vector.shape_cast %1351 : vector<8xf32> to vector<8x1xf32>
    %1353 = arith.mulf %139, %1308 : vector<8x128xf32>
    %cst_195 = arith.constant dense<0.000000e+00> : vector<8xf32>
    %1354 = vector.multi_reduction <add>, %1353, %cst_195 [1] : vector<8x128xf32> to vector<8xf32>
    %1355 = vector.shape_cast %1354 : vector<8xf32> to vector<8x1xf32>
    %1356 = arith.mulf %169, %1308 : vector<8x128xf32>
    %cst_196 = arith.constant dense<0.000000e+00> : vector<8xf32>
    %1357 = vector.multi_reduction <add>, %1356, %cst_196 [1] : vector<8x128xf32> to vector<8xf32>
    %1358 = vector.shape_cast %1357 : vector<8xf32> to vector<8x1xf32>
    %1359 = arith.mulf %199, %1308 : vector<8x128xf32>
    %cst_197 = arith.constant dense<0.000000e+00> : vector<8xf32>
    %1360 = vector.multi_reduction <add>, %1359, %cst_197 [1] : vector<8x128xf32> to vector<8xf32>
    %1361 = vector.shape_cast %1360 : vector<8xf32> to vector<8x1xf32>
    %1362 = arith.mulf %229, %1308 : vector<8x128xf32>
    %cst_198 = arith.constant dense<0.000000e+00> : vector<8xf32>
    %1363 = vector.multi_reduction <add>, %1362, %cst_198 [1] : vector<8x128xf32> to vector<8xf32>
    %1364 = vector.shape_cast %1363 : vector<8xf32> to vector<8x1xf32>
    %1365 = arith.mulf %259, %1308 : vector<8x128xf32>
    %cst_199 = arith.constant dense<0.000000e+00> : vector<8xf32>
    %1366 = vector.multi_reduction <add>, %1365, %cst_199 [1] : vector<8x128xf32> to vector<8xf32>
    %1367 = vector.shape_cast %1366 : vector<8xf32> to vector<8x1xf32>
    %1368 = arith.maximumf %1346, %1349 : vector<8x1xf32>
    %1369 = arith.maximumf %1368, %1352 : vector<8x1xf32>
    %1370 = arith.maximumf %1369, %1355 : vector<8x1xf32>
    %1371 = arith.maximumf %1370, %1358 : vector<8x1xf32>
    %1372 = arith.maximumf %1371, %1361 : vector<8x1xf32>
    %1373 = arith.maximumf %1372, %1364 : vector<8x1xf32>
    %1374 = arith.maximumf %1373, %1367 : vector<8x1xf32>
    %1375 = arith.subf %1346, %1374 : vector<8x1xf32>
    %1376 = math.exp %1375 : vector<8x1xf32>
    %1377 = arith.subf %1349, %1374 : vector<8x1xf32>
    %1378 = math.exp %1377 : vector<8x1xf32>
    %1379 = arith.subf %1352, %1374 : vector<8x1xf32>
    %1380 = math.exp %1379 : vector<8x1xf32>
    %1381 = arith.subf %1355, %1374 : vector<8x1xf32>
    %1382 = math.exp %1381 : vector<8x1xf32>
    %1383 = arith.subf %1358, %1374 : vector<8x1xf32>
    %1384 = math.exp %1383 : vector<8x1xf32>
    %1385 = arith.subf %1361, %1374 : vector<8x1xf32>
    %1386 = math.exp %1385 : vector<8x1xf32>
    %1387 = arith.subf %1364, %1374 : vector<8x1xf32>
    %1388 = math.exp %1387 : vector<8x1xf32>
    %1389 = arith.subf %1367, %1374 : vector<8x1xf32>
    %1390 = math.exp %1389 : vector<8x1xf32>
    %1391 = arith.addf %1376, %1378 : vector<8x1xf32>
    %1392 = arith.addf %1391, %1380 : vector<8x1xf32>
    %1393 = arith.addf %1392, %1382 : vector<8x1xf32>
    %1394 = arith.addf %1393, %1384 : vector<8x1xf32>
    %1395 = arith.addf %1394, %1386 : vector<8x1xf32>
    %1396 = arith.addf %1395, %1388 : vector<8x1xf32>
    %1397 = arith.addf %1396, %1390 : vector<8x1xf32>
    %cst_200 = arith.constant 1.000000e+00 : f32
    %1398 = vector.broadcast %cst_200 : f32 to vector<8x1xf32>
    %1399 = arith.divf %1398, %1397 : vector<8x1xf32>
    %1400 = arith.mulf %1376, %1399 : vector<8x1xf32>
    %1401 = vector.broadcast %1400 : vector<8x1xf32> to vector<8x128xf32>
    %1402 = arith.mulf %1401, %49 : vector<8x128xf32>
    %1403 = arith.mulf %1378, %1399 : vector<8x1xf32>
    %1404 = vector.broadcast %1403 : vector<8x1xf32> to vector<8x128xf32>
    %1405 = arith.mulf %1404, %79 : vector<8x128xf32>
    %1406 = arith.addf %1402, %1405 : vector<8x128xf32>
    %1407 = arith.mulf %1380, %1399 : vector<8x1xf32>
    %1408 = vector.broadcast %1407 : vector<8x1xf32> to vector<8x128xf32>
    %1409 = arith.mulf %1408, %109 : vector<8x128xf32>
    %1410 = arith.addf %1406, %1409 : vector<8x128xf32>
    %1411 = arith.mulf %1382, %1399 : vector<8x1xf32>
    %1412 = vector.broadcast %1411 : vector<8x1xf32> to vector<8x128xf32>
    %1413 = arith.mulf %1412, %139 : vector<8x128xf32>
    %1414 = arith.addf %1410, %1413 : vector<8x128xf32>
    %1415 = arith.mulf %1384, %1399 : vector<8x1xf32>
    %1416 = vector.broadcast %1415 : vector<8x1xf32> to vector<8x128xf32>
    %1417 = arith.mulf %1416, %169 : vector<8x128xf32>
    %1418 = arith.addf %1414, %1417 : vector<8x128xf32>
    %1419 = arith.mulf %1386, %1399 : vector<8x1xf32>
    %1420 = vector.broadcast %1419 : vector<8x1xf32> to vector<8x128xf32>
    %1421 = arith.mulf %1420, %199 : vector<8x128xf32>
    %1422 = arith.addf %1418, %1421 : vector<8x128xf32>
    %1423 = arith.mulf %1388, %1399 : vector<8x1xf32>
    %1424 = vector.broadcast %1423 : vector<8x1xf32> to vector<8x128xf32>
    %1425 = arith.mulf %1424, %229 : vector<8x128xf32>
    %1426 = arith.addf %1422, %1425 : vector<8x128xf32>
    %1427 = arith.mulf %1390, %1399 : vector<8x1xf32>
    %1428 = vector.broadcast %1427 : vector<8x1xf32> to vector<8x128xf32>
    %1429 = arith.mulf %1428, %259 : vector<8x128xf32>
    %1430 = arith.addf %1426, %1429 : vector<8x128xf32>
    %1431 = tpu.concatenate %1338, %1430 in 1 : vector<8x128xf32>, vector<8x128xf32> -> vector<8x256xf32>
    %1432 = arith.truncf %1431 : vector<8x256xf32> to vector<8x256xbf16>
    %cst_201 = arith.constant dense<0.000000e+00> : vector<8x384xf32>
    %1433 = tpu.matmul %1432, %260, %cst_201 {dimension_numbers = #tpu.dot_dimension_numbers<[1], [0], [0], [1], [0, 0, 1, 1], [], []>} : vector<8x256xbf16>, vector<256x384xbf16>, vector<8x384xf32> -> vector<8x384xf32>
    %1434 = arith.addf %1433, %264 : vector<8x384xf32>
    %1435 = vector.extract_strided_slice %1434 {offsets = [0, 0], sizes = [8, 128], strides = [1, 1]} : vector<8x384xf32> to vector<8x128xf32>
    %1436 = vector.extract_strided_slice %1312 {offsets = [0, 0], sizes = [8, 128], strides = [1, 1]} : vector<8x384xf32> to vector<8x128xf32>
    %1437 = arith.addf %1435, %1436 : vector<8x128xf32>
    %1438 = arith.negf %1437 : vector<8x128xf32>
    %1439 = math.exp %1438 : vector<8x128xf32>
    %cst_202 = arith.constant 1.000000e+00 : f32
    %1440 = vector.broadcast %cst_202 : f32 to vector<8x128xf32>
    %1441 = arith.addf %1440, %1439 : vector<8x128xf32>
    %1442 = arith.divf %1440, %1441 : vector<8x128xf32>
    %1443 = vector.extract_strided_slice %1434 {offsets = [0, 128], sizes = [8, 128], strides = [1, 1]} : vector<8x384xf32> to vector<8x128xf32>
    %1444 = vector.extract_strided_slice %1312 {offsets = [0, 128], sizes = [8, 128], strides = [1, 1]} : vector<8x384xf32> to vector<8x128xf32>
    %1445 = arith.addf %1443, %1444 : vector<8x128xf32>
    %1446 = arith.negf %1445 : vector<8x128xf32>
    %1447 = math.exp %1446 : vector<8x128xf32>
    %cst_203 = arith.constant 1.000000e+00 : f32
    %1448 = vector.broadcast %cst_203 : f32 to vector<8x128xf32>
    %1449 = arith.addf %1448, %1447 : vector<8x128xf32>
    %1450 = arith.divf %1448, %1449 : vector<8x128xf32>
    %1451 = vector.extract_strided_slice %1434 {offsets = [0, 256], sizes = [8, 128], strides = [1, 1]} : vector<8x384xf32> to vector<8x128xf32>
    %1452 = vector.extract_strided_slice %1312 {offsets = [0, 256], sizes = [8, 128], strides = [1, 1]} : vector<8x384xf32> to vector<8x128xf32>
    %1453 = arith.mulf %1442, %1452 : vector<8x128xf32>
    %1454 = arith.addf %1451, %1453 : vector<8x128xf32>
    %1455 = math.tanh %1454 : vector<8x128xf32>
    %cst_204 = arith.constant 1.000000e+00 : f32
    %1456 = vector.broadcast %cst_204 : f32 to vector<8x128xf32>
    %1457 = arith.subf %1456, %1450 : vector<8x128xf32>
    %1458 = arith.mulf %1457, %1455 : vector<8x128xf32>
    %1459 = arith.mulf %1450, %1308 : vector<8x128xf32>
    %1460 = arith.addf %1458, %1459 : vector<8x128xf32>
    %1461 = arith.truncf %1460 : vector<8x128xf32> to vector<8x128xbf16>
    %cst_205 = arith.constant dense<0.000000e+00> : vector<8x512xf32>
    %1462 = tpu.matmul %1461, %261, %cst_205 {dimension_numbers = #tpu.dot_dimension_numbers<[1], [0], [0], [1], [0, 0, 1, 1], [], []>} : vector<8x128xbf16>, vector<128x512xbf16>, vector<8x512xf32> -> vector<8x512xf32>
    %1463 = arith.addf %1462, %267 : vector<8x512xf32>
    %1464 = vector.extract_strided_slice %1463 {offsets = [0, 384], sizes = [8, 128], strides = [1, 1]} : vector<8x512xf32> to vector<8x128xf32>
    %cst_206 = arith.constant dense<0xFF800000> : vector<8xf32>
    %1465 = vector.multi_reduction <maximumf>, %1464, %cst_206 [1] : vector<8x128xf32> to vector<8xf32>
    %1466 = vector.shape_cast %1465 : vector<8xf32> to vector<8x1xf32>
    %1467 = vector.broadcast %1466 : vector<8x1xf32> to vector<8x128xf32>
    %1468 = arith.subf %1464, %1467 : vector<8x128xf32>
    %1469 = math.exp %1468 : vector<8x128xf32>
    %1470 = vector.broadcast %1466 : vector<8x1xf32> to vector<8x128xf32>
    %1471 = arith.subf %1464, %1470 : vector<8x128xf32>
    %cst_207 = arith.constant dense<0.000000e+00> : vector<8xf32>
    %1472 = vector.multi_reduction <add>, %1469, %cst_207 [1] : vector<8x128xf32> to vector<8xf32>
    %1473 = vector.shape_cast %1472 : vector<8xf32> to vector<8x1xf32>
    %1474 = math.log %1473 : vector<8x1xf32>
    %1475 = vector.broadcast %1474 : vector<8x1xf32> to vector<8x128xf32>
    %1476 = arith.subf %1471, %1475 : vector<8x128xf32>
    %1477 = vector.broadcast %1466 : vector<8x1xf32> to vector<8x128xf32>
    %1478 = arith.cmpf oge, %1464, %1477 : vector<8x128xf32>
    %cst_208 = arith.constant 1.280000e+02 : f32
    %1479 = vector.broadcast %cst_208 : f32 to vector<8x128xf32>
    %1480 = arith.select %1478, %269, %1479 : vector<8x128xi1>, vector<8x128xf32>
    %cst_209 = arith.constant dense<0x7F800000> : vector<8xf32>
    %1481 = vector.multi_reduction <minimumf>, %1480, %cst_209 [1] : vector<8x128xf32> to vector<8xf32>
    %1482 = vector.shape_cast %1481 : vector<8xf32> to vector<8x1xf32>
    %cst_210 = arith.constant 1.270000e+02 : f32
    %1483 = vector.broadcast %cst_210 : f32 to vector<8x1xf32>
    %1484 = arith.minimumf %1482, %1483 : vector<8x1xf32>
    %1485 = arith.fptosi %1484 : vector<8x1xf32> to vector<8x1xi32>
    %c7_i32 = arith.constant 7 : i32
    %1486 = vector.broadcast %c7_i32 : i32 to vector<8x8xi32>
    %1487 = arith.cmpi eq, %270, %1486 : vector<8x8xi32>
    %1488 = vector.shape_cast %1485 : vector<8x1xi32> to vector<8x1xi32>
    %1489 = vector.broadcast %1488 : vector<8x1xi32> to vector<8x8xi32>
    %1490 = arith.select %1487, %1489, %1343 : vector<8x8xi1>, vector<8x8xi32>
    %1491 = tpu.concatenate %413, %565, %717, %869, %1021, %1173, %1325, %1476 in 1 : vector<8x128xf32>, vector<8x128xf32>, vector<8x128xf32>, vector<8x128xf32>, vector<8x128xf32>, vector<8x128xf32>, vector<8x128xf32>, vector<8x128xf32> -> vector<8x1024xf32>
    %c0_211 = arith.constant 0 : index
    %c0_212 = arith.constant 0 : index
    %1492 = vector.load %arg12[%c0_211, %c0_212] : memref<8x1024xf32, #tpu.memory_space<vmem>>, vector<8x1024xf32>
    tpu.vector_store %arg12[%c0_211, %c0_212], %1491 {strides = array<i32>} : memref<8x1024xf32, #tpu.memory_space<vmem>>, vector<8x1024xf32>,
    %c0_213 = arith.constant 0 : index
    %c0_214 = arith.constant 0 : index
    %1493 = vector.load %arg13[%c0_213, %c0_214] : memref<8x8xi32, #tpu.memory_space<vmem>>, vector<8x8xi32>
    tpu.vector_store %arg13[%c0_213, %c0_214], %1490 {strides = array<i32>} : memref<8x8xi32, #tpu.memory_space<vmem>>, vector<8x8xi32>,
    return
  }
  func.func @transform_0(%arg0: i32) -> (i32, i32, i32) {
    %c0_i32 = arith.constant 0 : i32
    %c0_i32_0 = arith.constant 0 : i32
    %c0_i32_1 = arith.constant 0 : i32
    return %c0_i32, %arg0, %c0_i32_0 : i32, i32, i32
  }
  func.func @transform_1(%arg0: i32) -> (i32, i32) {
    %c0_i32 = arith.constant 0 : i32
    %c0_i32_0 = arith.constant 0 : i32
    %c0_i32_1 = arith.constant 0 : i32
    return %c0_i32, %c0_i32_0 : i32, i32
  }
  func.func @transform_2(%arg0: i32) -> (i32, i32) {
    %c0_i32 = arith.constant 0 : i32
    %c0_i32_0 = arith.constant 0 : i32
    %c0_i32_1 = arith.constant 0 : i32
    return %c0_i32, %c0_i32_0 : i32, i32
  }
  func.func @transform_3(%arg0: i32) -> (i32, i32) {
    %c0_i32 = arith.constant 0 : i32
    %c0_i32_0 = arith.constant 0 : i32
    %c0_i32_1 = arith.constant 0 : i32
    return %c0_i32, %c0_i32_0 : i32, i32
  }
  func.func @transform_4(%arg0: i32) -> (i32, i32) {
    %c0_i32 = arith.constant 0 : i32
    %c0_i32_0 = arith.constant 0 : i32
    %c0_i32_1 = arith.constant 0 : i32
    return %c0_i32, %c0_i32_0 : i32, i32
  }
  func.func @transform_5(%arg0: i32) -> (i32, i32) {
    %c0_i32 = arith.constant 0 : i32
    %c0_i32_0 = arith.constant 0 : i32
    %c0_i32_1 = arith.constant 0 : i32
    return %c0_i32, %c0_i32_0 : i32, i32
  }
  func.func @transform_6(%arg0: i32) -> (i32, i32) {
    %c0_i32 = arith.constant 0 : i32
    %c0_i32_0 = arith.constant 0 : i32
    %c0_i32_1 = arith.constant 0 : i32
    return %c0_i32, %c0_i32_0 : i32, i32
  }
  func.func @transform_7(%arg0: i32) -> (i32, i32) {
    %c0_i32 = arith.constant 0 : i32
    %c0_i32_0 = arith.constant 0 : i32
    %c0_i32_1 = arith.constant 0 : i32
    return %c0_i32, %c0_i32_0 : i32, i32
  }
  func.func @transform_8(%arg0: i32) -> (i32, i32) {
    %c0_i32 = arith.constant 0 : i32
    %c0_i32_0 = arith.constant 0 : i32
    %c0_i32_1 = arith.constant 0 : i32
    return %c0_i32, %c0_i32_0 : i32, i32
  }
  func.func @transform_9(%arg0: i32) -> (i32, i32) {
    %c0_i32 = arith.constant 0 : i32
    %c0_i32_0 = arith.constant 0 : i32
    %c0_i32_1 = arith.constant 0 : i32
    return %c0_i32, %c0_i32_0 : i32, i32
  }
  func.func @transform_10(%arg0: i32) -> (i32, i32) {
    %c0_i32 = arith.constant 0 : i32
    %c0_i32_0 = arith.constant 0 : i32
    %c0_i32_1 = arith.constant 0 : i32
    return %c0_i32, %c0_i32_0 : i32, i32
  }
  func.func @transform_11(%arg0: i32) -> (i32, i32) {
    %c0_i32 = arith.constant 0 : i32
    %c0_i32_0 = arith.constant 0 : i32
    return %arg0, %c0_i32 : i32, i32
  }
  func.func @transform_12(%arg0: i32) -> (i32, i32) {
    %c0_i32 = arith.constant 0 : i32
    %c0_i32_0 = arith.constant 0 : i32
    return %arg0, %c0_i32 : i32, i32
  }
}

</mosaic_0001>

<bundles_post_ra>
// kernel: _lambda_.1
= control target key start
LH: loop header
LB: loop body
LE: loop exit
PB: predicated region body
PF: predicated region fallthrough
CT: control target
= control target key end

     0   :  { %s6583_s21 = smov 0   ;;  %s6585_s22 = smov 0   ;;  %s9728_s0 = inlined_call_operand.vmem [shape: f32[8,16,16], index: 0, kind: input, shape index: {}]   ;;  %s9729_s1 = inlined_call_operand.vmem [shape: bf16[16,128], index: 1, kind: input, shape index: {}]   ;;  %s9730_s2 = inlined_call_operand.vmem [shape: f32[1,128], index: 2, kind: input, shape index: {}]   ;;  %s9731_s3 = inlined_call_operand.vmem [shape: bf16[128,384], index: 3, kind: input, shape index: {}]   ;;  %s9732_s4 = inlined_call_operand.vmem [shape: bf16[128,384], index: 4, kind: input, shape index: {}]   ;;  %s9733_s5 = inlined_call_operand.vmem [shape: f32[1,384], index: 5, kind: input, shape index: {}]   ;;  %s9734_s6 = inlined_call_operand.vmem [shape: f32[1,384], index: 6, kind: input, shape index: {}]   ;;  %s9735_s7 = inlined_call_operand.vmem [shape: bf16[256,384], index: 7, kind: input, shape index: {}]   ;;  %s9736_s8 = inlined_call_operand.vmem [shape: f32[1,384], index: 8, kind: input, shape index: {}]   ;;  %s9737_s9 = inlined_call_operand.vmem [shape: bf16[128,512], index: 9, kind: input, shape index: {}]   ;;  %s9738_s10 = inlined_call_operand.vmem [shape: f32[1,512], index: 10, kind: input, shape index: {}]   ;;  %s9739_s11 = inlined_call_operand.vmem [shape: f32[16,1024], index: 11, kind: output, shape index: {0}]   ;;  %s9740_s12 = inlined_call_operand.vmem [shape: s32[16,8], index: 12, kind: output, shape index: {1}]  }
   0x1   :  { %s6587_s23 = smov 0  }
   0x2 LB: > { %s4975_s24 = sadd.s32 4294967295, %s6512_s23   ;;  %s6600_s25 = sadd.s32 1, %s6512_s23   ;;  %s6512_s23 = sphi %s6587_s23, %s10535_s23   ;;  %s6508_s22 = sphi %s6585_s22, %s10534_s22   ;;  %s6504_s21 = sphi %s6583_s21, %s10533_s21  }
   0x3   : > { %s27_s26 = ssub.s32 %s6512_s23, %s6600_s25  ;;  %s30_s27 = sadd.s32 1, %s6508_s22 }
   0x4   : > { %p28_p0 = scmp.eq.s32.totalorder %s27_s26, 0  ;;  %p37_p1 = scmp.ne.s32.totalorder %s6508_s22, %s6504_s21 }
   0x5   : > { %p38_p2 = scmp.eq.s32.totalorder %s6512_s23, 0  ;;  %p4978_p4 = scmp.ge.s32.totalorder %s6512_s23, 2 }
   0x6   : > { %s6609_s28 = scalar_select %p28_p0, %s6508_s22, %s30_s27  }
   0x7   : > { %p39_p3 = por %p38_p2, %p37_p1  ;;  %355 = sbr.rel (%p4978_p4) target bundleno = 22 (0x16), region = 56 }
   0xe   : > { %358 = sbr.rel (!%p39_p3) target bundleno = 22 (0x16), region = 60  ;;  %s360_s29 = sand.u32 (%p39_p3), 1, %s6508_s22  }
   0xf   : > { %s4980_s30 = sshll.u32 (%p39_p3), %s6512_s23, 3  ;;  %s4979_s13 = sshll.u32 (%p39_p3), %s360_s29, 6 }
  0x10   : > { %s364_s16 = scalar_lea.vmem (%p39_p3), %s9728_s0, %s4980_s30  ;;  %s362_s17 = scalar_lea.vmem (%p39_p3), [#allocation2], %s4979_s13 }
  0x11   : > { %v406_v0 = vld [vmem:[%s364_s16] sm:$0xff] (%p39_p3)  ;;  %v408_v1 = vld [vmem:[%s364_s16 + $0x10] sm:$0xff] (%p39_p3) }
  0x12   : > { %v410_v2 = vld [vmem:[%s364_s16 + $0x20] sm:$0xff] (%p39_p3)  ;;  %407 = vst [vmem:[%s362_s17] sm:$0xff] (%p39_p3), %v406_v0  ;;  %409 = vst [vmem:[%s362_s17 + $0x8] sm:$0xff] (%p39_p3), %v408_v1  ;;  %v412_v3 = vld [vmem:[%s364_s16 + $0x30] sm:$0xff] (%p39_p3) }
  0x13   : > { %411 = vst [vmem:[%s362_s17 + $0x10] sm:$0xff] (%p39_p3), %v410_v2  ;;  %v414_v4 = vld [vmem:[%s364_s16 + $0x40] sm:$0xff] (%p39_p3)  ;;  %v416_v5 = vld [vmem:[%s364_s16 + $0x50] sm:$0xff] (%p39_p3)  ;;  %413 = vst [vmem:[%s362_s17 + $0x18] sm:$0xff] (%p39_p3), %v412_v3 }
  0x14   : > { %415 = vst [vmem:[%s362_s17 + $0x20] sm:$0xff] (%p39_p3), %v414_v4  ;;  %417 = vst [vmem:[%s362_s17 + $0x28] sm:$0xff] (%p39_p3), %v416_v5  ;;  %v418_v6 = vld [vmem:[%s364_s16 + $0x60] sm:$0xff] (%p39_p3)  ;;  %v420_v7 = vld [vmem:[%s364_s16 + $0x70] sm:$0xff] (%p39_p3) }
  0x15   : > { %419 = vst [vmem:[%s362_s17 + $0x30] sm:$0xff] %v418_v6  ;;  %421 = vst [vmem:[%s362_s17 + $0x38] sm:$0xff] %v420_v7 }
  0x16 PF: > { %p4981_p5 = scmp.ge.s32.totalorder %s6512_s23, 1  ;;  %p426_p6 = scmp.lt.s32.totalorder %s6512_s23, 3 }
  0x18   : > { %p427_p7 = pnand %p4981_p5, %p426_p6 }
  0x1a   : > { %430 = sbr.rel (%p427_p7) target bundleno = 8816 (0x2270), region = 98 }
  0x21   : > { %v5762_v8 = vld [vmem:[%s9729_s1] sm:$0xff]   ;;  %s433_s20 = sand.u32 1, %s6504_s21   ;;  %vm515_vm0 = vcmask 130048   ;;  %v5766_v22 = vld [vmem:[%s9731_s3 + $0x8] ss:$12 sps:$4 sm:$0xff]   ;;  %v9742_v45 = vmov 0  }
  0x22   : > { %s4982_s26 = sshll.u32 %s433_s20, 6  ;;  %v5763_v9 = vld [vmem:[%s9731_s3 + $0x4] ss:$12 sps:$4 sm:$0xff]   ;;  %5460 = vmatprep.subr.bf16.mxu0 %v5762_v8  ;;  %v5765_v10 = vld [vmem:[%s9731_s3] ss:$12 sps:$4 sm:$0xff]   ;;  %814 = vmatprep.mubr.bf16.mxu1 %v9742_v45  ;;  %v9744_v47 = vmov 0.0  }
  0x23   : > { %5461 = vmatpush3.bf16.msra.mxu0 %v5762_v8  ;;  %s435_s14 = scalar_lea.vmem [#allocation2], %s4982_s26  ;;  %782 = vmatprep.subr.bf16.mxu1 %v5763_v9  ;;  %v5767_v23 = vld [vmem:[%s9731_s3 + $0x1c] ss:$12 sps:$4 sm:$0xff]   ;;  %v5769_v24 = vld [vmem:[%s9731_s3 + $0x18] ss:$12 sps:$4 sm:$0xff]   ;;  %vm6516_vm1 = vmmov 0  }
  0x24   : > { %v488_v11 = vld [vmem:[%s435_s14] sm:$0xff]  ;;  %v489_v12 = vld [vmem:[%s435_s14 + $0x8] sm:$0xff]  ;;  %v490_v13 = vld [vmem:[%s435_s14 + $0x10] sm:$0xff]  ;;  %783 = vmatpush1.bf16.msra.mxu1 %v5765_v10  ;;  %5470 = vmatprep.subr.bf16.mxu0 %v5766_v22  ;;  %p478_p8 = scmp.lt.s32.totalorder %s4975_s24, 1 }
  0x25   : > { %v496_v14 = vpack.c.bf16 %v489_v12, %v488_v11  ;;  %v491_v15 = vld [vmem:[%s435_s14 + $0x18] sm:$0xff]  ;;  %v492_v16 = vld [vmem:[%s435_s14 + $0x20] sm:$0xff]  ;;  %v493_v17 = vld [vmem:[%s435_s14 + $0x28] sm:$0xff]  ;;  %784 = vmatprep.subr.bf16.mxu1 %v5767_v23 }
  0x26   : > { %v497_v18 = vpack.c.bf16 %v491_v15, %v490_v13  ;;  %v498_v19 = vpack.c.bf16 %v493_v17, %v492_v16  ;;  %v494_v20 = vld [vmem:[%s435_s14 + $0x30] sm:$0xff]  ;;  %v495_v21 = vld [vmem:[%s435_s14 + $0x38] sm:$0xff]  ;;  %v5770_v25 = vld [vmem:[%s9731_s3 + $0x20] ss:$12 sps:$4 sm:$0xff]   ;;  %s10537_s24 = smov (!%p478_p8, %s4975_s24), 1 }
  0x27   : > { %5462 = vmatprep.mubr.msk.bf16.mxu0 %vm515_vm0, %v496_v14  ;;  %v5771_v26 = vld [vmem:[%s9731_s3 + $0x34] ss:$12 sps:$4 sm:$0xff]   ;;  %v5773_v27 = vld [vmem:[%s9731_s3 + $0x30] ss:$12 sps:$4 sm:$0xff]   ;;  %v5774_v28 = vld [vmem:[%s9731_s3 + $0x38] ss:$12 sps:$4 sm:$0xff]   ;;  %v499_v29 = vpack.c.bf16 %v495_v21, %v494_v20 }
  0x28   : > { %5463 = vmatmul.mubr.msk.bf16.vlgmr.msra.gmra.mrb[0].mxu0 %vm515_vm0, %v497_v18  ;;  %785 = vmatpush1.bf16.msra.mxu1 %v5769_v24  ;;  %v5775_v30 = vld [vmem:[%s9731_s3 + $0x4c] ss:$12 sps:$4 sm:$0xff]   ;;  %v5777_v31 = vld [vmem:[%s9731_s3 + $0x48] ss:$12 sps:$4 sm:$0xff]   ;;  %v5778_v32 = vld [vmem:[%s9731_s3 + $0x50] ss:$12 sps:$4 sm:$0xff]  }
  0x29   : > { %5466 = vmatprep.mubr.msk.bf16.mxu0 %vm515_vm0, %v498_v19  ;;  %5471 = vmatpush3.bf16.msra.mxu0 %v5766_v22  ;;  %v5779_v33 = vld [vmem:[%s9731_s3 + $0x64] ss:$12 sps:$4 sm:$0xff]   ;;  %v5781_v34 = vld [vmem:[%s9731_s3 + $0x60] ss:$12 sps:$4 sm:$0xff]   ;;  %v5782_v35 = vld [vmem:[%s9731_s3 + $0x68] ss:$12 sps:$4 sm:$0xff]  }
  0x2a   : > { %5472 = vmatprep.subr.bf16.mxu0 %v5770_v25  ;;  %786 = vmatprep.subr.bf16.mxu1 %v5771_v26  ;;  %v5783_v36 = vld [vmem:[%s9731_s3 + $0x7c] ss:$12 sps:$4 sm:$0xff]   ;;  %v5785_v37 = vld [vmem:[%s9731_s3 + $0x78] ss:$12 sps:$4 sm:$0xff]   ;;  %v5786_v38 = vld [vmem:[%s9731_s3 + $0x80] ss:$12 sps:$4 sm:$0xff]  }
  0x2b   : > { %v5787_v39 = vld [vmem:[%s9731_s3 + $0x94] ss:$12 sps:$4 sm:$0xff]   ;;  %v5789_v40 = vld [vmem:[%s9731_s3 + $0x90] ss:$12 sps:$4 sm:$0xff]   ;;  %v5790_v41 = vld [vmem:[%s9731_s3 + $0x98] ss:$12 sps:$4 sm:$0xff]  }
  0x2c   : > { %787 = vmatpush1.bf16.msra.mxu1 %v5773_v27  ;;  %v5791_v42 = vld [vmem:[%s9731_s3 + $0xac] ss:$12 sps:$4 sm:$0xff]   ;;  %v5793_v43 = vld [vmem:[%s9731_s3 + $0xa8] ss:$12 sps:$4 sm:$0xff]   ;;  %v5794_v44 = vld [vmem:[%s9731_s3 + $0xb0] ss:$12 sps:$4 sm:$0xff]  }
  0x2d   : > { %5473 = vmatpush3.bf16.msra.mxu0 %v5770_v25  ;;  %788 = vmatprep.subr.bf16.mxu1 %v5775_v30  ;;  %v6703_v46 = vld [vmem:[%s9732_s4 + $0x4] ss:$12 sps:$4 sm:$0xff]   ;;  %v4986_v48 = vld [vmem:[%s9730_s2] ss:$0 sm:$0xff]  ;;  %v6718_v8 = vld [vmem:[%s9732_s4 + $0x1c] ss:$12 sps:$4 sm:$0xff]  }
  0x2e   : > { %5474 = vmatprep.subr.bf16.mxu0 %v5774_v28  ;;  %v6713_v5 = vld [vmem:[%s9732_s4] ss:$12 sps:$4 sm:$0xff]   ;;  %v6723_v9 = vld [vmem:[%s9732_s4 + $0x8] ss:$12 sps:$4 sm:$0xff]   ;;  %v6729_v10 = vld [vmem:[%s9732_s4 + $0x18] ss:$12 sps:$4 sm:$0xff]  }
  0x2f   : > { %v6736_v12 = vld [vmem:[%s9732_s4 + $0x34] ss:$12 sps:$4 sm:$0xff]   ;;  %v6749_v17 = vld [vmem:[%s9732_s4 + $0x30] ss:$12 sps:$4 sm:$0xff]   ;;  %v6755_v20 = vld [vmem:[%s9732_s4 + $0x4c] ss:$12 sps:$4 sm:$0xff]  }
  0x30   : > { %5467 = vmatmul.mubr.msk.bf16.gmra.mrb[4].mxu0 %vm515_vm0, %v499_v29  ;;  %789 = vmatpush1.bf16.msra.mxu1 %v5777_v31  ;;  %v6742_v14 = vld [vmem:[%s9732_s4 + $0x20] ss:$12 sps:$4 sm:$0xff]   ;;  %v6761_v21 = vld [vmem:[%s9732_s4 + $0x38] ss:$12 sps:$4 sm:$0xff]   ;;  %v6767_v22 = vld [vmem:[%s9732_s4 + $0x48] ss:$12 sps:$4 sm:$0xff]  }
  0x31   : > { %5475 = vmatpush3.bf16.msra.mxu0 %v5774_v28  ;;  %790 = vmatprep.subr.bf16.mxu1 %v5779_v33  ;;  %v6774_v23 = vld [vmem:[%s9732_s4 + $0x64] ss:$12 sps:$4 sm:$0xff]   ;;  %v6789_v25 = vld [vmem:[%s9732_s4 + $0x60] ss:$12 sps:$4 sm:$0xff]   ;;  %v6796_v26 = vld [vmem:[%s9732_s4 + $0x7c] ss:$12 sps:$4 sm:$0xff]  }
  0x32   : > { %5476 = vmatprep.subr.bf16.mxu0 %v5778_v32  ;;  %v6783_v24 = vld [vmem:[%s9732_s4 + $0x50] ss:$12 sps:$4 sm:$0xff]   ;;  %v6802_v27 = vld [vmem:[%s9732_s4 + $0x68] ss:$12 sps:$4 sm:$0xff]   ;;  %v6808_v28 = vld [vmem:[%s9732_s4 + $0x78] ss:$12 sps:$4 sm:$0xff]  }
  0x33   : > { %v6815_v29 = vld [vmem:[%s9732_s4 + $0x94] ss:$12 sps:$4 sm:$0xff]   ;;  %v6828_v31 = vld [vmem:[%s9732_s4 + $0x90] ss:$12 sps:$4 sm:$0xff]   ;;  %v6841_v33 = vld [vmem:[%s9732_s4 + $0x98] ss:$12 sps:$4 sm:$0xff]  }
  0x34   : > { %791 = vmatpush1.bf16.msra.mxu1 %v5781_v34  ;;  %v6822_v30 = vld [vmem:[%s9732_s4 + $0x80] ss:$12 sps:$4 sm:$0xff]   ;;  %v6847_v34 = vld [vmem:[%s9732_s4 + $0xa8] ss:$12 sps:$4 sm:$0xff]   ;;  %s5194_s30 = sshll.u32 %s10537_s24, 6  ;;  %s4985_s14 = sshll.u32 %s10537_s24, 3 }
  0x35   : > { %5477 = vmatpush3.bf16.msra.mxu0 %v5778_v32  ;;  %792 = vmatprep.subr.bf16.mxu1 %v5783_v36  ;;  %v6835_v32 = vld [vmem:[%s9732_s4 + $0xac] ss:$12 sps:$4 sm:$0xff]   ;;  %v9741_v36 = vlaneseq  ;;  %s9651_s17 = scalar_lea.vmem %s9739_s11, %s5194_s30  ;;  %s486_s16 = scalar_lea.vmem %s9740_s12, %s4985_s14 }
  0x36   : > { %5478 = vmatprep.subr.bf16.mxu0 %v5782_v35 }
  0x38   : > { %793 = vmatpush1.bf16.msra.mxu1 %v5785_v37  ;;  %v6901_v37 = vshrl.u32 %v9741_v36, 7 }
  0x39   : > { %5479 = vmatpush3.bf16.msra.mxu0 %v5782_v35  ;;  %794 = vmatprep.subr.bf16.mxu1 %v5787_v39  ;;  %v6856_v35 = vld [vmem:[%s9732_s4 + $0xb0] ss:$12 sps:$4 sm:$0xff]   ;;  %v637_v39 = vld [vmem:[%s9733_s5] sm:$0x7] }
  0x3a   : > { %5480 = vmatprep.subr.bf16.mxu0 %v5786_v38  ;;  %10055 = vst [vmem:[#allocation3_spill] sm:$0xff] %v6901_v37 }
  0x3c   : > { %795 = vmatpush1.bf16.msra.mxu1 %v5789_v40  ;;  %v6910_v40 = vsub.s32 0, %v6901_v37 }
  0x3d   : > { %5481 = vmatpush3.bf16.msra.mxu0 %v5786_v38  ;;  %796 = vmatprep.subr.bf16.mxu1 %v5791_v42  ;;  %v6904_v38 = vsub.s32 2, %v6901_v37 }
  0x3e   : > { %5482 = vmatprep.subr.bf16.mxu0 %v5790_v41  ;;  %10057 = vst [vmem:[#allocation5_spill] sm:$0xff] %v6910_v40 }
  0x3f   : > { %10056 = vst [vmem:[#allocation4_spill] sm:$0xff] %v6904_v38  ;;  %v6916_v42 = vrot.slane %v637_v39, %v6904_v38 }
  0x40   : > { %797 = vmatpush1.bf16.msra.mxu1 %v5793_v43 }
  0x41   : > { %5483 = vmatpush3.bf16.msra.mxu0 %v5790_v41  ;;  %1097 = vmatprep.subr.bf16.mxu1 %v6703_v46  ;;  %v6913_v41 = vsub.s32 1, %v6901_v37 }
  0x42   : > { %5484 = vmatprep.subr.bf16.mxu0 %v5794_v44 }
  0x43   : > { %10058 = vst [vmem:[#allocation6_spill] sm:$0xff] %v6913_v41 }
  0x45   : > { %5485 = vmatpush3.bf16.msra.mxu0 %v5794_v44  ;;  %v642_v44 = vrot.slane %v637_v39, %v6910_v40 }
  0x46   : > { %5494 = vmatprep.subr.bf16.mxu0 %v9744_v47 }
  0xfb   : > { %v5464_v49 = vpop.f32.mrb[0].mxu0 }
  0xfc   : > { %v571_v50 = vadd.f32 %v5464_v49, %v4986_v48  ;;  %v562_v51 = vpop.f32.mrb[1].mxu0 }
  0xfd   : > { %v563_v52 = vadd.f32 %v4986_v48, %v562_v51  ;;  %v5465_v53 = vpop.f32.mrb[2].mxu0 }
  0xfe   : > { %5939 = vtanh.f32 %v571_v50  ;;  %v574_v54 = vadd.f32 %v5465_v53, %v4986_v48  ;;  %v565_v55 = vpop.f32.mrb[3].mxu0  ;;  %v646_v50 = vrot.slane %v637_v39, %v6913_v41 }
  0xff   : > { %5941 = vtanh.f32 %v563_v52  ;;  %v566_v56 = vadd.f32 %v4986_v48, %v565_v55 }
 0x100   : > { %5943 = vtanh.f32 %v574_v54 }
 0x101   : > { %5945 = vtanh.f32 %v566_v56 }
 0x103   : > { %v5468_v57 = vpop.f32.mrb[4].mxu0 }
 0x104   : > { %v587_v58 = vadd.f32 %v5468_v57, %v4986_v48  ;;  %v578_v59 = vpop.f32.mrb[5].mxu0 }
 0x105   : > { %v579_v60 = vadd.f32 %v4986_v48, %v578_v59  ;;  %v5469_v61 = vpop.f32.mrb[6].mxu0 }
 0x106   : > { %5947 = vtanh.f32 %v587_v58  ;;  %v590_v62 = vadd.f32 %v5469_v61, %v4986_v48  ;;  %v581_v63 = vpop.f32.mrb[7].mxu0 }
 0x107   : > { %5949 = vtanh.f32 %v579_v60  ;;  %v582_v0 = vadd.f32 %v4986_v48, %v581_v63 }
 0x108   : > { %v5940_v1 = vpop.eup %5939  ;;  %5951 = vtanh.f32 %v590_v62 }
 0x109   : > { %v5942_v2 = vpop.eup %5941  ;;  %5953 = vtanh.f32 %v582_v0 }
 0x10a   : > { %v5944_v3 = vpop.eup %5943 }
 0x10b   : > { %v5946_v4 = vpop.eup %5945  ;;  %v602_v6 = vpack.c.bf16 %v5944_v3, %v5940_v1 }
 0x10c   : > { %v601_v7 = vpack.c.bf16 %v5946_v4, %v5942_v2 }
 0x10e   : > { %815 = vmatmul.mubr.bf16.vlgmr.msra.gmra.mrb[0].mxu1 %v601_v7  ;;  %5486 = vmatprep.mubr.bf16.mxu0 %v601_v7 }
 0x10f   : > { %1098 = vmatpush1.bf16.msra.mxu1 %v6713_v5  ;;  %5487 = vmatmul.mubr.bf16.vlgmr.msra.gmra.mrb[8].mxu0 %v602_v6 }
 0x110   : > { %v5948_v11 = vpop.eup %5947  ;;  %1099 = vmatprep.subr.bf16.mxu1 %v6718_v8  ;;  %824 = vmatprep.mubr.bf16.mxu1 %v9742_v45 }
 0x111   : > { %v5950_v13 = vpop.eup %5949  ;;  %5495 = vmatpush3.bf16.msra.mxu0 %v6723_v9 }
 0x112   : > { %v5952_v15 = vpop.eup %5951  ;;  %5496 = vmatprep.subr.bf16.mxu0 %v9744_v47 }
 0x113   : > { %v5954_v16 = vpop.eup %5953  ;;  %1100 = vmatpush1.bf16.msra.mxu1 %v6729_v10  ;;  %v604_v18 = vpack.c.bf16 %v5952_v15, %v5948_v11 }
 0x114   : > { %1101 = vmatprep.subr.bf16.mxu1 %v6736_v12  ;;  %v603_v19 = vpack.c.bf16 %v5954_v16, %v5950_v13 }
 0x115   : > { %5497 = vmatpush3.bf16.msra.mxu0 %v6742_v14 }
 0x116   : > { %825 = vmatmul.mubr.bf16.gmra.mrb[4].mxu1 %v602_v6  ;;  %5490 = vmatprep.mubr.bf16.mxu0 %v603_v19 }
 0x117   : > { %1102 = vmatpush1.bf16.msra.mxu1 %v6749_v17  ;;  %5491 = vmatmul.mubr.bf16.gmra.mrb[12].mxu0 %v604_v18 }
 0x118   : > { %1103 = vmatprep.subr.bf16.mxu1 %v6755_v20  ;;  %834 = vmatprep.mubr.bf16.mxu1 %v9742_v45 }
 0x119   : > { %5498 = vmatprep.subr.bf16.mxu0 %v9744_v47  ;;  %5510 = vmatprep.mubr.msk.bf16.mxu0 %vm6516_vm1, %v9744_v47 }
 0x11a   : > { %5499 = vmatpush3.bf16.msra.mxu0 %v6761_v21 }
 0x11b   : > { %1104 = vmatpush1.bf16.msra.mxu1 %v6767_v22  ;;  %5500 = vmatprep.subr.bf16.mxu0 %v9744_v47 }
 0x11c   : > { %1105 = vmatprep.subr.bf16.mxu1 %v6774_v23 }
 0x11e   : > { %835 = vmatmul.mubr.bf16.gmra.mrb[8].mxu1 %v603_v19  ;;  %5501 = vmatpush3.bf16.msra.mxu0 %v6783_v24 }
 0x11f   : > { %1106 = vmatpush1.bf16.msra.mxu1 %v6789_v25  ;;  %844 = vmatprep.mubr.bf16.mxu1 %v9742_v45 }
 0x120   : > { %1107 = vmatprep.subr.bf16.mxu1 %v6796_v26  ;;  %5502 = vmatprep.subr.bf16.mxu0 %v9744_v47 }
 0x122   : > { %5503 = vmatpush3.bf16.msra.mxu0 %v6802_v27 }
 0x123   : > { %1108 = vmatpush1.bf16.msra.mxu1 %v6808_v28  ;;  %5504 = vmatprep.subr.bf16.mxu0 %v9744_v47 }
 0x124   : > { %1109 = vmatprep.subr.bf16.mxu1 %v6815_v29 }
 0x126   : > { %845 = vmatmul.mubr.bf16.gmra.mrb[12].mxu1 %v604_v18  ;;  %5505 = vmatpush3.bf16.msra.mxu0 %v6822_v30 }
 0x127   : > { %1110 = vmatpush1.bf16.msra.mxu1 %v6828_v31  ;;  %1129 = vmatprep.mubr.bf16.mxu1 %v9742_v45 }
 0x128   : > { %1111 = vmatprep.subr.bf16.mxu1 %v6835_v32  ;;  %5506 = vmatprep.subr.bf16.mxu0 %v9744_v47 }
 0x12a   : > { %5507 = vmatpush3.bf16.msra.mxu0 %v6841_v33 }
 0x12b   : > { %1112 = vmatpush1.bf16.msra.mxu1 %v6847_v34  ;;  %5508 = vmatprep.subr.bf16.mxu0 %v9744_v47 }
 0x12c   : > { %1200 = vmatprep.subr.bf16.mxu1 %v6703_v46 }
 0x12e   : > { %1130 = vmatmul.mubr.bf16.vlgmr.msra.gmra.mrb[16].mxu1 %v9742_v45  ;;  %5509 = vmatpush3.bf16.msra.mxu0 %v6856_v35 }
 0x12f   : > { %5514 = vmatprep.subr.bf16.mxu0 %v9744_v47  ;;  %1201 = vmatpush1.bf16.msra.mxu1 %v6713_v5 }
 0x130   : > { %1202 = vmatprep.subr.bf16.mxu1 %v6718_v8  ;;  %1232 = vmatprep.mubr.bf16.mxu1 %v9742_v45 }
 0x131   : > { %5511 = vmatmul.mubr.bf16.vlgmr.msra.gmra.mrb[16].mxu0 %v9742_v45 }
 0x132   : > { %5515 = vmatpush3.bf16.msra.mxu0 %v6723_v9  ;;  %5530 = vmatprep.mubr.msk.bf16.mxu0 %vm6516_vm1, %v9744_v47 }
 0x133   : > { %5516 = vmatprep.subr.bf16.mxu0 %v9744_v47  ;;  %1203 = vmatpush1.bf16.msra.mxu1 %v6729_v10 }
 0x134   : > { %1204 = vmatprep.subr.bf16.mxu1 %v6736_v12 }
 0x136   : > { %5517 = vmatpush3.bf16.msra.mxu0 %v6742_v14 }
 0x137   : > { %5518 = vmatprep.subr.bf16.mxu0 %v9744_v47  ;;  %1205 = vmatpush1.bf16.msra.mxu1 %v6749_v17 }
 0x138   : > { %1206 = vmatprep.subr.bf16.mxu1 %v6755_v20 }
 0x13a   : > { %5519 = vmatpush3.bf16.msra.mxu0 %v6761_v21 }
 0x13b   : > { %5520 = vmatprep.subr.bf16.mxu0 %v9744_v47  ;;  %1207 = vmatpush1.bf16.msra.mxu1 %v6767_v22 }
 0x13c   : > { %1208 = vmatprep.subr.bf16.mxu1 %v6774_v23 }
 0x13e   : > { %5521 = vmatpush3.bf16.msra.mxu0 %v6783_v24 }
 0x13f   : > { %5522 = vmatprep.subr.bf16.mxu0 %v9744_v47  ;;  %1209 = vmatpush1.bf16.msra.mxu1 %v6789_v25 }
 0x140   : > { %1210 = vmatprep.subr.bf16.mxu1 %v6796_v26 }
 0x142   : > { %5523 = vmatpush3.bf16.msra.mxu0 %v6802_v27 }
 0x143   : > { %5524 = vmatprep.subr.bf16.mxu0 %v9744_v47  ;;  %1211 = vmatpush1.bf16.msra.mxu1 %v6808_v28 }
 0x144   : > { %1212 = vmatprep.subr.bf16.mxu1 %v6815_v29 }
 0x146   : > { %5525 = vmatpush3.bf16.msra.mxu0 %v6822_v30 }
 0x147   : > { %5526 = vmatprep.subr.bf16.mxu0 %v9744_v47  ;;  %1213 = vmatpush1.bf16.msra.mxu1 %v6828_v31 }
 0x148   : > { %1214 = vmatprep.subr.bf16.mxu1 %v6835_v32 }
 0x14a   : > { %5527 = vmatpush3.bf16.msra.mxu0 %v6841_v33 }
 0x14b   : > { %5528 = vmatprep.subr.bf16.mxu0 %v9744_v47  ;;  %1215 = vmatpush1.bf16.msra.mxu1 %v6847_v34 }
 0x14c   : > { %1303 = vmatprep.subr.bf16.mxu1 %v6703_v46 }
 0x14e   : > { %5529 = vmatpush3.bf16.msra.mxu0 %v6856_v35 }
 0x14f   : > { %5534 = vmatprep.subr.bf16.mxu0 %v9744_v47 }
 0x1e1   : > { %v816_v43 = vpop.f32.mrb[0].mxu1 }
 0x1e2   : > { %v818_v48 = vpop.f32.mrb[1].mxu1  ;;  %v5488_v49 = vpop.f32.mrb[8].mxu0  ;;  %v817_v45 = vadd.f32 %v816_v43, %v642_v44 }
 0x1e3   : > { %v6921_v51 = vadd.f32 %v5488_v49, %v6916_v42  ;;  %v820_v52 = vpop.f32.mrb[2].mxu1  ;;  %v6923_v53 = vpop.f32.mrb[9].mxu0  ;;  %v819_v37 = vadd.f32 %v818_v48, %v646_v50 }
 0x1e4   : > { %v6925_v54 = vadd.f32 %v820_v52, %v642_v44  ;;  %v822_v55 = vpop.f32.mrb[3].mxu1  ;;  %v5489_v56 = vpop.f32.mrb[10].mxu0 }
 0x1e5   : > { %v6927_v57 = vadd.f32 %v822_v55, %v646_v50  ;;  %v6930_v58 = vadd.f32 %v5489_v56, %v6916_v42  ;;  %v892_v59 = vpop.f32.mrb[11].mxu0 }
 0x1e6   : > { %v6933_v60 = vadd.f32 %v892_v59, %v6916_v42 }
 0x1e9   : > { %v826_v61 = vpop.f32.mrb[4].mxu1 }
 0x1ea   : > { %v6935_v62 = vadd.f32 %v826_v61, %v642_v44  ;;  %v828_v63 = vpop.f32.mrb[5].mxu1  ;;  %v5492_v0 = vpop.f32.mrb[12].mxu0 }
 0x1eb   : > { %v6937_v1 = vadd.f32 %v828_v63, %v646_v50  ;;  %v830_v2 = vpop.f32.mrb[6].mxu1  ;;  %v6940_v3 = vadd.f32 %v5492_v0, %v6916_v42  ;;  %v905_v4 = vpop.f32.mrb[13].mxu0 }
 0x1ec   : > { %v6942_v6 = vadd.f32 %v830_v2, %v642_v44  ;;  %v832_v7 = vpop.f32.mrb[7].mxu1  ;;  %v6945_v11 = vadd.f32 %v905_v4, %v6916_v42  ;;  %v5493_v13 = vpop.f32.mrb[14].mxu0 }
 0x1ed   : > { %10059 = vst [vmem:[#allocation7_spill] sm:$0xff] %v6940_v3  ;;  %v6947_v15 = vadd.f32 %v832_v7, %v646_v50  ;;  %v6950_v16 = vadd.f32 %v5493_v13, %v6916_v42  ;;  %v908_v18 = vpop.f32.mrb[15].mxu0 }
 0x1ee   : > { %v6953_v19 = vadd.f32 %v908_v18, %v6916_v42  ;;  %v952_v18 = vld [vmem:[%s9734_s6] sm:$0x7] }
 0x1ef   : > { %10060 = vst [vmem:[#allocation8_spill] sm:$0xff] %v6950_v16 }
 0x1f0   : > { %10061 = vst [vmem:[#allocation9_spill] sm:$0xff] %v6953_v19 }
 0x1f1   : > { %v836_v39 = vpop.f32.mrb[8].mxu1 }
 0x1f2   : > { %v6955_v49 = vadd.f32 %v836_v39, %v642_v44  ;;  %v838_v52 = vpop.f32.mrb[9].mxu1 }
 0x1f3   : > { %v6957_v55 = vadd.f32 %v838_v52, %v646_v50  ;;  %v840_v56 = vpop.f32.mrb[10].mxu1 }
 0x1f4   : > { %v6959_v59 = vadd.f32 %v840_v56, %v642_v44  ;;  %v842_v61 = vpop.f32.mrb[11].mxu1  ;;  %v6975_v56 = vrot.slane %v952_v18, %v6910_v40 }
 0x1f5   : > { %v6961_v63 = vadd.f32 %v842_v61, %v646_v50  ;;  %v6978_v61 = vrot.slane %v952_v18, %v6913_v41 }
 0x1f7   : > { %10062 = vst [vmem:[#allocation10_spill] sm:$0xff] %v6961_v63 }
 0x1f9   : > { %v846_v0 = vpop.f32.mrb[12].mxu1 }
 0x1fa   : > { %v6963_v2 = vadd.f32 %v846_v0, %v642_v44  ;;  %v848_v4 = vpop.f32.mrb[13].mxu1 }
 0x1fb   : > { %v6965_v7 = vadd.f32 %v848_v4, %v646_v50  ;;  %v850_v13 = vpop.f32.mrb[14].mxu1 }
 0x1fc   : > { %10063 = vst [vmem:[#allocation11_spill] sm:$0xff] %v6963_v2  ;;  %v6970_v39 = vadd.f32 %v850_v13, %v642_v44  ;;  %v852_v52 = vpop.f32.mrb[15].mxu1  ;;  %v6983_v44 = vrot.slane %v952_v18, %v6904_v38 }
 0x1fd   : > { %10064 = vst [vmem:[#allocation12_spill] sm:$0xff] %v6965_v7  ;;  %v6972_v36 = vadd.f32 %v852_v52, %v646_v50 }
 0x1fe   : > { %10065 = vst [vmem:[#allocation13_spill] sm:$0xff] %v6970_v39 }
 0x1ff   : > { %10066 = vst [vmem:[#allocation14_spill] sm:$0xff] %v6972_v36 }
 0x201   : > { %v1131_v0 = vpop.f32.mrb[16].mxu1 }
 0x202   : > { %v1132_v4 = vadd.f32 %v1131_v0, %v6975_v56  ;;  %v1133_v47 = vpop.f32.mrb[17].mxu1 }
 0x203   : > { %v1134_v16 = vadd.f32 %v1133_v47, %v6978_v61  ;;  %v1135_v3 = vpop.f32.mrb[18].mxu1 }
 0x204   : > { %v1178_v13 = vadd.f32 %v1132_v4, %v817_v45  ;;  %v1136_v39 = vpop.f32.mrb[19].mxu1  ;;  %v1172_v7 = vpop.f32.mrb[16].mxu0 }
 0x205   : > { %v1185_v52 = vadd.f32 %v1134_v16, %v819_v37  ;;  %v5512_v36 = vpop.f32.mrb[17].mxu0  ;;  %v1173_v45 = vadd.f32 %v1172_v7, %v6983_v44 }
 0x206   : > { %v5040_v2 = vmul.f32 -1.442695, %v1178_v13  ;;  %v1175_v40 = vpop.f32.mrb[18].mxu0  ;;  %v890_v36 = vadd.f32 %v6923_v53, %v6916_v42  ;;  %v10068_v42 = vmov 0.0   ;;  %v10069_v53 = vmov 0  }
 0x207   : > { %v5513_v19 = vpop.f32.mrb[19].mxu0  ;;  %v5041_v41 = vmul.f32 -1.442695, %v1185_v52 }
 0x208   : > { %5955 = vpow2.f32 %v5040_v2 }
 0x209   : > { %5957 = vpow2.f32 %v5041_v41 }
 0x212   : > { %v5956_v63 = vpop.eup %5955 }
 0x213   : > { %v1182_v43 = vadd.f32 1.0, %v5956_v63  ;;  %v5958_v48 = vpop.eup %5957 }
 0x214   : > { %v1189_v47 = vadd.f32 1.0, %v5958_v48 }
 0x215   : > { %5959 = vrcp.f32 %v1182_v43 }
 0x216   : > { %5961 = vrcp.f32 %v1189_v47 }
 0x21f   : > { %v5960_v50 = vpop.eup %5959 }
 0x220   : > { %v1192_v37 = vmul.f32 %v5960_v50, %v1173_v45  ;;  %v5962_v3 = vpop.eup %5961 }
 0x221   : > { %v1195_v41 = vsub.f32 1.0, %v5962_v3  ;;  %v1197_v19 = vmul.f32 0.0, %v5962_v3 }
 0x222   : > { %v1193_v40 = vadd.f32 %v1192_v37, %v890_v36 }
 0x224   : > { %5963 = vtanh.f32 %v1193_v40 }
 0x22e   : > { %v5964_v16 = vpop.eup %5963 }
 0x22f   : > { %v1196_v63 = vmul.f32 %v5964_v16, %v1195_v41 }
 0x231   : > { %v6988_v2 = vadd.f32 %v1197_v19, %v1196_v63 }
 0x233   : > { %10067 = vst [vmem:[#allocation15_spill] sm:$0xff] %v6988_v2  ;;  %v1199_v18 = vpack.c.bf16 %v6988_v2, %v6988_v2 }
 0x235   : > { %1233 = vmatmul.mubr.bf16.vlgmr.msra.gmra.mrb[20].mxu1 %v1199_v18  ;;  %5531 = vmatmul.mubr.bf16.vlgmr.msra.gmra.mrb[20].mxu0 %v1199_v18 }
 0x236   : > { %1304 = vmatpush1.bf16.msra.mxu1 %v6713_v5  ;;  %5535 = vmatpush3.bf16.msra.mxu0 %v6723_v9 }
 0x237   : > { %1305 = vmatprep.subr.bf16.mxu1 %v6718_v8  ;;  %5536 = vmatprep.subr.bf16.mxu0 %v10068_v42 }
 0x238   : > { %1335 = vmatprep.mubr.bf16.mxu1 %v10069_v53  ;;  %5550 = vmatprep.mubr.msk.bf16.mxu0 %vm6516_vm1, %v10068_v42 }
 0x23a   : > { %1306 = vmatpush1.bf16.msra.mxu1 %v6729_v10  ;;  %5537 = vmatpush3.bf16.msra.mxu0 %v6742_v14 }
 0x23b   : > { %1307 = vmatprep.subr.bf16.mxu1 %v6736_v12  ;;  %5538 = vmatprep.subr.bf16.mxu0 %v10068_v42 }
 0x23e   : > { %1308 = vmatpush1.bf16.msra.mxu1 %v6749_v17  ;;  %5539 = vmatpush3.bf16.msra.mxu0 %v6761_v21 }
 0x23f   : > { %1309 = vmatprep.subr.bf16.mxu1 %v6755_v20  ;;  %5540 = vmatprep.subr.bf16.mxu0 %v10068_v42 }
 0x242   : > { %1310 = vmatpush1.bf16.msra.mxu1 %v6767_v22  ;;  %5541 = vmatpush3.bf16.msra.mxu0 %v6783_v24 }
 0x243   : > { %1311 = vmatprep.subr.bf16.mxu1 %v6774_v23  ;;  %5542 = vmatprep.subr.bf16.mxu0 %v10068_v42 }
 0x246   : > { %1312 = vmatpush1.bf16.msra.mxu1 %v6789_v25  ;;  %5543 = vmatpush3.bf16.msra.mxu0 %v6802_v27 }
 0x247   : > { %1313 = vmatprep.subr.bf16.mxu1 %v6796_v26  ;;  %5544 = vmatprep.subr.bf16.mxu0 %v10068_v42 }
 0x24a   : > { %1314 = vmatpush1.bf16.msra.mxu1 %v6808_v28  ;;  %5545 = vmatpush3.bf16.msra.mxu0 %v6822_v30 }
 0x24b   : > { %1315 = vmatprep.subr.bf16.mxu1 %v6815_v29  ;;  %5546 = vmatprep.subr.bf16.mxu0 %v10068_v42 }
 0x24e   : > { %1316 = vmatpush1.bf16.msra.mxu1 %v6828_v31  ;;  %5547 = vmatpush3.bf16.msra.mxu0 %v6841_v33 }
 0x24f   : > { %1317 = vmatprep.subr.bf16.mxu1 %v6835_v32  ;;  %5548 = vmatprep.subr.bf16.mxu0 %v10068_v42 }
 0x252   : > { %1318 = vmatpush1.bf16.msra.mxu1 %v6847_v34  ;;  %5549 = vmatpush3.bf16.msra.mxu0 %v6856_v35 }
 0x253   : > { %1406 = vmatprep.subr.bf16.mxu1 %v6703_v46  ;;  %5554 = vmatprep.subr.bf16.mxu0 %v10068_v42 }
 0x308   : > { %v1234_v7 = vpop.f32.mrb[20].mxu1  ;;  %v1275_v39 = vpop.f32.mrb[20].mxu0 }
 0x309   : > { %v1235_v0 = vadd.f32 %v1234_v7, %v6975_v56  ;;  %v1236_v4 = vpop.f32.mrb[21].mxu1  ;;  %v5532_v13 = vpop.f32.mrb[21].mxu0  ;;  %v1276_v63 = vadd.f32 %v1275_v39, %v6983_v44 }
 0x30a   : > { %v1237_v52 = vadd.f32 %v1236_v4, %v6978_v61  ;;  %v1238_v43 = vpop.f32.mrb[22].mxu1  ;;  %v1278_v48 = vpop.f32.mrb[22].mxu0 }
 0x30b   : > { %v1281_v47 = vadd.f32 %v1235_v0, %v6925_v54  ;;  %v1239_v45 = vpop.f32.mrb[23].mxu1  ;;  %v5533_v50 = vpop.f32.mrb[23].mxu0 }
 0x30c   : > { %v1288_v36 = vadd.f32 %v1237_v52, %v6927_v57 }
 0x30d   : > { %v5042_v37 = vmul.f32 -1.442695, %v1281_v47 }
 0x30e   : > { %v5043_v40 = vmul.f32 -1.442695, %v1288_v36 }
 0x30f   : > { %5965 = vpow2.f32 %v5042_v37 }
 0x310   : > { %5967 = vpow2.f32 %v5043_v40 }
 0x319   : > { %v5966_v3 = vpop.eup %5965 }
 0x31a   : > { %v1285_v41 = vadd.f32 1.0, %v5966_v3  ;;  %v5968_v16 = vpop.eup %5967 }
 0x31b   : > { %v1292_v19 = vadd.f32 1.0, %v5968_v16 }
 0x31c   : > { %5969 = vrcp.f32 %v1285_v41 }
 0x31d   : > { %5971 = vrcp.f32 %v1292_v19 }
 0x326   : > { %v5970_v18 = vpop.eup %5969 }
 0x327   : > { %v1295_v7 = vmul.f32 %v5970_v18, %v1276_v63  ;;  %v5972_v0 = vpop.eup %5971 }
 0x328   : > { %v1298_v4 = vsub.f32 1.0, %v5972_v0  ;;  %v1300_v52 = vmul.f32 %v5972_v0, %v6988_v2 }
 0x329   : > { %v1296_v54 = vadd.f32 %v1295_v7, %v6933_v60 }
 0x32b   : > { %5973 = vtanh.f32 %v1296_v54 }
 0x335   : > { %v5974_v57 = vpop.eup %5973 }
 0x336   : > { %v1299_v13 = vmul.f32 %v5974_v57, %v1298_v4 }
 0x338   : > { %v7034_v43 = vadd.f32 %v1300_v52, %v1299_v13 }
 0x33a   : > { %v1302_v48 = vpack.c.bf16 %v7034_v43, %v7034_v43 }
 0x33c   : > { %1336 = vmatmul.mubr.bf16.vlgmr.msra.gmra.mrb[24].mxu1 %v1302_v48  ;;  %5551 = vmatmul.mubr.bf16.vlgmr.msra.gmra.mrb[24].mxu0 %v1302_v48 }
 0x33d   : > { %1407 = vmatpush1.bf16.msra.mxu1 %v6713_v5  ;;  %5555 = vmatpush3.bf16.msra.mxu0 %v6723_v9 }
 0x33e   : > { %1408 = vmatprep.subr.bf16.mxu1 %v6718_v8  ;;  %5556 = vmatprep.subr.bf16.mxu0 %v10068_v42 }
 0x33f   : > { %1438 = vmatprep.mubr.bf16.mxu1 %v10069_v53  ;;  %5570 = vmatprep.mubr.msk.bf16.mxu0 %vm6516_vm1, %v10068_v42 }
 0x341   : > { %1409 = vmatpush1.bf16.msra.mxu1 %v6729_v10  ;;  %5557 = vmatpush3.bf16.msra.mxu0 %v6742_v14 }
 0x342   : > { %1410 = vmatprep.subr.bf16.mxu1 %v6736_v12  ;;  %5558 = vmatprep.subr.bf16.mxu0 %v10068_v42 }
 0x345   : > { %1411 = vmatpush1.bf16.msra.mxu1 %v6749_v17  ;;  %5559 = vmatpush3.bf16.msra.mxu0 %v6761_v21 }
 0x346   : > { %1412 = vmatprep.subr.bf16.mxu1 %v6755_v20  ;;  %5560 = vmatprep.subr.bf16.mxu0 %v10068_v42 }
 0x349   : > { %1413 = vmatpush1.bf16.msra.mxu1 %v6767_v22  ;;  %5561 = vmatpush3.bf16.msra.mxu0 %v6783_v24 }
 0x34a   : > { %1414 = vmatprep.subr.bf16.mxu1 %v6774_v23  ;;  %5562 = vmatprep.subr.bf16.mxu0 %v10068_v42 }
 0x34d   : > { %1415 = vmatpush1.bf16.msra.mxu1 %v6789_v25  ;;  %5563 = vmatpush3.bf16.msra.mxu0 %v6802_v27 }
 0x34e   : > { %1416 = vmatprep.subr.bf16.mxu1 %v6796_v26  ;;  %5564 = vmatprep.subr.bf16.mxu0 %v10068_v42 }
 0x351   : > { %1417 = vmatpush1.bf16.msra.mxu1 %v6808_v28  ;;  %5565 = vmatpush3.bf16.msra.mxu0 %v6822_v30 }
 0x352   : > { %1418 = vmatprep.subr.bf16.mxu1 %v6815_v29  ;;  %5566 = vmatprep.subr.bf16.mxu0 %v10068_v42 }
 0x355   : > { %1419 = vmatpush1.bf16.msra.mxu1 %v6828_v31  ;;  %5567 = vmatpush3.bf16.msra.mxu0 %v6841_v33 }
 0x356   : > { %1420 = vmatprep.subr.bf16.mxu1 %v6835_v32  ;;  %5568 = vmatprep.subr.bf16.mxu0 %v10068_v42 }
 0x359   : > { %1421 = vmatpush1.bf16.msra.mxu1 %v6847_v34  ;;  %5569 = vmatpush3.bf16.msra.mxu0 %v6856_v35 }
 0x35a   : > { %1509 = vmatprep.subr.bf16.mxu1 %v6703_v46  ;;  %5574 = vmatprep.subr.bf16.mxu0 %v10068_v42 }
 0x40f   : > { %v1337_v60 = vpop.f32.mrb[24].mxu1  ;;  %v1378_v39 = vpop.f32.mrb[24].mxu0 }
 0x410   : > { %v1338_v47 = vadd.f32 %v1337_v60, %v6975_v56  ;;  %v1339_v45 = vpop.f32.mrb[25].mxu1  ;;  %v5552_v50 = vpop.f32.mrb[25].mxu0  ;;  %v1379_v57 = vadd.f32 %v1378_v39, %v6983_v44 }
 0x411   : > { %v1340_v36 = vadd.f32 %v1339_v45, %v6978_v61  ;;  %v1341_v37 = vpop.f32.mrb[26].mxu1  ;;  %v1381_v40 = vpop.f32.mrb[26].mxu0 }
 0x412   : > { %v1384_v3 = vadd.f32 %v1338_v47, %v6935_v62  ;;  %v1342_v41 = vpop.f32.mrb[27].mxu1  ;;  %v5553_v16 = vpop.f32.mrb[27].mxu0 }
 0x413   : > { %v1391_v19 = vadd.f32 %v1340_v36, %v6937_v1 }
 0x414   : > { %v5044_v63 = vmul.f32 -1.442695, %v1384_v3 }
 0x415   : > { %v5045_v18 = vmul.f32 -1.442695, %v1391_v19 }
 0x416   : > { %5975 = vpow2.f32 %v5044_v63 }
 0x417   : > { %5977 = vpow2.f32 %v5045_v18 }
 0x420   : > { %v5976_v7 = vpop.eup %5975 }
 0x421   : > { %v1388_v54 = vadd.f32 1.0, %v5976_v7  ;;  %v5978_v0 = vpop.eup %5977 }
 0x422   : > { %v1395_v4 = vadd.f32 1.0, %v5978_v0 }
 0x423   : > { %5979 = vrcp.f32 %v1388_v54 }
 0x424   : > { %5981 = vrcp.f32 %v1395_v4 }
 0x42d   : > { %v5980_v13 = vpop.eup %5979 }
 0x42e   : > { %v1398_v52 = vmul.f32 %v5980_v13, %v1379_v57  ;;  %v5982_v48 = vpop.eup %5981 }
 0x42f   : > { %v1401_v60 = vsub.f32 1.0, %v5982_v48  ;;  %v1403_v45 = vmul.f32 %v5982_v48, %v7034_v43 }
 0x430   : > { %v1399_v62 = vadd.f32 %v1398_v52, %v6921_v51 }
 0x432   : > { %5983 = vtanh.f32 %v1399_v62 }
 0x43c   : > { %v5984_v1 = vpop.eup %5983 }
 0x43d   : > { %v1402_v47 = vmul.f32 %v5984_v1, %v1401_v60 }
 0x43f   : > { %v7080_v50 = vadd.f32 %v1403_v45, %v1402_v47 }
 0x441   : > { %v1405_v36 = vpack.c.bf16 %v7080_v50, %v7080_v50 }
 0x443   : > { %1439 = vmatmul.mubr.bf16.vlgmr.msra.gmra.mrb[28].mxu1 %v1405_v36  ;;  %5571 = vmatmul.mubr.bf16.vlgmr.msra.gmra.mrb[28].mxu0 %v1405_v36 }
 0x444   : > { %1510 = vmatpush1.bf16.msra.mxu1 %v6713_v5  ;;  %5575 = vmatpush3.bf16.msra.mxu0 %v6723_v9 }
 0x445   : > { %1511 = vmatprep.subr.bf16.mxu1 %v6718_v8  ;;  %5576 = vmatprep.subr.bf16.mxu0 %v10068_v42 }
 0x446   : > { %1541 = vmatprep.mubr.bf16.mxu1 %v10069_v53  ;;  %5590 = vmatprep.mubr.msk.bf16.mxu0 %vm6516_vm1, %v10068_v42 }
 0x448   : > { %1512 = vmatpush1.bf16.msra.mxu1 %v6729_v10  ;;  %5577 = vmatpush3.bf16.msra.mxu0 %v6742_v14 }
 0x449   : > { %1513 = vmatprep.subr.bf16.mxu1 %v6736_v12  ;;  %5578 = vmatprep.subr.bf16.mxu0 %v10068_v42 }
 0x44c   : > { %1514 = vmatpush1.bf16.msra.mxu1 %v6749_v17  ;;  %5579 = vmatpush3.bf16.msra.mxu0 %v6761_v21 }
 0x44d   : > { %1515 = vmatprep.subr.bf16.mxu1 %v6755_v20  ;;  %5580 = vmatprep.subr.bf16.mxu0 %v10068_v42 }
 0x450   : > { %1516 = vmatpush1.bf16.msra.mxu1 %v6767_v22  ;;  %5581 = vmatpush3.bf16.msra.mxu0 %v6783_v24 }
 0x451   : > { %1517 = vmatprep.subr.bf16.mxu1 %v6774_v23  ;;  %5582 = vmatprep.subr.bf16.mxu0 %v10068_v42 }
 0x454   : > { %1518 = vmatpush1.bf16.msra.mxu1 %v6789_v25  ;;  %5583 = vmatpush3.bf16.msra.mxu0 %v6802_v27 }
 0x455   : > { %1519 = vmatprep.subr.bf16.mxu1 %v6796_v26  ;;  %5584 = vmatprep.subr.bf16.mxu0 %v10068_v42 }
 0x458   : > { %1520 = vmatpush1.bf16.msra.mxu1 %v6808_v28  ;;  %5585 = vmatpush3.bf16.msra.mxu0 %v6822_v30 }
 0x459   : > { %1521 = vmatprep.subr.bf16.mxu1 %v6815_v29  ;;  %5586 = vmatprep.subr.bf16.mxu0 %v10068_v42 }
 0x45c   : > { %1522 = vmatpush1.bf16.msra.mxu1 %v6828_v31  ;;  %5587 = vmatpush3.bf16.msra.mxu0 %v6841_v33 }
 0x45d   : > { %1523 = vmatprep.subr.bf16.mxu1 %v6835_v32  ;;  %5588 = vmatprep.subr.bf16.mxu0 %v10068_v42 }
 0x460   : > { %1524 = vmatpush1.bf16.msra.mxu1 %v6847_v34  ;;  %5589 = vmatpush3.bf16.msra.mxu0 %v6856_v35 }
 0x461   : > { %1612 = vmatprep.subr.bf16.mxu1 %v6703_v46  ;;  %5594 = vmatprep.subr.bf16.mxu0 %v10068_v42 }
 0x516   : > { %v1440_v51 = vpop.f32.mrb[28].mxu1  ;;  %v1481_v39 = vpop.f32.mrb[28].mxu0 }
 0x517   : > { %v1441_v37 = vadd.f32 %v1440_v51, %v6975_v56  ;;  %v1442_v40 = vpop.f32.mrb[29].mxu1  ;;  %v5572_v3 = vpop.f32.mrb[29].mxu0  ;;  %v1482_v48 = vadd.f32 %v1481_v39, %v6983_v44 }
 0x518   : > { %v1443_v41 = vadd.f32 %v1442_v40, %v6978_v61  ;;  %v1444_v16 = vpop.f32.mrb[30].mxu1  ;;  %v1484_v19 = vpop.f32.mrb[30].mxu0 }
 0x519   : > { %v1487_v63 = vadd.f32 %v1441_v37, %v6942_v6  ;;  %v1445_v18 = vpop.f32.mrb[31].mxu1  ;;  %v5573_v7 = vpop.f32.mrb[31].mxu0 }
 0x51a   : > { %v1494_v54 = vadd.f32 %v1443_v41, %v6947_v15 }
 0x51b   : > { %v5046_v0 = vmul.f32 -1.442695, %v1487_v63 }
 0x51c   : > { %v5047_v4 = vmul.f32 -1.442695, %v1494_v54 }
 0x51d   : > { %5985 = vpow2.f32 %v5046_v0 }
 0x51e   : > { %5987 = vpow2.f32 %v5047_v4 }
 0x527   : > { %v5986_v57 = vpop.eup %5985 }
 0x528   : > { %v1491_v13 = vadd.f32 1.0, %v5986_v57  ;;  %v5988_v52 = vpop.eup %5987 }
 0x529   : > { %v1498_v62 = vadd.f32 1.0, %v5988_v52 }
 0x52a   : > { %5989 = vrcp.f32 %v1491_v13 }
 0x52b   : > { %5991 = vrcp.f32 %v1498_v62 }
 0x534   : > { %v5990_v60 = vpop.eup %5989 }
 0x535   : > { %v1501_v1 = vmul.f32 %v5990_v60, %v1482_v48  ;;  %v5992_v47 = vpop.eup %5991 }
 0x536   : > { %v1504_v45 = vsub.f32 1.0, %v5992_v47  ;;  %v1506_v51 = vmul.f32 %v5992_v47, %v7080_v50 }
 0x537   : > { %v1502_v6 = vadd.f32 %v1501_v1, %v6930_v58 }
 0x539   : > { %5993 = vtanh.f32 %v1502_v6 }
 0x543   : > { %v5994_v15 = vpop.eup %5993 }
 0x544   : > { %v1505_v36 = vmul.f32 %v5994_v15, %v1504_v45 }
 0x546   : > { %v7126_v37 = vadd.f32 %v1506_v51, %v1505_v36 }
 0x548   : > { %v1508_v40 = vpack.c.bf16 %v7126_v37, %v7126_v37 }
 0x54a   : > { %1542 = vmatmul.mubr.bf16.vlgmr.msra.gmra.mrb[32].mxu1 %v1508_v40  ;;  %5591 = vmatmul.mubr.bf16.vlgmr.msra.gmra.mrb[32].mxu0 %v1508_v40 }
 0x54b   : > { %1613 = vmatpush1.bf16.msra.mxu1 %v6713_v5  ;;  %5595 = vmatpush3.bf16.msra.mxu0 %v6723_v9 }
 0x54c   : > { %1614 = vmatprep.subr.bf16.mxu1 %v6718_v8  ;;  %5596 = vmatprep.subr.bf16.mxu0 %v10068_v42 }
 0x54d   : > { %1644 = vmatprep.mubr.bf16.mxu1 %v10069_v53  ;;  %5610 = vmatprep.mubr.msk.bf16.mxu0 %vm6516_vm1, %v10068_v42 }
 0x54f   : > { %1615 = vmatpush1.bf16.msra.mxu1 %v6729_v10  ;;  %5597 = vmatpush3.bf16.msra.mxu0 %v6742_v14 }
 0x550   : > { %1616 = vmatprep.subr.bf16.mxu1 %v6736_v12  ;;  %5598 = vmatprep.subr.bf16.mxu0 %v10068_v42 }
 0x553   : > { %1617 = vmatpush1.bf16.msra.mxu1 %v6749_v17  ;;  %5599 = vmatpush3.bf16.msra.mxu0 %v6761_v21 }
 0x554   : > { %1618 = vmatprep.subr.bf16.mxu1 %v6755_v20  ;;  %5600 = vmatprep.subr.bf16.mxu0 %v10068_v42 }
 0x557   : > { %1619 = vmatpush1.bf16.msra.mxu1 %v6767_v22  ;;  %5601 = vmatpush3.bf16.msra.mxu0 %v6783_v24 }
 0x558   : > { %1620 = vmatprep.subr.bf16.mxu1 %v6774_v23  ;;  %5602 = vmatprep.subr.bf16.mxu0 %v10068_v42 }
 0x55b   : > { %1621 = vmatpush1.bf16.msra.mxu1 %v6789_v25  ;;  %5603 = vmatpush3.bf16.msra.mxu0 %v6802_v27 }
 0x55c   : > { %1622 = vmatprep.subr.bf16.mxu1 %v6796_v26  ;;  %5604 = vmatprep.subr.bf16.mxu0 %v10068_v42 }
 0x55f   : > { %1623 = vmatpush1.bf16.msra.mxu1 %v6808_v28  ;;  %5605 = vmatpush3.bf16.msra.mxu0 %v6822_v30 }
 0x560   : > { %1624 = vmatprep.subr.bf16.mxu1 %v6815_v29  ;;  %5606 = vmatprep.subr.bf16.mxu0 %v10068_v42 }
 0x563   : > { %1625 = vmatpush1.bf16.msra.mxu1 %v6828_v31  ;;  %5607 = vmatpush3.bf16.msra.mxu0 %v6841_v33 }
 0x564   : > { %1626 = vmatprep.subr.bf16.mxu1 %v6835_v32  ;;  %5608 = vmatprep.subr.bf16.mxu0 %v10068_v42 }
 0x567   : > { %1627 = vmatpush1.bf16.msra.mxu1 %v6847_v34  ;;  %5609 = vmatpush3.bf16.msra.mxu0 %v6856_v35 }
 0x568   : > { %1715 = vmatprep.subr.bf16.mxu1 %v6703_v46  ;;  %5614 = vmatprep.subr.bf16.mxu0 %v10068_v42 }
 0x61d   : > { %v1543_v58 = vpop.f32.mrb[32].mxu1  ;;  %v1584_v39 = vpop.f32.mrb[32].mxu0 }
 0x61e   : > { %v1544_v3 = vadd.f32 %v1543_v58, %v6975_v56  ;;  %v1545_v41 = vpop.f32.mrb[33].mxu1  ;;  %v5592_v16 = vpop.f32.mrb[33].mxu0  ;;  %v1585_v60 = vadd.f32 %v1584_v39, %v6983_v44 }
 0x61f   : > { %v1546_v19 = vadd.f32 %v1545_v41, %v6978_v61  ;;  %v1547_v63 = vpop.f32.mrb[34].mxu1  ;;  %v1587_v18 = vpop.f32.mrb[34].mxu0 }
 0x620   : > { %v1590_v7 = vadd.f32 %v1544_v3, %v6955_v49  ;;  %v1548_v54 = vpop.f32.mrb[35].mxu1  ;;  %v5593_v0 = vpop.f32.mrb[35].mxu0  ;;  %v6292_v18 = vld [vmem:[%s9732_s4] ss:$12 sps:$4 sm:$0xff]  }
 0x621   : > { %v1597_v4 = vadd.f32 %v1546_v19, %v6957_v55  ;;  %v6294_v54 = vld [vmem:[%s9732_s4 + $0x1c] ss:$12 sps:$4 sm:$0xff]   ;;  %v6295_v0 = vld [vmem:[%s9732_s4 + $0x18] ss:$12 sps:$4 sm:$0xff]  }
 0x622   : > { %v5048_v57 = vmul.f32 -1.442695, %v1590_v7  ;;  %v6293_v7 = vld [vmem:[%s9732_s4 + $0x8] ss:$12 sps:$4 sm:$0xff]  }
 0x623   : > { %v5049_v46 = vmul.f32 -1.442695, %v1597_v4  ;;  %v6296_v4 = vld [vmem:[%s9732_s4 + $0x20] ss:$12 sps:$4 sm:$0xff]  }
 0x624   : > { %5995 = vpow2.f32 %v5048_v57  ;;  %v6297_v57 = vld [vmem:[%s9732_s4 + $0x34] ss:$12 sps:$4 sm:$0xff]  }
 0x625   : > { %5997 = vpow2.f32 %v5049_v46  ;;  %v6298_v46 = vld [vmem:[%s9732_s4 + $0x30] ss:$12 sps:$4 sm:$0xff]  }
 0x62e   : > { %v5996_v13 = vpop.eup %5995 }
 0x62f   : > { %v1594_v52 = vadd.f32 1.0, %v5996_v13  ;;  %v5998_v62 = vpop.eup %5997  ;;  %v6299_v13 = vld [vmem:[%s9732_s4 + $0x38] ss:$12 sps:$4 sm:$0xff]  }
 0x630   : > { %v1601_v48 = vadd.f32 1.0, %v5998_v62  ;;  %v6301_v62 = vld [vmem:[%s9732_s4 + $0x48] ss:$12 sps:$4 sm:$0xff]  }
 0x631   : > { %5999 = vrcp.f32 %v1594_v52  ;;  %v6300_v52 = vld [vmem:[%s9732_s4 + $0x4c] ss:$12 sps:$4 sm:$0xff]  }
 0x632   : > { %6001 = vrcp.f32 %v1601_v48  ;;  %v6302_v48 = vld [vmem:[%s9732_s4 + $0x50] ss:$12 sps:$4 sm:$0xff]  }
 0x63b   : > { %v6000_v1 = vpop.eup %5999 }
 0x63c   : > { %v1604_v6 = vmul.f32 %v6000_v1, %v1585_v60  ;;  %v6002_v47 = vpop.eup %6001  ;;  %v6303_v60 = vld [vmem:[%s9732_s4 + $0x64] ss:$12 sps:$4 sm:$0xff]   ;;  %v6304_v1 = vld [vmem:[%s9732_s4 + $0x60] ss:$12 sps:$4 sm:$0xff]  }
 0x63d   : > { %v1607_v45 = vsub.f32 1.0, %v6002_v47  ;;  %v1609_v36 = vmul.f32 %v6002_v47, %v7126_v37  ;;  %v6307_v47 = vld [vmem:[%s9732_s4 + $0x78] ss:$12 sps:$4 sm:$0xff]  }
 0x63e   : > { %v1605_v49 = vadd.f32 %v1604_v6, %v6945_v11  ;;  %v10071_v11 = vld [vmem:[#allocation9_spill] sm:$0xff] }
 0x63f   : > { %v6305_v6 = vld [vmem:[%s9732_s4 + $0x68] ss:$12 sps:$4 sm:$0xff]  }
 0x640   : > { %6003 = vtanh.f32 %v1605_v49  ;;  %v6306_v49 = vld [vmem:[%s9732_s4 + $0x7c] ss:$12 sps:$4 sm:$0xff]  }
 0x64a   : > { %v6004_v55 = vpop.eup %6003 }
 0x64b   : > { %v1608_v15 = vmul.f32 %v6004_v55, %v1607_v45  ;;  %v6308_v45 = vld [vmem:[%s9732_s4 + $0x80] ss:$12 sps:$4 sm:$0xff]  }
 0x64c   : > { %v6309_v55 = vld [vmem:[%s9732_s4 + $0x94] ss:$12 sps:$4 sm:$0xff]  }
 0x64d   : > { %v7172_v51 = vadd.f32 %v1609_v36, %v1608_v15  ;;  %v6310_v15 = vld [vmem:[%s9732_s4 + $0x90] ss:$12 sps:$4 sm:$0xff]   ;;  %v6311_v36 = vld [vmem:[%s9732_s4 + $0x98] ss:$12 sps:$4 sm:$0xff]  }
 0x64f   : > { %v1611_v40 = vpack.c.bf16 %v7172_v51, %v7172_v51 }
 0x651   : > { %1645 = vmatmul.mubr.bf16.vlgmr.msra.gmra.mrb[36].mxu1 %v1611_v40  ;;  %5611 = vmatmul.mubr.bf16.vlgmr.msra.gmra.mrb[36].mxu0 %v1611_v40  ;;  %v6312_v40 = vld [vmem:[%s9732_s4 + $0xac] ss:$12 sps:$4 sm:$0xff]  }
 0x652   : > { %1716 = vmatpush1.bf16.msra.mxu1 %v6713_v5  ;;  %5615 = vmatpush3.bf16.msra.mxu0 %v6723_v9  ;;  %v6291_v5 = vld [vmem:[%s9732_s4 + $0x4] ss:$12 sps:$4 sm:$0xff]  }
 0x653   : > { %1717 = vmatprep.subr.bf16.mxu1 %v6718_v8  ;;  %5616 = vmatprep.subr.bf16.mxu0 %v10068_v42 }
 0x654   : > { %1747 = vmatprep.mubr.bf16.mxu1 %v10069_v53  ;;  %5630 = vmatprep.mubr.msk.bf16.mxu0 %vm6516_vm1, %v10068_v42 }
 0x656   : > { %1718 = vmatpush1.bf16.msra.mxu1 %v6729_v10  ;;  %5617 = vmatpush3.bf16.msra.mxu0 %v6742_v14 }
 0x657   : > { %1719 = vmatprep.subr.bf16.mxu1 %v6736_v12  ;;  %5618 = vmatprep.subr.bf16.mxu0 %v10068_v42 }
 0x65a   : > { %1720 = vmatpush1.bf16.msra.mxu1 %v6749_v17  ;;  %5619 = vmatpush3.bf16.msra.mxu0 %v6761_v21 }
 0x65b   : > { %1721 = vmatprep.subr.bf16.mxu1 %v6755_v20  ;;  %5620 = vmatprep.subr.bf16.mxu0 %v10068_v42 }
 0x65e   : > { %1722 = vmatpush1.bf16.msra.mxu1 %v6767_v22  ;;  %5621 = vmatpush3.bf16.msra.mxu0 %v6783_v24 }
 0x65f   : > { %1723 = vmatprep.subr.bf16.mxu1 %v6774_v23  ;;  %5622 = vmatprep.subr.bf16.mxu0 %v10068_v42 }
 0x662   : > { %1724 = vmatpush1.bf16.msra.mxu1 %v6789_v25  ;;  %5623 = vmatpush3.bf16.msra.mxu0 %v6802_v27  ;;  %v10070_v25 = vld [vmem:[#allocation10_spill] sm:$0xff] }
 0x663   : > { %1725 = vmatprep.subr.bf16.mxu1 %v6796_v26  ;;  %5624 = vmatprep.subr.bf16.mxu0 %v10068_v42 }
 0x666   : > { %1726 = vmatpush1.bf16.msra.mxu1 %v6808_v28  ;;  %5625 = vmatpush3.bf16.msra.mxu0 %v6822_v30 }
 0x667   : > { %1727 = vmatprep.subr.bf16.mxu1 %v6815_v29  ;;  %5626 = vmatprep.subr.bf16.mxu0 %v10068_v42 }
 0x66a   : > { %1728 = vmatpush1.bf16.msra.mxu1 %v6828_v31  ;;  %5627 = vmatpush3.bf16.msra.mxu0 %v6841_v33 }
 0x66b   : > { %1729 = vmatprep.subr.bf16.mxu1 %v6835_v32  ;;  %5628 = vmatprep.subr.bf16.mxu0 %v10068_v42 }
 0x66e   : > { %1730 = vmatpush1.bf16.msra.mxu1 %v6847_v34  ;;  %5629 = vmatpush3.bf16.msra.mxu0 %v6856_v35 }
 0x66f   : > { %1818 = vmatprep.subr.bf16.mxu1 %v6291_v5  ;;  %5634 = vmatprep.subr.bf16.mxu0 %v10068_v42  ;;  %v6313_v5 = vld [vmem:[%s9732_s4 + $0xa8] ss:$12 sps:$4 sm:$0xff]  }
 0x724   : > { %v1646_v8 = vpop.f32.mrb[36].mxu1  ;;  %v1687_v9 = vpop.f32.mrb[36].mxu0 }
 0x725   : > { %v1647_v10 = vadd.f32 %v1646_v8, %v6975_v56  ;;  %v1648_v12 = vpop.f32.mrb[37].mxu1  ;;  %v5612_v14 = vpop.f32.mrb[37].mxu0  ;;  %v1688_v33 = vadd.f32 %v1687_v9, %v6983_v44  ;;  %v6314_v8 = vld [vmem:[%s9732_s4 + $0xb0] ss:$12 sps:$4 sm:$0xff]  }
 0x726   : > { %v1649_v17 = vadd.f32 %v1648_v12, %v6978_v61  ;;  %v1650_v20 = vpop.f32.mrb[38].mxu1  ;;  %v1690_v21 = vpop.f32.mrb[38].mxu0 }
 0x727   : > { %v1693_v22 = vadd.f32 %v1647_v10, %v6959_v59  ;;  %v1651_v23 = vpop.f32.mrb[39].mxu1  ;;  %v5613_v24 = vpop.f32.mrb[39].mxu0 }
 0x728   : > { %v1700_v26 = vadd.f32 %v1649_v17, %v10070_v25 }
 0x729   : > { %v5050_v27 = vmul.f32 -1.442695, %v1693_v22  ;;  %v10072_v22 = vld [vmem:[#allocation11_spill] sm:$0xff] }
 0x72a   : > { %v5051_v28 = vmul.f32 -1.442695, %v1700_v26  ;;  %v10073_v26 = vld [vmem:[#allocation12_spill] sm:$0xff] }
 0x72b   : > { %6005 = vpow2.f32 %v5050_v27 }
 0x72c   : > { %6007 = vpow2.f32 %v5051_v28 }
 0x735   : > { %v6006_v29 = vpop.eup %6005 }
 0x736   : > { %v1697_v30 = vadd.f32 1.0, %v6006_v29  ;;  %v6008_v31 = vpop.eup %6007 }
 0x737   : > { %v1704_v32 = vadd.f32 1.0, %v6008_v31 }
 0x738   : > { %6009 = vrcp.f32 %v1697_v30 }
 0x739   : > { %6011 = vrcp.f32 %v1704_v32 }
 0x742   : > { %v6010_v34 = vpop.eup %6009 }
 0x743   : > { %v1707_v35 = vmul.f32 %v6010_v34, %v1688_v33  ;;  %v6012_v58 = vpop.eup %6011 }
 0x744   : > { %v1710_v39 = vsub.f32 1.0, %v6012_v58  ;;  %v1712_v16 = vmul.f32 %v6012_v58, %v7172_v51 }
 0x745   : > { %v1708_v59 = vadd.f32 %v1707_v35, %v10071_v11 }
 0x747   : > { %6013 = vtanh.f32 %v1708_v59  ;;  %v10074_v59 = vld [vmem:[#allocation7_spill] sm:$0xff] }
 0x751   : > { %v6014_v3 = vpop.eup %6013 }
 0x752   : > { %v1711_v41 = vmul.f32 %v6014_v3, %v1710_v39 }
 0x754   : > { %v7220_v19 = vadd.f32 %v1712_v16, %v1711_v41 }
 0x756   : > { %v1714_v63 = vpack.c.bf16 %v7220_v19, %v7220_v19 }
 0x758   : > { %1748 = vmatmul.mubr.bf16.vlgmr.msra.gmra.mrb[40].mxu1 %v1714_v63  ;;  %5631 = vmatmul.mubr.bf16.vlgmr.msra.gmra.mrb[40].mxu0 %v1714_v63 }
 0x759   : > { %1819 = vmatpush1.bf16.msra.mxu1 %v6292_v18  ;;  %5635 = vmatpush3.bf16.msra.mxu0 %v6293_v7 }
 0x75a   : > { %1820 = vmatprep.subr.bf16.mxu1 %v6294_v54  ;;  %5636 = vmatprep.subr.bf16.mxu0 %v10068_v42  ;;  %v7319_v54 = vld [vmem:[%s9737_s9 + $0x4] ss:$16 sps:$4 sm:$0xff]  }
 0x75b   : > { %1850 = vmatprep.mubr.bf16.mxu1 %v10069_v53  ;;  %5650 = vmatprep.mubr.msk.bf16.mxu0 %vm6516_vm1, %v10068_v42  ;;  %10075 = vst [vmem:[#allocation10_spill] sm:$0xff] %v7319_v54 }
 0x75d   : > { %1821 = vmatpush1.bf16.msra.mxu1 %v6295_v0  ;;  %5637 = vmatpush3.bf16.msra.mxu0 %v6296_v4  ;;  %v7324_v0 = vld [vmem:[%s9737_s9 + $0xc] ss:$16 sps:$4 sm:$0xff]   ;;  %v7329_v4 = vld [vmem:[%s9737_s9] ss:$16 sps:$4 sm:$0xff]  }
 0x75e   : > { %1822 = vmatprep.subr.bf16.mxu1 %v6297_v57  ;;  %5638 = vmatprep.subr.bf16.mxu0 %v10068_v42  ;;  %10076 = vst [vmem:[#allocation9_spill] sm:$0xff] %v7324_v0  ;;  %v7334_v57 = vld [vmem:[%s9737_s9 + $0x8] ss:$16 sps:$4 sm:$0xff]  }
 0x761   : > { %1823 = vmatpush1.bf16.msra.mxu1 %v6298_v46  ;;  %5639 = vmatpush3.bf16.msra.mxu0 %v6299_v13  ;;  %v7343_v46 = vld [vmem:[%s9737_s9 + $0x24] ss:$16 sps:$4 sm:$0xff]   ;;  %v7348_v13 = vld [vmem:[%s9737_s9 + $0x2c] ss:$16 sps:$4 sm:$0xff]  }
 0x762   : > { %1824 = vmatprep.subr.bf16.mxu1 %v6300_v52  ;;  %5640 = vmatprep.subr.bf16.mxu0 %v10068_v42  ;;  %v7353_v52 = vld [vmem:[%s9737_s9 + $0x20] ss:$16 sps:$4 sm:$0xff]  }
 0x765   : > { %1825 = vmatpush1.bf16.msra.mxu1 %v6301_v62  ;;  %5641 = vmatpush3.bf16.msra.mxu0 %v6302_v48  ;;  %v7358_v62 = vld [vmem:[%s9737_s9 + $0x28] ss:$16 sps:$4 sm:$0xff]   ;;  %v7367_v48 = vld [vmem:[%s9737_s9 + $0x44] ss:$16 sps:$4 sm:$0xff]  }
 0x766   : > { %1826 = vmatprep.subr.bf16.mxu1 %v6303_v60  ;;  %5642 = vmatprep.subr.bf16.mxu0 %v10068_v42  ;;  %v7372_v60 = vld [vmem:[%s9737_s9 + $0x4c] ss:$16 sps:$4 sm:$0xff]  }
 0x769   : > { %1827 = vmatpush1.bf16.msra.mxu1 %v6304_v1  ;;  %5643 = vmatpush3.bf16.msra.mxu0 %v6305_v6  ;;  %v7377_v1 = vld [vmem:[%s9737_s9 + $0x40] ss:$16 sps:$4 sm:$0xff]   ;;  %v7382_v6 = vld [vmem:[%s9737_s9 + $0x48] ss:$16 sps:$4 sm:$0xff]  }
 0x76a   : > { %1828 = vmatprep.subr.bf16.mxu1 %v6306_v49  ;;  %5644 = vmatprep.subr.bf16.mxu0 %v10068_v42  ;;  %v7391_v49 = vld [vmem:[%s9737_s9 + $0x64] ss:$16 sps:$4 sm:$0xff]  }
 0x76d   : > { %1829 = vmatpush1.bf16.msra.mxu1 %v6307_v47  ;;  %5645 = vmatpush3.bf16.msra.mxu0 %v6308_v45  ;;  %v7396_v47 = vld [vmem:[%s9737_s9 + $0x6c] ss:$16 sps:$4 sm:$0xff]   ;;  %v7401_v45 = vld [vmem:[%s9737_s9 + $0x60] ss:$16 sps:$4 sm:$0xff]  }
 0x76e   : > { %1830 = vmatprep.subr.bf16.mxu1 %v6309_v55  ;;  %5646 = vmatprep.subr.bf16.mxu0 %v10068_v42  ;;  %v7406_v55 = vld [vmem:[%s9737_s9 + $0x68] ss:$16 sps:$4 sm:$0xff]  }
 0x771   : > { %1831 = vmatpush1.bf16.msra.mxu1 %v6310_v15  ;;  %5647 = vmatpush3.bf16.msra.mxu0 %v6311_v36  ;;  %v7415_v15 = vld [vmem:[%s9737_s9 + $0x84] ss:$16 sps:$4 sm:$0xff]   ;;  %v7420_v36 = vld [vmem:[%s9737_s9 + $0x8c] ss:$16 sps:$4 sm:$0xff]  }
 0x772   : > { %1832 = vmatprep.subr.bf16.mxu1 %v6312_v40  ;;  %5648 = vmatprep.subr.bf16.mxu0 %v10068_v42  ;;  %v7425_v40 = vld [vmem:[%s9737_s9 + $0x80] ss:$16 sps:$4 sm:$0xff]  }
 0x775   : > { %1833 = vmatpush1.bf16.msra.mxu1 %v6313_v5  ;;  %5649 = vmatpush3.bf16.msra.mxu0 %v6314_v8  ;;  %v7430_v5 = vld [vmem:[%s9737_s9 + $0x88] ss:$16 sps:$4 sm:$0xff]   ;;  %v7439_v8 = vld [vmem:[%s9737_s9 + $0xa4] ss:$16 sps:$4 sm:$0xff]  }
 0x776   : > { %2222 = vmatprep.subr.bf16.mxu1 %v7319_v54  ;;  %2263 = vmatprep.subr.bf16.mxu0 %v7324_v0 }
 0x82b   : > { %v1749_v9 = vpop.f32.mrb[40].mxu1  ;;  %v1790_v10 = vpop.f32.mrb[40].mxu0 }
 0x82c   : > { %v1750_v12 = vadd.f32 %v1749_v9, %v6975_v56  ;;  %v1751_v14 = vpop.f32.mrb[41].mxu1  ;;  %v5632_v17 = vpop.f32.mrb[41].mxu0  ;;  %v1791_v34 = vadd.f32 %v1790_v10, %v6983_v44  ;;  %v7444_v9 = vld [vmem:[%s9737_s9 + $0xac] ss:$16 sps:$4 sm:$0xff]   ;;  %v7449_v10 = vld [vmem:[%s9737_s9 + $0xa0] ss:$16 sps:$4 sm:$0xff]  }
 0x82d   : > { %v1752_v20 = vadd.f32 %v1751_v14, %v6978_v61  ;;  %v1753_v21 = vpop.f32.mrb[42].mxu1  ;;  %v1793_v42 = vpop.f32.mrb[42].mxu0  ;;  %v7463_v14 = vld [vmem:[%s9737_s9 + $0xc4] ss:$16 sps:$4 sm:$0xff]   ;;  %v7468_v17 = vld [vmem:[%s9737_s9 + $0xcc] ss:$16 sps:$4 sm:$0xff]  }
 0x82e   : > { %v1796_v23 = vadd.f32 %v1750_v12, %v10072_v22  ;;  %v1754_v24 = vpop.f32.mrb[43].mxu1  ;;  %v5633_v25 = vpop.f32.mrb[43].mxu0  ;;  %v7454_v12 = vld [vmem:[%s9737_s9 + $0xa8] ss:$16 sps:$4 sm:$0xff]   ;;  %v7487_v42 = vld [vmem:[%s9737_s9 + $0xe4] ss:$16 sps:$4 sm:$0xff]  }
 0x82f   : > { %v1803_v27 = vadd.f32 %v1752_v20, %v10073_v26  ;;  %v7473_v20 = vld [vmem:[%s9737_s9 + $0xc0] ss:$16 sps:$4 sm:$0xff]   ;;  %v7478_v21 = vld [vmem:[%s9737_s9 + $0xc8] ss:$16 sps:$4 sm:$0xff]   ;;  %v7492_v22 = vld [vmem:[%s9737_s9 + $0xec] ss:$16 sps:$4 sm:$0xff]  }
 0x830   : > { %v5052_v28 = vmul.f32 -1.442695, %v1796_v23  ;;  %v7497_v23 = vld [vmem:[%s9737_s9 + $0xe0] ss:$16 sps:$4 sm:$0xff]   ;;  %v7502_v24 = vld [vmem:[%s9737_s9 + $0xe8] ss:$16 sps:$4 sm:$0xff]  }
 0x831   : > { %v5053_v29 = vmul.f32 -1.442695, %v1803_v27 }
 0x832   : > { %6015 = vpow2.f32 %v5052_v28 }
 0x833   : > { %6017 = vpow2.f32 %v5053_v29 }
 0x83c   : > { %v6016_v30 = vpop.eup %6015 }
 0x83d   : > { %v1800_v31 = vadd.f32 1.0, %v6016_v30  ;;  %v6018_v32 = vpop.eup %6017 }
 0x83e   : > { %v1807_v33 = vadd.f32 1.0, %v6018_v32 }
 0x83f   : > { %6019 = vrcp.f32 %v1800_v31 }
 0x840   : > { %6021 = vrcp.f32 %v1807_v33  ;;  %v10077_v33 = vld [vmem:[#allocation13_spill] sm:$0xff] }
 0x849   : > { %v6020_v35 = vpop.eup %6019 }
 0x84a   : > { %v1810_v11 = vmul.f32 %v6020_v35, %v1791_v34  ;;  %v6022_v39 = vpop.eup %6021 }
 0x84b   : > { %v1813_v3 = vsub.f32 1.0, %v6022_v39  ;;  %v1815_v63 = vmul.f32 %v6022_v39, %v7220_v19 }
 0x84c   : > { %v1811_v58 = vadd.f32 %v1810_v11, %v10074_v59  ;;  %v10078_v59 = vld [vmem:[#allocation14_spill] sm:$0xff] }
 0x84e   : > { %6023 = vtanh.f32 %v1811_v58 }
 0x858   : > { %v6024_v41 = vpop.eup %6023 }
 0x859   : > { %v1814_v16 = vmul.f32 %v6024_v41, %v1813_v3 }
 0x85b   : > { %v7310_v18 = vadd.f32 %v1815_v63, %v1814_v16 }
 0x85d   : > { %v1817_v7 = vpack.c.bf16 %v7310_v18, %v7310_v18 }
 0x85f   : > { %1851 = vmatmul.mubr.bf16.vlgmr.msra.gmra.mrb[44].mxu1 %v1817_v7  ;;  %5651 = vmatmul.mubr.bf16.vlgmr.msra.gmra.mrb[44].mxu0 %v1817_v7 }
 0x860   : > { %2254 = vmatprep.mubr.bf16.mxu1 %v10069_v53  ;;  %2295 = vmatprep.mubr.bf16.mxu0 %v10069_v53 }
 0x861   : > { %2223 = vmatpush1.bf16.msra.mxu1 %v7329_v4  ;;  %2264 = vmatpush1.bf16.msra.mxu0 %v7334_v57 }
 0x862   : > { %2224 = vmatprep.subr.bf16.mxu1 %v7343_v46  ;;  %2265 = vmatprep.subr.bf16.mxu0 %v7348_v13 }
 0x865   : > { %2225 = vmatpush1.bf16.msra.mxu1 %v7353_v52  ;;  %2266 = vmatpush1.bf16.msra.mxu0 %v7358_v62 }
 0x866   : > { %2226 = vmatprep.subr.bf16.mxu1 %v7367_v48  ;;  %2267 = vmatprep.subr.bf16.mxu0 %v7372_v60 }
 0x869   : > { %2227 = vmatpush1.bf16.msra.mxu1 %v7377_v1  ;;  %2268 = vmatpush1.bf16.msra.mxu0 %v7382_v6 }
 0x86a   : > { %2228 = vmatprep.subr.bf16.mxu1 %v7391_v49  ;;  %2269 = vmatprep.subr.bf16.mxu0 %v7396_v47 }
 0x86d   : > { %2229 = vmatpush1.bf16.msra.mxu1 %v7401_v45  ;;  %2270 = vmatpush1.bf16.msra.mxu0 %v7406_v55 }
 0x86e   : > { %2230 = vmatprep.subr.bf16.mxu1 %v7415_v15  ;;  %2271 = vmatprep.subr.bf16.mxu0 %v7420_v36 }
 0x871   : > { %2231 = vmatpush1.bf16.msra.mxu1 %v7425_v40  ;;  %2272 = vmatpush1.bf16.msra.mxu0 %v7430_v5 }
 0x872   : > { %2232 = vmatprep.subr.bf16.mxu1 %v7439_v8  ;;  %2273 = vmatprep.subr.bf16.mxu0 %v7444_v9 }
 0x875   : > { %2233 = vmatpush1.bf16.msra.mxu1 %v7449_v10  ;;  %2274 = vmatpush1.bf16.msra.mxu0 %v7454_v12 }
 0x876   : > { %2234 = vmatprep.subr.bf16.mxu1 %v7463_v14  ;;  %2275 = vmatprep.subr.bf16.mxu0 %v7468_v17 }
 0x879   : > { %2235 = vmatpush1.bf16.msra.mxu1 %v7473_v20  ;;  %2276 = vmatpush1.bf16.msra.mxu0 %v7478_v21 }
 0x87a   : > { %2236 = vmatprep.subr.bf16.mxu1 %v7487_v42  ;;  %2277 = vmatprep.subr.bf16.mxu0 %v7492_v22 }
 0x87d   : > { %2237 = vmatpush1.bf16.msra.mxu1 %v7497_v23  ;;  %2278 = vmatpush1.bf16.msra.mxu0 %v7502_v24 }
 0x932   : > { %v1852_v25 = vpop.f32.mrb[44].mxu1  ;;  %v1893_v26 = vpop.f32.mrb[44].mxu0 }
 0x933   : > { %v1853_v27 = vadd.f32 %v1852_v25, %v6975_v56  ;;  %v1854_v28 = vpop.f32.mrb[45].mxu1  ;;  %v5652_v29 = vpop.f32.mrb[45].mxu0  ;;  %v1894_v7 = vadd.f32 %v1893_v26, %v6983_v44 }
 0x934   : > { %v1855_v30 = vadd.f32 %v1854_v28, %v6978_v61  ;;  %v1856_v31 = vpop.f32.mrb[46].mxu1  ;;  %v1896_v32 = vpop.f32.mrb[46].mxu0  ;;  %v10079_v28 = vld [vmem:[#allocation8_spill] sm:$0xff] }
 0x935   : > { %v1899_v34 = vadd.f32 %v1853_v27, %v10077_v33  ;;  %v1857_v35 = vpop.f32.mrb[47].mxu1  ;;  %v5653_v11 = vpop.f32.mrb[47].mxu0 }
 0x936   : > { %v1906_v58 = vadd.f32 %v1855_v30, %v10078_v59 }
 0x937   : > { %v5054_v39 = vmul.f32 -1.442695, %v1899_v34 }
 0x938   : > { %v5055_v3 = vmul.f32 -1.442695, %v1906_v58 }
 0x939   : > { %6025 = vpow2.f32 %v5054_v39 }
 0x93a   : > { %6027 = vpow2.f32 %v5055_v3 }
 0x943   : > { %v6026_v41 = vpop.eup %6025 }
 0x944   : > { %v1903_v16 = vadd.f32 1.0, %v6026_v41  ;;  %v6028_v56 = vpop.eup %6027 }
 0x945   : > { %v1910_v63 = vadd.f32 1.0, %v6028_v56  ;;  %v7543_v56 = vld [vmem:[%s9735_s7] ss:$12 sps:$4 sm:$0xff]  }
 0x946   : > { %6029 = vrcp.f32 %v1903_v16  ;;  %v7538_v16 = vld [vmem:[%s9735_s7 + $0x4] ss:$12 sps:$4 sm:$0xff]   ;;  %10080 = vst [vmem:[#allocation11_spill] sm:$0xff] %v7543_v56 }
 0x947   : > { %6031 = vrcp.f32 %v1910_v63  ;;  %2648 = vmatprep.subr.bf16.mxu1 %v7538_v16  ;;  %v7550_v63 = vld [vmem:[%s9735_s7 + $0x1c] ss:$12 sps:$4 sm:$0xff]  }
 0x948   : > { %10081 = vst [vmem:[#allocation12_spill] sm:$0xff] %v7550_v63 }
 0x950   : > { %v6030_v61 = vpop.eup %6029 }
 0x951   : > { %v1913_v25 = vmul.f32 %v6030_v61, %v1894_v7  ;;  %v6032_v29 = vpop.eup %6031  ;;  %v7555_v7 = vld [vmem:[%s9735_s7 + $0x18] ss:$12 sps:$4 sm:$0xff]   ;;  %v7562_v61 = vld [vmem:[%s9735_s7 + $0x34] ss:$12 sps:$4 sm:$0xff]  }
 0x952   : > { %v1916_v31 = vsub.f32 1.0, %v6032_v29  ;;  %v1918_v33 = vmul.f32 %v6032_v29, %v7310_v18  ;;  %10082 = vst [vmem:[#allocation7_spill] sm:$0xff] %v7555_v7  ;;  %10083 = vst [vmem:[#allocation13_spill] sm:$0xff] %v7562_v61  ;;  %v7586_v29 = vld [vmem:[%s9735_s7 + $0x64] ss:$12 sps:$4 sm:$0xff]  }
 0x953   : > { %v1914_v27 = vadd.f32 %v1913_v25, %v10079_v28  ;;  %v7567_v25 = vld [vmem:[%s9735_s7 + $0x30] ss:$12 sps:$4 sm:$0xff]   ;;  %v7574_v28 = vld [vmem:[%s9735_s7 + $0x4c] ss:$12 sps:$4 sm:$0xff]   ;;  %10087 = vst [vmem:[#allocation17_spill] sm:$0xff] %v7586_v29 }
 0x954   : > { %10084 = vst [vmem:[#allocation14_spill] sm:$0xff] %v7567_v25  ;;  %10085 = vst [vmem:[#allocation8_spill] sm:$0xff] %v7574_v28 }
 0x955   : > { %6033 = vtanh.f32 %v1914_v27  ;;  %v7579_v27 = vld [vmem:[%s9735_s7 + $0x48] ss:$12 sps:$4 sm:$0xff]  }
 0x956   : > { %10086 = vst [vmem:[#allocation16_spill] sm:$0xff] %v7579_v27 }
 0x95f   : > { %v6034_v30 = vpop.eup %6033 }
 0x960   : > { %v1917_v32 = vmul.f32 %v6034_v30, %v1916_v31  ;;  %v7591_v31 = vld [vmem:[%s9735_s7 + $0x60] ss:$12 sps:$4 sm:$0xff]   ;;  %v7598_v30 = vld [vmem:[%s9735_s7 + $0x7c] ss:$12 sps:$4 sm:$0xff]  }
 0x961   : > { %10088 = vst [vmem:[#allocation18_spill] sm:$0xff] %v7591_v31  ;;  %10089 = vst [vmem:[#allocation19_spill] sm:$0xff] %v7598_v30 }
 0x962   : > { %v7515_v34 = vadd.f32 %v1918_v33, %v1917_v32  ;;  %v7603_v32 = vld [vmem:[%s9735_s7 + $0x78] ss:$12 sps:$4 sm:$0xff]   ;;  %v7610_v33 = vld [vmem:[%s9735_s7 + $0x94] ss:$12 sps:$4 sm:$0xff]  }
 0x963   : > { %10090 = vst [vmem:[#allocation20_spill] sm:$0xff] %v7603_v32  ;;  %10091 = vst [vmem:[#allocation21_spill] sm:$0xff] %v7610_v33 }
 0x964   : > { %v2309_v35 = vmul.f32 %v7515_v34, %v7080_v50  ;;  %v2303_v44 = vmul.f32 %v7515_v34, %v6988_v2  ;;  %v2061_v26 = vpack.c.bf16 %v7515_v34, %v7515_v34  ;;  %v2312_v11 = vmul.f32 %v7515_v34, %v7126_v37 }
 0x965   : > { %v2306_v59 = vmul.f32 %v7515_v34, %v7034_v43  ;;  %v2318_v58 = vmul.f32 %v7515_v34, %v7220_v19  ;;  %v2315_v39 = vmul.f32 %v7515_v34, %v7172_v51  ;;  %v2324_v3 = vmul.f32 %v7515_v34, %v7515_v34 }
 0x966   : > { %2310 = vadd.xlane.f32.xlu1 %v2309_v35  ;;  %2304 = vadd.xlane.f32.xlu0 %v2303_v44  ;;  %v2321_v41 = vmul.f32 %v7515_v34, %v7310_v18  ;;  %v7615_v35 = vld [vmem:[%s9735_s7 + $0x90] ss:$12 sps:$4 sm:$0xff]   ;;  %v7622_v44 = vld [vmem:[%s9735_s7 + $0xac] ss:$12 sps:$4 sm:$0xff]  }
 0x967   : > { %2255 = vmatmul.mubr.bf16.vlgmr.msra.gmra.mrb[48].mxu1 %v2061_v26  ;;  %2296 = vmatmul.mubr.bf16.vlgmr.msra.gmra.mrb[48].mxu0 %v2061_v26  ;;  %10092 = vst [vmem:[#allocation22_spill] sm:$0xff] %v7615_v35  ;;  %10093 = vst [vmem:[#allocation23_spill] sm:$0xff] %v7622_v44  ;;  %v7627_v26 = vld [vmem:[%s9735_s7 + $0xa8] ss:$12 sps:$4 sm:$0xff]  }
 0x968   : > { %2649 = vmatpush1.bf16.msra.mxu1 %v7543_v56  ;;  %10094 = vst [vmem:[#allocation24_spill] sm:$0xff] %v7627_v26 }
 0x969   : > { %2650 = vmatprep.subr.bf16.mxu1 %v7550_v63 }
 0x96a   : > { %2313 = vadd.xlane.f32.xlu1 %v2312_v11  ;;  %2307 = vadd.xlane.f32.xlu0 %v2306_v59  ;;  %v7632_v11 = vld [vmem:[%s9735_s7 + $0xc4] ss:$12 sps:$4 sm:$0xff]   ;;  %v7639_v59 = vld [vmem:[%s9735_s7 + $0xc0] ss:$12 sps:$4 sm:$0xff]  }
 0x96b   : > { %10095 = vst [vmem:[#allocation25_spill] sm:$0xff] %v7632_v11  ;;  %10096 = vst [vmem:[#allocation26_spill] sm:$0xff] %v7639_v59 }
 0x96c   : > { %2651 = vmatpush1.bf16.msra.mxu1 %v7555_v7 }
 0x96d   : > { %2652 = vmatprep.subr.bf16.mxu1 %v7562_v61 }
 0x96e   : > { %2319 = vadd.xlane.f32.xlu1 %v2318_v58  ;;  %2316 = vadd.xlane.f32.xlu0 %v2315_v39  ;;  %v7645_v58 = vld [vmem:[%s9735_s7 + $0xdc] ss:$12 sps:$4 sm:$0xff]   ;;  %v7651_v39 = vld [vmem:[%s9735_s7 + $0xd8] ss:$12 sps:$4 sm:$0xff]  }
 0x96f   : > { %10097 = vst [vmem:[#allocation27_spill] sm:$0xff] %v7645_v58  ;;  %10098 = vst [vmem:[#allocation28_spill] sm:$0xff] %v7651_v39 }
 0x970   : > { %2653 = vmatpush1.bf16.msra.mxu1 %v7567_v25 }
 0x971   : > { %2654 = vmatprep.subr.bf16.mxu1 %v7574_v28 }
 0x972   : > { %2325 = vadd.xlane.f32.xlu1 %v2324_v3  ;;  %2322 = vadd.xlane.f32.xlu0 %v2321_v41  ;;  %v7657_v3 = vld [vmem:[%s9735_s7 + $0xf4] ss:$12 sps:$4 sm:$0xff]   ;;  %v7663_v41 = vld [vmem:[%s9735_s7 + $0xf0] ss:$12 sps:$4 sm:$0xff]  }
 0x973   : > { %10099 = vst [vmem:[#allocation29_spill] sm:$0xff] %v7657_v3  ;;  %10100 = vst [vmem:[#allocation30_spill] sm:$0xff] %v7663_v41 }
 0x974   : > { %2655 = vmatpush1.bf16.msra.mxu1 %v7579_v27 }
 0x975   : > { %2656 = vmatprep.subr.bf16.mxu1 %v7586_v29 }
 0x978   : > { %2657 = vmatpush1.bf16.msra.mxu1 %v7591_v31  ;;  %v7808_v31 = vld [vmem:[%s9735_s7 + $0x98] ss:$12 sps:$4 sm:$0xff]  }
 0x979   : > { %2658 = vmatprep.subr.bf16.mxu1 %v7598_v30  ;;  %v7802_v30 = vld [vmem:[%s9735_s7 + $0x158] ss:$12 sps:$4 sm:$0xff]   ;;  %10124 = vst [vmem:[#allocation54_spill] sm:$0xff] %v7808_v31 }
 0x97a   : > { %10123 = vst [vmem:[#allocation53_spill] sm:$0xff] %v7802_v30 }
 0x97c   : > { %2659 = vmatpush1.bf16.msra.mxu1 %v7603_v32  ;;  %v7784_v32 = vld [vmem:[%s9735_s7 + $0x68] ss:$12 sps:$4 sm:$0xff]  }
 0x97d   : > { %2660 = vmatprep.subr.bf16.mxu1 %v7610_v33  ;;  %v7764_v33 = vld [vmem:[%s9735_s7 + $0x110] ss:$12 sps:$4 sm:$0xff]   ;;  %10120 = vst [vmem:[#allocation50_spill] sm:$0xff] %v7784_v32 }
 0x97e   : > { %10117 = vst [vmem:[#allocation47_spill] sm:$0xff] %v7764_v33 }
 0x980   : > { %2661 = vmatpush1.bf16.msra.mxu1 %v7615_v35  ;;  %v7745_v35 = vld [vmem:[%s9735_s7 + $0x16c] ss:$12 sps:$4 sm:$0xff]  }
 0x981   : > { %2662 = vmatprep.subr.bf16.mxu1 %v7622_v44  ;;  %v7739_v44 = vld [vmem:[%s9735_s7 + $0xf8] ss:$12 sps:$4 sm:$0xff]   ;;  %10114 = vst [vmem:[#allocation44_spill] sm:$0xff] %v7745_v35 }
 0x982   : > { %10113 = vst [vmem:[#allocation43_spill] sm:$0xff] %v7739_v44 }
 0x984   : > { %2663 = vmatpush1.bf16.msra.mxu1 %v7627_v26  ;;  %v7727_v26 = vld [vmem:[%s9735_s7 + $0x20] ss:$12 sps:$4 sm:$0xff]  }
 0x985   : > { %2664 = vmatprep.subr.bf16.mxu1 %v7632_v11  ;;  %v7721_v11 = vld [vmem:[%s9735_s7 + $0xe0] ss:$12 sps:$4 sm:$0xff]   ;;  %10111 = vst [vmem:[#allocation41_spill] sm:$0xff] %v7727_v26 }
 0x986   : > { %10110 = vst [vmem:[#allocation40_spill] sm:$0xff] %v7721_v11 }
 0x988   : > { %2665 = vmatpush1.bf16.msra.mxu1 %v7639_v59  ;;  %v7669_v59 = vld [vmem:[%s9735_s7 + $0x10c] ss:$12 sps:$4 sm:$0xff]  }
 0x989   : > { %2666 = vmatprep.subr.bf16.mxu1 %v7645_v58  ;;  %10101 = vst [vmem:[#allocation31_spill] sm:$0xff] %v7669_v59  ;;  %v7675_v58 = vld [vmem:[%s9735_s7 + $0x108] ss:$12 sps:$4 sm:$0xff]  }
 0x98a   : > { %10102 = vst [vmem:[#allocation32_spill] sm:$0xff] %v7675_v58 }
 0x98c   : > { %2667 = vmatpush1.bf16.msra.mxu1 %v7651_v39  ;;  %v7681_v39 = vld [vmem:[%s9735_s7 + $0x124] ss:$12 sps:$4 sm:$0xff]  }
 0x98d   : > { %2668 = vmatprep.subr.bf16.mxu1 %v7657_v3  ;;  %10103 = vst [vmem:[#allocation33_spill] sm:$0xff] %v7681_v39  ;;  %v7687_v3 = vld [vmem:[%s9735_s7 + $0x120] ss:$12 sps:$4 sm:$0xff]  }
 0x98e   : > { %10104 = vst [vmem:[#allocation34_spill] sm:$0xff] %v7687_v3 }
 0x990   : > { %2669 = vmatpush1.bf16.msra.mxu1 %v7663_v41  ;;  %v7693_v41 = vld [vmem:[%s9735_s7 + $0x13c] ss:$12 sps:$4 sm:$0xff]  }
 0x991   : > { %2670 = vmatprep.subr.bf16.mxu1 %v7669_v59  ;;  %10105 = vst [vmem:[#allocation35_spill] sm:$0xff] %v7693_v41  ;;  %v7699_v59 = vld [vmem:[%s9735_s7 + $0x138] ss:$12 sps:$4 sm:$0xff]  }
 0x992   : > { %10106 = vst [vmem:[#allocation36_spill] sm:$0xff] %v7699_v59 }
 0x994   : > { %2671 = vmatpush1.bf16.msra.mxu1 %v7675_v58  ;;  %v7704_v58 = vld [vmem:[%s9735_s7 + $0xc8] ss:$12 sps:$4 sm:$0xff]  }
 0x995   : > { %2672 = vmatprep.subr.bf16.mxu1 %v7681_v39  ;;  %10107 = vst [vmem:[#allocation37_spill] sm:$0xff] %v7704_v58  ;;  %v7709_v39 = vld [vmem:[%s9735_s7 + $0x8] ss:$12 sps:$4 sm:$0xff]   ;;  %5284 = vmatprep.subr.bf16.mxu0 %v7704_v58 }
 0x996   : > { %10108 = vst [vmem:[#allocation38_spill] sm:$0xff] %v7709_v39  ;;  %5285 = vmatpush3.bf16.msra.mxu0 %v7709_v39 }
 0x997   : > { %5286 = vmatprep.subr.bf16.mxu0 %v7721_v11 }
 0x998   : > { %2673 = vmatpush1.bf16.msra.mxu1 %v7687_v3  ;;  %v7715_v3 = vld [vmem:[%s9735_s7 + $0x154] ss:$12 sps:$4 sm:$0xff]  }
 0x999   : > { %2674 = vmatprep.subr.bf16.mxu1 %v7693_v41  ;;  %10109 = vst [vmem:[#allocation39_spill] sm:$0xff] %v7715_v3  ;;  %v7733_v41 = vld [vmem:[%s9735_s7 + $0x150] ss:$12 sps:$4 sm:$0xff]  }
 0x99a   : > { %10112 = vst [vmem:[#allocation42_spill] sm:$0xff] %v7733_v41  ;;  %5287 = vmatpush3.bf16.msra.mxu0 %v7727_v26 }
 0x99b   : > { %5288 = vmatprep.subr.bf16.mxu0 %v7739_v44 }
 0x99c   : > { %2675 = vmatpush1.bf16.msra.mxu1 %v7699_v59  ;;  %v7752_v59 = vld [vmem:[%s9735_s7 + $0x168] ss:$12 sps:$4 sm:$0xff]  }
 0x99d   : > { %2676 = vmatprep.subr.bf16.mxu1 %v7715_v3  ;;  %10115 = vst [vmem:[#allocation45_spill] sm:$0xff] %v7752_v59  ;;  %v7758_v3 = vld [vmem:[%s9735_s7 + $0x38] ss:$12 sps:$4 sm:$0xff]  }
 0x99e   : > { %10116 = vst [vmem:[#allocation46_spill] sm:$0xff] %v7758_v3  ;;  %5289 = vmatpush3.bf16.msra.mxu0 %v7758_v3 }
 0x99f   : > { %5290 = vmatprep.subr.bf16.mxu0 %v7764_v33 }
 0x9a0   : > { %2677 = vmatpush1.bf16.msra.mxu1 %v7733_v41  ;;  %v7770_v41 = vld [vmem:[%s9735_s7 + $0x50] ss:$12 sps:$4 sm:$0xff]  }
 0x9a1   : > { %2678 = vmatprep.subr.bf16.mxu1 %v7745_v35  ;;  %10118 = vst [vmem:[#allocation48_spill] sm:$0xff] %v7770_v41  ;;  %v7777_v35 = vld [vmem:[%s9735_s7 + $0x128] ss:$12 sps:$4 sm:$0xff]  }
 0x9a2   : > { %10119 = vst [vmem:[#allocation49_spill] sm:$0xff] %v7777_v35  ;;  %5291 = vmatpush3.bf16.msra.mxu0 %v7770_v41 }
 0x9a3   : > { %5292 = vmatprep.subr.bf16.mxu0 %v7777_v35 }
 0x9a4   : > { %2679 = vmatpush1.bf16.msra.mxu1 %v7752_v59  ;;  %v7790_v59 = vld [vmem:[%s9735_s7 + $0x140] ss:$12 sps:$4 sm:$0xff]  }
 0x9a5   : > { %2792 = vmatprep.subr.bf16.mxu1 %v7324_v0  ;;  %10121 = vst [vmem:[#allocation51_spill] sm:$0xff] %v7790_v59  ;;  %v7796_v0 = vld [vmem:[%s9735_s7 + $0x80] ss:$12 sps:$4 sm:$0xff]  }
 0x9a6   : > { %5293 = vmatpush3.bf16.msra.mxu0 %v7784_v32  ;;  %10122 = vst [vmem:[#allocation52_spill] sm:$0xff] %v7796_v0  ;;  %v7814_v32 = vld [vmem:[%s9735_s7 + $0x170] ss:$12 sps:$4 sm:$0xff]  }
 0x9a7   : > { %5294 = vmatprep.subr.bf16.mxu0 %v7790_v59  ;;  %10125 = vst [vmem:[#allocation55_spill] sm:$0xff] %v7814_v32  ;;  %v7820_v59 = vld [vmem:[%s9735_s7 + $0xb0] ss:$12 sps:$4 sm:$0xff]  }
 0x9a8   : > { %10126 = vst [vmem:[#allocation56_spill] sm:$0xff] %v7820_v59 }
 0x9aa   : > { %5295 = vmatpush3.bf16.msra.mxu0 %v7796_v0 }
 0x9ab   : > { %5296 = vmatprep.subr.bf16.mxu0 %v7802_v30 }
 0x9ae   : > { %5297 = vmatpush3.bf16.msra.mxu0 %v7808_v31 }
 0x9af   : > { %5298 = vmatprep.subr.bf16.mxu0 %v7814_v32 }
 0x9b2   : > { %5299 = vmatpush3.bf16.msra.mxu0 %v7820_v59 }
 0x9b3   : > { %2751 = vmatprep.subr.bf16.mxu0 %v7319_v54 }
 0x9f3   : > { %v2311_v0 = vpop.xlane.xlu1 %2310  ;;  %v2305_v30 = vpop.xlane.xlu0 %2304 }
 0x9f7   : > { %v2314_v35 = vpop.xlane.xlu1 %2313  ;;  %v2308_v41 = vpop.xlane.xlu0 %2307 }
 0x9f8   : > { %v2327_v29 = vmax.f32 %v2305_v30, %v2308_v41 }
 0x9fa   : > { %v2328_v27 = vmax.f32 %v2327_v29, %v2311_v0 }
 0x9fb   : > { %v2317_v33 = vpop.xlane.xlu0 %2316  ;;  %v2320_v31 = vpop.xlane.xlu1 %2319 }
 0x9fc   : > { %v2329_v3 = vmax.f32 %v2328_v27, %v2314_v35 }
 0x9fe   : > { %v2330_v28 = vmax.f32 %v2329_v3, %v2317_v33 }
 0x9ff   : > { %v2323_v44 = vpop.xlane.xlu0 %2322  ;;  %v2326_v61 = vpop.xlane.xlu1 %2325 }
 0xa00   : > { %v2331_v25 = vmax.f32 %v2330_v28, %v2320_v31 }
 0xa02   : > { %v2332_v26 = vmax.f32 %v2331_v25, %v2323_v44 }
 0xa04   : > { %v2333_v7 = vmax.f32 %v2332_v26, %v2326_v61 }
 0xa06   : > { %v2334_v32 = vsub.f32 %v2305_v30, %v2333_v7  ;;  %v2337_v11 = vsub.f32 %v2308_v41, %v2333_v7  ;;  %v2340_v59 = vsub.f32 %v2311_v0, %v2333_v7  ;;  %v2343_v39 = vsub.f32 %v2314_v35, %v2333_v7 }
 0xa07   : > { %v2346_v38 = vsub.f32 %v2317_v33, %v2333_v7  ;;  %v2349_v58 = vsub.f32 %v2320_v31, %v2333_v7  ;;  %v2352_v3 = vsub.f32 %v2323_v44, %v2333_v7  ;;  %v2355_v25 = vsub.f32 %v2326_v61, %v2333_v7 }
 0xa08   : > { %v2335_v54 = vmul.f32 1.442695, %v2334_v32  ;;  %v2338_v63 = vmul.f32 1.442695, %v2337_v11  ;;  %v2341_v56 = vmul.f32 1.442695, %v2340_v59 }
 0xa09   : > { %v2344_v29 = vmul.f32 1.442695, %v2343_v39  ;;  %v2347_v27 = vmul.f32 1.442695, %v2346_v38  ;;  %v2350_v28 = vmul.f32 1.442695, %v2349_v58 }
 0xa0a   : > { %6035 = vpow2.f32 %v2335_v54  ;;  %v2353_v26 = vmul.f32 1.442695, %v2352_v3  ;;  %v2356_v30 = vmul.f32 1.442695, %v2355_v25 }
 0xa0b   : > { %6037 = vpow2.f32 %v2338_v63 }
 0xa0c   : > { %6039 = vpow2.f32 %v2341_v56 }
 0xa0d   : > { %6041 = vpow2.f32 %v2344_v29 }
 0xa0e   : > { %6043 = vpow2.f32 %v2347_v27 }
 0xa0f   : > { %6045 = vpow2.f32 %v2350_v28 }
 0xa10   : > { %6047 = vpow2.f32 %v2353_v26 }
 0xa11   : > { %6049 = vpow2.f32 %v2356_v30 }
 0xa14   : > { %v6036_v0 = vpop.eup %6035 }
 0xa15   : > { %v6038_v35 = vpop.eup %6037 }
 0xa16   : > { %v2358_v32 = vadd.f32 %v6038_v35, %v6036_v0  ;;  %v6040_v11 = vpop.eup %6039 }
 0xa17   : > { %v6042_v63 = vpop.eup %6041 }
 0xa18   : > { %v2359_v54 = vadd.f32 %v6040_v11, %v2358_v32  ;;  %v6044_v31 = vpop.eup %6043 }
 0xa19   : > { %v6046_v38 = vpop.eup %6045 }
 0xa1a   : > { %v2360_v33 = vadd.f32 %v6042_v63, %v2359_v54  ;;  %v6048_v59 = vpop.eup %6047 }
 0xa1b   : > { %v6050_v7 = vpop.eup %6049 }
 0xa1c   : > { %v2361_v56 = vadd.f32 %v6044_v31, %v2360_v33 }
 0xa1e   : > { %v2362_v44 = vadd.f32 %v6046_v38, %v2361_v56 }
 0xa20   : > { %v2363_v58 = vadd.f32 %v6048_v59, %v2362_v44 }
 0xa22   : > { %v2364_v61 = vadd.f32 %v6050_v7, %v2363_v58 }
 0xa24   : > { %6051 = vrcp.f32 %v2364_v61 }
 0xa2e   : > { %v6052_v39 = vpop.eup %6051 }
 0xa2f   : > { %v2367_v41 = vmul.f32 %v6052_v39, %v6036_v0  ;;  %v2369_v29 = vmul.f32 %v6052_v39, %v6038_v35  ;;  %v2372_v27 = vmul.f32 %v6052_v39, %v6040_v11  ;;  %v2375_v25 = vmul.f32 %v6052_v39, %v6042_v63 }
 0xa30   : > { %v2378_v32 = vmul.f32 %v6052_v39, %v6044_v31  ;;  %v2381_v56 = vmul.f32 %v6052_v39, %v6046_v38  ;;  %v2384_v61 = vmul.f32 %v6052_v39, %v6048_v59  ;;  %v2387_v11 = vmul.f32 %v6052_v39, %v6050_v7 }
 0xa31   : > { %v2368_v3 = vmul.f32 %v2367_v41, %v6988_v2  ;;  %v2370_v28 = vmul.f32 %v2369_v29, %v7034_v43  ;;  %v2373_v30 = vmul.f32 %v2372_v27, %v7080_v50  ;;  %v2376_v33 = vmul.f32 %v2375_v25, %v7126_v37 }
 0xa32   : > { %v2379_v58 = vmul.f32 %v2378_v32, %v7172_v51  ;;  %v2382_v35 = vmul.f32 %v2381_v56, %v7220_v19  ;;  %v10127_v41 = vlaneseq  ;;  %v2385_v31 = vmul.f32 %v2384_v61, %v7310_v18 }
 0xa33   : > { %v2371_v26 = vadd.f32 %v2370_v28, %v2368_v3  ;;  %v2388_v25 = vmul.f32 %v2387_v11, %v7515_v34  ;;  %v9837_v7 = vmov 1.0|1.0  }
 0xa34   : > { %v7832_v2 = vand.u32 127, %v10127_v41  ;;  %v10133_v41 = vld [vmem:[#allocation15_spill] sm:$0xff] }
 0xa35   : > { %v2374_v54 = vadd.f32 %v2373_v30, %v2371_v26 }
 0xa36   : > { %vm2058_vm2 = vcmp.eq.s32.totalorder %v7832_v2, 1  ;;  %vm2852_vm8 = vcmp.eq.s32.totalorder %v7832_v2, 0  ;;  %vm3441_vm12 = vcmp.eq.s32.totalorder %v7832_v2, 2  ;;  %vm3736_vm0 = vcmp.eq.s32.totalorder %v7832_v2, 3 }
 0xa37   : > { %v2377_v44 = vadd.f32 %v2376_v33, %v2374_v54  ;;  %vm5137_vm3 = vmpackc.low %vm2058_vm2, %vm2058_vm2 }
 0xa39   : > { %v2380_v0 = vadd.f32 %v2379_v58, %v2377_v44 }
 0xa3a   : > { %v7834_v63 = vpop.f32.mrb[48].mxu0 }
 0xa3b   : > { %v2299_v29 = vpop.f32.mrb[49].mxu0  ;;  %v2383_v27 = vadd.f32 %v2382_v35, %v2380_v0 }
 0xa3c   : > { %v2300_v3 = vpop.f32.mrb[50].mxu0 }
 0xa3d   : > { %v2301_v28 = vpop.f32.mrb[51].mxu0  ;;  %v2386_v38 = vadd.f32 %v2385_v31, %v2383_v27  ;;  %v10134_v27 = vld [vmem:[#allocation11_spill] sm:$0xff]  ;;  %v10135_v3 = vld [vmem:[#allocation12_spill] sm:$0xff] }
 0xa3e   : > { %v10136_v28 = vld [vmem:[#allocation38_spill] sm:$0xff] }
 0xa3f   : > { %v2389_v59 = vadd.f32 %v2388_v25, %v2386_v38  ;;  %v10137_v38 = vld [vmem:[#allocation40_spill] sm:$0xff]  ;;  %v10138_v25 = vld [vmem:[#allocation7_spill] sm:$0xff] }
 0xa41   : > { %v2391_v26 = vpack.c.bf16 %v2389_v59, %v2389_v59 }
 0xa43   : > { %2680 = vmatprep.mubr.bf16.mxu1 %v2391_v26  ;;  %2721 = vmatprep.mubr.bf16.mxu0 %v2391_v26  ;;  %v10139_v26 = vld [vmem:[#allocation13_spill] sm:$0xff] }
 0xa44   : > { %5138 = vmatmul.mubr.msk.bf16.vlgmr.msra.gmra.mrb[48].mxu1 %vm5137_vm3, %v9837_v7  ;;  %5140 = vmatmul.mubr.msk.bf16.vlgmr.msra.gmra.mrb[52].mxu0 %vm5137_vm3, %v9837_v7 }
 0xa45   : > { %2752 = vmatpush1.bf16.msra.mxu0 %v7329_v4  ;;  %2793 = vmatpush1.bf16.msra.mxu1 %v7334_v57  ;;  %v10128_v4 = vld [vmem:[#allocation37_spill] sm:$0xff]  ;;  %v2016_v57 = vld [vmem:[%s9736_s8] sm:$0x7] }
 0xa46   : > { %2753 = vmatprep.subr.bf16.mxu0 %v7343_v46  ;;  %2794 = vmatprep.subr.bf16.mxu1 %v7348_v13  ;;  %v7884_v46 = vld [vmem:[%s9738_s10] sm:$0xf]  ;;  %v10129_v13 = vld [vmem:[#allocation5_spill] sm:$0xff] }
 0xa47   : > { %2783 = vmatprep.mubr.bf16.mxu0 %v10069_v53  ;;  %2824 = vmatprep.mubr.bf16.mxu1 %v10069_v53 }
 0xa49   : > { %2754 = vmatpush1.bf16.msra.mxu0 %v7353_v52  ;;  %2795 = vmatpush1.bf16.msra.mxu1 %v7358_v62  ;;  %v2021_v52 = vrot.slane %v2016_v57, %v10129_v13  ;;  %v2038_v62 = vrot.slane %v7884_v46, %v10129_v13  ;;  %v10141_v13 = vld [vmem:[#allocation43_spill] sm:$0xff] }
 0xa4a   : > { %2755 = vmatprep.subr.bf16.mxu0 %v7367_v48  ;;  %2796 = vmatprep.subr.bf16.mxu1 %v7372_v60  ;;  %v10130_v48 = vld [vmem:[#allocation6_spill] sm:$0xff] }
 0xa4b   : > { %v2025_v60 = vrot.slane %v2016_v57, %v10130_v48 }
 0xa4d   : > { %2756 = vmatpush1.bf16.msra.mxu0 %v7377_v1  ;;  %2797 = vmatpush1.bf16.msra.mxu1 %v7382_v6  ;;  %v2042_v1 = vrot.slane %v7884_v46, %v10130_v48  ;;  %v7892_v6 = vadd.f32 %v2038_v62, %v2021_v52  ;;  %v10142_v52 = vld [vmem:[#allocation14_spill] sm:$0xff]  ;;  %v10143_v48 = vld [vmem:[#allocation8_spill] sm:$0xff] }
 0xa4e   : > { %2757 = vmatprep.subr.bf16.mxu0 %v7391_v49  ;;  %2798 = vmatprep.subr.bf16.mxu1 %v7396_v47 }
 0xa4f   : > { %10131 = vst [vmem:[#allocation37_spill] sm:$0xff] %v7892_v6  ;;  %v7894_v47 = vadd.f32 %v2042_v1, %v2025_v60  ;;  %v10144_v60 = vld [vmem:[#allocation46_spill] sm:$0xff]  ;;  %v10145_v1 = vld [vmem:[#allocation47_spill] sm:$0xff] }
 0xa51   : > { %2758 = vmatpush1.bf16.msra.mxu0 %v7401_v45  ;;  %2799 = vmatpush1.bf16.msra.mxu1 %v7406_v55 }
 0xa52   : > { %2759 = vmatprep.subr.bf16.mxu0 %v7415_v15  ;;  %2800 = vmatprep.subr.bf16.mxu1 %v7420_v36 }
 0xa55   : > { %2760 = vmatpush1.bf16.msra.mxu0 %v7425_v40  ;;  %2801 = vmatpush1.bf16.msra.mxu1 %v7430_v5 }
 0xa56   : > { %2761 = vmatprep.subr.bf16.mxu0 %v7439_v8  ;;  %2802 = vmatprep.subr.bf16.mxu1 %v7444_v9 }
 0xa59   : > { %2762 = vmatpush1.bf16.msra.mxu0 %v7449_v10  ;;  %2803 = vmatpush1.bf16.msra.mxu1 %v7454_v12 }
 0xa5a   : > { %2763 = vmatprep.subr.bf16.mxu0 %v7463_v14  ;;  %2804 = vmatprep.subr.bf16.mxu1 %v7468_v17 }
 0xa5d   : > { %2764 = vmatpush1.bf16.msra.mxu0 %v7473_v20  ;;  %2805 = vmatpush1.bf16.msra.mxu1 %v7478_v21 }
 0xa5e   : > { %2765 = vmatprep.subr.bf16.mxu0 %v7487_v42  ;;  %2806 = vmatprep.subr.bf16.mxu1 %v7492_v22  ;;  %v10132_v22 = vld [vmem:[#allocation4_spill] sm:$0xff] }
 0xa61   : > { %2766 = vmatpush1.bf16.msra.mxu0 %v7497_v23  ;;  %2807 = vmatpush1.bf16.msra.mxu1 %v7502_v24  ;;  %v7900_v23 = vrot.slane %v7884_v46, %v10132_v22  ;;  %v7903_v24 = vrot.slane %v2016_v57, %v10132_v22  ;;  %v10140_v57 = vld [vmem:[#allocation41_spill] sm:$0xff]  ;;  %v10162_v22 = vld [vmem:[#allocation24_spill] sm:$0xff] }
 0xa62   : > { %2943 = vmatprep.subr.bf16.mxu0 %v7538_v16  ;;  %5306 = vmatprep.subr.bf16.mxu1 %v10128_v4 }
 0xa63   : > { %v2298_v30 = vadd.f32 %v7834_v63, %v7900_v23 }
 0xb17   : > { %v2682_v49 = vpop.f32.mrb[48].mxu1  ;;  %v5300_v45 = vpop.f32.mrb[52].mxu0 }
 0xb18   : > { %v5655_v55 = vadd.f32 %v7892_v6, %v2682_v49  ;;  %v2684_v15 = vpop.f32.mrb[49].mxu1  ;;  %v5301_v36 = vpop.f32.mrb[53].mxu0  ;;  %v10146_v49 = vld [vmem:[#allocation16_spill] sm:$0xff] }
 0xb19   : > { %v2686_v40 = vpop.f32.mrb[50].mxu1  ;;  %v5302_v5 = vadd.f32 %v5301_v36, %v5300_v45  ;;  %v5303_v8 = vpop.f32.mrb[54].mxu0  ;;  %v5657_v14 = vadd.f32 %v7894_v47, %v2684_v15  ;;  %v10147_v45 = vld [vmem:[#allocation17_spill] sm:$0xff]  ;;  %v10150_v36 = vld [vmem:[#allocation18_spill] sm:$0xff] }
 0xb1a   : > { %v5141_v9 = vmul.f32 -1.442695, %v5655_v55  ;;  %v2687_v10 = vpop.f32.mrb[51].mxu1  ;;  %v5304_v12 = vpop.f32.mrb[55].mxu0  ;;  %v10148_v55 = vld [vmem:[#allocation48_spill] sm:$0xff]  ;;  %v10149_v15 = vld [vmem:[#allocation49_spill] sm:$0xff] }
 0xb1b   : > { %v5142_v17 = vmul.f32 -1.442695, %v5657_v14  ;;  %v2724_v32 = vadd.f32 %v5302_v5, %v7903_v24  ;;  %v10151_v40 = vld [vmem:[#allocation19_spill] sm:$0xff]  ;;  %v10152_v5 = vld [vmem:[#allocation50_spill] sm:$0xff]  ;;  %v10155_v10 = vld [vmem:[#allocation21_spill] sm:$0xff] }
 0xb1c   : > { %6053 = vpow2.f32 %v5141_v9  ;;  %v10153_v8 = vld [vmem:[#allocation51_spill] sm:$0xff]  ;;  %v10154_v9 = vld [vmem:[#allocation20_spill] sm:$0xff]  ;;  %v10157_v14 = vld [vmem:[#allocation53_spill] sm:$0xff] }
 0xb1d   : > { %6055 = vpow2.f32 %v5142_v17  ;;  %v10156_v12 = vld [vmem:[#allocation52_spill] sm:$0xff]  ;;  %v10158_v17 = vld [vmem:[#allocation22_spill] sm:$0xff] }
 0xb26   : > { %v6054_v20 = vpop.eup %6053 }
 0xb27   : > { %v2733_v21 = vadd.f32 1.0, %v6054_v20  ;;  %v6056_v42 = vpop.eup %6055  ;;  %v10159_v20 = vld [vmem:[#allocation23_spill] sm:$0xff] }
 0xb28   : > { %v2740_v39 = vadd.f32 1.0, %v6056_v42  ;;  %v10161_v42 = vld [vmem:[#allocation55_spill] sm:$0xff] }
 0xb29   : > { %6057 = vrcp.f32 %v2733_v21  ;;  %v10160_v21 = vld [vmem:[#allocation54_spill] sm:$0xff] }
 0xb2a   : > { %6059 = vrcp.f32 %v2740_v39  ;;  %v10163_v39 = vld [vmem:[#allocation25_spill] sm:$0xff] }
 0xb33   : > { %v6058_v54 = vpop.eup %6057 }
 0xb34   : > { %v2743_v33 = vmul.f32 %v6058_v54, %v2298_v30  ;;  %v6060_v44 = vpop.eup %6059  ;;  %v10164_v30 = vld [vmem:[#allocation56_spill] sm:$0xff]  ;;  %v10166_v54 = vld [vmem:[#allocation26_spill] sm:$0xff] }
 0xb35   : > { %v2746_v58 = vsub.f32 1.0, %v6060_v44  ;;  %v2748_v0 = vmul.f32 %v6060_v44, %v7515_v34  ;;  %v10169_v44 = vld [vmem:[#allocation29_spill] sm:$0xff] }
 0xb36   : > { %v2744_v56 = vadd.f32 %v2743_v33, %v2724_v32  ;;  %v10165_v32 = vld [vmem:[#allocation10_spill] sm:$0xff]  ;;  %v10167_v33 = vld [vmem:[#allocation27_spill] sm:$0xff] }
 0xb38   : > { %6061 = vtanh.f32 %v2744_v56  ;;  %v10168_v56 = vld [vmem:[#allocation28_spill] sm:$0xff] }
 0xb42   : > { %v6062_v61 = vpop.eup %6061 }
 0xb43   : > { %v2747_v35 = vmul.f32 %v6062_v61, %v2746_v58  ;;  %v10170_v58 = vld [vmem:[#allocation30_spill] sm:$0xff]  ;;  %v10171_v61 = vld [vmem:[#allocation31_spill] sm:$0xff] }
 0xb45   : > { %v7909_v11 = vadd.f32 %v2748_v0, %v2747_v35  ;;  %v10172_v0 = vld [vmem:[#allocation32_spill] sm:$0xff]  ;;  %v10173_v35 = vld [vmem:[#allocation33_spill] sm:$0xff] }
 0xb47   : > { %v2854_v29 = vmul.f32 %v7909_v11, %v10133_v41  ;;  %v2750_v63 = vpack.c.bf16 %v7909_v11, %v7909_v11  ;;  %v2860_v31 = vmul.f32 %v7909_v11, %v7080_v50  ;;  %v2866_v59 = vmul.f32 %v7909_v11, %v7172_v51 }
 0xb48   : > { %v2872_v62 = vmul.f32 %v7909_v11, %v7310_v18 }
 0xb49   : > { %2855 = vadd.xlane.f32.xlu1 %v2854_v29  ;;  %2784 = vmatmul.mubr.bf16.vlgmr.msra.gmra.mrb[56].mxu0 %v2750_v63  ;;  %v10174_v29 = vld [vmem:[#allocation34_spill] sm:$0xff] }
 0xb4a   : > { %2825 = vmatmul.mubr.bf16.vlgmr.msra.gmra.mrb[52].mxu1 %v2750_v63  ;;  %2944 = vmatpush1.bf16.msra.mxu0 %v10134_v27  ;;  %v10175_v63 = vld [vmem:[#allocation35_spill] sm:$0xff] }
 0xb4b   : > { %2945 = vmatprep.subr.bf16.mxu0 %v10135_v3  ;;  %5307 = vmatpush3.bf16.msra.mxu1 %v10136_v28 }
 0xb4c   : > { %5308 = vmatprep.subr.bf16.mxu1 %v10137_v38 }
 0xb4d   : > { %2861 = vadd.xlane.f32.xlu1 %v2860_v31  ;;  %v10176_v31 = vld [vmem:[#allocation36_spill] sm:$0xff] }
 0xb4e   : > { %2946 = vmatpush1.bf16.msra.mxu0 %v10138_v25 }
 0xb4f   : > { %2947 = vmatprep.subr.bf16.mxu0 %v10139_v26  ;;  %5309 = vmatpush3.bf16.msra.mxu1 %v10140_v57 }
 0xb50   : > { %5310 = vmatprep.subr.bf16.mxu1 %v10141_v13 }
 0xb51   : > { %2867 = vadd.xlane.f32.xlu1 %v2866_v59  ;;  %v10177_v59 = vld [vmem:[#allocation39_spill] sm:$0xff] }
 0xb52   : > { %2948 = vmatpush1.bf16.msra.mxu0 %v10142_v52  ;;  %v10178_v52 = vld [vmem:[#allocation42_spill] sm:$0xff] }
 0xb53   : > { %2949 = vmatprep.subr.bf16.mxu0 %v10143_v48  ;;  %5311 = vmatpush3.bf16.msra.mxu1 %v10144_v60 }
 0xb54   : > { %5312 = vmatprep.subr.bf16.mxu1 %v10145_v1 }
 0xb55   : > { %2873 = vadd.xlane.f32.xlu1 %v2872_v62  ;;  %v10179_v62 = vld [vmem:[#allocation44_spill] sm:$0xff] }
 0xb56   : > { %2950 = vmatpush1.bf16.msra.mxu0 %v10146_v49  ;;  %v10180_v49 = vld [vmem:[#allocation45_spill] sm:$0xff] }
 0xb57   : > { %2951 = vmatprep.subr.bf16.mxu0 %v10147_v45  ;;  %5313 = vmatpush3.bf16.msra.mxu1 %v10148_v55  ;;  %v10181_v45 = vld [vmem:[#allocation9_spill] sm:$0xff] }
 0xb58   : > { %5314 = vmatprep.subr.bf16.mxu1 %v10149_v15 }
 0xb5a   : > { %2952 = vmatpush1.bf16.msra.mxu0 %v10150_v36  ;;  %v10182_v36 = vld [vmem:[#allocation3_spill] sm:$0xff] }
 0xb5b   : > { %2953 = vmatprep.subr.bf16.mxu0 %v10151_v40  ;;  %5315 = vmatpush3.bf16.msra.mxu1 %v10152_v5  ;;  %v2049_v40 = vsub.s32 3, %v10182_v36 }
 0xb5c   : > { %5316 = vmatprep.subr.bf16.mxu1 %v10153_v8 }
 0xb5e   : > { %2954 = vmatpush1.bf16.msra.mxu0 %v10154_v9  ;;  %v7971_v9 = vrot.slane %v7884_v46, %v2049_v40  ;;  %v2869_v46 = vmul.f32 %v7909_v11, %v7220_v19 }
 0xb5f   : > { %2955 = vmatprep.subr.bf16.mxu0 %v10155_v10  ;;  %5317 = vmatpush3.bf16.msra.mxu1 %v10156_v12 }
 0xb60   : > { %5318 = vmatprep.subr.bf16.mxu1 %v10157_v14  ;;  %10183 = vst [vmem:[#allocation5_spill] sm:$0xff] %v7971_v9 }
 0xb62   : > { %2956 = vmatpush1.bf16.msra.mxu0 %v10158_v17 }
 0xb63   : > { %2957 = vmatprep.subr.bf16.mxu0 %v10159_v20  ;;  %5319 = vmatpush3.bf16.msra.mxu1 %v10160_v21 }
 0xb64   : > { %5320 = vmatprep.subr.bf16.mxu1 %v10161_v42 }
 0xb66   : > { %2958 = vmatpush1.bf16.msra.mxu0 %v10162_v22 }
 0xb67   : > { %2959 = vmatprep.subr.bf16.mxu0 %v10163_v39  ;;  %5321 = vmatpush3.bf16.msra.mxu1 %v10164_v30 }
 0xb68   : > { %3046 = vmatprep.subr.bf16.mxu1 %v10165_v32  ;;  %v2857_v32 = vmul.f32 %v7909_v11, %v7034_v43 }
 0xb6a   : > { %2960 = vmatpush1.bf16.msra.mxu0 %v10166_v54  ;;  %v2863_v54 = vmul.f32 %v7909_v11, %v7126_v37 }
 0xb6b   : > { %2961 = vmatprep.subr.bf16.mxu0 %v10167_v33  ;;  %v2875_v33 = vmul.f32 %v7909_v11, %v7515_v34 }
 0xb6e   : > { %2962 = vmatpush1.bf16.msra.mxu0 %v10168_v56 }
 0xb6f   : > { %2963 = vmatprep.subr.bf16.mxu0 %v10169_v44 }
 0xb72   : > { %2964 = vmatpush1.bf16.msra.mxu0 %v10170_v58 }
 0xb73   : > { %2965 = vmatprep.subr.bf16.mxu0 %v10171_v61 }
 0xb76   : > { %2966 = vmatpush1.bf16.msra.mxu0 %v10172_v0 }
 0xb77   : > { %2967 = vmatprep.subr.bf16.mxu0 %v10173_v35 }
 0xb7a   : > { %2968 = vmatpush1.bf16.msra.mxu0 %v10174_v29 }
 0xb7b   : > { %2969 = vmatprep.subr.bf16.mxu0 %v10175_v63 }
 0xb7e   : > { %2970 = vmatpush1.bf16.msra.mxu0 %v10176_v31 }
 0xb7f   : > { %2971 = vmatprep.subr.bf16.mxu0 %v10177_v59 }
 0xb82   : > { %2972 = vmatpush1.bf16.msra.mxu0 %v10178_v52 }
 0xb83   : > { %2973 = vmatprep.subr.bf16.mxu0 %v10179_v62 }
 0xb86   : > { %2974 = vmatpush1.bf16.msra.mxu0 %v10180_v49 }
 0xb87   : > { %3087 = vmatprep.subr.bf16.mxu0 %v10181_v45  ;;  %v7988_v45 = vcvt.s32.f32 %v7832_v2 }
 0xb89   : > { %10185 = vst [vmem:[#allocation4_spill] sm:$0xff] %v7988_v45 }
 0xbd6   : > { %v2856_v56 = vpop.xlane.xlu1 %2855 }
 0xbda   : > { %v2862_v40 = vpop.xlane.xlu1 %2861 }
 0xc1d   : > { %v7973_v10 = vpop.f32.mrb[52].mxu1 }
 0xc1e   : > { %v2828_v17 = vpop.f32.mrb[53].mxu1 }
 0xc1f   : > { %v7976_v20 = vadd.f32 %v2828_v17, %v7971_v9  ;;  %v2830_v22 = vpop.f32.mrb[54].mxu1 }
 0xc20   : > { %v2831_v39 = vpop.f32.mrb[55].mxu1 }
 0xc21   : > { %10184 = vst [vmem:[#allocation6_spill] sm:$0xff] %v7976_v20  ;;  %2833 = vmax.xlane.f32.xlu0 %v7976_v20 }
 0xc25   : > { %2858 = vadd.xlane.f32.xlu0 %v2857_v32 }
 0xc29   : > { %2864 = vadd.xlane.f32.xlu0 %v2863_v54  ;;  %v2868_v54 = vpop.xlane.xlu1 %2867 }
 0xc2d   : > { %2870 = vadd.xlane.f32.xlu0 %v2869_v46  ;;  %v2874_v62 = vpop.xlane.xlu1 %2873 }
 0xc31   : > { %2876 = vadd.xlane.f32.xlu0 %v2875_v33 }
 0xcae   : > { %v7990_v36 = vpop.xlane.xlu0 %2833 }
 0xcaf   : > { %10186 = vst [vmem:[#allocation15_spill] sm:$0xff] %v7990_v36  ;;  %vm2843_vm4 = vcmp.ge.f32.partialorder %v7976_v20, %v7990_v36 }
 0xcb0   : > { %v2844_v17 = vsel %vm2843_vm4, %v7988_v45, 128.0  ;;  %vm4031_vm4 = vcmp.eq.s32.totalorder %v7832_v2, 4 }
 0xcb1   : > { %2845 = vmin.xlane.f32.xlu1 %v2844_v17 }
 0xcb2   : > { %v2859_v22 = vpop.xlane.xlu0 %2858 }
 0xcb3   : > { %v2878_v39 = vmax.f32 %v2856_v56, %v2859_v22 }
 0xcb5   : > { %v2879_v32 = vmax.f32 %v2878_v39, %v2862_v40 }
 0xcb6   : > { %v2865_v46 = vpop.xlane.xlu0 %2864 }
 0xcb7   : > { %v2880_v7 = vmax.f32 %v2879_v32, %v2865_v46 }
 0xcb9   : > { %v2881_v33 = vmax.f32 %v2880_v7, %v2868_v54 }
 0xcba   : > { %v2871_v9 = vpop.xlane.xlu0 %2870 }
 0xcbb   : > { %v2882_v49 = vmax.f32 %v2881_v33, %v2871_v9 }
 0xcbd   : > { %v2883_v52 = vmax.f32 %v2882_v49, %v2874_v62 }
 0xcbe   : > { %v2877_v59 = vpop.xlane.xlu0 %2876 }
 0xcbf   : > { %v2884_v31 = vmax.f32 %v2883_v52, %v2877_v59 }
 0xcc1   : > { %v2885_v63 = vsub.f32 %v2856_v56, %v2884_v31  ;;  %v2888_v29 = vsub.f32 %v2859_v22, %v2884_v31  ;;  %v2891_v20 = vsub.f32 %v2862_v40, %v2884_v31  ;;  %v2894_v36 = vsub.f32 %v2865_v46, %v2884_v31 }
 0xcc2   : > { %v2897_v0 = vsub.f32 %v2868_v54, %v2884_v31  ;;  %v2900_v61 = vsub.f32 %v2871_v9, %v2884_v31  ;;  %v2903_v32 = vsub.f32 %v2874_v62, %v2884_v31  ;;  %v2906_v49 = vsub.f32 %v2877_v59, %v2884_v31 }
 0xcc3   : > { %v2886_v35 = vmul.f32 1.442695, %v2885_v63  ;;  %v2889_v45 = vmul.f32 1.442695, %v2888_v29  ;;  %v2892_v17 = vmul.f32 1.442695, %v2891_v20 }
 0xcc4   : > { %v2895_v39 = vmul.f32 1.442695, %v2894_v36  ;;  %v2898_v7 = vmul.f32 1.442695, %v2897_v0  ;;  %v2901_v33 = vmul.f32 1.442695, %v2900_v61 }
 0xcc5   : > { %6063 = vpow2.f32 %v2886_v35  ;;  %v2904_v52 = vmul.f32 1.442695, %v2903_v32  ;;  %v2907_v56 = vmul.f32 1.442695, %v2906_v49 }
 0xcc6   : > { %6065 = vpow2.f32 %v2889_v45 }
 0xcc7   : > { %6067 = vpow2.f32 %v2892_v17 }
 0xcc8   : > { %6069 = vpow2.f32 %v2895_v39 }
 0xcc9   : > { %6071 = vpow2.f32 %v2898_v7 }
 0xcca   : > { %6073 = vpow2.f32 %v2901_v33 }
 0xccb   : > { %6075 = vpow2.f32 %v2904_v52 }
 0xccc   : > { %6077 = vpow2.f32 %v2907_v56 }
 0xccf   : > { %v6064_v40 = vpop.eup %6063 }
 0xcd0   : > { %v6066_v22 = vpop.eup %6065 }
 0xcd1   : > { %v2909_v29 = vadd.f32 %v6066_v22, %v6064_v40  ;;  %v6068_v63 = vpop.eup %6067 }
 0xcd2   : > { %v6070_v20 = vpop.eup %6069 }
 0xcd3   : > { %v2910_v35 = vadd.f32 %v6068_v63, %v2909_v29  ;;  %v6072_v9 = vpop.eup %6071 }
 0xcd4   : > { %v6074_v0 = vpop.eup %6073 }
 0xcd5   : > { %v2911_v45 = vadd.f32 %v6070_v20, %v2910_v35  ;;  %v6076_v54 = vpop.eup %6075 }
 0xcd6   : > { %v6078_v31 = vpop.eup %6077 }
 0xcd7   : > { %v2912_v36 = vadd.f32 %v6072_v9, %v2911_v45 }
 0xcd9   : > { %v2913_v62 = vadd.f32 %v6074_v0, %v2912_v36 }
 0xcdb   : > { %v2914_v61 = vadd.f32 %v6076_v54, %v2913_v62 }
 0xcdd   : > { %v2915_v59 = vadd.f32 %v6078_v31, %v2914_v61 }
 0xcdf   : > { %6079 = vrcp.f32 %v2915_v59 }
 0xce9   : > { %v6080_v46 = vpop.eup %6079 }
 0xcea   : > { %v2918_v17 = vmul.f32 %v6080_v46, %v6064_v40  ;;  %v2920_v39 = vmul.f32 %v6080_v46, %v6066_v22  ;;  %v2923_v7 = vmul.f32 %v6080_v46, %v6068_v63  ;;  %v2926_v49 = vmul.f32 %v6080_v46, %v6070_v20 }
 0xceb   : > { %v2929_v29 = vmul.f32 %v6080_v46, %v6072_v9  ;;  %v2932_v36 = vmul.f32 %v6080_v46, %v6074_v0  ;;  %v2935_v59 = vmul.f32 %v6080_v46, %v6076_v54  ;;  %v2938_v63 = vmul.f32 %v6080_v46, %v6078_v31  ;;  %v8014_v46 = vld [vmem:[%s9737_s9] ss:$16 sps:$4 sm:$0xff]  }
 0xcec   : > { %v2919_v32 = vmul.f32 %v2918_v17, %v10133_v41  ;;  %v2921_v33 = vmul.f32 %v2920_v39, %v7034_v43  ;;  %v2924_v56 = vmul.f32 %v2923_v7, %v7080_v50  ;;  %v2927_v45 = vmul.f32 %v2926_v49, %v7126_v37 }
 0xced   : > { %v2930_v61 = vmul.f32 %v2929_v29, %v7172_v51  ;;  %v2933_v22 = vmul.f32 %v2932_v36, %v7220_v19  ;;  %v2936_v39 = vmul.f32 %v2935_v59, %v7310_v18  ;;  %v10187_v31 = vmov 1.0|1.0   ;;  %v8032_v29 = vld [vmem:[%s9737_s9 + $0x2c] ss:$16 sps:$4 sm:$0xff]   ;;  %v8052_v36 = vld [vmem:[%s9737_s9 + $0x44] ss:$16 sps:$4 sm:$0xff]  }
 0xcee   : > { %v2922_v52 = vadd.f32 %v2921_v33, %v2919_v32  ;;  %v2939_v32 = vmul.f32 %v2938_v63, %v7515_v34  ;;  %v8070_v59 = vld [vmem:[%s9737_s9 + $0x48] ss:$16 sps:$4 sm:$0xff]   ;;  %v8088_v63 = vld [vmem:[%s9737_s9 + $0x60] ss:$16 sps:$4 sm:$0xff]  }
 0xcef   : > { %10190 = vst [vmem:[#allocation38_spill] sm:$0xff] %v8070_v59  ;;  %10193 = vst [vmem:[#allocation13_spill] sm:$0xff] %v8088_v63 }
 0xcf0   : > { %v2925_v35 = vadd.f32 %v2924_v56, %v2922_v52  ;;  %v8020_v52 = vld [vmem:[%s9737_s9 + $0x8] ss:$16 sps:$4 sm:$0xff]   ;;  %v8026_v56 = vld [vmem:[%s9737_s9 + $0x24] ss:$16 sps:$4 sm:$0xff]  }
 0xcf2   : > { %v2928_v62 = vadd.f32 %v2927_v45, %v2925_v35  ;;  %v8040_v35 = vld [vmem:[%s9737_s9 + $0x20] ss:$16 sps:$4 sm:$0xff]   ;;  %v8046_v45 = vld [vmem:[%s9737_s9 + $0x28] ss:$16 sps:$4 sm:$0xff]  }
 0xcf4   : > { %v2931_v40 = vadd.f32 %v2930_v61, %v2928_v62  ;;  %v8058_v62 = vld [vmem:[%s9737_s9 + $0x4c] ss:$16 sps:$4 sm:$0xff]   ;;  %v8064_v61 = vld [vmem:[%s9737_s9 + $0x40] ss:$16 sps:$4 sm:$0xff]  }
 0xcf5   : > { %10188 = vst [vmem:[#allocation11_spill] sm:$0xff] %v8058_v62  ;;  %10189 = vst [vmem:[#allocation12_spill] sm:$0xff] %v8064_v61 }
 0xcf6   : > { %v2934_v17 = vadd.f32 %v2933_v22, %v2931_v40  ;;  %v8076_v40 = vld [vmem:[%s9737_s9 + $0x64] ss:$16 sps:$4 sm:$0xff]   ;;  %v8082_v22 = vld [vmem:[%s9737_s9 + $0x6c] ss:$16 sps:$4 sm:$0xff]  }
 0xcf7   : > { %10191 = vst [vmem:[#allocation40_spill] sm:$0xff] %v8076_v40  ;;  %10192 = vst [vmem:[#allocation7_spill] sm:$0xff] %v8082_v22 }
 0xcf8   : > { %v2937_v20 = vadd.f32 %v2936_v39, %v2934_v17  ;;  %v8094_v17 = vld [vmem:[%s9737_s9 + $0x68] ss:$16 sps:$4 sm:$0xff]   ;;  %v8100_v39 = vld [vmem:[%s9737_s9 + $0x84] ss:$16 sps:$4 sm:$0xff]  }
 0xcf9   : > { %10194 = vst [vmem:[#allocation41_spill] sm:$0xff] %v8094_v17  ;;  %10195 = vst [vmem:[#allocation43_spill] sm:$0xff] %v8100_v39 }
 0xcfa   : > { %v2940_v7 = vadd.f32 %v2939_v32, %v2937_v20  ;;  %v8106_v20 = vld [vmem:[%s9737_s9 + $0x8c] ss:$16 sps:$4 sm:$0xff]   ;;  %v8112_v32 = vld [vmem:[%s9737_s9 + $0x80] ss:$16 sps:$4 sm:$0xff]  }
 0xcfb   : > { %10196 = vst [vmem:[#allocation14_spill] sm:$0xff] %v8106_v20  ;;  %10197 = vst [vmem:[#allocation8_spill] sm:$0xff] %v8112_v32 }
 0xcfc   : > { %v2942_v9 = vpack.c.bf16 %v2940_v7, %v2940_v7  ;;  %v8118_v7 = vld [vmem:[%s9737_s9 + $0x88] ss:$16 sps:$4 sm:$0xff]  }
 0xcfd   : > { %10198 = vst [vmem:[#allocation46_spill] sm:$0xff] %v8118_v7 }
 0xcfe   : > { %2975 = vmatprep.mubr.bf16.mxu0 %v2942_v9  ;;  %3016 = vmatprep.mubr.bf16.mxu1 %v2942_v9  ;;  %v8124_v9 = vld [vmem:[%s9737_s9 + $0xa4] ss:$16 sps:$4 sm:$0xff]  }
 0xcff   : > { %10199 = vst [vmem:[#allocation47_spill] sm:$0xff] %v8124_v9 }
 0xd3e   : > { %v2846_v33 = vpop.xlane.xlu1 %2845 }
 0xd3f   : > { %v2847_v0 = vmin.f32 %v2846_v33, 127.0  ;;  %v8130_v33 = vld [vmem:[%s9737_s9 + $0xac] ss:$16 sps:$4 sm:$0xff]  }
 0xd40   : > { %10200 = vst [vmem:[#allocation16_spill] sm:$0xff] %v8130_v33 }
 0xd41   : > { %v8003_v49 = vtrunc.f32 %v2847_v0  ;;  %v8136_v0 = vld [vmem:[%s9737_s9 + $0xa0] ss:$16 sps:$4 sm:$0xff]  }
 0xd42   : > { %10201 = vst [vmem:[#allocation17_spill] sm:$0xff] %v8136_v0 }
 0xd43   : > { %v9845_v54 = vcvt.f32.s32 %v8003_v49 }
 0xd45   : > { %vm2849_vm5 = vcmp.eq.s32.totalorder %v7832_v2, %v9845_v54  ;;  %v8142_v54 = vld [vmem:[%s9737_s9 + $0xa8] ss:$16 sps:$4 sm:$0xff]  }
 0xd46   : > { %vm5144_vm6 = vmpackc.low %vm2849_vm5, %vm2849_vm5  ;;  %10202 = vst [vmem:[#allocation48_spill] sm:$0xff] %v8142_v54 }
 0xd47   : > { %5145 = vmatmul.mubr.msk.bf16.vlgmr.msra.gmra.mrb[56].mxu0 %vm5144_vm6, %v10187_v31  ;;  %5147 = vmatmul.mubr.msk.bf16.vlgmr.msra.gmra.mrb[56].mxu1 %vm5144_vm6, %v10187_v31 }
 0xd48   : > { %3047 = vmatpush1.bf16.msra.mxu1 %v8014_v46  ;;  %3088 = vmatpush1.bf16.msra.mxu0 %v8020_v52 }
 0xd49   : > { %3048 = vmatprep.subr.bf16.mxu1 %v8026_v56  ;;  %3089 = vmatprep.subr.bf16.mxu0 %v8032_v29 }
 0xd4a   : > { %3078 = vmatprep.mubr.bf16.mxu1 %v10069_v53  ;;  %3119 = vmatprep.mubr.bf16.mxu0 %v10069_v53 }
 0xd4c   : > { %3049 = vmatpush1.bf16.msra.mxu1 %v8040_v35  ;;  %3090 = vmatpush1.bf16.msra.mxu0 %v8046_v45 }
 0xd4d   : > { %3050 = vmatprep.subr.bf16.mxu1 %v8052_v36  ;;  %3091 = vmatprep.subr.bf16.mxu0 %v8058_v62 }
 0xd50   : > { %3051 = vmatpush1.bf16.msra.mxu1 %v8064_v61  ;;  %3092 = vmatpush1.bf16.msra.mxu0 %v8070_v59 }
 0xd51   : > { %3052 = vmatprep.subr.bf16.mxu1 %v8076_v40  ;;  %3093 = vmatprep.subr.bf16.mxu0 %v8082_v22 }
 0xd54   : > { %3053 = vmatpush1.bf16.msra.mxu1 %v8088_v63  ;;  %3094 = vmatpush1.bf16.msra.mxu0 %v8094_v17 }
 0xd55   : > { %3054 = vmatprep.subr.bf16.mxu1 %v8100_v39  ;;  %3095 = vmatprep.subr.bf16.mxu0 %v8106_v20 }
 0xd58   : > { %3055 = vmatpush1.bf16.msra.mxu1 %v8112_v32  ;;  %3096 = vmatpush1.bf16.msra.mxu0 %v8118_v7 }
 0xd59   : > { %3056 = vmatprep.subr.bf16.mxu1 %v8124_v9  ;;  %3097 = vmatprep.subr.bf16.mxu0 %v8130_v33  ;;  %v8148_v9 = vld [vmem:[%s9737_s9 + $0xc4] ss:$16 sps:$4 sm:$0xff]   ;;  %v8154_v33 = vld [vmem:[%s9737_s9 + $0xcc] ss:$16 sps:$4 sm:$0xff]  }
 0xd5a   : > { %10203 = vst [vmem:[#allocation49_spill] sm:$0xff] %v8148_v9  ;;  %10204 = vst [vmem:[#allocation18_spill] sm:$0xff] %v8154_v33 }
 0xd5c   : > { %3057 = vmatpush1.bf16.msra.mxu1 %v8136_v0  ;;  %3098 = vmatpush1.bf16.msra.mxu0 %v8142_v54  ;;  %v8160_v0 = vld [vmem:[%s9737_s9 + $0xc0] ss:$16 sps:$4 sm:$0xff]   ;;  %v8166_v54 = vld [vmem:[%s9737_s9 + $0xc8] ss:$16 sps:$4 sm:$0xff]  }
 0xd5d   : > { %3058 = vmatprep.subr.bf16.mxu1 %v8148_v9  ;;  %3099 = vmatprep.subr.bf16.mxu0 %v8154_v33  ;;  %10205 = vst [vmem:[#allocation19_spill] sm:$0xff] %v8160_v0  ;;  %10206 = vst [vmem:[#allocation50_spill] sm:$0xff] %v8166_v54  ;;  %v8172_v9 = vld [vmem:[%s9737_s9 + $0xe4] ss:$16 sps:$4 sm:$0xff]   ;;  %v8178_v33 = vld [vmem:[%s9737_s9 + $0xec] ss:$16 sps:$4 sm:$0xff]  }
 0xd5e   : > { %10207 = vst [vmem:[#allocation51_spill] sm:$0xff] %v8172_v9  ;;  %10208 = vst [vmem:[#allocation20_spill] sm:$0xff] %v8178_v33 }
 0xd60   : > { %3059 = vmatpush1.bf16.msra.mxu1 %v8160_v0  ;;  %3100 = vmatpush1.bf16.msra.mxu0 %v8166_v54  ;;  %v8184_v0 = vld [vmem:[%s9737_s9 + $0xe0] ss:$16 sps:$4 sm:$0xff]   ;;  %v8190_v54 = vld [vmem:[%s9737_s9 + $0xe8] ss:$16 sps:$4 sm:$0xff]  }
 0xd61   : > { %3060 = vmatprep.subr.bf16.mxu1 %v8172_v9  ;;  %3101 = vmatprep.subr.bf16.mxu0 %v8178_v33  ;;  %10209 = vst [vmem:[#allocation21_spill] sm:$0xff] %v8184_v0  ;;  %10210 = vst [vmem:[#allocation52_spill] sm:$0xff] %v8190_v54 }
 0xd64   : > { %3061 = vmatpush1.bf16.msra.mxu1 %v8184_v0  ;;  %3102 = vmatpush1.bf16.msra.mxu0 %v8190_v54 }
 0xd65   : > { %3237 = vmatprep.subr.bf16.mxu1 %v7538_v16  ;;  %5328 = vmatprep.subr.bf16.mxu0 %v10128_v4 }
 0xe1a   : > { %v2977_v9 = vpop.f32.mrb[56].mxu0  ;;  %v5322_v33 = vpop.f32.mrb[56].mxu1 }
 0xe1b   : > { %v5659_v7 = vadd.f32 %v7892_v6, %v2977_v9  ;;  %v2979_v32 = vpop.f32.mrb[57].mxu0  ;;  %v5323_v20 = vpop.f32.mrb[57].mxu1  ;;  %v2827_v9 = vadd.f32 %v7973_v10, %v7900_v23 }
 0xe1c   : > { %v5324_v39 = vadd.f32 %v5323_v20, %v5322_v33  ;;  %v2981_v17 = vpop.f32.mrb[58].mxu0  ;;  %v5325_v0 = vpop.f32.mrb[58].mxu1  ;;  %v5661_v59 = vadd.f32 %v7894_v47, %v2979_v32  ;;  %v10231_v33 = vld [vmem:[#allocation39_spill] sm:$0xff] }
 0xe1d   : > { %v5148_v63 = vmul.f32 -1.442695, %v5659_v7  ;;  %v2982_v22 = vpop.f32.mrb[59].mxu0  ;;  %v5326_v40 = vpop.f32.mrb[59].mxu1  ;;  %v10232_v0 = vld [vmem:[#allocation42_spill] sm:$0xff] }
 0xe1e   : > { %v5149_v54 = vmul.f32 -1.442695, %v5661_v59  ;;  %v3019_v17 = vadd.f32 %v5324_v39, %v7903_v24  ;;  %v10230_v39 = vld [vmem:[#allocation36_spill] sm:$0xff] }
 0xe1f   : > { %6081 = vpow2.f32 %v5148_v63 }
 0xe20   : > { %6083 = vpow2.f32 %v5149_v54 }
 0xe29   : > { %v6082_v16 = vpop.eup %6081 }
 0xe2a   : > { %v3028_v61 = vadd.f32 1.0, %v6082_v16  ;;  %v6084_v4 = vpop.eup %6083  ;;  %v10233_v16 = vld [vmem:[#allocation44_spill] sm:$0xff] }
 0xe2b   : > { %v3035_v62 = vadd.f32 1.0, %v6084_v4 }
 0xe2c   : > { %6085 = vrcp.f32 %v3028_v61 }
 0xe2d   : > { %6087 = vrcp.f32 %v3035_v62  ;;  %v10229_v62 = vld [vmem:[#allocation35_spill] sm:$0xff] }
 0xe36   : > { %v6086_v6 = vpop.eup %6085 }
 0xe37   : > { %v3038_v20 = vmul.f32 %v6086_v6, %v2827_v9  ;;  %v6088_v40 = vpop.eup %6087 }
 0xe38   : > { %v3041_v32 = vsub.f32 1.0, %v6088_v40  ;;  %v3043_v54 = vmul.f32 %v6088_v40, %v7909_v11 }
 0xe39   : > { %v3039_v22 = vadd.f32 %v3038_v20, %v3019_v17  ;;  %v10236_v17 = vld [vmem:[#allocation5_spill] sm:$0xff] }
 0xe3b   : > { %6089 = vtanh.f32 %v3039_v22 }
 0xe45   : > { %v6090_v63 = vpop.eup %6089 }
 0xe46   : > { %v3042_v59 = vmul.f32 %v6090_v63, %v3041_v32 }
 0xe48   : > { %v8201_v7 = vadd.f32 %v3043_v54, %v3042_v59 }
 0xe4a   : > { %v3148_v61 = vmul.f32 %v8201_v7, %v10133_v41  ;;  %v3045_v10 = vpack.c.bf16 %v8201_v7, %v8201_v7  ;;  %v3154_v6 = vmul.f32 %v8201_v7, %v7080_v50  ;;  %v3160_v11 = vmul.f32 %v8201_v7, %v7172_v51 }
 0xe4b   : > { %v3151_v32 = vmul.f32 %v8201_v7, %v7034_v43  ;;  %v3157_v63 = vmul.f32 %v8201_v7, %v7126_v37  ;;  %v3163_v54 = vmul.f32 %v8201_v7, %v7220_v19  ;;  %v3169_v59 = vmul.f32 %v8201_v7, %v7515_v34 }
 0xe4c   : > { %3149 = vadd.xlane.f32.xlu1 %v3148_v61  ;;  %3079 = vmatmul.mubr.bf16.vlgmr.msra.gmra.mrb[60].mxu1 %v3045_v10 }
 0xe4d   : > { %3120 = vmatmul.mubr.bf16.vlgmr.msra.gmra.mrb[60].mxu0 %v3045_v10  ;;  %3238 = vmatpush1.bf16.msra.mxu1 %v10134_v27  ;;  %v8222_v27 = vld [vmem:[%s9735_s7 + $0x30] ss:$12 sps:$4 sm:$0xff]  }
 0xe4e   : > { %3239 = vmatprep.subr.bf16.mxu1 %v10135_v3  ;;  %5329 = vmatpush3.bf16.msra.mxu0 %v10136_v28  ;;  %v3166_v3 = vmul.f32 %v8201_v7, %v7310_v18  ;;  %v8233_v28 = vld [vmem:[%s9735_s7 + $0x48] ss:$12 sps:$4 sm:$0xff]  }
 0xe4f   : > { %5330 = vmatprep.subr.bf16.mxu0 %v10137_v38  ;;  %10211 = vst [vmem:[#allocation53_spill] sm:$0xff] %v8233_v28  ;;  %v8239_v38 = vld [vmem:[%s9735_s7 + $0x64] ss:$12 sps:$4 sm:$0xff]  }
 0xe50   : > { %3155 = vadd.xlane.f32.xlu1 %v3154_v6  ;;  %10212 = vst [vmem:[#allocation22_spill] sm:$0xff] %v8239_v38 }
 0xe51   : > { %3240 = vmatpush1.bf16.msra.mxu1 %v10138_v25  ;;  %v8247_v25 = vld [vmem:[%s9735_s7 + $0x60] ss:$12 sps:$4 sm:$0xff]  }
 0xe52   : > { %3241 = vmatprep.subr.bf16.mxu1 %v10139_v26  ;;  %5331 = vmatpush3.bf16.msra.mxu0 %v10140_v57  ;;  %10213 = vst [vmem:[#allocation23_spill] sm:$0xff] %v8247_v25  ;;  %v8253_v26 = vld [vmem:[%s9735_s7 + $0x7c] ss:$12 sps:$4 sm:$0xff]   ;;  %v8261_v57 = vld [vmem:[%s9735_s7 + $0x78] ss:$12 sps:$4 sm:$0xff]  }
 0xe53   : > { %5332 = vmatprep.subr.bf16.mxu0 %v10141_v13  ;;  %10214 = vst [vmem:[#allocation54_spill] sm:$0xff] %v8253_v26  ;;  %10215 = vst [vmem:[#allocation55_spill] sm:$0xff] %v8261_v57  ;;  %v8267_v13 = vld [vmem:[%s9735_s7 + $0x94] ss:$12 sps:$4 sm:$0xff]  }
 0xe54   : > { %3161 = vadd.xlane.f32.xlu1 %v3160_v11  ;;  %10216 = vst [vmem:[#allocation24_spill] sm:$0xff] %v8267_v13  ;;  %v10239_v11 = vld [vmem:[#allocation4_spill] sm:$0xff] }
 0xe55   : > { %3242 = vmatpush1.bf16.msra.mxu1 %v8222_v27 }
 0xe56   : > { %3243 = vmatprep.subr.bf16.mxu1 %v10143_v48  ;;  %5333 = vmatpush3.bf16.msra.mxu0 %v10144_v60  ;;  %v8275_v48 = vld [vmem:[%s9735_s7 + $0x90] ss:$12 sps:$4 sm:$0xff]   ;;  %v8281_v60 = vld [vmem:[%s9735_s7 + $0xac] ss:$12 sps:$4 sm:$0xff]  }
 0xe57   : > { %5334 = vmatprep.subr.bf16.mxu0 %v10145_v1  ;;  %10217 = vst [vmem:[#allocation25_spill] sm:$0xff] %v8275_v48  ;;  %10218 = vst [vmem:[#allocation56_spill] sm:$0xff] %v8281_v60  ;;  %v8289_v1 = vld [vmem:[%s9735_s7 + $0xa8] ss:$12 sps:$4 sm:$0xff]  }
 0xe58   : > { %3167 = vadd.xlane.f32.xlu1 %v3166_v3  ;;  %10219 = vst [vmem:[#allocation10_spill] sm:$0xff] %v8289_v1 }
 0xe59   : > { %3244 = vmatpush1.bf16.msra.mxu1 %v8233_v28 }
 0xe5a   : > { %3245 = vmatprep.subr.bf16.mxu1 %v8239_v38  ;;  %5335 = vmatpush3.bf16.msra.mxu0 %v10148_v55  ;;  %v8295_v55 = vld [vmem:[%s9735_s7 + $0xc4] ss:$12 sps:$4 sm:$0xff]  }
 0xe5b   : > { %5336 = vmatprep.subr.bf16.mxu0 %v10149_v15  ;;  %10220 = vst [vmem:[#allocation26_spill] sm:$0xff] %v8295_v55  ;;  %v8302_v15 = vld [vmem:[%s9737_s9 + $0x4] ss:$16 sps:$4 sm:$0xff]  }
 0xe5c   : > { %10221 = vst [vmem:[#allocation27_spill] sm:$0xff] %v8302_v15 }
 0xe5d   : > { %3246 = vmatpush1.bf16.msra.mxu1 %v8247_v25 }
 0xe5e   : > { %3247 = vmatprep.subr.bf16.mxu1 %v8253_v26  ;;  %5337 = vmatpush3.bf16.msra.mxu0 %v10152_v5  ;;  %v8308_v5 = vld [vmem:[%s9735_s7 + $0xc0] ss:$12 sps:$4 sm:$0xff]  }
 0xe5f   : > { %5338 = vmatprep.subr.bf16.mxu0 %v10153_v8  ;;  %10222 = vst [vmem:[#allocation28_spill] sm:$0xff] %v8308_v5  ;;  %v8314_v8 = vld [vmem:[%s9735_s7 + $0xdc] ss:$12 sps:$4 sm:$0xff]  }
 0xe60   : > { %10223 = vst [vmem:[#allocation29_spill] sm:$0xff] %v8314_v8 }
 0xe61   : > { %3248 = vmatpush1.bf16.msra.mxu1 %v8261_v57 }
 0xe62   : > { %3249 = vmatprep.subr.bf16.mxu1 %v8267_v13  ;;  %5339 = vmatpush3.bf16.msra.mxu0 %v10156_v12  ;;  %v8320_v12 = vld [vmem:[%s9735_s7 + $0xd8] ss:$12 sps:$4 sm:$0xff]  }
 0xe63   : > { %5340 = vmatprep.subr.bf16.mxu0 %v10157_v14  ;;  %10224 = vst [vmem:[#allocation30_spill] sm:$0xff] %v8320_v12  ;;  %v10225_v14 = vld [vmem:[#allocation31_spill] sm:$0xff] }
 0xe65   : > { %3250 = vmatpush1.bf16.msra.mxu1 %v8275_v48 }
 0xe66   : > { %3251 = vmatprep.subr.bf16.mxu1 %v8281_v60  ;;  %5341 = vmatpush3.bf16.msra.mxu0 %v10160_v21  ;;  %v10226_v21 = vld [vmem:[#allocation32_spill] sm:$0xff] }
 0xe67   : > { %5342 = vmatprep.subr.bf16.mxu0 %v10161_v42  ;;  %v10227_v42 = vld [vmem:[#allocation33_spill] sm:$0xff] }
 0xe69   : > { %3252 = vmatpush1.bf16.msra.mxu1 %v8289_v1 }
 0xe6a   : > { %3253 = vmatprep.subr.bf16.mxu1 %v8295_v55  ;;  %5343 = vmatpush3.bf16.msra.mxu0 %v10164_v30  ;;  %v10228_v30 = vld [vmem:[#allocation34_spill] sm:$0xff] }
 0xe6b   : > { %3340 = vmatprep.subr.bf16.mxu0 %v8302_v15 }
 0xe6d   : > { %3254 = vmatpush1.bf16.msra.mxu1 %v8308_v5 }
 0xe6e   : > { %3255 = vmatprep.subr.bf16.mxu1 %v8314_v8 }
 0xe71   : > { %3256 = vmatpush1.bf16.msra.mxu1 %v8320_v12 }
 0xe72   : > { %3257 = vmatprep.subr.bf16.mxu1 %v10169_v44  ;;  %v10234_v44 = vld [vmem:[#allocation45_spill] sm:$0xff] }
 0xe75   : > { %3258 = vmatpush1.bf16.msra.mxu1 %v10170_v58  ;;  %v8338_v58 = vld [vmem:[%s9737_s9 + $0xc] ss:$16 sps:$4 sm:$0xff]  }
 0xe76   : > { %3259 = vmatprep.subr.bf16.mxu1 %v10225_v14  ;;  %10235 = vst [vmem:[#allocation9_spill] sm:$0xff] %v8338_v58 }
 0xe79   : > { %3260 = vmatpush1.bf16.msra.mxu1 %v10226_v21 }
 0xe7a   : > { %3261 = vmatprep.subr.bf16.mxu1 %v10227_v42 }
 0xe7d   : > { %3262 = vmatpush1.bf16.msra.mxu1 %v10228_v30 }
 0xe7e   : > { %3263 = vmatprep.subr.bf16.mxu1 %v10229_v62 }
 0xe81   : > { %3264 = vmatpush1.bf16.msra.mxu1 %v10230_v39 }
 0xe82   : > { %3265 = vmatprep.subr.bf16.mxu1 %v10231_v33 }
 0xe85   : > { %3266 = vmatpush1.bf16.msra.mxu1 %v10232_v0 }
 0xe86   : > { %3267 = vmatprep.subr.bf16.mxu1 %v10233_v16 }
 0xe89   : > { %3268 = vmatpush1.bf16.msra.mxu1 %v10234_v44 }
 0xe8a   : > { %3381 = vmatprep.subr.bf16.mxu1 %v8338_v58 }
 0xed9   : > { %v3150_v61 = vpop.xlane.xlu1 %3149 }
 0xedd   : > { %v3156_v6 = vpop.xlane.xlu1 %3155 }
 0xee1   : > { %v3162_v30 = vpop.xlane.xlu1 %3161 }
 0xee5   : > { %v3168_v44 = vpop.xlane.xlu1 %3167 }
 0xf20   : > { %v8341_v4 = vpop.f32.mrb[60].mxu0 }
 0xf21   : > { %v3123_v9 = vpop.f32.mrb[61].mxu0 }
 0xf22   : > { %v8344_v20 = vadd.f32 %v3123_v9, %v10236_v17  ;;  %v3125_v22 = vpop.f32.mrb[62].mxu0 }
 0xf23   : > { %v3126_v40 = vpop.f32.mrb[63].mxu0 }
 0xf24   : > { %10237 = vst [vmem:[#allocation3_spill] sm:$0xff] %v8344_v20  ;;  %3128 = vmax.xlane.f32.xlu0 %v8344_v20 }
 0xf28   : > { %3152 = vadd.xlane.f32.xlu0 %v3151_v32 }
 0xf2c   : > { %3158 = vadd.xlane.f32.xlu0 %v3157_v63 }
 0xf30   : > { %3164 = vadd.xlane.f32.xlu0 %v3163_v54 }
 0xf34   : > { %3170 = vadd.xlane.f32.xlu0 %v3169_v59 }
 0xfb1   : > { %v8355_v10 = vpop.xlane.xlu0 %3128 }
 0xfb2   : > { %10238 = vst [vmem:[#allocation31_spill] sm:$0xff] %v8355_v10  ;;  %vm3138_vm7 = vcmp.ge.f32.partialorder %v8344_v20, %v8355_v10 }
 0xfb3   : > { %v3139_v3 = vsel %vm3138_vm7, %v10239_v11, 128.0 }
 0xfb4   : > { %3140 = vmin.xlane.f32.xlu1 %v3139_v3 }
 0xfb5   : > { %v3153_v14 = vpop.xlane.xlu0 %3152 }
 0xfb6   : > { %v3172_v21 = vmax.f32 %v3150_v61, %v3153_v14 }
 0xfb8   : > { %v3173_v42 = vmax.f32 %v3172_v21, %v3156_v6 }
 0xfb9   : > { %v3159_v62 = vpop.xlane.xlu0 %3158 }
 0xfba   : > { %v3174_v39 = vmax.f32 %v3173_v42, %v3159_v62 }
 0xfbc   : > { %v3175_v33 = vmax.f32 %v3174_v39, %v3162_v30 }
 0xfbd   : > { %v3165_v0 = vpop.xlane.xlu0 %3164 }
 0xfbe   : > { %v3176_v16 = vmax.f32 %v3175_v33, %v3165_v0 }
 0xfc0   : > { %v3177_v9 = vmax.f32 %v3176_v16, %v3168_v44 }
 0xfc1   : > { %v3171_v22 = vpop.xlane.xlu0 %3170 }
 0xfc2   : > { %v3178_v40 = vmax.f32 %v3177_v9, %v3171_v22 }
 0xfc4   : > { %v3179_v32 = vsub.f32 %v3150_v61, %v3178_v40  ;;  %v3182_v63 = vsub.f32 %v3153_v14, %v3178_v40  ;;  %v3185_v54 = vsub.f32 %v3156_v6, %v3178_v40  ;;  %v3188_v59 = vsub.f32 %v3159_v62, %v3178_v40 }
 0xfc5   : > { %v3191_v11 = vsub.f32 %v3162_v30, %v3178_v40  ;;  %v3194_v17 = vsub.f32 %v3165_v0, %v3178_v40  ;;  %v3197_v39 = vsub.f32 %v3168_v44, %v3178_v40  ;;  %v3200_v16 = vsub.f32 %v3171_v22, %v3178_v40 }
 0xfc6   : > { %v3180_v20 = vmul.f32 1.442695, %v3179_v32  ;;  %v3183_v10 = vmul.f32 1.442695, %v3182_v63  ;;  %v3186_v3 = vmul.f32 1.442695, %v3185_v54 }
 0xfc7   : > { %v3189_v21 = vmul.f32 1.442695, %v3188_v59  ;;  %v3192_v42 = vmul.f32 1.442695, %v3191_v11  ;;  %v3195_v33 = vmul.f32 1.442695, %v3194_v17 }
 0xfc8   : > { %6091 = vpow2.f32 %v3180_v20  ;;  %v3198_v9 = vmul.f32 1.442695, %v3197_v39  ;;  %v3201_v61 = vmul.f32 1.442695, %v3200_v16 }
 0xfc9   : > { %6093 = vpow2.f32 %v3183_v10 }
 0xfca   : > { %6095 = vpow2.f32 %v3186_v3 }
 0xfcb   : > { %6097 = vpow2.f32 %v3189_v21 }
 0xfcc   : > { %6099 = vpow2.f32 %v3192_v42 }
 0xfcd   : > { %6101 = vpow2.f32 %v3195_v33 }
 0xfce   : > { %6103 = vpow2.f32 %v3198_v9 }
 0xfcf   : > { %6105 = vpow2.f32 %v3201_v61 }
 0xfd2   : > { %v6092_v6 = vpop.eup %6091 }
 0xfd3   : > { %v6094_v14 = vpop.eup %6093 }
 0xfd4   : > { %v3203_v62 = vadd.f32 %v6094_v14, %v6092_v6  ;;  %v6096_v32 = vpop.eup %6095 }
 0xfd5   : > { %v6098_v10 = vpop.eup %6097 }
 0xfd6   : > { %v3204_v20 = vadd.f32 %v6096_v32, %v3203_v62  ;;  %v6100_v0 = vpop.eup %6099 }
 0xfd7   : > { %v6102_v11 = vpop.eup %6101 }
 0xfd8   : > { %v3205_v30 = vadd.f32 %v6098_v10, %v3204_v20  ;;  %v6104_v54 = vpop.eup %6103 }
 0xfd9   : > { %v6106_v22 = vpop.eup %6105 }
 0xfda   : > { %v3206_v63 = vadd.f32 %v6100_v0, %v3205_v30 }
 0xfdc   : > { %v3207_v44 = vadd.f32 %v6102_v11, %v3206_v63 }
 0xfde   : > { %v3208_v17 = vadd.f32 %v6104_v54, %v3207_v44 }
 0xfe0   : > { %v3209_v40 = vadd.f32 %v6106_v22, %v3208_v17 }
 0xfe2   : > { %6107 = vrcp.f32 %v3209_v40 }
 0xfec   : > { %v6108_v59 = vpop.eup %6107 }
 0xfed   : > { %v3212_v3 = vmul.f32 %v6108_v59, %v6092_v6  ;;  %v3214_v21 = vmul.f32 %v6108_v59, %v6094_v14  ;;  %v3217_v42 = vmul.f32 %v6108_v59, %v6096_v32  ;;  %v3220_v16 = vmul.f32 %v6108_v59, %v6098_v10 }
 0xfee   : > { %v3223_v62 = vmul.f32 %v6108_v59, %v6100_v0  ;;  %v3226_v63 = vmul.f32 %v6108_v59, %v6102_v11  ;;  %v3229_v40 = vmul.f32 %v6108_v59, %v6104_v54  ;;  %v3232_v32 = vmul.f32 %v6108_v59, %v6106_v22  ;;  %v10242_v59 = vld [vmem:[#allocation12_spill] sm:$0xff] }
 0xfef   : > { %v3213_v39 = vmul.f32 %v3212_v3, %v10133_v41  ;;  %v3215_v33 = vmul.f32 %v3214_v21, %v7034_v43  ;;  %v3218_v61 = vmul.f32 %v3217_v42, %v7080_v50  ;;  %v3221_v30 = vmul.f32 %v3220_v16, %v7126_v37 }
 0xff0   : > { %v3224_v17 = vmul.f32 %v3223_v62, %v7172_v51  ;;  %v3227_v14 = vmul.f32 %v3226_v63, %v7220_v19  ;;  %v3230_v21 = vmul.f32 %v3229_v40, %v7310_v18  ;;  %v10243_v62 = vld [vmem:[#allocation38_spill] sm:$0xff]  ;;  %v10246_v63 = vld [vmem:[#allocation13_spill] sm:$0xff] }
 0xff1   : > { %v3216_v9 = vadd.f32 %v3215_v33, %v3213_v39  ;;  %v3233_v39 = vmul.f32 %v3232_v32, %v7515_v34  ;;  %v10249_v40 = vld [vmem:[#allocation14_spill] sm:$0xff]  ;;  %v10252_v32 = vld [vmem:[#allocation47_spill] sm:$0xff] }
 0xff3   : > { %v3219_v20 = vadd.f32 %v3218_v61, %v3216_v9  ;;  %v10240_v9 = vcvt.f32.s32 %v8003_v49  ;;  %v10241_v49 = vld [vmem:[#allocation11_spill] sm:$0xff] }
 0xff5   : > { %v3222_v44 = vadd.f32 %v3221_v30, %v3219_v20  ;;  %v2853_v61 = vsel %vm2852_vm8, %v10240_v9, 0  ;;  %v10244_v20 = vld [vmem:[#allocation40_spill] sm:$0xff]  ;;  %v10245_v30 = vld [vmem:[#allocation7_spill] sm:$0xff]  ;;  %vm4326_vm8 = vcmp.eq.s32.totalorder %v7832_v2, 5 }
 0xff6   : > { %v10263_v9 = vld [vmem:[#allocation52_spill] sm:$0xff] }
 0xff7   : > { %v3225_v6 = vadd.f32 %v3224_v17, %v3222_v44  ;;  %v10247_v44 = vld [vmem:[#allocation41_spill] sm:$0xff]  ;;  %v10248_v17 = vld [vmem:[#allocation43_spill] sm:$0xff] }
 0xff9   : > { %v3228_v3 = vadd.f32 %v3227_v14, %v3225_v6  ;;  %v10250_v6 = vld [vmem:[#allocation8_spill] sm:$0xff]  ;;  %v10251_v14 = vld [vmem:[#allocation46_spill] sm:$0xff] }
 0xffb   : > { %v3231_v10 = vadd.f32 %v3230_v21, %v3228_v3  ;;  %v10253_v3 = vld [vmem:[#allocation16_spill] sm:$0xff]  ;;  %v10254_v21 = vld [vmem:[#allocation17_spill] sm:$0xff] }
 0xffd   : > { %v3234_v42 = vadd.f32 %v3233_v39, %v3231_v10  ;;  %v10255_v10 = vld [vmem:[#allocation48_spill] sm:$0xff]  ;;  %v10256_v39 = vld [vmem:[#allocation49_spill] sm:$0xff] }
 0xfff   : > { %v3236_v0 = vpack.c.bf16 %v3234_v42, %v3234_v42  ;;  %v10257_v42 = vld [vmem:[#allocation18_spill] sm:$0xff] }
0x1001   : > { %3269 = vmatprep.mubr.bf16.mxu1 %v3236_v0  ;;  %3310 = vmatprep.mubr.bf16.mxu0 %v3236_v0  ;;  %v10258_v0 = vld [vmem:[#allocation19_spill] sm:$0xff] }
0x1041   : > { %v3141_v33 = vpop.xlane.xlu1 %3140 }
0x1042   : > { %v3142_v11 = vmin.f32 %v3141_v33, 127.0  ;;  %v10259_v33 = vld [vmem:[#allocation50_spill] sm:$0xff] }
0x1044   : > { %v5720_v16 = vtrunc.f32 %v3142_v11  ;;  %v10260_v11 = vld [vmem:[#allocation51_spill] sm:$0xff] }
0x1046   : > { %v5721_v54 = vcvt.f32.s32 %v5720_v16  ;;  %v10261_v16 = vld [vmem:[#allocation20_spill] sm:$0xff] }
0x1048   : > { %vm3144_vm9 = vcmp.eq.s32.totalorder %v7832_v2, %v5721_v54  ;;  %v8374_v22 = vsel %vm2058_vm2, %v5721_v54, %v2853_v61  ;;  %v10262_v54 = vld [vmem:[#allocation21_spill] sm:$0xff] }
0x1049   : > { %vm5151_vm10 = vmpackc.low %vm3144_vm9, %vm3144_vm9  ;;  %v8413_v61 = vld [vmem:[%s9735_s7 + $0x4] ss:$12 sps:$4 sm:$0xff]  }
0x104a   : > { %5152 = vmatmul.mubr.msk.bf16.vlgmr.msra.gmra.mrb[60].mxu1 %vm5151_vm10, %v10187_v31  ;;  %5154 = vmatmul.mubr.msk.bf16.vlgmr.msra.gmra.mrb[64].mxu0 %vm5151_vm10, %v10187_v31  ;;  %10264 = vst [vmem:[#allocation32_spill] sm:$0xff] %v8413_v61 }
0x104b   : > { %3341 = vmatpush1.bf16.msra.mxu0 %v8014_v46  ;;  %3382 = vmatpush1.bf16.msra.mxu1 %v8020_v52 }
0x104c   : > { %3342 = vmatprep.subr.bf16.mxu0 %v8026_v56  ;;  %3383 = vmatprep.subr.bf16.mxu1 %v8032_v29 }
0x104d   : > { %3372 = vmatprep.mubr.bf16.mxu0 %v10069_v53  ;;  %3413 = vmatprep.mubr.bf16.mxu1 %v10069_v53 }
0x104f   : > { %3343 = vmatpush1.bf16.msra.mxu0 %v8040_v35  ;;  %3384 = vmatpush1.bf16.msra.mxu1 %v8046_v45 }
0x1050   : > { %3344 = vmatprep.subr.bf16.mxu0 %v8052_v36  ;;  %3385 = vmatprep.subr.bf16.mxu1 %v10241_v49 }
0x1053   : > { %3345 = vmatpush1.bf16.msra.mxu0 %v10242_v59  ;;  %3386 = vmatpush1.bf16.msra.mxu1 %v10243_v62 }
0x1054   : > { %3346 = vmatprep.subr.bf16.mxu0 %v10244_v20  ;;  %3387 = vmatprep.subr.bf16.mxu1 %v10245_v30 }
0x1057   : > { %3347 = vmatpush1.bf16.msra.mxu0 %v10246_v63  ;;  %3388 = vmatpush1.bf16.msra.mxu1 %v10247_v44 }
0x1058   : > { %3348 = vmatprep.subr.bf16.mxu0 %v10248_v17  ;;  %3389 = vmatprep.subr.bf16.mxu1 %v10249_v40 }
0x105b   : > { %3349 = vmatpush1.bf16.msra.mxu0 %v10250_v6  ;;  %3390 = vmatpush1.bf16.msra.mxu1 %v10251_v14 }
0x105c   : > { %3350 = vmatprep.subr.bf16.mxu0 %v10252_v32  ;;  %3391 = vmatprep.subr.bf16.mxu1 %v10253_v3 }
0x105f   : > { %3351 = vmatpush1.bf16.msra.mxu0 %v10254_v21  ;;  %3392 = vmatpush1.bf16.msra.mxu1 %v10255_v10 }
0x1060   : > { %3352 = vmatprep.subr.bf16.mxu0 %v10256_v39  ;;  %3393 = vmatprep.subr.bf16.mxu1 %v10257_v42 }
0x1063   : > { %3353 = vmatpush1.bf16.msra.mxu0 %v10258_v0  ;;  %3394 = vmatpush1.bf16.msra.mxu1 %v10259_v33  ;;  %v8419_v0 = vld [vmem:[%s9735_s7 + $0xc8] ss:$12 sps:$4 sm:$0xff]  }
0x1064   : > { %3354 = vmatprep.subr.bf16.mxu0 %v10260_v11  ;;  %3395 = vmatprep.subr.bf16.mxu1 %v10261_v16  ;;  %10265 = vst [vmem:[#allocation33_spill] sm:$0xff] %v8419_v0  ;;  %v10266_v33 = vld [vmem:[#allocation37_spill] sm:$0xff] }
0x1067   : > { %3355 = vmatpush1.bf16.msra.mxu0 %v10262_v54  ;;  %3396 = vmatpush1.bf16.msra.mxu1 %v10263_v9 }
0x1068   : > { %3532 = vmatprep.subr.bf16.mxu0 %v8413_v61  ;;  %5350 = vmatprep.subr.bf16.mxu1 %v8419_v0 }
0x111d   : > { %v3271_v11 = vpop.f32.mrb[60].mxu1  ;;  %v5344_v16 = vpop.f32.mrb[64].mxu0 }
0x111e   : > { %v5663_v54 = vadd.f32 %v10266_v33, %v3271_v11  ;;  %v3273_v42 = vpop.f32.mrb[61].mxu1  ;;  %v5345_v9 = vpop.f32.mrb[65].mxu0  ;;  %v3122_v11 = vadd.f32 %v8341_v4, %v7900_v23 }
0x111f   : > { %v5346_v39 = vadd.f32 %v5345_v9, %v5344_v16  ;;  %v3275_v10 = vpop.f32.mrb[62].mxu1  ;;  %v5347_v21 = vpop.f32.mrb[66].mxu0  ;;  %v5665_v61 = vadd.f32 %v7894_v47, %v3273_v42 }
0x1120   : > { %v5155_v3 = vmul.f32 -1.442695, %v5663_v54  ;;  %v3276_v32 = vpop.f32.mrb[63].mxu1  ;;  %v5348_v14 = vpop.f32.mrb[67].mxu0  ;;  %v8463_v54 = vld [vmem:[%s9735_s7 + $0x18] ss:$12 sps:$4 sm:$0xff]  }
0x1121   : > { %v5156_v6 = vmul.f32 -1.442695, %v5665_v61  ;;  %v3313_v21 = vadd.f32 %v5346_v39, %v7903_v24  ;;  %v8445_v39 = vld [vmem:[%s9735_s7 + $0x1c] ss:$12 sps:$4 sm:$0xff]   ;;  %v8471_v61 = vld [vmem:[%s9735_s7 + $0x34] ss:$12 sps:$4 sm:$0xff]  }
0x1122   : > { %6109 = vpow2.f32 %v5155_v3 }
0x1123   : > { %6111 = vpow2.f32 %v5156_v6 }
0x112c   : > { %v6110_v40 = vpop.eup %6109 }
0x112d   : > { %v3322_v17 = vadd.f32 1.0, %v6110_v40  ;;  %v6112_v0 = vpop.eup %6111 }
0x112e   : > { %v3329_v44 = vadd.f32 1.0, %v6112_v0  ;;  %v8451_v0 = vld [vmem:[%s9735_s7 + $0x8] ss:$12 sps:$4 sm:$0xff]  }
0x112f   : > { %6113 = vrcp.f32 %v3322_v17 }
0x1130   : > { %6115 = vrcp.f32 %v3329_v44  ;;  %v8437_v44 = vld [vmem:[%s9735_s7] ss:$12 sps:$4 sm:$0xff]  }
0x1139   : > { %v6114_v33 = vpop.eup %6113 }
0x113a   : > { %v3332_v10 = vmul.f32 %v6114_v33, %v3122_v11  ;;  %v6116_v14 = vpop.eup %6115  ;;  %v8457_v33 = vld [vmem:[%s9735_s7 + $0xe0] ss:$12 sps:$4 sm:$0xff]  }
0x113b   : > { %v3335_v42 = vsub.f32 1.0, %v6116_v14  ;;  %v3337_v6 = vmul.f32 %v6116_v14, %v8201_v7  ;;  %v8477_v11 = vld [vmem:[%s9735_s7 + $0x20] ss:$12 sps:$4 sm:$0xff]   ;;  %v8498_v14 = vld [vmem:[%s9735_s7 + $0x38] ss:$12 sps:$4 sm:$0xff]  }
0x113c   : > { %v3333_v32 = vadd.f32 %v3332_v10, %v3313_v21  ;;  %v8483_v21 = vld [vmem:[%s9735_s7 + $0xf8] ss:$12 sps:$4 sm:$0xff]   ;;  %10267 = vst [vmem:[#allocation34_spill] sm:$0xff] %v8498_v14 }
0x113e   : > { %6117 = vtanh.f32 %v3333_v32  ;;  %v8492_v32 = vld [vmem:[%s9735_s7 + $0x4c] ss:$12 sps:$4 sm:$0xff]  }
0x1148   : > { %v6118_v3 = vpop.eup %6117 }
0x1149   : > { %v3336_v16 = vmul.f32 %v6118_v3, %v3335_v42  ;;  %v8504_v42 = vld [vmem:[%s9735_s7 + $0x110] ss:$12 sps:$4 sm:$0xff]  }
0x114a   : > { %10268 = vst [vmem:[#allocation35_spill] sm:$0xff] %v8504_v42  ;;  %v8512_v3 = vld [vmem:[%s9735_s7 + $0x50] ss:$12 sps:$4 sm:$0xff]  }
0x114b   : > { %v8428_v40 = vadd.f32 %v3337_v6, %v3336_v16  ;;  %10269 = vst [vmem:[#allocation36_spill] sm:$0xff] %v8512_v3  ;;  %v8518_v6 = vld [vmem:[%s9735_s7 + $0x128] ss:$12 sps:$4 sm:$0xff]  }
0x114c   : > { %10270 = vst [vmem:[#allocation39_spill] sm:$0xff] %v8518_v6  ;;  %v8526_v16 = vld [vmem:[%s9735_s7 + $0x68] ss:$12 sps:$4 sm:$0xff]  }
0x114d   : > { %v3443_v17 = vmul.f32 %v8428_v40, %v10133_v41  ;;  %v3339_v4 = vpack.c.bf16 %v8428_v40, %v8428_v40  ;;  %v3449_v7 = vmul.f32 %v8428_v40, %v7080_v50  ;;  %v3455_v9 = vmul.f32 %v8428_v40, %v7172_v51  ;;  %10271 = vst [vmem:[#allocation42_spill] sm:$0xff] %v8526_v16 }
0x114e   : > { %v3461_v10 = vmul.f32 %v8428_v40, %v7310_v18 }
0x114f   : > { %3444 = vadd.xlane.f32.xlu1 %v3443_v17  ;;  %3373 = vmatmul.mubr.bf16.vlgmr.msra.gmra.mrb[68].mxu0 %v3339_v4  ;;  %v8532_v17 = vld [vmem:[%s9735_s7 + $0x140] ss:$12 sps:$4 sm:$0xff]  }
0x1150   : > { %3414 = vmatmul.mubr.bf16.vlgmr.msra.gmra.mrb[64].mxu1 %v3339_v4  ;;  %3533 = vmatpush1.bf16.msra.mxu0 %v8437_v44  ;;  %10272 = vst [vmem:[#allocation44_spill] sm:$0xff] %v8532_v17  ;;  %v8540_v4 = vld [vmem:[%s9735_s7 + $0x80] ss:$12 sps:$4 sm:$0xff]  }
0x1151   : > { %3534 = vmatprep.subr.bf16.mxu0 %v8445_v39  ;;  %5351 = vmatpush3.bf16.msra.mxu1 %v8451_v0  ;;  %10273 = vst [vmem:[#allocation45_spill] sm:$0xff] %v8540_v4 }
0x1152   : > { %5352 = vmatprep.subr.bf16.mxu1 %v8457_v33 }
0x1153   : > { %3450 = vadd.xlane.f32.xlu1 %v3449_v7  ;;  %v8546_v7 = vld [vmem:[%s9735_s7 + $0x158] ss:$12 sps:$4 sm:$0xff]  }
0x1154   : > { %3535 = vmatpush1.bf16.msra.mxu0 %v8463_v54  ;;  %10274 = vst [vmem:[#allocation11_spill] sm:$0xff] %v8546_v7 }
0x1155   : > { %3536 = vmatprep.subr.bf16.mxu0 %v8471_v61  ;;  %5353 = vmatpush3.bf16.msra.mxu1 %v8477_v11 }
0x1156   : > { %5354 = vmatprep.subr.bf16.mxu1 %v8483_v21 }
0x1157   : > { %3456 = vadd.xlane.f32.xlu1 %v3455_v9  ;;  %v8554_v9 = vld [vmem:[%s9735_s7 + $0x98] ss:$12 sps:$4 sm:$0xff]  }
0x1158   : > { %3537 = vmatpush1.bf16.msra.mxu0 %v8222_v27  ;;  %10275 = vst [vmem:[#allocation12_spill] sm:$0xff] %v8554_v9 }
0x1159   : > { %3538 = vmatprep.subr.bf16.mxu0 %v8492_v32  ;;  %5355 = vmatpush3.bf16.msra.mxu1 %v8498_v14 }
0x115a   : > { %5356 = vmatprep.subr.bf16.mxu1 %v8504_v42 }
0x115b   : > { %3462 = vadd.xlane.f32.xlu1 %v3461_v10  ;;  %v8560_v10 = vld [vmem:[%s9735_s7 + $0x170] ss:$12 sps:$4 sm:$0xff]  }
0x115c   : > { %3539 = vmatpush1.bf16.msra.mxu0 %v8233_v28  ;;  %10276 = vst [vmem:[#allocation38_spill] sm:$0xff] %v8560_v10 }
0x115d   : > { %3540 = vmatprep.subr.bf16.mxu0 %v8239_v38  ;;  %5357 = vmatpush3.bf16.msra.mxu1 %v8512_v3 }
0x115e   : > { %5358 = vmatprep.subr.bf16.mxu1 %v8518_v6 }
0x1160   : > { %3541 = vmatpush1.bf16.msra.mxu0 %v8247_v25 }
0x1161   : > { %3542 = vmatprep.subr.bf16.mxu0 %v8253_v26  ;;  %5359 = vmatpush3.bf16.msra.mxu1 %v8526_v16 }
0x1162   : > { %5360 = vmatprep.subr.bf16.mxu1 %v8532_v17 }
0x1164   : > { %3543 = vmatpush1.bf16.msra.mxu0 %v8261_v57 }
0x1165   : > { %3544 = vmatprep.subr.bf16.mxu0 %v8267_v13  ;;  %5361 = vmatpush3.bf16.msra.mxu1 %v8540_v4 }
0x1166   : > { %5362 = vmatprep.subr.bf16.mxu1 %v8546_v7 }
0x1168   : > { %3545 = vmatpush1.bf16.msra.mxu0 %v8275_v48 }
0x1169   : > { %3546 = vmatprep.subr.bf16.mxu0 %v8281_v60  ;;  %5363 = vmatpush3.bf16.msra.mxu1 %v8554_v9  ;;  %v8568_v60 = vld [vmem:[%s9735_s7 + $0xb0] ss:$12 sps:$4 sm:$0xff]   ;;  %v3452_v9 = vmul.f32 %v8428_v40, %v7126_v37 }
0x116a   : > { %5364 = vmatprep.subr.bf16.mxu1 %v8560_v10  ;;  %10277 = vst [vmem:[#allocation40_spill] sm:$0xff] %v8568_v60 }
0x116c   : > { %3547 = vmatpush1.bf16.msra.mxu0 %v8289_v1  ;;  %v8578_v1 = vld [vmem:[%s9735_s7 + $0xf4] ss:$12 sps:$4 sm:$0xff]  }
0x116d   : > { %3548 = vmatprep.subr.bf16.mxu0 %v8295_v55  ;;  %5365 = vmatpush3.bf16.msra.mxu1 %v8568_v60  ;;  %10278 = vst [vmem:[#allocation7_spill] sm:$0xff] %v8578_v1  ;;  %v8584_v55 = vld [vmem:[%s9735_s7 + $0xf0] ss:$12 sps:$4 sm:$0xff]  }
0x116e   : > { %3635 = vmatprep.subr.bf16.mxu1 %v8302_v15  ;;  %10279 = vst [vmem:[#allocation13_spill] sm:$0xff] %v8584_v55 }
0x1170   : > { %3549 = vmatpush1.bf16.msra.mxu0 %v8308_v5 }
0x1171   : > { %3550 = vmatprep.subr.bf16.mxu0 %v8314_v8  ;;  %v8590_v8 = vld [vmem:[%s9735_s7 + $0x10c] ss:$12 sps:$4 sm:$0xff]  }
0x1172   : > { %10280 = vst [vmem:[#allocation57_spill] sm:$0xff] %v8590_v8 }
0x1174   : > { %3551 = vmatpush1.bf16.msra.mxu0 %v8320_v12  ;;  %v8596_v12 = vld [vmem:[%s9735_s7 + $0x108] ss:$12 sps:$4 sm:$0xff]  }
0x1175   : > { %3552 = vmatprep.subr.bf16.mxu0 %v8578_v1  ;;  %10281 = vst [vmem:[#allocation58_spill] sm:$0xff] %v8596_v12  ;;  %v8602_v1 = vld [vmem:[%s9735_s7 + $0x124] ss:$12 sps:$4 sm:$0xff]  }
0x1176   : > { %10282 = vst [vmem:[#allocation59_spill] sm:$0xff] %v8602_v1 }
0x1178   : > { %3553 = vmatpush1.bf16.msra.mxu0 %v8584_v55  ;;  %v8608_v55 = vld [vmem:[%s9735_s7 + $0x120] ss:$12 sps:$4 sm:$0xff]  }
0x1179   : > { %3554 = vmatprep.subr.bf16.mxu0 %v8590_v8  ;;  %10283 = vst [vmem:[#allocation60_spill] sm:$0xff] %v8608_v55  ;;  %v8614_v8 = vld [vmem:[%s9735_s7 + $0x13c] ss:$12 sps:$4 sm:$0xff]  }
0x117a   : > { %10284 = vst [vmem:[#allocation61_spill] sm:$0xff] %v8614_v8 }
0x117c   : > { %3555 = vmatpush1.bf16.msra.mxu0 %v8596_v12  ;;  %v8620_v12 = vld [vmem:[%s9735_s7 + $0x138] ss:$12 sps:$4 sm:$0xff]  }
0x117d   : > { %3556 = vmatprep.subr.bf16.mxu0 %v8602_v1  ;;  %10285 = vst [vmem:[#allocation62_spill] sm:$0xff] %v8620_v12  ;;  %v8626_v1 = vld [vmem:[%s9735_s7 + $0x154] ss:$12 sps:$4 sm:$0xff]  }
0x117e   : > { %10286 = vst [vmem:[#allocation63_spill] sm:$0xff] %v8626_v1 }
0x1180   : > { %3557 = vmatpush1.bf16.msra.mxu0 %v8608_v55  ;;  %v8632_v55 = vld [vmem:[%s9735_s7 + $0x150] ss:$12 sps:$4 sm:$0xff]  }
0x1181   : > { %3558 = vmatprep.subr.bf16.mxu0 %v8614_v8  ;;  %10287 = vst [vmem:[#allocation64_spill] sm:$0xff] %v8632_v55  ;;  %v8638_v8 = vld [vmem:[%s9735_s7 + $0x16c] ss:$12 sps:$4 sm:$0xff]  }
0x1182   : > { %10288 = vst [vmem:[#allocation65_spill] sm:$0xff] %v8638_v8 }
0x1184   : > { %3559 = vmatpush1.bf16.msra.mxu0 %v8620_v12  ;;  %v8644_v12 = vld [vmem:[%s9735_s7 + $0x168] ss:$12 sps:$4 sm:$0xff]  }
0x1185   : > { %3560 = vmatprep.subr.bf16.mxu0 %v8626_v1  ;;  %10289 = vst [vmem:[#allocation66_spill] sm:$0xff] %v8644_v12 }
0x1188   : > { %3561 = vmatpush1.bf16.msra.mxu0 %v8632_v55  ;;  %v10290_v55 = vld [vmem:[#allocation5_spill] sm:$0xff] }
0x1189   : > { %3562 = vmatprep.subr.bf16.mxu0 %v8638_v8  ;;  %v3446_v8 = vmul.f32 %v8428_v40, %v7034_v43 }
0x118c   : > { %3563 = vmatpush1.bf16.msra.mxu0 %v8644_v12 }
0x118d   : > { %3676 = vmatprep.subr.bf16.mxu0 %v8338_v58  ;;  %v3458_v58 = vmul.f32 %v8428_v40, %v7220_v19 }
0x1223   : > { %v8648_v1 = vpop.f32.mrb[64].mxu1 }
0x1224   : > { %v3417_v5 = vpop.f32.mrb[65].mxu1 }
0x1225   : > { %v8651_v15 = vadd.f32 %v3417_v5, %v10290_v55  ;;  %v3419_v60 = vpop.f32.mrb[66].mxu1  ;;  %v3464_v5 = vmul.f32 %v8428_v40, %v7515_v34 }
0x1226   : > { %v3420_v10 = vpop.f32.mrb[67].mxu1  ;;  %v3445_v60 = vpop.xlane.xlu1 %3444 }
0x1227   : > { %10291 = vst [vmem:[#allocation67_spill] sm:$0xff] %v8651_v15  ;;  %3422 = vmax.xlane.f32.xlu0 %v8651_v15 }
0x122a   : > { %v3451_v55 = vpop.xlane.xlu1 %3450 }
0x122b   : > { %3447 = vadd.xlane.f32.xlu0 %v3446_v8  ;;  %v10293_v8 = vld [vmem:[#allocation4_spill] sm:$0xff] }
0x122e   : > { %v3457_v4 = vpop.xlane.xlu1 %3456 }
0x122f   : > { %3453 = vadd.xlane.f32.xlu0 %v3452_v9 }
0x1233   : > { %3459 = vadd.xlane.f32.xlu0 %v3458_v58 }
0x1237   : > { %3465 = vadd.xlane.f32.xlu0 %v3464_v5  ;;  %v3463_v5 = vpop.xlane.xlu1 %3462 }
0x12b4   : > { %v8662_v10 = vpop.xlane.xlu0 %3422 }
0x12b5   : > { %10292 = vst [vmem:[#allocation68_spill] sm:$0xff] %v8662_v10  ;;  %vm3432_vm11 = vcmp.ge.f32.partialorder %v8651_v15, %v8662_v10 }
0x12b6   : > { %v3433_v12 = vsel %vm3432_vm11, %v10293_v8, 128.0 }
0x12b7   : > { %3434 = vmin.xlane.f32.xlu1 %v3433_v12 }
0x12b8   : > { %v3448_v48 = vpop.xlane.xlu0 %3447 }
0x12b9   : > { %v3467_v9 = vmax.f32 %v3445_v60, %v3448_v48 }
0x12bb   : > { %v3468_v7 = vmax.f32 %v3467_v9, %v3451_v55 }
0x12bc   : > { %v3454_v13 = vpop.xlane.xlu0 %3453 }
0x12bd   : > { %v3469_v58 = vmax.f32 %v3468_v7, %v3454_v13 }
0x12bf   : > { %v3470_v57 = vmax.f32 %v3469_v58, %v3457_v4 }
0x12c0   : > { %v3460_v17 = vpop.xlane.xlu0 %3459 }
0x12c1   : > { %v3471_v16 = vmax.f32 %v3470_v57, %v3460_v17 }
0x12c3   : > { %v3472_v26 = vmax.f32 %v3471_v16, %v3463_v5 }
0x12c4   : > { %v3466_v25 = vpop.xlane.xlu0 %3465 }
0x12c5   : > { %v3473_v6 = vmax.f32 %v3472_v26, %v3466_v25 }
0x12c7   : > { %v3474_v3 = vsub.f32 %v3445_v60, %v3473_v6  ;;  %v3477_v38 = vsub.f32 %v3448_v48, %v3473_v6  ;;  %v3480_v15 = vsub.f32 %v3451_v55, %v3473_v6  ;;  %v3483_v10 = vsub.f32 %v3454_v13, %v3473_v6 }
0x12c8   : > { %v3486_v42 = vsub.f32 %v3457_v4, %v3473_v6  ;;  %v3489_v14 = vsub.f32 %v3460_v17, %v3473_v6  ;;  %v3492_v58 = vsub.f32 %v3463_v5, %v3473_v6  ;;  %v3495_v16 = vsub.f32 %v3466_v25, %v3473_v6 }
0x12c9   : > { %v3475_v28 = vmul.f32 1.442695, %v3474_v3  ;;  %v3478_v8 = vmul.f32 1.442695, %v3477_v38  ;;  %v3481_v12 = vmul.f32 1.442695, %v3480_v15 }
0x12ca   : > { %v3484_v9 = vmul.f32 1.442695, %v3483_v10  ;;  %v3487_v7 = vmul.f32 1.442695, %v3486_v42  ;;  %v3490_v57 = vmul.f32 1.442695, %v3489_v14 }
0x12cb   : > { %6119 = vpow2.f32 %v3475_v28  ;;  %v3493_v26 = vmul.f32 1.442695, %v3492_v58  ;;  %v3496_v48 = vmul.f32 1.442695, %v3495_v16 }
0x12cc   : > { %6121 = vpow2.f32 %v3478_v8 }
0x12cd   : > { %6123 = vpow2.f32 %v3481_v12 }
0x12ce   : > { %6125 = vpow2.f32 %v3484_v9 }
0x12cf   : > { %6127 = vpow2.f32 %v3487_v7 }
0x12d0   : > { %6129 = vpow2.f32 %v3490_v57 }
0x12d1   : > { %6131 = vpow2.f32 %v3493_v26 }
0x12d2   : > { %6133 = vpow2.f32 %v3496_v48 }
0x12d5   : > { %v6120_v55 = vpop.eup %6119 }
0x12d6   : > { %v6122_v13 = vpop.eup %6121 }
0x12d7   : > { %v3498_v38 = vadd.f32 %v6122_v13, %v6120_v55  ;;  %v6124_v15 = vpop.eup %6123 }
0x12d8   : > { %v6126_v3 = vpop.eup %6125 }
0x12d9   : > { %v3499_v28 = vadd.f32 %v6124_v15, %v3498_v38  ;;  %v6128_v17 = vpop.eup %6127 }
0x12da   : > { %v6130_v42 = vpop.eup %6129 }
0x12db   : > { %v3500_v4 = vadd.f32 %v6126_v3, %v3499_v28  ;;  %v6132_v8 = vpop.eup %6131 }
0x12dc   : > { %v6134_v25 = vpop.eup %6133 }
0x12dd   : > { %v3501_v60 = vadd.f32 %v6128_v17, %v3500_v4 }
0x12df   : > { %v3502_v10 = vadd.f32 %v6130_v42, %v3501_v60 }
0x12e1   : > { %v3503_v14 = vadd.f32 %v6132_v8, %v3502_v10 }
0x12e3   : > { %v3504_v6 = vadd.f32 %v6134_v25, %v3503_v14 }
0x12e5   : > { %6135 = vrcp.f32 %v3504_v6 }
0x12ef   : > { %v6136_v5 = vpop.eup %6135 }
0x12f0   : > { %v3507_v12 = vmul.f32 %v6136_v5, %v6120_v55  ;;  %v3509_v9 = vmul.f32 %v6136_v5, %v6122_v13  ;;  %v3512_v7 = vmul.f32 %v6136_v5, %v6124_v15  ;;  %v3515_v16 = vmul.f32 %v6136_v5, %v6126_v3 }
0x12f1   : > { %v3518_v38 = vmul.f32 %v6136_v5, %v6128_v17  ;;  %v3521_v60 = vmul.f32 %v6136_v5, %v6130_v42  ;;  %v3524_v6 = vmul.f32 %v6136_v5, %v6132_v8  ;;  %v3527_v15 = vmul.f32 %v6136_v5, %v6134_v25  ;;  %v10308_v5 = vld [vmem:[#allocation20_spill] sm:$0xff] }
0x12f2   : > { %v3508_v58 = vmul.f32 %v3507_v12, %v10133_v41  ;;  %v3510_v57 = vmul.f32 %v3509_v9, %v7034_v43  ;;  %v3513_v48 = vmul.f32 %v3512_v7, %v7080_v50  ;;  %v3516_v4 = vmul.f32 %v3515_v16, %v7126_v37 }
0x12f3   : > { %v3519_v14 = vmul.f32 %v3518_v38, %v7172_v51  ;;  %v3522_v13 = vmul.f32 %v3521_v60, %v7220_v19  ;;  %v3525_v9 = vmul.f32 %v3524_v6, %v7310_v18  ;;  %v10311_v38 = vld [vmem:[#allocation32_spill] sm:$0xff] }
0x12f4   : > { %v3511_v26 = vadd.f32 %v3510_v57, %v3508_v58  ;;  %v3528_v58 = vmul.f32 %v3527_v15, %v7515_v34 }
0x12f6   : > { %v3514_v28 = vadd.f32 %v3513_v48, %v3511_v26  ;;  %v10309_v26 = vld [vmem:[#allocation21_spill] sm:$0xff]  ;;  %v10310_v48 = vld [vmem:[#allocation52_spill] sm:$0xff] }
0x12f8   : > { %v3517_v10 = vadd.f32 %v3516_v4, %v3514_v28  ;;  %v10312_v28 = vld [vmem:[#allocation33_spill] sm:$0xff] }
0x12fa   : > { %v3520_v55 = vadd.f32 %v3519_v14, %v3517_v10  ;;  %v10313_v10 = vld [vmem:[#allocation37_spill] sm:$0xff] }
0x12fc   : > { %v3523_v12 = vadd.f32 %v3522_v13, %v3520_v55 }
0x12fe   : > { %v3526_v3 = vadd.f32 %v3525_v9, %v3523_v12 }
0x1300   : > { %v3529_v7 = vadd.f32 %v3528_v58, %v3526_v3 }
0x1302   : > { %v3531_v17 = vpack.c.bf16 %v3529_v7, %v3529_v7 }
0x1304   : > { %3564 = vmatprep.mubr.bf16.mxu0 %v3531_v17  ;;  %3605 = vmatprep.mubr.bf16.mxu1 %v3531_v17 }
0x1344   : > { %v3435_v57 = vpop.xlane.xlu1 %3434 }
0x1345   : > { %v3436_v42 = vmin.f32 %v3435_v57, 127.0 }
0x1347   : > { %v5722_v16 = vtrunc.f32 %v3436_v42 }
0x1349   : > { %v5723_v8 = vcvt.f32.s32 %v5722_v16 }
0x134b   : > { %vm3438_vm13 = vcmp.eq.s32.totalorder %v7832_v2, %v5723_v8  ;;  %v8678_v25 = vsel %vm3441_vm12, %v5723_v8, %v8374_v22  ;;  %v10301_v22 = vld [vmem:[#allocation17_spill] sm:$0xff]  ;;  %vm4621_vm12 = vcmp.eq.s32.totalorder %v7832_v2, 6 }
0x134c   : > { %vm5158_vm14 = vmpackc.low %vm3438_vm13, %vm3438_vm13 }
0x134d   : > { %5159 = vmatmul.mubr.msk.bf16.vlgmr.msra.gmra.mrb[68].mxu0 %vm5158_vm14, %v10187_v31  ;;  %5161 = vmatmul.mubr.msk.bf16.vlgmr.msra.gmra.mrb[68].mxu1 %vm5158_vm14, %v10187_v31 }
0x134e   : > { %3636 = vmatpush1.bf16.msra.mxu1 %v8014_v46  ;;  %3677 = vmatpush1.bf16.msra.mxu0 %v8020_v52  ;;  %v10294_v46 = vld [vmem:[#allocation41_spill] sm:$0xff]  ;;  %v10295_v52 = vld [vmem:[#allocation43_spill] sm:$0xff] }
0x134f   : > { %3637 = vmatprep.subr.bf16.mxu1 %v8026_v56  ;;  %3678 = vmatprep.subr.bf16.mxu0 %v8032_v29  ;;  %v10296_v56 = vld [vmem:[#allocation14_spill] sm:$0xff]  ;;  %v10297_v29 = vld [vmem:[#allocation8_spill] sm:$0xff] }
0x1350   : > { %3667 = vmatprep.mubr.bf16.mxu1 %v10069_v53  ;;  %3708 = vmatprep.mubr.bf16.mxu0 %v10069_v53 }
0x1352   : > { %3638 = vmatpush1.bf16.msra.mxu1 %v8040_v35  ;;  %3679 = vmatpush1.bf16.msra.mxu0 %v8046_v45  ;;  %v10298_v35 = vld [vmem:[#allocation46_spill] sm:$0xff]  ;;  %v10299_v45 = vld [vmem:[#allocation47_spill] sm:$0xff] }
0x1353   : > { %3639 = vmatprep.subr.bf16.mxu1 %v8052_v36  ;;  %3680 = vmatprep.subr.bf16.mxu0 %v10241_v49  ;;  %v10300_v36 = vld [vmem:[#allocation16_spill] sm:$0xff] }
0x1354   : > { %v10302_v49 = vld [vmem:[#allocation48_spill] sm:$0xff] }
0x1356   : > { %3640 = vmatpush1.bf16.msra.mxu1 %v10242_v59  ;;  %3681 = vmatpush1.bf16.msra.mxu0 %v10243_v62  ;;  %v10303_v59 = vld [vmem:[#allocation49_spill] sm:$0xff]  ;;  %v10304_v62 = vld [vmem:[#allocation18_spill] sm:$0xff] }
0x1357   : > { %3641 = vmatprep.subr.bf16.mxu1 %v10244_v20  ;;  %3682 = vmatprep.subr.bf16.mxu0 %v10245_v30  ;;  %v10305_v20 = vld [vmem:[#allocation19_spill] sm:$0xff]  ;;  %v10306_v30 = vld [vmem:[#allocation50_spill] sm:$0xff] }
0x135a   : > { %3642 = vmatpush1.bf16.msra.mxu1 %v10246_v63  ;;  %3683 = vmatpush1.bf16.msra.mxu0 %v10294_v46  ;;  %v10307_v63 = vld [vmem:[#allocation51_spill] sm:$0xff]  ;;  %v3416_v46 = vadd.f32 %v8648_v1, %v7900_v23 }
0x135b   : > { %3643 = vmatprep.subr.bf16.mxu1 %v10295_v52  ;;  %3684 = vmatprep.subr.bf16.mxu0 %v10296_v56 }
0x135e   : > { %3644 = vmatpush1.bf16.msra.mxu1 %v10297_v29  ;;  %3685 = vmatpush1.bf16.msra.mxu0 %v10298_v35 }
0x135f   : > { %3645 = vmatprep.subr.bf16.mxu1 %v10299_v45  ;;  %3686 = vmatprep.subr.bf16.mxu0 %v10300_v36 }
0x1362   : > { %3646 = vmatpush1.bf16.msra.mxu1 %v10301_v22  ;;  %3687 = vmatpush1.bf16.msra.mxu0 %v10302_v49 }
0x1363   : > { %3647 = vmatprep.subr.bf16.mxu1 %v10303_v59  ;;  %3688 = vmatprep.subr.bf16.mxu0 %v10304_v62 }
0x1366   : > { %3648 = vmatpush1.bf16.msra.mxu1 %v10305_v20  ;;  %3689 = vmatpush1.bf16.msra.mxu0 %v10306_v30 }
0x1367   : > { %3649 = vmatprep.subr.bf16.mxu1 %v10307_v63  ;;  %3690 = vmatprep.subr.bf16.mxu0 %v10308_v5  ;;  %v10314_v5 = vld [vmem:[#allocation34_spill] sm:$0xff] }
0x136a   : > { %3650 = vmatpush1.bf16.msra.mxu1 %v10309_v26  ;;  %3691 = vmatpush1.bf16.msra.mxu0 %v10310_v48  ;;  %v10315_v26 = vld [vmem:[#allocation35_spill] sm:$0xff]  ;;  %v10316_v48 = vld [vmem:[#allocation53_spill] sm:$0xff] }
0x136b   : > { %3827 = vmatprep.subr.bf16.mxu1 %v10311_v38  ;;  %5372 = vmatprep.subr.bf16.mxu0 %v10312_v28 }
0x1420   : > { %v3566_v4 = vpop.f32.mrb[68].mxu0  ;;  %v5366_v60 = vpop.f32.mrb[68].mxu1 }
0x1421   : > { %v5667_v14 = vadd.f32 %v10313_v10, %v3566_v4  ;;  %v3568_v6 = vpop.f32.mrb[69].mxu0  ;;  %v5367_v55 = vpop.f32.mrb[69].mxu1  ;;  %v10317_v4 = vld [vmem:[#allocation22_spill] sm:$0xff] }
0x1422   : > { %v5368_v13 = vadd.f32 %v5367_v55, %v5366_v60  ;;  %v3570_v15 = vpop.f32.mrb[70].mxu0  ;;  %v5369_v12 = vpop.f32.mrb[70].mxu1  ;;  %v5669_v7 = vadd.f32 %v7894_v47, %v3568_v6  ;;  %v10318_v60 = vld [vmem:[#allocation36_spill] sm:$0xff]  ;;  %v10320_v6 = vld [vmem:[#allocation23_spill] sm:$0xff]  ;;  %v10322_v55 = vld [vmem:[#allocation42_spill] sm:$0xff] }
0x1423   : > { %v5162_v9 = vmul.f32 -1.442695, %v5667_v14  ;;  %v3571_v3 = vpop.f32.mrb[71].mxu0  ;;  %v5370_v58 = vpop.f32.mrb[71].mxu1  ;;  %v10319_v14 = vld [vmem:[#allocation39_spill] sm:$0xff]  ;;  %v10325_v12 = vld [vmem:[#allocation24_spill] sm:$0xff] }
0x1424   : > { %v5163_v17 = vmul.f32 -1.442695, %v5669_v7  ;;  %v3608_v56 = vadd.f32 %v5368_v13, %v7903_v24  ;;  %v10323_v13 = vld [vmem:[#allocation44_spill] sm:$0xff]  ;;  %v10324_v15 = vld [vmem:[#allocation55_spill] sm:$0xff]  ;;  %v10328_v58 = vld [vmem:[#allocation25_spill] sm:$0xff] }
0x1425   : > { %6137 = vpow2.f32 %v5162_v9  ;;  %v10326_v9 = vld [vmem:[#allocation45_spill] sm:$0xff]  ;;  %v10327_v3 = vld [vmem:[#allocation11_spill] sm:$0xff]  ;;  %v10329_v7 = vld [vmem:[#allocation56_spill] sm:$0xff] }
0x1426   : > { %6139 = vpow2.f32 %v5163_v17  ;;  %v10330_v17 = vld [vmem:[#allocation12_spill] sm:$0xff] }
0x142f   : > { %v6138_v57 = vpop.eup %6137 }
0x1430   : > { %v3617_v42 = vadd.f32 1.0, %v6138_v57  ;;  %v6140_v16 = vpop.eup %6139  ;;  %v10331_v57 = vld [vmem:[#allocation38_spill] sm:$0xff] }
0x1431   : > { %v3624_v8 = vadd.f32 1.0, %v6140_v16  ;;  %v10333_v16 = vld [vmem:[#allocation26_spill] sm:$0xff] }
0x1432   : > { %6141 = vrcp.f32 %v3617_v42  ;;  %v10332_v42 = vld [vmem:[#allocation10_spill] sm:$0xff] }
0x1433   : > { %6143 = vrcp.f32 %v3624_v8  ;;  %v10334_v8 = vld [vmem:[#allocation40_spill] sm:$0xff] }
0x143c   : > { %v6142_v52 = vpop.eup %6141 }
0x143d   : > { %v3627_v29 = vmul.f32 %v6142_v52, %v3416_v46  ;;  %v6144_v45 = vpop.eup %6143  ;;  %v10335_v46 = vld [vmem:[#allocation27_spill] sm:$0xff]  ;;  %v10336_v52 = vld [vmem:[#allocation28_spill] sm:$0xff] }
0x143e   : > { %v3630_v36 = vsub.f32 1.0, %v6144_v45  ;;  %v3632_v49 = vmul.f32 %v6144_v45, %v8428_v40  ;;  %v10340_v45 = vld [vmem:[#allocation13_spill] sm:$0xff] }
0x143f   : > { %v3628_v35 = vadd.f32 %v3627_v29, %v3608_v56  ;;  %v10337_v56 = vld [vmem:[#allocation29_spill] sm:$0xff]  ;;  %v10338_v29 = vld [vmem:[#allocation30_spill] sm:$0xff] }
0x1441   : > { %6145 = vtanh.f32 %v3628_v35  ;;  %v10339_v35 = vld [vmem:[#allocation7_spill] sm:$0xff] }
0x144b   : > { %v6146_v22 = vpop.eup %6145 }
0x144c   : > { %v3631_v59 = vmul.f32 %v6146_v22, %v3630_v36  ;;  %v10341_v36 = vld [vmem:[#allocation57_spill] sm:$0xff]  ;;  %v10342_v22 = vld [vmem:[#allocation58_spill] sm:$0xff] }
0x144e   : > { %v8722_v62 = vadd.f32 %v3632_v49, %v3631_v59  ;;  %v10343_v49 = vld [vmem:[#allocation59_spill] sm:$0xff]  ;;  %v10344_v59 = vld [vmem:[#allocation60_spill] sm:$0xff] }
0x1450   : > { %v3738_v20 = vmul.f32 %v8722_v62, %v10133_v41  ;;  %v3634_v1 = vpack.c.bf16 %v8722_v62, %v8722_v62  ;;  %v3744_v30 = vmul.f32 %v8722_v62, %v7080_v50  ;;  %v3750_v40 = vmul.f32 %v8722_v62, %v7172_v51 }
0x1451   : > { %v3756_v63 = vmul.f32 %v8722_v62, %v7310_v18 }
0x1452   : > { %3739 = vadd.xlane.f32.xlu1 %v3738_v20  ;;  %3668 = vmatmul.mubr.bf16.vlgmr.msra.gmra.mrb[72].mxu1 %v3634_v1  ;;  %v10345_v20 = vld [vmem:[#allocation61_spill] sm:$0xff] }
0x1453   : > { %3709 = vmatmul.mubr.bf16.vlgmr.msra.gmra.mrb[72].mxu0 %v3634_v1  ;;  %3828 = vmatpush1.bf16.msra.mxu1 %v8437_v44  ;;  %v10346_v1 = vld [vmem:[#allocation62_spill] sm:$0xff] }
0x1454   : > { %3829 = vmatprep.subr.bf16.mxu1 %v8445_v39  ;;  %5373 = vmatpush3.bf16.msra.mxu0 %v8451_v0 }
0x1455   : > { %5374 = vmatprep.subr.bf16.mxu0 %v8457_v33 }
0x1456   : > { %3745 = vadd.xlane.f32.xlu1 %v3744_v30  ;;  %v10347_v30 = vld [vmem:[#allocation63_spill] sm:$0xff] }
0x1457   : > { %3830 = vmatpush1.bf16.msra.mxu1 %v8463_v54 }
0x1458   : > { %3831 = vmatprep.subr.bf16.mxu1 %v8471_v61  ;;  %5375 = vmatpush3.bf16.msra.mxu0 %v8477_v11 }
0x1459   : > { %5376 = vmatprep.subr.bf16.mxu0 %v8483_v21 }
0x145a   : > { %3751 = vadd.xlane.f32.xlu1 %v3750_v40  ;;  %v10348_v40 = vld [vmem:[#allocation64_spill] sm:$0xff] }
0x145b   : > { %3832 = vmatpush1.bf16.msra.mxu1 %v8222_v27  ;;  %v10321_v27 = vld [vmem:[#allocation54_spill] sm:$0xff] }
0x145c   : > { %3833 = vmatprep.subr.bf16.mxu1 %v8492_v32  ;;  %5377 = vmatpush3.bf16.msra.mxu0 %v10314_v5 }
0x145d   : > { %5378 = vmatprep.subr.bf16.mxu0 %v10315_v26 }
0x145e   : > { %3757 = vadd.xlane.f32.xlu1 %v3756_v63  ;;  %v10349_v63 = vld [vmem:[#allocation65_spill] sm:$0xff] }
0x145f   : > { %3834 = vmatpush1.bf16.msra.mxu1 %v10316_v48  ;;  %v10350_v48 = vld [vmem:[#allocation66_spill] sm:$0xff] }
0x1460   : > { %3835 = vmatprep.subr.bf16.mxu1 %v10317_v4  ;;  %5379 = vmatpush3.bf16.msra.mxu0 %v10318_v60  ;;  %v10351_v4 = vld [vmem:[#allocation9_spill] sm:$0xff] }
0x1461   : > { %5380 = vmatprep.subr.bf16.mxu0 %v10319_v14 }
0x1463   : > { %3836 = vmatpush1.bf16.msra.mxu1 %v10320_v6 }
0x1464   : > { %3837 = vmatprep.subr.bf16.mxu1 %v10321_v27  ;;  %5381 = vmatpush3.bf16.msra.mxu0 %v10322_v55 }
0x1465   : > { %5382 = vmatprep.subr.bf16.mxu0 %v10323_v13 }
0x1467   : > { %3838 = vmatpush1.bf16.msra.mxu1 %v10324_v15  ;;  %v10352_v15 = vld [vmem:[#allocation5_spill] sm:$0xff] }
0x1468   : > { %3839 = vmatprep.subr.bf16.mxu1 %v10325_v12  ;;  %5383 = vmatpush3.bf16.msra.mxu0 %v10326_v9 }
0x1469   : > { %5384 = vmatprep.subr.bf16.mxu0 %v10327_v3 }
0x146b   : > { %3840 = vmatpush1.bf16.msra.mxu1 %v10328_v58 }
0x146c   : > { %3841 = vmatprep.subr.bf16.mxu1 %v10329_v7  ;;  %5385 = vmatpush3.bf16.msra.mxu0 %v10330_v17 }
0x146d   : > { %5386 = vmatprep.subr.bf16.mxu0 %v10331_v57 }
0x146f   : > { %3842 = vmatpush1.bf16.msra.mxu1 %v10332_v42  ;;  %v3741_v42 = vmul.f32 %v8722_v62, %v7034_v43 }
0x1470   : > { %3843 = vmatprep.subr.bf16.mxu1 %v10333_v16  ;;  %5387 = vmatpush3.bf16.msra.mxu0 %v10334_v8  ;;  %v3747_v16 = vmul.f32 %v8722_v62, %v7126_v37 }
0x1471   : > { %3930 = vmatprep.subr.bf16.mxu0 %v10335_v46  ;;  %v3753_v46 = vmul.f32 %v8722_v62, %v7220_v19 }
0x1473   : > { %3844 = vmatpush1.bf16.msra.mxu1 %v10336_v52  ;;  %v3759_v52 = vmul.f32 %v8722_v62, %v7515_v34 }
0x1474   : > { %3845 = vmatprep.subr.bf16.mxu1 %v10337_v56 }
0x1477   : > { %3846 = vmatpush1.bf16.msra.mxu1 %v10338_v29 }
0x1478   : > { %3847 = vmatprep.subr.bf16.mxu1 %v10339_v35 }
0x147b   : > { %3848 = vmatpush1.bf16.msra.mxu1 %v10340_v45 }
0x147c   : > { %3849 = vmatprep.subr.bf16.mxu1 %v10341_v36 }
0x147f   : > { %3850 = vmatpush1.bf16.msra.mxu1 %v10342_v22 }
0x1480   : > { %3851 = vmatprep.subr.bf16.mxu1 %v10343_v49 }
0x1483   : > { %3852 = vmatpush1.bf16.msra.mxu1 %v10344_v59 }
0x1484   : > { %3853 = vmatprep.subr.bf16.mxu1 %v10345_v20 }
0x1487   : > { %3854 = vmatpush1.bf16.msra.mxu1 %v10346_v1 }
0x1488   : > { %3855 = vmatprep.subr.bf16.mxu1 %v10347_v30 }
0x148b   : > { %3856 = vmatpush1.bf16.msra.mxu1 %v10348_v40 }
0x148c   : > { %3857 = vmatprep.subr.bf16.mxu1 %v10349_v63 }
0x148f   : > { %3858 = vmatpush1.bf16.msra.mxu1 %v10350_v48 }
0x1490   : > { %3971 = vmatprep.subr.bf16.mxu1 %v10351_v4 }
0x14df   : > { %v3740_v56 = vpop.xlane.xlu1 %3739 }
0x14e3   : > { %v3746_v4 = vpop.xlane.xlu1 %3745 }
0x1526   : > { %v8782_v6 = vpop.f32.mrb[72].mxu0 }
0x1527   : > { %v3712_v27 = vpop.f32.mrb[73].mxu0 }
0x1528   : > { %v8785_v12 = vadd.f32 %v3712_v27, %v10352_v15  ;;  %v3714_v58 = vpop.f32.mrb[74].mxu0  ;;  %v10355_v27 = vld [vmem:[#allocation4_spill] sm:$0xff]  ;;  %v3752_v15 = vpop.xlane.xlu1 %3751 }
0x1529   : > { %v3715_v7 = vpop.f32.mrb[75].mxu0 }
0x152a   : > { %10353 = vst [vmem:[#allocation41_spill] sm:$0xff] %v8785_v12  ;;  %3717 = vmax.xlane.f32.xlu0 %v8785_v12 }
0x152e   : > { %3742 = vadd.xlane.f32.xlu0 %v3741_v42 }
0x1532   : > { %3748 = vadd.xlane.f32.xlu0 %v3747_v16 }
0x1536   : > { %3754 = vadd.xlane.f32.xlu0 %v3753_v46 }
0x153a   : > { %3760 = vadd.xlane.f32.xlu0 %v3759_v52  ;;  %v3758_v52 = vpop.xlane.xlu1 %3757 }
0x15b7   : > { %v8796_v29 = vpop.xlane.xlu0 %3717 }
0x15b8   : > { %10354 = vst [vmem:[#allocation43_spill] sm:$0xff] %v8796_v29  ;;  %vm3727_vm15 = vcmp.ge.f32.partialorder %v8785_v12, %v8796_v29 }
0x15b9   : > { %v3728_v58 = vsel %vm3727_vm15, %v10355_v27, 128.0 }
0x15ba   : > { %3729 = vmin.xlane.f32.xlu1 %v3728_v58 }
0x15bb   : > { %v3743_v7 = vpop.xlane.xlu0 %3742 }
0x15bc   : > { %v3762_v42 = vmax.f32 %v3740_v56, %v3743_v7 }
0x15be   : > { %v3763_v16 = vmax.f32 %v3762_v42, %v3746_v4 }
0x15bf   : > { %v3749_v48 = vpop.xlane.xlu0 %3748 }
0x15c0   : > { %v3764_v46 = vmax.f32 %v3763_v16, %v3749_v48 }
0x15c2   : > { %v3765_v63 = vmax.f32 %v3764_v46, %v3752_v15 }
0x15c3   : > { %v3755_v40 = vpop.xlane.xlu0 %3754 }
0x15c4   : > { %v3766_v30 = vmax.f32 %v3765_v63, %v3755_v40 }
0x15c6   : > { %v3767_v1 = vmax.f32 %v3766_v30, %v3758_v52 }
0x15c7   : > { %v3761_v20 = vpop.xlane.xlu0 %3760 }
0x15c8   : > { %v3768_v59 = vmax.f32 %v3767_v1, %v3761_v20 }
0x15ca   : > { %v3769_v49 = vsub.f32 %v3740_v56, %v3768_v59  ;;  %v3772_v22 = vsub.f32 %v3743_v7, %v3768_v59  ;;  %v3775_v12 = vsub.f32 %v3746_v4, %v3768_v59  ;;  %v3778_v29 = vsub.f32 %v3749_v48, %v3768_v59 }
0x15cb   : > { %v3781_v45 = vsub.f32 %v3752_v15, %v3768_v59  ;;  %v3784_v35 = vsub.f32 %v3755_v40, %v3768_v59  ;;  %v3787_v46 = vsub.f32 %v3758_v52, %v3768_v59  ;;  %v3790_v30 = vsub.f32 %v3761_v20, %v3768_v59 }
0x15cc   : > { %v3770_v36 = vmul.f32 1.442695, %v3769_v49  ;;  %v3773_v27 = vmul.f32 1.442695, %v3772_v22  ;;  %v3776_v58 = vmul.f32 1.442695, %v3775_v12 }
0x15cd   : > { %v3779_v42 = vmul.f32 1.442695, %v3778_v29  ;;  %v3782_v16 = vmul.f32 1.442695, %v3781_v45  ;;  %v3785_v63 = vmul.f32 1.442695, %v3784_v35 }
0x15ce   : > { %6147 = vpow2.f32 %v3770_v36  ;;  %v3788_v1 = vmul.f32 1.442695, %v3787_v46  ;;  %v3791_v56 = vmul.f32 1.442695, %v3790_v30 }
0x15cf   : > { %6149 = vpow2.f32 %v3773_v27 }
0x15d0   : > { %6151 = vpow2.f32 %v3776_v58 }
0x15d1   : > { %6153 = vpow2.f32 %v3779_v42 }
0x15d2   : > { %6155 = vpow2.f32 %v3782_v16 }
0x15d3   : > { %6157 = vpow2.f32 %v3785_v63 }
0x15d4   : > { %6159 = vpow2.f32 %v3788_v1 }
0x15d5   : > { %6161 = vpow2.f32 %v3791_v56 }
0x15d8   : > { %v6148_v4 = vpop.eup %6147 }
0x15d9   : > { %v6150_v48 = vpop.eup %6149 }
0x15da   : > { %v3793_v22 = vadd.f32 %v6150_v48, %v6148_v4  ;;  %v6152_v49 = vpop.eup %6151 }
0x15db   : > { %v6154_v15 = vpop.eup %6153 }
0x15dc   : > { %v3794_v36 = vadd.f32 %v6152_v49, %v3793_v22  ;;  %v6156_v40 = vpop.eup %6155 }
0x15dd   : > { %v6158_v45 = vpop.eup %6157 }
0x15de   : > { %v3795_v12 = vadd.f32 %v6154_v15, %v3794_v36  ;;  %v6160_v7 = vpop.eup %6159 }
0x15df   : > { %v6162_v59 = vpop.eup %6161 }
0x15e0   : > { %v3796_v29 = vadd.f32 %v6156_v40, %v3795_v12 }
0x15e2   : > { %v3797_v27 = vadd.f32 %v6158_v45, %v3796_v29 }
0x15e4   : > { %v3798_v35 = vadd.f32 %v6160_v7, %v3797_v27 }
0x15e6   : > { %v3799_v20 = vadd.f32 %v6162_v59, %v3798_v35 }
0x15e8   : > { %6163 = vrcp.f32 %v3799_v20 }
0x15f2   : > { %v6164_v52 = vpop.eup %6163 }
0x15f3   : > { %v3802_v58 = vmul.f32 %v6164_v52, %v6148_v4  ;;  %v3804_v42 = vmul.f32 %v6164_v52, %v6150_v48  ;;  %v3807_v16 = vmul.f32 %v6164_v52, %v6152_v49  ;;  %v3810_v30 = vmul.f32 %v6164_v52, %v6154_v15 }
0x15f4   : > { %v3813_v22 = vmul.f32 %v6164_v52, %v6156_v40  ;;  %v3816_v29 = vmul.f32 %v6164_v52, %v6158_v45  ;;  %v3819_v20 = vmul.f32 %v6164_v52, %v6160_v7  ;;  %v3822_v49 = vmul.f32 %v6164_v52, %v6162_v59  ;;  %v8819_v52 = vld [vmem:[%s9737_s9] ss:$16 sps:$4 sm:$0xff]  }
0x15f5   : > { %v3803_v46 = vmul.f32 %v3802_v58, %v10133_v41  ;;  %v3805_v63 = vmul.f32 %v3804_v42, %v7034_v43  ;;  %v3808_v56 = vmul.f32 %v3807_v16, %v7080_v50  ;;  %v3811_v12 = vmul.f32 %v3810_v30, %v7126_v37 }
0x15f6   : > { %v3814_v35 = vmul.f32 %v3813_v22, %v7172_v51  ;;  %v3817_v48 = vmul.f32 %v3816_v29, %v7220_v19  ;;  %v3820_v42 = vmul.f32 %v3819_v20, %v7310_v18  ;;  %v8845_v22 = vld [vmem:[%s9737_s9 + $0x20] ss:$16 sps:$4 sm:$0xff]   ;;  %v8863_v29 = vld [vmem:[%s9737_s9 + $0x4c] ss:$16 sps:$4 sm:$0xff]   ;;  %v8881_v20 = vld [vmem:[%s9737_s9 + $0x64] ss:$16 sps:$4 sm:$0xff]  }
0x15f7   : > { %v3806_v1 = vadd.f32 %v3805_v63, %v3803_v46  ;;  %v3823_v46 = vmul.f32 %v3822_v49, %v7515_v34  ;;  %10357 = vst [vmem:[#allocation8_spill] sm:$0xff] %v8881_v20  ;;  %v8899_v49 = vld [vmem:[%s9737_s9 + $0x68] ss:$16 sps:$4 sm:$0xff]  }
0x15f8   : > { %10360 = vst [vmem:[#allocation16_spill] sm:$0xff] %v8899_v49 }
0x15f9   : > { %v3809_v36 = vadd.f32 %v3808_v56, %v3806_v1  ;;  %v8825_v1 = vld [vmem:[%s9737_s9 + $0x8] ss:$16 sps:$4 sm:$0xff]   ;;  %v8837_v56 = vld [vmem:[%s9737_s9 + $0x2c] ss:$16 sps:$4 sm:$0xff]  }
0x15fb   : > { %v3812_v27 = vadd.f32 %v3811_v12, %v3809_v36  ;;  %v8851_v36 = vld [vmem:[%s9737_s9 + $0x28] ss:$16 sps:$4 sm:$0xff]   ;;  %v8857_v12 = vld [vmem:[%s9737_s9 + $0x44] ss:$16 sps:$4 sm:$0xff]  }
0x15fd   : > { %v3815_v4 = vadd.f32 %v3814_v35, %v3812_v27  ;;  %v8869_v27 = vld [vmem:[%s9737_s9 + $0x40] ss:$16 sps:$4 sm:$0xff]   ;;  %v8875_v35 = vld [vmem:[%s9737_s9 + $0x48] ss:$16 sps:$4 sm:$0xff]  }
0x15fe   : > { %10356 = vst [vmem:[#allocation14_spill] sm:$0xff] %v8875_v35 }
0x15ff   : > { %v3818_v58 = vadd.f32 %v3817_v48, %v3815_v4  ;;  %v8887_v4 = vld [vmem:[%s9737_s9 + $0x6c] ss:$16 sps:$4 sm:$0xff]   ;;  %v8893_v48 = vld [vmem:[%s9737_s9 + $0x60] ss:$16 sps:$4 sm:$0xff]  }
0x1600   : > { %10358 = vst [vmem:[#allocation46_spill] sm:$0xff] %v8887_v4  ;;  %10359 = vst [vmem:[#allocation47_spill] sm:$0xff] %v8893_v48 }
0x1601   : > { %v3821_v15 = vadd.f32 %v3820_v42, %v3818_v58  ;;  %v8905_v58 = vld [vmem:[%s9737_s9 + $0x84] ss:$16 sps:$4 sm:$0xff]   ;;  %v8911_v42 = vld [vmem:[%s9737_s9 + $0x8c] ss:$16 sps:$4 sm:$0xff]  }
0x1602   : > { %10361 = vst [vmem:[#allocation17_spill] sm:$0xff] %v8905_v58  ;;  %10362 = vst [vmem:[#allocation48_spill] sm:$0xff] %v8911_v42 }
0x1603   : > { %v3824_v16 = vadd.f32 %v3823_v46, %v3821_v15  ;;  %v8917_v15 = vld [vmem:[%s9737_s9 + $0x80] ss:$16 sps:$4 sm:$0xff]   ;;  %v8923_v46 = vld [vmem:[%s9737_s9 + $0x88] ss:$16 sps:$4 sm:$0xff]  }
0x1604   : > { %10363 = vst [vmem:[#allocation49_spill] sm:$0xff] %v8917_v15  ;;  %10364 = vst [vmem:[#allocation18_spill] sm:$0xff] %v8923_v46 }
0x1605   : > { %v3826_v40 = vpack.c.bf16 %v3824_v16, %v3824_v16  ;;  %v8929_v16 = vld [vmem:[%s9737_s9 + $0xa4] ss:$16 sps:$4 sm:$0xff]  }
0x1606   : > { %10365 = vst [vmem:[#allocation19_spill] sm:$0xff] %v8929_v16 }
0x1607   : > { %3859 = vmatprep.mubr.bf16.mxu1 %v3826_v40  ;;  %3900 = vmatprep.mubr.bf16.mxu0 %v3826_v40  ;;  %v8935_v40 = vld [vmem:[%s9737_s9 + $0xac] ss:$16 sps:$4 sm:$0xff]  }
0x1608   : > { %10366 = vst [vmem:[#allocation50_spill] sm:$0xff] %v8935_v40 }
0x1647   : > { %v3730_v63 = vpop.xlane.xlu1 %3729 }
0x1648   : > { %v3731_v45 = vmin.f32 %v3730_v63, 127.0  ;;  %v8941_v63 = vld [vmem:[%s9737_s9 + $0xa0] ss:$16 sps:$4 sm:$0xff]  }
0x1649   : > { %10367 = vst [vmem:[#allocation51_spill] sm:$0xff] %v8941_v63 }
0x164a   : > { %v5724_v30 = vtrunc.f32 %v3731_v45  ;;  %v8947_v45 = vld [vmem:[%s9737_s9 + $0xa8] ss:$16 sps:$4 sm:$0xff]  }
0x164b   : > { %10368 = vst [vmem:[#allocation20_spill] sm:$0xff] %v8947_v45 }
0x164c   : > { %v5725_v7 = vcvt.f32.s32 %v5724_v30  ;;  %v8953_v30 = vld [vmem:[%s9737_s9 + $0xc4] ss:$16 sps:$4 sm:$0xff]  }
0x164d   : > { %10369 = vst [vmem:[#allocation21_spill] sm:$0xff] %v8953_v30 }
0x164e   : > { %vm3733_vm1 = vcmp.eq.s32.totalorder %v7832_v2, %v5725_v7  ;;  %v8812_v59 = vsel %vm3736_vm0, %v5725_v7, %v8678_v25  ;;  %v8831_v25 = vld [vmem:[%s9737_s9 + $0x24] ss:$16 sps:$4 sm:$0xff]   ;;  %v8959_v7 = vld [vmem:[%s9737_s9 + $0xcc] ss:$16 sps:$4 sm:$0xff]   ;;  %vm4871_vm0 = vcmp.eq.s32.totalorder %v7832_v2, 7 }
0x164f   : > { %vm5165_vm2 = vmpackc.low %vm3733_vm1, %vm3733_vm1  ;;  %10370 = vst [vmem:[#allocation52_spill] sm:$0xff] %v8959_v7  ;;  %vm4881_vm1 = vcmask 64512  }
0x1650   : > { %5166 = vmatmul.mubr.msk.bf16.vlgmr.msra.gmra.mrb[72].mxu1 %vm5165_vm2, %v10187_v31  ;;  %5168 = vmatmul.mubr.msk.bf16.vlgmr.msra.gmra.mrb[76].mxu0 %vm5165_vm2, %v10187_v31 }
0x1651   : > { %3931 = vmatpush1.bf16.msra.mxu0 %v8819_v52  ;;  %3972 = vmatpush1.bf16.msra.mxu1 %v8825_v1 }
0x1652   : > { %3932 = vmatprep.subr.bf16.mxu0 %v8831_v25  ;;  %3973 = vmatprep.subr.bf16.mxu1 %v8837_v56 }
0x1653   : > { %3962 = vmatprep.mubr.bf16.mxu0 %v10069_v53  ;;  %4003 = vmatprep.mubr.bf16.mxu1 %v10069_v53 }
0x1655   : > { %3933 = vmatpush1.bf16.msra.mxu0 %v8845_v22  ;;  %3974 = vmatpush1.bf16.msra.mxu1 %v8851_v36 }
0x1656   : > { %3934 = vmatprep.subr.bf16.mxu0 %v8857_v12  ;;  %3975 = vmatprep.subr.bf16.mxu1 %v8863_v29 }
0x1659   : > { %3935 = vmatpush1.bf16.msra.mxu0 %v8869_v27  ;;  %3976 = vmatpush1.bf16.msra.mxu1 %v8875_v35 }
0x165a   : > { %3936 = vmatprep.subr.bf16.mxu0 %v8881_v20  ;;  %3977 = vmatprep.subr.bf16.mxu1 %v8887_v4 }
0x165d   : > { %3937 = vmatpush1.bf16.msra.mxu0 %v8893_v48  ;;  %3978 = vmatpush1.bf16.msra.mxu1 %v8899_v49 }
0x165e   : > { %3938 = vmatprep.subr.bf16.mxu0 %v8905_v58  ;;  %3979 = vmatprep.subr.bf16.mxu1 %v8911_v42 }
0x1661   : > { %3939 = vmatpush1.bf16.msra.mxu0 %v8917_v15  ;;  %3980 = vmatpush1.bf16.msra.mxu1 %v8923_v46 }
0x1662   : > { %3940 = vmatprep.subr.bf16.mxu0 %v8929_v16  ;;  %3981 = vmatprep.subr.bf16.mxu1 %v8935_v40 }
0x1665   : > { %3941 = vmatpush1.bf16.msra.mxu0 %v8941_v63  ;;  %3982 = vmatpush1.bf16.msra.mxu1 %v8947_v45  ;;  %v8965_v63 = vld [vmem:[%s9737_s9 + $0xc0] ss:$16 sps:$4 sm:$0xff]   ;;  %v8971_v45 = vld [vmem:[%s9737_s9 + $0xc8] ss:$16 sps:$4 sm:$0xff]  }
0x1666   : > { %3942 = vmatprep.subr.bf16.mxu0 %v8953_v30  ;;  %3983 = vmatprep.subr.bf16.mxu1 %v8959_v7  ;;  %10371 = vst [vmem:[#allocation32_spill] sm:$0xff] %v8965_v63  ;;  %10372 = vst [vmem:[#allocation33_spill] sm:$0xff] %v8971_v45  ;;  %v8977_v30 = vld [vmem:[%s9737_s9 + $0xe4] ss:$16 sps:$4 sm:$0xff]   ;;  %v8983_v7 = vld [vmem:[%s9737_s9 + $0xec] ss:$16 sps:$4 sm:$0xff]  }
0x1667   : > { %10373 = vst [vmem:[#allocation34_spill] sm:$0xff] %v8977_v30  ;;  %10374 = vst [vmem:[#allocation35_spill] sm:$0xff] %v8983_v7 }
0x1669   : > { %3943 = vmatpush1.bf16.msra.mxu0 %v8965_v63  ;;  %3984 = vmatpush1.bf16.msra.mxu1 %v8971_v45  ;;  %v8989_v63 = vld [vmem:[%s9737_s9 + $0xe0] ss:$16 sps:$4 sm:$0xff]   ;;  %v8995_v45 = vld [vmem:[%s9737_s9 + $0xe8] ss:$16 sps:$4 sm:$0xff]  }
0x166a   : > { %3944 = vmatprep.subr.bf16.mxu0 %v8977_v30  ;;  %3985 = vmatprep.subr.bf16.mxu1 %v8983_v7  ;;  %10375 = vst [vmem:[#allocation53_spill] sm:$0xff] %v8989_v63  ;;  %10376 = vst [vmem:[#allocation22_spill] sm:$0xff] %v8995_v45 }
0x166d   : > { %3945 = vmatpush1.bf16.msra.mxu0 %v8989_v63  ;;  %3986 = vmatpush1.bf16.msra.mxu1 %v8995_v45 }
0x166e   : > { %4122 = vmatprep.subr.bf16.mxu0 %v10311_v38  ;;  %5394 = vmatprep.subr.bf16.mxu1 %v10312_v28 }
0x1723   : > { %v3861_v30 = vpop.f32.mrb[72].mxu1  ;;  %v5388_v7 = vpop.f32.mrb[76].mxu0 }
0x1724   : > { %v5671_v40 = vadd.f32 %v10313_v10, %v3861_v30  ;;  %v3863_v16 = vpop.f32.mrb[73].mxu1  ;;  %v5389_v46 = vpop.f32.mrb[77].mxu0  ;;  %v3711_v30 = vadd.f32 %v8782_v6, %v7900_v23 }
0x1725   : > { %v5390_v15 = vadd.f32 %v5389_v46, %v5388_v7  ;;  %v3865_v42 = vpop.f32.mrb[74].mxu1  ;;  %v5391_v63 = vpop.f32.mrb[78].mxu0  ;;  %v5673_v4 = vadd.f32 %v7894_v47, %v3863_v16  ;;  %v10398_v7 = vld [vmem:[#allocation62_spill] sm:$0xff] }
0x1726   : > { %v5169_v58 = vmul.f32 -1.442695, %v5671_v40  ;;  %v3866_v49 = vpop.f32.mrb[75].mxu1  ;;  %v5392_v48 = vpop.f32.mrb[79].mxu0 }
0x1727   : > { %v5170_v45 = vmul.f32 -1.442695, %v5673_v4  ;;  %v3903_v42 = vadd.f32 %v5390_v15, %v7903_v24  ;;  %v10396_v15 = vld [vmem:[#allocation60_spill] sm:$0xff] }
0x1728   : > { %6165 = vpow2.f32 %v5169_v58 }
0x1729   : > { %6167 = vpow2.f32 %v5170_v45  ;;  %v10397_v45 = vld [vmem:[#allocation61_spill] sm:$0xff] }
0x1732   : > { %v6166_v38 = vpop.eup %6165 }
0x1733   : > { %v3912_v20 = vadd.f32 1.0, %v6166_v38  ;;  %v6168_v28 = vpop.eup %6167  ;;  %v10399_v38 = vld [vmem:[#allocation63_spill] sm:$0xff] }
0x1734   : > { %v3919_v35 = vadd.f32 1.0, %v6168_v28  ;;  %v10400_v28 = vld [vmem:[#allocation64_spill] sm:$0xff] }
0x1735   : > { %6169 = vrcp.f32 %v3912_v20 }
0x1736   : > { %6171 = vrcp.f32 %v3919_v35  ;;  %v10395_v35 = vld [vmem:[#allocation59_spill] sm:$0xff] }
0x173f   : > { %v6170_v10 = vpop.eup %6169 }
0x1740   : > { %v3922_v46 = vmul.f32 %v6170_v10, %v3711_v30  ;;  %v6172_v48 = vpop.eup %6171  ;;  %v10401_v30 = vld [vmem:[#allocation65_spill] sm:$0xff] }
0x1741   : > { %v3925_v16 = vsub.f32 1.0, %v6172_v48  ;;  %v3927_v4 = vmul.f32 %v6172_v48, %v8722_v62 }
0x1742   : > { %v3923_v49 = vadd.f32 %v3922_v46, %v3903_v42  ;;  %v10402_v42 = vld [vmem:[#allocation66_spill] sm:$0xff] }
0x1743   : > { %v9143_v46 = vld [vmem:[%s9737_s9 + $0xc] ss:$16 sps:$4 sm:$0xff]  }
0x1744   : > { %6173 = vtanh.f32 %v3923_v49  ;;  %10403 = vst [vmem:[#allocation10_spill] sm:$0xff] %v9143_v46 }
0x174e   : > { %v6174_v58 = vpop.eup %6173 }
0x174f   : > { %v3926_v40 = vmul.f32 %v6174_v58, %v3925_v16  ;;  %v10404_v16 = vld [vmem:[#allocation5_spill] sm:$0xff] }
0x1751   : > { %v9006_v63 = vadd.f32 %v3927_v4, %v3926_v40 }
0x1753   : > { %v4033_v20 = vmul.f32 %v9006_v63, %v10133_v41  ;;  %v3929_v6 = vpack.c.bf16 %v9006_v63, %v9006_v63  ;;  %v4039_v10 = vmul.f32 %v9006_v63, %v7080_v50  ;;  %v4045_v62 = vmul.f32 %v9006_v63, %v7172_v51 }
0x1755   : > { %4034 = vadd.xlane.f32.xlu1 %v4033_v20  ;;  %3963 = vmatmul.mubr.bf16.vlgmr.msra.gmra.mrb[80].mxu0 %v3929_v6  ;;  %v4036_v20 = vmul.f32 %v9006_v63, %v7034_v43 }
0x1756   : > { %4004 = vmatmul.mubr.bf16.vlgmr.msra.gmra.mrb[76].mxu1 %v3929_v6  ;;  %4123 = vmatpush1.bf16.msra.mxu0 %v8437_v44  ;;  %v9027_v44 = vld [vmem:[%s9735_s7 + $0x30] ss:$12 sps:$4 sm:$0xff]   ;;  %v4042_v6 = vmul.f32 %v9006_v63, %v7126_v37 }
0x1757   : > { %4124 = vmatprep.subr.bf16.mxu0 %v8445_v39  ;;  %5395 = vmatpush3.bf16.msra.mxu1 %v8451_v0  ;;  %10377 = vst [vmem:[#allocation36_spill] sm:$0xff] %v9027_v44  ;;  %v4051_v39 = vmul.f32 %v9006_v63, %v7310_v18  ;;  %v9038_v0 = vld [vmem:[%s9735_s7 + $0x48] ss:$12 sps:$4 sm:$0xff]  }
0x1758   : > { %5396 = vmatprep.subr.bf16.mxu1 %v8457_v33  ;;  %10378 = vst [vmem:[#allocation39_spill] sm:$0xff] %v9038_v0  ;;  %v9044_v33 = vld [vmem:[%s9735_s7 + $0x64] ss:$12 sps:$4 sm:$0xff]  }
0x1759   : > { %4040 = vadd.xlane.f32.xlu1 %v4039_v10  ;;  %10379 = vst [vmem:[#allocation23_spill] sm:$0xff] %v9044_v33  ;;  %v4048_v10 = vmul.f32 %v9006_v63, %v7220_v19 }
0x175a   : > { %4125 = vmatpush1.bf16.msra.mxu0 %v8463_v54  ;;  %v9052_v54 = vld [vmem:[%s9735_s7 + $0x60] ss:$12 sps:$4 sm:$0xff]  }
0x175b   : > { %4126 = vmatprep.subr.bf16.mxu0 %v8471_v61  ;;  %5397 = vmatpush3.bf16.msra.mxu1 %v8477_v11  ;;  %10380 = vst [vmem:[#allocation54_spill] sm:$0xff] %v9052_v54  ;;  %v9058_v61 = vld [vmem:[%s9735_s7 + $0x7c] ss:$12 sps:$4 sm:$0xff]   ;;  %v9066_v11 = vld [vmem:[%s9735_s7 + $0x78] ss:$12 sps:$4 sm:$0xff]  }
0x175c   : > { %5398 = vmatprep.subr.bf16.mxu1 %v8483_v21  ;;  %10381 = vst [vmem:[#allocation42_spill] sm:$0xff] %v9058_v61  ;;  %10382 = vst [vmem:[#allocation44_spill] sm:$0xff] %v9066_v11  ;;  %v9072_v21 = vld [vmem:[%s9735_s7 + $0x94] ss:$12 sps:$4 sm:$0xff]  }
0x175d   : > { %4046 = vadd.xlane.f32.xlu1 %v4045_v62  ;;  %10383 = vst [vmem:[#allocation55_spill] sm:$0xff] %v9072_v21  ;;  %v4054_v62 = vmul.f32 %v9006_v63, %v7515_v34 }
0x175e   : > { %4127 = vmatpush1.bf16.msra.mxu0 %v9027_v44 }
0x175f   : > { %4128 = vmatprep.subr.bf16.mxu0 %v8492_v32  ;;  %5399 = vmatpush3.bf16.msra.mxu1 %v10314_v5  ;;  %v9080_v32 = vld [vmem:[%s9735_s7 + $0x90] ss:$12 sps:$4 sm:$0xff]   ;;  %v9086_v5 = vld [vmem:[%s9735_s7 + $0xac] ss:$12 sps:$4 sm:$0xff]  }
0x1760   : > { %5400 = vmatprep.subr.bf16.mxu1 %v10315_v26  ;;  %10384 = vst [vmem:[#allocation24_spill] sm:$0xff] %v9080_v32  ;;  %10385 = vst [vmem:[#allocation45_spill] sm:$0xff] %v9086_v5  ;;  %v9094_v26 = vld [vmem:[%s9735_s7 + $0xa8] ss:$12 sps:$4 sm:$0xff]  }
0x1761   : > { %4052 = vadd.xlane.f32.xlu1 %v4051_v39  ;;  %10386 = vst [vmem:[#allocation11_spill] sm:$0xff] %v9094_v26 }
0x1762   : > { %4129 = vmatpush1.bf16.msra.mxu0 %v9038_v0 }
0x1763   : > { %4130 = vmatprep.subr.bf16.mxu0 %v9044_v33  ;;  %5401 = vmatpush3.bf16.msra.mxu1 %v10318_v60  ;;  %v9100_v60 = vld [vmem:[%s9735_s7 + $0xc4] ss:$12 sps:$4 sm:$0xff]  }
0x1764   : > { %5402 = vmatprep.subr.bf16.mxu1 %v10319_v14  ;;  %10387 = vst [vmem:[#allocation25_spill] sm:$0xff] %v9100_v60  ;;  %v9107_v14 = vld [vmem:[%s9737_s9 + $0x4] ss:$16 sps:$4 sm:$0xff]  }
0x1766   : > { %4131 = vmatpush1.bf16.msra.mxu0 %v9052_v54 }
0x1767   : > { %4132 = vmatprep.subr.bf16.mxu0 %v9058_v61  ;;  %5403 = vmatpush3.bf16.msra.mxu1 %v10322_v55  ;;  %v9113_v55 = vld [vmem:[%s9735_s7 + $0xc0] ss:$12 sps:$4 sm:$0xff]  }
0x1768   : > { %5404 = vmatprep.subr.bf16.mxu1 %v10323_v13  ;;  %10388 = vst [vmem:[#allocation56_spill] sm:$0xff] %v9113_v55  ;;  %v9119_v13 = vld [vmem:[%s9735_s7 + $0xdc] ss:$12 sps:$4 sm:$0xff]  }
0x1769   : > { %10389 = vst [vmem:[#allocation12_spill] sm:$0xff] %v9119_v13 }
0x176a   : > { %4133 = vmatpush1.bf16.msra.mxu0 %v9066_v11 }
0x176b   : > { %4134 = vmatprep.subr.bf16.mxu0 %v9072_v21  ;;  %5405 = vmatpush3.bf16.msra.mxu1 %v10326_v9  ;;  %v9125_v9 = vld [vmem:[%s9735_s7 + $0xd8] ss:$12 sps:$4 sm:$0xff]  }
0x176c   : > { %5406 = vmatprep.subr.bf16.mxu1 %v10327_v3  ;;  %10390 = vst [vmem:[#allocation38_spill] sm:$0xff] %v9125_v9  ;;  %v10391_v3 = vld [vmem:[#allocation7_spill] sm:$0xff] }
0x176e   : > { %4135 = vmatpush1.bf16.msra.mxu0 %v9080_v32 }
0x176f   : > { %4136 = vmatprep.subr.bf16.mxu0 %v9086_v5  ;;  %5407 = vmatpush3.bf16.msra.mxu1 %v10330_v17  ;;  %v10392_v17 = vld [vmem:[#allocation13_spill] sm:$0xff] }
0x1770   : > { %5408 = vmatprep.subr.bf16.mxu1 %v10331_v57  ;;  %v10393_v57 = vld [vmem:[#allocation57_spill] sm:$0xff] }
0x1772   : > { %4137 = vmatpush1.bf16.msra.mxu0 %v9094_v26 }
0x1773   : > { %4138 = vmatprep.subr.bf16.mxu0 %v9100_v60  ;;  %5409 = vmatpush3.bf16.msra.mxu1 %v10334_v8  ;;  %v10394_v8 = vld [vmem:[#allocation58_spill] sm:$0xff] }
0x1774   : > { %4225 = vmatprep.subr.bf16.mxu1 %v9107_v14 }
0x1776   : > { %4139 = vmatpush1.bf16.msra.mxu0 %v9113_v55 }
0x1777   : > { %4140 = vmatprep.subr.bf16.mxu0 %v9119_v13 }
0x177a   : > { %4141 = vmatpush1.bf16.msra.mxu0 %v9125_v9 }
0x177b   : > { %4142 = vmatprep.subr.bf16.mxu0 %v10391_v3 }
0x177e   : > { %4143 = vmatpush1.bf16.msra.mxu0 %v10392_v17 }
0x177f   : > { %4144 = vmatprep.subr.bf16.mxu0 %v10393_v57  ;;  %v10407_v57 = vld [vmem:[#allocation4_spill] sm:$0xff] }
0x1782   : > { %4145 = vmatpush1.bf16.msra.mxu0 %v10394_v8 }
0x1783   : > { %4146 = vmatprep.subr.bf16.mxu0 %v10395_v35 }
0x1786   : > { %4147 = vmatpush1.bf16.msra.mxu0 %v10396_v15 }
0x1787   : > { %4148 = vmatprep.subr.bf16.mxu0 %v10397_v45 }
0x178a   : > { %4149 = vmatpush1.bf16.msra.mxu0 %v10398_v7 }
0x178b   : > { %4150 = vmatprep.subr.bf16.mxu0 %v10399_v38 }
0x178e   : > { %4151 = vmatpush1.bf16.msra.mxu0 %v10400_v28 }
0x178f   : > { %4152 = vmatprep.subr.bf16.mxu0 %v10401_v30 }
0x1792   : > { %4153 = vmatpush1.bf16.msra.mxu0 %v10402_v42 }
0x1793   : > { %4266 = vmatprep.subr.bf16.mxu0 %v9143_v46 }
0x17e2   : > { %v4035_v39 = vpop.xlane.xlu1 %4034 }
0x17e6   : > { %v4041_v17 = vpop.xlane.xlu1 %4040 }
0x17ea   : > { %v4047_v7 = vpop.xlane.xlu1 %4046 }
0x1829   : > { %v9146_v49 = vpop.f32.mrb[76].mxu1 }
0x182a   : > { %v4007_v48 = vpop.f32.mrb[77].mxu1 }
0x182b   : > { %v9149_v58 = vadd.f32 %v4007_v48, %v10404_v16  ;;  %v4009_v4 = vpop.f32.mrb[78].mxu1 }
0x182c   : > { %v4010_v40 = vpop.f32.mrb[79].mxu1  ;;  %v4053_v4 = vpop.xlane.xlu1 %4052 }
0x182d   : > { %10405 = vst [vmem:[#allocation26_spill] sm:$0xff] %v9149_v58  ;;  %4012 = vmax.xlane.f32.xlu0 %v9149_v58 }
0x1831   : > { %4037 = vadd.xlane.f32.xlu0 %v4036_v20 }
0x1835   : > { %4043 = vadd.xlane.f32.xlu0 %v4042_v6 }
0x1839   : > { %4049 = vadd.xlane.f32.xlu0 %v4048_v10 }
0x183d   : > { %4055 = vadd.xlane.f32.xlu0 %v4054_v62 }
0x18ba   : > { %v9160_v3 = vpop.xlane.xlu0 %4012 }
0x18bb   : > { %10406 = vst [vmem:[#allocation40_spill] sm:$0xff] %v9160_v3  ;;  %vm4022_vm3 = vcmp.ge.f32.partialorder %v9149_v58, %v9160_v3 }
0x18bc   : > { %v4023_v8 = vsel %vm4022_vm3, %v10407_v57, 128.0 }
0x18bd   : > { %4024 = vmin.xlane.f32.xlu1 %v4023_v8 }
0x18be   : > { %v4038_v35 = vpop.xlane.xlu0 %4037 }
0x18bf   : > { %v4057_v15 = vmax.f32 %v4035_v39, %v4038_v35 }
0x18c1   : > { %v4058_v45 = vmax.f32 %v4057_v15, %v4041_v17 }
0x18c2   : > { %v4044_v38 = vpop.xlane.xlu0 %4043 }
0x18c3   : > { %v4059_v28 = vmax.f32 %v4058_v45, %v4044_v38 }
0x18c5   : > { %v4060_v30 = vmax.f32 %v4059_v28, %v4047_v7 }
0x18c6   : > { %v4050_v42 = vpop.xlane.xlu0 %4049 }
0x18c7   : > { %v4061_v48 = vmax.f32 %v4060_v30, %v4050_v42 }
0x18c9   : > { %v4062_v40 = vmax.f32 %v4061_v48, %v4053_v4 }
0x18ca   : > { %v4056_v20 = vpop.xlane.xlu0 %4055 }
0x18cb   : > { %v4063_v6 = vmax.f32 %v4062_v40, %v4056_v20 }
0x18cd   : > { %v4064_v10 = vsub.f32 %v4035_v39, %v4063_v6  ;;  %v4067_v62 = vsub.f32 %v4038_v35, %v4063_v6  ;;  %v4070_v58 = vsub.f32 %v4041_v17, %v4063_v6  ;;  %v4073_v3 = vsub.f32 %v4044_v38, %v4063_v6 }
0x18ce   : > { %v4076_v46 = vsub.f32 %v4047_v7, %v4063_v6  ;;  %v4079_v9 = vsub.f32 %v4050_v42, %v4063_v6  ;;  %v4082_v28 = vsub.f32 %v4053_v4, %v4063_v6  ;;  %v4085_v48 = vsub.f32 %v4056_v20, %v4063_v6 }
0x18cf   : > { %v4065_v16 = vmul.f32 1.442695, %v4064_v10  ;;  %v4068_v57 = vmul.f32 1.442695, %v4067_v62  ;;  %v4071_v8 = vmul.f32 1.442695, %v4070_v58 }
0x18d0   : > { %v4074_v15 = vmul.f32 1.442695, %v4073_v3  ;;  %v4077_v45 = vmul.f32 1.442695, %v4076_v46  ;;  %v4080_v30 = vmul.f32 1.442695, %v4079_v9 }
0x18d1   : > { %6175 = vpow2.f32 %v4065_v16  ;;  %v4083_v40 = vmul.f32 1.442695, %v4082_v28  ;;  %v4086_v39 = vmul.f32 1.442695, %v4085_v48 }
0x18d2   : > { %6177 = vpow2.f32 %v4068_v57 }
0x18d3   : > { %6179 = vpow2.f32 %v4071_v8 }
0x18d4   : > { %6181 = vpow2.f32 %v4074_v15 }
0x18d5   : > { %6183 = vpow2.f32 %v4077_v45 }
0x18d6   : > { %6185 = vpow2.f32 %v4080_v30 }
0x18d7   : > { %6187 = vpow2.f32 %v4083_v40 }
0x18d8   : > { %6189 = vpow2.f32 %v4086_v39 }
0x18db   : > { %v6176_v17 = vpop.eup %6175 }
0x18dc   : > { %v6178_v35 = vpop.eup %6177 }
0x18dd   : > { %v4088_v38 = vadd.f32 %v6178_v35, %v6176_v17  ;;  %v6180_v58 = vpop.eup %6179 }
0x18de   : > { %v6182_v57 = vpop.eup %6181 }
0x18df   : > { %v4089_v16 = vadd.f32 %v6180_v58, %v4088_v38  ;;  %v6184_v7 = vpop.eup %6183 }
0x18e0   : > { %v6186_v46 = vpop.eup %6185 }
0x18e1   : > { %v4090_v3 = vadd.f32 %v6182_v57, %v4089_v16  ;;  %v6188_v10 = vpop.eup %6187 }
0x18e2   : > { %v6190_v20 = vpop.eup %6189 }
0x18e3   : > { %v4091_v42 = vadd.f32 %v6184_v7, %v4090_v3 }
0x18e5   : > { %v4092_v4 = vadd.f32 %v6186_v46, %v4091_v42 }
0x18e7   : > { %v4093_v9 = vadd.f32 %v6188_v10, %v4092_v4 }
0x18e9   : > { %v4094_v6 = vadd.f32 %v6190_v20, %v4093_v9 }
0x18eb   : > { %6191 = vrcp.f32 %v4094_v6 }
0x18f5   : > { %v6192_v62 = vpop.eup %6191 }
0x18f6   : > { %v4097_v8 = vmul.f32 %v6192_v62, %v6176_v17  ;;  %v4099_v15 = vmul.f32 %v6192_v62, %v6178_v35  ;;  %v4102_v45 = vmul.f32 %v6192_v62, %v6180_v58  ;;  %v4105_v48 = vmul.f32 %v6192_v62, %v6182_v57 }
0x18f7   : > { %v4108_v38 = vmul.f32 %v6192_v62, %v6184_v7  ;;  %v4111_v42 = vmul.f32 %v6192_v62, %v6186_v46  ;;  %v4114_v6 = vmul.f32 %v6192_v62, %v6188_v10  ;;  %v4117_v58 = vmul.f32 %v6192_v62, %v6190_v20  ;;  %v10409_v62 = vld [vmem:[#allocation8_spill] sm:$0xff] }
0x18f8   : > { %v4098_v28 = vmul.f32 %v4097_v8, %v10133_v41  ;;  %v4100_v30 = vmul.f32 %v4099_v15, %v7034_v43  ;;  %v4103_v39 = vmul.f32 %v4102_v45, %v7080_v50  ;;  %v4106_v3 = vmul.f32 %v4105_v48, %v7126_v37 }
0x18f9   : > { %v4109_v9 = vmul.f32 %v4108_v38, %v7172_v51  ;;  %v4112_v35 = vmul.f32 %v4111_v42, %v7220_v19  ;;  %v4115_v15 = vmul.f32 %v4114_v6, %v7310_v18  ;;  %v10412_v38 = vld [vmem:[#allocation16_spill] sm:$0xff]  ;;  %v10415_v42 = vld [vmem:[#allocation49_spill] sm:$0xff]  ;;  %v10418_v6 = vld [vmem:[#allocation50_spill] sm:$0xff] }
0x18fa   : > { %v4101_v40 = vadd.f32 %v4100_v30, %v4098_v28  ;;  %v4118_v28 = vmul.f32 %v4117_v58, %v7515_v34  ;;  %v10421_v58 = vld [vmem:[#allocation21_spill] sm:$0xff] }
0x18fc   : > { %v4104_v16 = vadd.f32 %v4103_v39, %v4101_v40  ;;  %v10410_v40 = vld [vmem:[#allocation46_spill] sm:$0xff]  ;;  %v10411_v39 = vld [vmem:[#allocation47_spill] sm:$0xff] }
0x18fe   : > { %v4107_v4 = vadd.f32 %v4106_v3, %v4104_v16  ;;  %v10413_v16 = vld [vmem:[#allocation17_spill] sm:$0xff]  ;;  %v10414_v3 = vld [vmem:[#allocation48_spill] sm:$0xff] }
0x1900   : > { %v4110_v17 = vadd.f32 %v4109_v9, %v4107_v4  ;;  %v10416_v4 = vld [vmem:[#allocation18_spill] sm:$0xff]  ;;  %v10417_v9 = vld [vmem:[#allocation19_spill] sm:$0xff] }
0x1902   : > { %v4113_v8 = vadd.f32 %v4112_v35, %v4110_v17  ;;  %v10419_v17 = vld [vmem:[#allocation51_spill] sm:$0xff]  ;;  %v10420_v35 = vld [vmem:[#allocation20_spill] sm:$0xff] }
0x1904   : > { %v4116_v57 = vadd.f32 %v4115_v15, %v4113_v8  ;;  %v10422_v8 = vld [vmem:[#allocation52_spill] sm:$0xff] }
0x1905   : > { %v10423_v15 = vld [vmem:[#allocation32_spill] sm:$0xff] }
0x1906   : > { %v4119_v45 = vadd.f32 %v4118_v28, %v4116_v57  ;;  %v10424_v57 = vld [vmem:[#allocation33_spill] sm:$0xff]  ;;  %v10425_v28 = vld [vmem:[#allocation34_spill] sm:$0xff] }
0x1908   : > { %v4121_v7 = vpack.c.bf16 %v4119_v45, %v4119_v45  ;;  %v10426_v45 = vld [vmem:[#allocation35_spill] sm:$0xff] }
0x190a   : > { %4154 = vmatprep.mubr.bf16.mxu0 %v4121_v7  ;;  %4195 = vmatprep.mubr.bf16.mxu1 %v4121_v7  ;;  %v10427_v7 = vld [vmem:[#allocation53_spill] sm:$0xff] }
0x194a   : > { %v4025_v30 = vpop.xlane.xlu1 %4024 }
0x194b   : > { %v4026_v46 = vmin.f32 %v4025_v30, 127.0  ;;  %v10428_v30 = vld [vmem:[#allocation22_spill] sm:$0xff] }
0x194d   : > { %v5726_v48 = vtrunc.f32 %v4026_v46  ;;  %v9215_v46 = vld [vmem:[%s9735_s7 + $0x4] ss:$12 sps:$4 sm:$0xff]  }
0x194e   : > { %10429 = vst [vmem:[#allocation27_spill] sm:$0xff] %v9215_v46 }
0x194f   : > { %v5727_v10 = vcvt.f32.s32 %v5726_v48  ;;  %v9221_v48 = vld [vmem:[%s9735_s7 + $0xc8] ss:$12 sps:$4 sm:$0xff]  }
0x1950   : > { %10430 = vst [vmem:[#allocation28_spill] sm:$0xff] %v9221_v48 }
0x1951   : > { %vm4028_vm5 = vcmp.eq.s32.totalorder %v7832_v2, %v5727_v10  ;;  %v9176_v20 = vsel %vm4031_vm4, %v5727_v10, %v8812_v59  ;;  %v10408_v59 = vld [vmem:[#allocation14_spill] sm:$0xff] }
0x1952   : > { %vm5172_vm6 = vmpackc.low %vm4028_vm5, %vm4028_vm5 }
0x1953   : > { %5173 = vmatmul.mubr.msk.bf16.vlgmr.msra.gmra.mrb[80].mxu0 %vm5172_vm6, %v10187_v31  ;;  %5175 = vmatmul.mubr.msk.bf16.vlgmr.msra.gmra.mrb[80].mxu1 %vm5172_vm6, %v10187_v31 }
0x1954   : > { %4226 = vmatpush1.bf16.msra.mxu1 %v8819_v52  ;;  %4267 = vmatpush1.bf16.msra.mxu0 %v8825_v1 }
0x1955   : > { %4227 = vmatprep.subr.bf16.mxu1 %v8831_v25  ;;  %4268 = vmatprep.subr.bf16.mxu0 %v8837_v56 }
0x1956   : > { %4257 = vmatprep.mubr.bf16.mxu1 %v10069_v53  ;;  %4298 = vmatprep.mubr.bf16.mxu0 %v10069_v53 }
0x1958   : > { %4228 = vmatpush1.bf16.msra.mxu1 %v8845_v22  ;;  %4269 = vmatpush1.bf16.msra.mxu0 %v8851_v36 }
0x1959   : > { %4229 = vmatprep.subr.bf16.mxu1 %v8857_v12  ;;  %4270 = vmatprep.subr.bf16.mxu0 %v8863_v29 }
0x195c   : > { %4230 = vmatpush1.bf16.msra.mxu1 %v8869_v27  ;;  %4271 = vmatpush1.bf16.msra.mxu0 %v10408_v59 }
0x195d   : > { %4231 = vmatprep.subr.bf16.mxu1 %v10409_v62  ;;  %4272 = vmatprep.subr.bf16.mxu0 %v10410_v40 }
0x1960   : > { %4232 = vmatpush1.bf16.msra.mxu1 %v10411_v39  ;;  %4273 = vmatpush1.bf16.msra.mxu0 %v10412_v38 }
0x1961   : > { %4233 = vmatprep.subr.bf16.mxu1 %v10413_v16  ;;  %4274 = vmatprep.subr.bf16.mxu0 %v10414_v3 }
0x1964   : > { %4234 = vmatpush1.bf16.msra.mxu1 %v10415_v42  ;;  %4275 = vmatpush1.bf16.msra.mxu0 %v10416_v4 }
0x1965   : > { %4235 = vmatprep.subr.bf16.mxu1 %v10417_v9  ;;  %4276 = vmatprep.subr.bf16.mxu0 %v10418_v6 }
0x1968   : > { %4236 = vmatpush1.bf16.msra.mxu1 %v10419_v17  ;;  %4277 = vmatpush1.bf16.msra.mxu0 %v10420_v35 }
0x1969   : > { %4237 = vmatprep.subr.bf16.mxu1 %v10421_v58  ;;  %4278 = vmatprep.subr.bf16.mxu0 %v10422_v8 }
0x196c   : > { %4238 = vmatpush1.bf16.msra.mxu1 %v10423_v15  ;;  %4279 = vmatpush1.bf16.msra.mxu0 %v10424_v57 }
0x196d   : > { %4239 = vmatprep.subr.bf16.mxu1 %v10425_v28  ;;  %4280 = vmatprep.subr.bf16.mxu0 %v10426_v45  ;;  %v10431_v28 = vld [vmem:[#allocation37_spill] sm:$0xff] }
0x1970   : > { %4240 = vmatpush1.bf16.msra.mxu1 %v10427_v7  ;;  %4281 = vmatpush1.bf16.msra.mxu0 %v10428_v30 }
0x1971   : > { %4417 = vmatprep.subr.bf16.mxu1 %v9215_v46  ;;  %5416 = vmatprep.subr.bf16.mxu0 %v9221_v48 }
0x1a26   : > { %v4156_v10 = vpop.f32.mrb[80].mxu0  ;;  %v5410_v45 = vpop.f32.mrb[80].mxu1 }
0x1a27   : > { %v5675_v7 = vadd.f32 %v10431_v28, %v4156_v10  ;;  %v4158_v57 = vpop.f32.mrb[81].mxu0  ;;  %v5411_v30 = vpop.f32.mrb[81].mxu1  ;;  %v4006_v10 = vadd.f32 %v9146_v49, %v7900_v23 }
0x1a28   : > { %v5412_v15 = vadd.f32 %v5411_v30, %v5410_v45  ;;  %v4160_v8 = vpop.f32.mrb[82].mxu0  ;;  %v5413_v58 = vpop.f32.mrb[82].mxu1  ;;  %v5677_v46 = vadd.f32 %v7894_v47, %v4158_v57  ;;  %v9265_v30 = vld [vmem:[%s9735_s7 + $0x18] ss:$12 sps:$4 sm:$0xff]  }
0x1a29   : > { %v5176_v35 = vmul.f32 -1.442695, %v5675_v7  ;;  %v4161_v17 = vpop.f32.mrb[83].mxu0  ;;  %v5414_v6 = vpop.f32.mrb[83].mxu1  ;;  %v9259_v7 = vld [vmem:[%s9735_s7 + $0xe0] ss:$12 sps:$4 sm:$0xff]  }
0x1a2a   : > { %v5177_v9 = vmul.f32 -1.442695, %v5677_v46  ;;  %v4198_v58 = vadd.f32 %v5412_v15, %v7903_v24  ;;  %v9247_v15 = vld [vmem:[%s9735_s7 + $0x1c] ss:$12 sps:$4 sm:$0xff]  }
0x1a2b   : > { %6193 = vpow2.f32 %v5176_v35 }
0x1a2c   : > { %6195 = vpow2.f32 %v5177_v9 }
0x1a35   : > { %v6194_v4 = vpop.eup %6193 }
0x1a36   : > { %v4207_v42 = vadd.f32 1.0, %v6194_v4  ;;  %v6196_v48 = vpop.eup %6195 }
0x1a37   : > { %v4214_v3 = vadd.f32 1.0, %v6196_v48  ;;  %v9273_v48 = vld [vmem:[%s9735_s7 + $0x34] ss:$12 sps:$4 sm:$0xff]  }
0x1a38   : > { %6197 = vrcp.f32 %v4207_v42 }
0x1a39   : > { %6199 = vrcp.f32 %v4214_v3  ;;  %v9239_v3 = vld [vmem:[%s9735_s7] ss:$12 sps:$4 sm:$0xff]  }
0x1a42   : > { %v6198_v28 = vpop.eup %6197 }
0x1a43   : > { %v4217_v8 = vmul.f32 %v6198_v28, %v4006_v10  ;;  %v6200_v6 = vpop.eup %6199  ;;  %v9253_v28 = vld [vmem:[%s9735_s7 + $0x8] ss:$12 sps:$4 sm:$0xff]   ;;  %v9279_v10 = vld [vmem:[%s9735_s7 + $0x20] ss:$12 sps:$4 sm:$0xff]  }
0x1a44   : > { %v4220_v57 = vsub.f32 1.0, %v6200_v6  ;;  %v4222_v9 = vmul.f32 %v6200_v6, %v9006_v63  ;;  %v9300_v6 = vld [vmem:[%s9735_s7 + $0x38] ss:$12 sps:$4 sm:$0xff]  }
0x1a45   : > { %v4218_v17 = vadd.f32 %v4217_v8, %v4198_v58  ;;  %v9285_v58 = vld [vmem:[%s9735_s7 + $0xf8] ss:$12 sps:$4 sm:$0xff]   ;;  %10433 = vst [vmem:[#allocation30_spill] sm:$0xff] %v9300_v6 }
0x1a47   : > { %6201 = vtanh.f32 %v4218_v17  ;;  %v9294_v17 = vld [vmem:[%s9735_s7 + $0x4c] ss:$12 sps:$4 sm:$0xff]  }
0x1a48   : > { %10432 = vst [vmem:[#allocation29_spill] sm:$0xff] %v9294_v17 }
0x1a51   : > { %v6202_v35 = vpop.eup %6201 }
0x1a52   : > { %v4221_v45 = vmul.f32 %v6202_v35, %v4220_v57  ;;  %v9306_v57 = vld [vmem:[%s9735_s7 + $0x110] ss:$12 sps:$4 sm:$0xff]  }
0x1a53   : > { %10434 = vst [vmem:[#allocation9_spill] sm:$0xff] %v9306_v57  ;;  %v9314_v35 = vld [vmem:[%s9735_s7 + $0x50] ss:$12 sps:$4 sm:$0xff]  }
0x1a54   : > { %v9230_v4 = vadd.f32 %v4222_v9, %v4221_v45  ;;  %10435 = vst [vmem:[#allocation7_spill] sm:$0xff] %v9314_v35  ;;  %v9320_v9 = vld [vmem:[%s9735_s7 + $0x128] ss:$12 sps:$4 sm:$0xff]  }
0x1a55   : > { %10436 = vst [vmem:[#allocation13_spill] sm:$0xff] %v9320_v9  ;;  %v9328_v45 = vld [vmem:[%s9735_s7 + $0x68] ss:$12 sps:$4 sm:$0xff]  }
0x1a56   : > { %v4328_v42 = vmul.f32 %v9230_v4, %v10133_v41  ;;  %v4224_v49 = vpack.c.bf16 %v9230_v4, %v9230_v4  ;;  %v4334_v63 = vmul.f32 %v9230_v4, %v7080_v50  ;;  %v4340_v46 = vmul.f32 %v9230_v4, %v7172_v51  ;;  %10437 = vst [vmem:[#allocation57_spill] sm:$0xff] %v9328_v45 }
0x1a57   : > { %v4346_v8 = vmul.f32 %v9230_v4, %v7310_v18 }
0x1a58   : > { %4329 = vadd.xlane.f32.xlu1 %v4328_v42  ;;  %4258 = vmatmul.mubr.bf16.vlgmr.msra.gmra.mrb[84].mxu1 %v4224_v49  ;;  %v9334_v42 = vld [vmem:[%s9735_s7 + $0x140] ss:$12 sps:$4 sm:$0xff]  }
0x1a59   : > { %4299 = vmatmul.mubr.bf16.vlgmr.msra.gmra.mrb[84].mxu0 %v4224_v49  ;;  %4418 = vmatpush1.bf16.msra.mxu1 %v9239_v3  ;;  %10438 = vst [vmem:[#allocation58_spill] sm:$0xff] %v9334_v42  ;;  %v9342_v49 = vld [vmem:[%s9735_s7 + $0x80] ss:$12 sps:$4 sm:$0xff]  }
0x1a5a   : > { %4419 = vmatprep.subr.bf16.mxu1 %v9247_v15  ;;  %5417 = vmatpush3.bf16.msra.mxu0 %v9253_v28  ;;  %10439 = vst [vmem:[#allocation59_spill] sm:$0xff] %v9342_v49 }
0x1a5b   : > { %5418 = vmatprep.subr.bf16.mxu0 %v9259_v7 }
0x1a5c   : > { %4335 = vadd.xlane.f32.xlu1 %v4334_v63  ;;  %v9348_v63 = vld [vmem:[%s9735_s7 + $0x158] ss:$12 sps:$4 sm:$0xff]  }
0x1a5d   : > { %4420 = vmatpush1.bf16.msra.mxu1 %v9265_v30  ;;  %10440 = vst [vmem:[#allocation60_spill] sm:$0xff] %v9348_v63 }
0x1a5e   : > { %4421 = vmatprep.subr.bf16.mxu1 %v9273_v48  ;;  %5419 = vmatpush3.bf16.msra.mxu0 %v9279_v10 }
0x1a5f   : > { %5420 = vmatprep.subr.bf16.mxu0 %v9285_v58 }
0x1a60   : > { %4341 = vadd.xlane.f32.xlu1 %v4340_v46  ;;  %v9356_v46 = vld [vmem:[%s9735_s7 + $0x98] ss:$12 sps:$4 sm:$0xff]  }
0x1a61   : > { %4422 = vmatpush1.bf16.msra.mxu1 %v9027_v44  ;;  %10441 = vst [vmem:[#allocation61_spill] sm:$0xff] %v9356_v46 }
0x1a62   : > { %4423 = vmatprep.subr.bf16.mxu1 %v9294_v17  ;;  %5421 = vmatpush3.bf16.msra.mxu0 %v9300_v6 }
0x1a63   : > { %5422 = vmatprep.subr.bf16.mxu0 %v9306_v57 }
0x1a64   : > { %4347 = vadd.xlane.f32.xlu1 %v4346_v8  ;;  %v9362_v8 = vld [vmem:[%s9735_s7 + $0x170] ss:$12 sps:$4 sm:$0xff]  }
0x1a65   : > { %4424 = vmatpush1.bf16.msra.mxu1 %v9038_v0  ;;  %10442 = vst [vmem:[#allocation62_spill] sm:$0xff] %v9362_v8 }
0x1a66   : > { %4425 = vmatprep.subr.bf16.mxu1 %v9044_v33  ;;  %5423 = vmatpush3.bf16.msra.mxu0 %v9314_v35 }
0x1a67   : > { %5424 = vmatprep.subr.bf16.mxu0 %v9320_v9 }
0x1a69   : > { %4426 = vmatpush1.bf16.msra.mxu1 %v9052_v54 }
0x1a6a   : > { %4427 = vmatprep.subr.bf16.mxu1 %v9058_v61  ;;  %5425 = vmatpush3.bf16.msra.mxu0 %v9328_v45 }
0x1a6b   : > { %5426 = vmatprep.subr.bf16.mxu0 %v9334_v42 }
0x1a6d   : > { %4428 = vmatpush1.bf16.msra.mxu1 %v9066_v11 }
0x1a6e   : > { %4429 = vmatprep.subr.bf16.mxu1 %v9072_v21  ;;  %5427 = vmatpush3.bf16.msra.mxu0 %v9342_v49 }
0x1a6f   : > { %5428 = vmatprep.subr.bf16.mxu0 %v9348_v63  ;;  %v4337_v63 = vmul.f32 %v9230_v4, %v7126_v37 }
0x1a71   : > { %4430 = vmatpush1.bf16.msra.mxu1 %v9080_v32 }
0x1a72   : > { %4431 = vmatprep.subr.bf16.mxu1 %v9086_v5  ;;  %5429 = vmatpush3.bf16.msra.mxu0 %v9356_v46  ;;  %v9370_v5 = vld [vmem:[%s9735_s7 + $0xb0] ss:$12 sps:$4 sm:$0xff]  }
0x1a73   : > { %5430 = vmatprep.subr.bf16.mxu0 %v9362_v8  ;;  %10443 = vst [vmem:[#allocation63_spill] sm:$0xff] %v9370_v5  ;;  %v10444_v46 = vld [vmem:[#allocation38_spill] sm:$0xff] }
0x1a75   : > { %4432 = vmatpush1.bf16.msra.mxu1 %v9094_v26  ;;  %v9380_v26 = vld [vmem:[%s9735_s7 + $0xf4] ss:$12 sps:$4 sm:$0xff]  }
0x1a76   : > { %4433 = vmatprep.subr.bf16.mxu1 %v9100_v60  ;;  %5431 = vmatpush3.bf16.msra.mxu0 %v9370_v5  ;;  %10445 = vst [vmem:[#allocation64_spill] sm:$0xff] %v9380_v26  ;;  %v9386_v60 = vld [vmem:[%s9735_s7 + $0xf0] ss:$12 sps:$4 sm:$0xff]  }
0x1a77   : > { %4520 = vmatprep.subr.bf16.mxu0 %v9107_v14  ;;  %10446 = vst [vmem:[#allocation65_spill] sm:$0xff] %v9386_v60  ;;  %v9392_v14 = vld [vmem:[%s9735_s7 + $0x10c] ss:$12 sps:$4 sm:$0xff]  }
0x1a78   : > { %10447 = vst [vmem:[#allocation66_spill] sm:$0xff] %v9392_v14 }
0x1a79   : > { %4434 = vmatpush1.bf16.msra.mxu1 %v9113_v55 }
0x1a7a   : > { %4435 = vmatprep.subr.bf16.mxu1 %v9119_v13 }
0x1a7d   : > { %4436 = vmatpush1.bf16.msra.mxu1 %v10444_v46  ;;  %v9398_v46 = vld [vmem:[%s9735_s7 + $0x108] ss:$12 sps:$4 sm:$0xff]  }
0x1a7e   : > { %4437 = vmatprep.subr.bf16.mxu1 %v9380_v26  ;;  %10448 = vst [vmem:[#allocation14_spill] sm:$0xff] %v9398_v46  ;;  %v9404_v26 = vld [vmem:[%s9735_s7 + $0x124] ss:$12 sps:$4 sm:$0xff]  }
0x1a7f   : > { %10449 = vst [vmem:[#allocation8_spill] sm:$0xff] %v9404_v26 }
0x1a81   : > { %4438 = vmatpush1.bf16.msra.mxu1 %v9386_v60  ;;  %v9410_v60 = vld [vmem:[%s9735_s7 + $0x120] ss:$12 sps:$4 sm:$0xff]  }
0x1a82   : > { %4439 = vmatprep.subr.bf16.mxu1 %v9392_v14  ;;  %10450 = vst [vmem:[#allocation46_spill] sm:$0xff] %v9410_v60  ;;  %v9416_v14 = vld [vmem:[%s9735_s7 + $0x13c] ss:$12 sps:$4 sm:$0xff]  }
0x1a83   : > { %10451 = vst [vmem:[#allocation47_spill] sm:$0xff] %v9416_v14 }
0x1a85   : > { %4440 = vmatpush1.bf16.msra.mxu1 %v9398_v46  ;;  %v9422_v46 = vld [vmem:[%s9735_s7 + $0x138] ss:$12 sps:$4 sm:$0xff]  }
0x1a86   : > { %4441 = vmatprep.subr.bf16.mxu1 %v9404_v26  ;;  %10452 = vst [vmem:[#allocation16_spill] sm:$0xff] %v9422_v46  ;;  %v9428_v26 = vld [vmem:[%s9735_s7 + $0x154] ss:$12 sps:$4 sm:$0xff]  }
0x1a87   : > { %10453 = vst [vmem:[#allocation17_spill] sm:$0xff] %v9428_v26 }
0x1a89   : > { %4442 = vmatpush1.bf16.msra.mxu1 %v9410_v60  ;;  %v9434_v60 = vld [vmem:[%s9735_s7 + $0x150] ss:$12 sps:$4 sm:$0xff]  }
0x1a8a   : > { %4443 = vmatprep.subr.bf16.mxu1 %v9416_v14  ;;  %10454 = vst [vmem:[#allocation69_spill] sm:$0xff] %v9434_v60  ;;  %v9440_v14 = vld [vmem:[%s9735_s7 + $0x16c] ss:$12 sps:$4 sm:$0xff]  }
0x1a8b   : > { %10455 = vst [vmem:[#allocation70_spill] sm:$0xff] %v9440_v14 }
0x1a8d   : > { %4444 = vmatpush1.bf16.msra.mxu1 %v9422_v46  ;;  %v9446_v46 = vld [vmem:[%s9735_s7 + $0x168] ss:$12 sps:$4 sm:$0xff]  }
0x1a8e   : > { %4445 = vmatprep.subr.bf16.mxu1 %v9428_v26  ;;  %10456 = vst [vmem:[#allocation71_spill] sm:$0xff] %v9446_v46  ;;  %v10457_v26 = vld [vmem:[#allocation10_spill] sm:$0xff] }
0x1a91   : > { %4446 = vmatpush1.bf16.msra.mxu1 %v9434_v60  ;;  %v10458_v60 = vld [vmem:[#allocation5_spill] sm:$0xff] }
0x1a92   : > { %4447 = vmatprep.subr.bf16.mxu1 %v9440_v14  ;;  %v4331_v14 = vmul.f32 %v9230_v4, %v7034_v43 }
0x1a95   : > { %4448 = vmatpush1.bf16.msra.mxu1 %v9446_v46  ;;  %v4343_v46 = vmul.f32 %v9230_v4, %v7220_v19 }
0x1a96   : > { %4561 = vmatprep.subr.bf16.mxu1 %v10457_v26 }
0x1b2c   : > { %v9450_v13 = vpop.f32.mrb[84].mxu0 }
0x1b2d   : > { %v4302_v55 = vpop.f32.mrb[85].mxu0 }
0x1b2e   : > { %v9453_v5 = vadd.f32 %v4302_v55, %v10458_v60  ;;  %v4304_v8 = vpop.f32.mrb[86].mxu0  ;;  %v4349_v55 = vmul.f32 %v9230_v4, %v7515_v34 }
0x1b2f   : > { %v4305_v32 = vpop.f32.mrb[87].mxu0  ;;  %v4330_v8 = vpop.xlane.xlu1 %4329 }
0x1b30   : > { %10459 = vst [vmem:[#allocation72_spill] sm:$0xff] %v9453_v5  ;;  %4307 = vmax.xlane.f32.xlu0 %v9453_v5 }
0x1b33   : > { %v4336_v60 = vpop.xlane.xlu1 %4335 }
0x1b34   : > { %4332 = vadd.xlane.f32.xlu0 %v4331_v14  ;;  %v10461_v14 = vld [vmem:[#allocation4_spill] sm:$0xff] }
0x1b37   : > { %v4342_v11 = vpop.xlane.xlu1 %4341 }
0x1b38   : > { %4338 = vadd.xlane.f32.xlu0 %v4337_v63 }
0x1b3c   : > { %4344 = vadd.xlane.f32.xlu0 %v4343_v46 }
0x1b40   : > { %4350 = vadd.xlane.f32.xlu0 %v4349_v55  ;;  %v4348_v55 = vpop.xlane.xlu1 %4347 }
0x1bbd   : > { %v9464_v32 = vpop.xlane.xlu0 %4307 }
0x1bbe   : > { %10460 = vst [vmem:[#allocation73_spill] sm:$0xff] %v9464_v32  ;;  %vm4317_vm7 = vcmp.ge.f32.partialorder %v9453_v5, %v9464_v32 }
0x1bbf   : > { %v4318_v26 = vsel %vm4317_vm7, %v10461_v14, 128.0 }
0x1bc0   : > { %4319 = vmin.xlane.f32.xlu1 %v4318_v26 }
0x1bc1   : > { %v4333_v49 = vpop.xlane.xlu0 %4332 }
0x1bc2   : > { %v4352_v63 = vmax.f32 %v4330_v8, %v4333_v49 }
0x1bc4   : > { %v4353_v21 = vmax.f32 %v4352_v63, %v4336_v60 }
0x1bc5   : > { %v4339_v42 = vpop.xlane.xlu0 %4338 }
0x1bc6   : > { %v4354_v46 = vmax.f32 %v4353_v21, %v4339_v42 }
0x1bc8   : > { %v4355_v45 = vmax.f32 %v4354_v46, %v4342_v11 }
0x1bc9   : > { %v4345_v61 = vpop.xlane.xlu0 %4344 }
0x1bca   : > { %v4356_v54 = vmax.f32 %v4355_v45, %v4345_v61 }
0x1bcc   : > { %v4357_v9 = vmax.f32 %v4356_v54, %v4348_v55 }
0x1bcd   : > { %v4351_v35 = vpop.xlane.xlu0 %4350 }
0x1bce   : > { %v4358_v33 = vmax.f32 %v4357_v9, %v4351_v35 }
0x1bd0   : > { %v4359_v0 = vsub.f32 %v4330_v8, %v4358_v33  ;;  %v4362_v57 = vsub.f32 %v4333_v49, %v4358_v33  ;;  %v4365_v5 = vsub.f32 %v4336_v60, %v4358_v33  ;;  %v4368_v32 = vsub.f32 %v4339_v42, %v4358_v33 }
0x1bd1   : > { %v4371_v17 = vsub.f32 %v4342_v11, %v4358_v33  ;;  %v4374_v44 = vsub.f32 %v4345_v61, %v4358_v33  ;;  %v4377_v46 = vsub.f32 %v4348_v55, %v4358_v33  ;;  %v4380_v54 = vsub.f32 %v4351_v35, %v4358_v33 }
0x1bd2   : > { %v4360_v6 = vmul.f32 1.442695, %v4359_v0  ;;  %v4363_v14 = vmul.f32 1.442695, %v4362_v57  ;;  %v4366_v26 = vmul.f32 1.442695, %v4365_v5 }
0x1bd3   : > { %v4369_v63 = vmul.f32 1.442695, %v4368_v32  ;;  %v4372_v21 = vmul.f32 1.442695, %v4371_v17  ;;  %v4375_v45 = vmul.f32 1.442695, %v4374_v44 }
0x1bd4   : > { %6203 = vpow2.f32 %v4360_v6  ;;  %v4378_v9 = vmul.f32 1.442695, %v4377_v46  ;;  %v4381_v49 = vmul.f32 1.442695, %v4380_v54 }
0x1bd5   : > { %6205 = vpow2.f32 %v4363_v14 }
0x1bd6   : > { %6207 = vpow2.f32 %v4366_v26 }
0x1bd7   : > { %6209 = vpow2.f32 %v4369_v63 }
0x1bd8   : > { %6211 = vpow2.f32 %v4372_v21 }
0x1bd9   : > { %6213 = vpow2.f32 %v4375_v45 }
0x1bda   : > { %6215 = vpow2.f32 %v4378_v9 }
0x1bdb   : > { %6217 = vpow2.f32 %v4381_v49 }
0x1bde   : > { %v6204_v60 = vpop.eup %6203 }
0x1bdf   : > { %v6206_v42 = vpop.eup %6205 }
0x1be0   : > { %v4383_v0 = vadd.f32 %v6206_v42, %v6204_v60  ;;  %v6208_v5 = vpop.eup %6207 }
0x1be1   : > { %v6210_v6 = vpop.eup %6209 }
0x1be2   : > { %v4384_v11 = vadd.f32 %v6208_v5, %v4383_v0  ;;  %v6212_v61 = vpop.eup %6211 }
0x1be3   : > { %v6214_v17 = vpop.eup %6213 }
0x1be4   : > { %v4385_v57 = vadd.f32 %v6210_v6, %v4384_v11  ;;  %v6216_v14 = vpop.eup %6215 }
0x1be5   : > { %v6218_v33 = vpop.eup %6217 }
0x1be6   : > { %v4386_v8 = vadd.f32 %v6212_v61, %v4385_v57 }
0x1be8   : > { %v4387_v32 = vadd.f32 %v6214_v17, %v4386_v8 }
0x1bea   : > { %v4388_v44 = vadd.f32 %v6216_v14, %v4387_v32 }
0x1bec   : > { %v4389_v35 = vadd.f32 %v6218_v33, %v4388_v44 }
0x1bee   : > { %6219 = vrcp.f32 %v4389_v35 }
0x1bf8   : > { %v6220_v55 = vpop.eup %6219 }
0x1bf9   : > { %v4392_v26 = vmul.f32 %v6220_v55, %v6204_v60  ;;  %v4394_v63 = vmul.f32 %v6220_v55, %v6206_v42  ;;  %v4397_v21 = vmul.f32 %v6220_v55, %v6208_v5  ;;  %v4400_v54 = vmul.f32 %v6220_v55, %v6210_v6 }
0x1bfa   : > { %v4403_v0 = vmul.f32 %v6220_v55, %v6212_v61  ;;  %v4406_v8 = vmul.f32 %v6220_v55, %v6214_v17  ;;  %v4409_v35 = vmul.f32 %v6220_v55, %v6216_v14  ;;  %v4412_v5 = vmul.f32 %v6220_v55, %v6218_v33  ;;  %v10478_v55 = vld [vmem:[#allocation28_spill] sm:$0xff] }
0x1bfb   : > { %v4393_v46 = vmul.f32 %v4392_v26, %v10133_v41  ;;  %v4395_v45 = vmul.f32 %v4394_v63, %v7034_v43  ;;  %v4398_v49 = vmul.f32 %v4397_v21, %v7080_v50  ;;  %v4401_v57 = vmul.f32 %v4400_v54, %v7126_v37 }
0x1bfc   : > { %v4404_v44 = vmul.f32 %v4403_v0, %v7172_v51  ;;  %v4407_v42 = vmul.f32 %v4406_v8, %v7220_v19  ;;  %v4410_v63 = vmul.f32 %v4409_v35, %v7310_v18  ;;  %v10479_v0 = vld [vmem:[#allocation37_spill] sm:$0xff] }
0x1bfd   : > { %v4396_v9 = vadd.f32 %v4395_v45, %v4393_v46  ;;  %v4413_v46 = vmul.f32 %v4412_v5, %v7515_v34 }
0x1bff   : > { %v4399_v11 = vadd.f32 %v4398_v49, %v4396_v9 }
0x1c01   : > { %v4402_v32 = vadd.f32 %v4401_v57, %v4399_v11 }
0x1c03   : > { %v4405_v60 = vadd.f32 %v4404_v44, %v4402_v32 }
0x1c05   : > { %v4408_v26 = vadd.f32 %v4407_v42, %v4405_v60 }
0x1c07   : > { %v4411_v6 = vadd.f32 %v4410_v63, %v4408_v26 }
0x1c09   : > { %v4414_v21 = vadd.f32 %v4413_v46, %v4411_v6 }
0x1c0b   : > { %v4416_v61 = vpack.c.bf16 %v4414_v21, %v4414_v21 }
0x1c0d   : > { %4449 = vmatprep.mubr.bf16.mxu1 %v4416_v61  ;;  %4490 = vmatprep.mubr.bf16.mxu0 %v4416_v61 }
0x1c4d   : > { %v4320_v45 = vpop.xlane.xlu1 %4319 }
0x1c4e   : > { %v4321_v17 = vmin.f32 %v4320_v45, 127.0  ;;  %v4301_v45 = vadd.f32 %v9450_v13, %v7900_v23 }
0x1c50   : > { %v5728_v54 = vtrunc.f32 %v4321_v17 }
0x1c52   : > { %v5729_v14 = vcvt.f32.s32 %v5728_v54 }
0x1c54   : > { %vm4323_vm9 = vcmp.eq.s32.totalorder %v7832_v2, %v5729_v14  ;;  %v9480_v33 = vsel %vm4326_vm8, %v5729_v14, %v9176_v20  ;;  %v10471_v20 = vld [vmem:[#allocation32_spill] sm:$0xff] }
0x1c55   : > { %vm5179_vm10 = vmpackc.low %vm4323_vm9, %vm4323_vm9 }
0x1c56   : > { %5180 = vmatmul.mubr.msk.bf16.vlgmr.msra.gmra.mrb[84].mxu1 %vm5179_vm10, %v10187_v31  ;;  %5182 = vmatmul.mubr.msk.bf16.vlgmr.msra.gmra.mrb[88].mxu0 %vm5179_vm10, %v10187_v31 }
0x1c57   : > { %4521 = vmatpush1.bf16.msra.mxu0 %v8819_v52  ;;  %4562 = vmatpush1.bf16.msra.mxu1 %v8825_v1  ;;  %v10462_v52 = vld [vmem:[#allocation48_spill] sm:$0xff]  ;;  %v10463_v1 = vld [vmem:[#allocation49_spill] sm:$0xff] }
0x1c58   : > { %4522 = vmatprep.subr.bf16.mxu0 %v8831_v25  ;;  %4563 = vmatprep.subr.bf16.mxu1 %v8837_v56  ;;  %v10464_v25 = vld [vmem:[#allocation18_spill] sm:$0xff]  ;;  %v10465_v56 = vld [vmem:[#allocation19_spill] sm:$0xff] }
0x1c59   : > { %4552 = vmatprep.mubr.bf16.mxu0 %v10069_v53  ;;  %4593 = vmatprep.mubr.bf16.mxu1 %v10069_v53 }
0x1c5b   : > { %4523 = vmatpush1.bf16.msra.mxu0 %v8845_v22  ;;  %4564 = vmatpush1.bf16.msra.mxu1 %v8851_v36  ;;  %v10466_v22 = vld [vmem:[#allocation50_spill] sm:$0xff]  ;;  %v10467_v36 = vld [vmem:[#allocation51_spill] sm:$0xff] }
0x1c5c   : > { %4524 = vmatprep.subr.bf16.mxu0 %v8857_v12  ;;  %4565 = vmatprep.subr.bf16.mxu1 %v8863_v29  ;;  %v10468_v12 = vld [vmem:[#allocation20_spill] sm:$0xff]  ;;  %v10469_v29 = vld [vmem:[#allocation21_spill] sm:$0xff] }
0x1c5f   : > { %4525 = vmatpush1.bf16.msra.mxu0 %v8869_v27  ;;  %4566 = vmatpush1.bf16.msra.mxu1 %v10408_v59  ;;  %v10470_v27 = vld [vmem:[#allocation52_spill] sm:$0xff]  ;;  %v10472_v59 = vld [vmem:[#allocation33_spill] sm:$0xff] }
0x1c60   : > { %4526 = vmatprep.subr.bf16.mxu0 %v10409_v62  ;;  %4567 = vmatprep.subr.bf16.mxu1 %v10410_v40  ;;  %v10473_v62 = vld [vmem:[#allocation34_spill] sm:$0xff]  ;;  %v10474_v40 = vld [vmem:[#allocation35_spill] sm:$0xff] }
0x1c63   : > { %4527 = vmatpush1.bf16.msra.mxu0 %v10411_v39  ;;  %4568 = vmatpush1.bf16.msra.mxu1 %v10412_v38  ;;  %v10475_v39 = vld [vmem:[#allocation53_spill] sm:$0xff]  ;;  %v10476_v38 = vld [vmem:[#allocation22_spill] sm:$0xff] }
0x1c64   : > { %4528 = vmatprep.subr.bf16.mxu0 %v10413_v16  ;;  %4569 = vmatprep.subr.bf16.mxu1 %v10462_v52  ;;  %v10477_v16 = vld [vmem:[#allocation27_spill] sm:$0xff] }
0x1c67   : > { %4529 = vmatpush1.bf16.msra.mxu0 %v10463_v1  ;;  %4570 = vmatpush1.bf16.msra.mxu1 %v10464_v25 }
0x1c68   : > { %4530 = vmatprep.subr.bf16.mxu0 %v10465_v56  ;;  %4571 = vmatprep.subr.bf16.mxu1 %v10466_v22 }
0x1c6b   : > { %4531 = vmatpush1.bf16.msra.mxu0 %v10467_v36  ;;  %4572 = vmatpush1.bf16.msra.mxu1 %v10468_v12 }
0x1c6c   : > { %4532 = vmatprep.subr.bf16.mxu0 %v10469_v29  ;;  %4573 = vmatprep.subr.bf16.mxu1 %v10470_v27 }
0x1c6f   : > { %4533 = vmatpush1.bf16.msra.mxu0 %v10471_v20  ;;  %4574 = vmatpush1.bf16.msra.mxu1 %v10472_v59  ;;  %v10484_v20 = vld [vmem:[#allocation39_spill] sm:$0xff]  ;;  %v10488_v59 = vld [vmem:[#allocation54_spill] sm:$0xff] }
0x1c70   : > { %4534 = vmatprep.subr.bf16.mxu0 %v10473_v62  ;;  %4575 = vmatprep.subr.bf16.mxu1 %v10474_v40  ;;  %v10489_v62 = vld [vmem:[#allocation42_spill] sm:$0xff]  ;;  %v10490_v40 = vld [vmem:[#allocation57_spill] sm:$0xff] }
0x1c73   : > { %4535 = vmatpush1.bf16.msra.mxu0 %v10475_v39  ;;  %4576 = vmatpush1.bf16.msra.mxu1 %v10476_v38  ;;  %v10491_v39 = vld [vmem:[#allocation58_spill] sm:$0xff]  ;;  %v10492_v38 = vld [vmem:[#allocation44_spill] sm:$0xff] }
0x1c74   : > { %4712 = vmatprep.subr.bf16.mxu0 %v10477_v16  ;;  %5438 = vmatprep.subr.bf16.mxu1 %v10478_v55  ;;  %v10493_v16 = vld [vmem:[#allocation55_spill] sm:$0xff] }
0x1c75   : > { %v10494_v55 = vld [vmem:[#allocation59_spill] sm:$0xff] }
0x1d29   : > { %v4451_v9 = vpop.f32.mrb[84].mxu1  ;;  %v5432_v49 = vpop.f32.mrb[88].mxu0 }
0x1d2a   : > { %v5679_v11 = vadd.f32 %v10479_v0, %v4451_v9  ;;  %v4453_v57 = vpop.f32.mrb[85].mxu1  ;;  %v5433_v8 = vpop.f32.mrb[89].mxu0  ;;  %v10495_v9 = vld [vmem:[#allocation60_spill] sm:$0xff] }
0x1d2b   : > { %v5434_v32 = vadd.f32 %v5433_v8, %v5432_v49  ;;  %v4455_v44 = vpop.f32.mrb[86].mxu1  ;;  %v5435_v35 = vpop.f32.mrb[90].mxu0  ;;  %v5681_v26 = vadd.f32 %v7894_v47, %v4453_v57  ;;  %v10496_v49 = vld [vmem:[#allocation24_spill] sm:$0xff]  ;;  %v10498_v57 = vld [vmem:[#allocation61_spill] sm:$0xff]  ;;  %v10499_v8 = vld [vmem:[#allocation62_spill] sm:$0xff] }
0x1d2c   : > { %v5183_v60 = vmul.f32 -1.442695, %v5679_v11  ;;  %v4456_v42 = vpop.f32.mrb[87].mxu1  ;;  %v5436_v5 = vpop.f32.mrb[91].mxu0  ;;  %v10497_v11 = vld [vmem:[#allocation45_spill] sm:$0xff]  ;;  %v10502_v35 = vld [vmem:[#allocation63_spill] sm:$0xff] }
0x1d2d   : > { %v5184_v63 = vmul.f32 -1.442695, %v5681_v26  ;;  %v4493_v54 = vadd.f32 %v5434_v32, %v7903_v24  ;;  %v10500_v32 = vld [vmem:[#allocation11_spill] sm:$0xff]  ;;  %v10501_v44 = vld [vmem:[#allocation25_spill] sm:$0xff]  ;;  %v10504_v42 = vld [vmem:[#allocation56_spill] sm:$0xff] }
0x1d2e   : > { %6221 = vpow2.f32 %v5183_v60  ;;  %v10503_v60 = vld [vmem:[#allocation10_spill] sm:$0xff]  ;;  %v10505_v5 = vld [vmem:[#allocation12_spill] sm:$0xff] }
0x1d2f   : > { %6223 = vpow2.f32 %v5184_v63  ;;  %v10506_v26 = vld [vmem:[#allocation38_spill] sm:$0xff]  ;;  %v10507_v63 = vld [vmem:[#allocation64_spill] sm:$0xff] }
0x1d38   : > { %v6222_v6 = vpop.eup %6221 }
0x1d39   : > { %v4502_v46 = vadd.f32 1.0, %v6222_v6  ;;  %v6224_v21 = vpop.eup %6223  ;;  %v10508_v6 = vld [vmem:[#allocation65_spill] sm:$0xff] }
0x1d3a   : > { %v4509_v61 = vadd.f32 1.0, %v6224_v21  ;;  %v10510_v21 = vld [vmem:[#allocation14_spill] sm:$0xff] }
0x1d3b   : > { %6225 = vrcp.f32 %v4502_v46  ;;  %v10509_v46 = vld [vmem:[#allocation66_spill] sm:$0xff] }
0x1d3c   : > { %6227 = vrcp.f32 %v4509_v61  ;;  %v10511_v61 = vld [vmem:[#allocation8_spill] sm:$0xff] }
0x1d45   : > { %v6226_v17 = vpop.eup %6225 }
0x1d46   : > { %v4512_v14 = vmul.f32 %v6226_v17, %v4301_v45  ;;  %v6228_v1 = vpop.eup %6227  ;;  %v10512_v45 = vld [vmem:[#allocation46_spill] sm:$0xff]  ;;  %v10513_v17 = vld [vmem:[#allocation47_spill] sm:$0xff] }
0x1d47   : > { %v4515_v25 = vsub.f32 1.0, %v6228_v1  ;;  %v4517_v22 = vmul.f32 %v6228_v1, %v9230_v4  ;;  %v10517_v1 = vld [vmem:[#allocation70_spill] sm:$0xff] }
0x1d48   : > { %v4513_v52 = vadd.f32 %v4512_v14, %v4493_v54  ;;  %v10514_v54 = vld [vmem:[#allocation16_spill] sm:$0xff]  ;;  %v10515_v14 = vld [vmem:[#allocation17_spill] sm:$0xff] }
0x1d4a   : > { %6229 = vtanh.f32 %v4513_v52  ;;  %v10516_v52 = vld [vmem:[#allocation69_spill] sm:$0xff] }
0x1d54   : > { %v6230_v56 = vpop.eup %6229 }
0x1d55   : > { %v4516_v36 = vmul.f32 %v6230_v56, %v4515_v25  ;;  %v10518_v25 = vld [vmem:[#allocation71_spill] sm:$0xff] }
0x1d57   : > { %v9524_v12 = vadd.f32 %v4517_v22, %v4516_v36  ;;  %v10519_v36 = vld [vmem:[#allocation5_spill] sm:$0xff] }
0x1d59   : > { %v4623_v29 = vmul.f32 %v9524_v12, %v10133_v41  ;;  %v4519_v13 = vpack.c.bf16 %v9524_v12, %v9524_v12  ;;  %v4629_v27 = vmul.f32 %v9524_v12, %v7080_v50  ;;  %v4635_v4 = vmul.f32 %v9524_v12, %v7172_v51 }
0x1d5b   : > { %4624 = vadd.xlane.f32.xlu1 %v4623_v29  ;;  %4553 = vmatmul.mubr.bf16.vlgmr.msra.gmra.mrb[92].mxu0 %v4519_v13 }
0x1d5c   : > { %4594 = vmatmul.mubr.bf16.vlgmr.msra.gmra.mrb[88].mxu1 %v4519_v13  ;;  %4713 = vmatpush1.bf16.msra.mxu0 %v9239_v3  ;;  %v10480_v3 = vld [vmem:[#allocation36_spill] sm:$0xff] }
0x1d5d   : > { %4714 = vmatprep.subr.bf16.mxu0 %v9247_v15  ;;  %5439 = vmatpush3.bf16.msra.mxu1 %v9253_v28  ;;  %v4641_v15 = vmul.f32 %v9524_v12, %v7310_v18  ;;  %v10481_v28 = vld [vmem:[#allocation29_spill] sm:$0xff] }
0x1d5e   : > { %5440 = vmatprep.subr.bf16.mxu1 %v9259_v7  ;;  %v10482_v7 = vld [vmem:[#allocation30_spill] sm:$0xff] }
0x1d5f   : > { %4630 = vadd.xlane.f32.xlu1 %v4629_v27 }
0x1d60   : > { %4715 = vmatpush1.bf16.msra.mxu0 %v9265_v30  ;;  %v10483_v30 = vld [vmem:[#allocation9_spill] sm:$0xff] }
0x1d61   : > { %4716 = vmatprep.subr.bf16.mxu0 %v9273_v48  ;;  %5441 = vmatpush3.bf16.msra.mxu1 %v9279_v10  ;;  %v10485_v48 = vld [vmem:[#allocation23_spill] sm:$0xff] }
0x1d62   : > { %5442 = vmatprep.subr.bf16.mxu1 %v9285_v58  ;;  %v10486_v10 = vld [vmem:[#allocation7_spill] sm:$0xff]  ;;  %v10487_v58 = vld [vmem:[#allocation13_spill] sm:$0xff] }
0x1d63   : > { %4636 = vadd.xlane.f32.xlu1 %v4635_v4  ;;  %v4626_v4 = vmul.f32 %v9524_v12, %v7034_v43 }
0x1d64   : > { %4717 = vmatpush1.bf16.msra.mxu0 %v10480_v3  ;;  %v4632_v3 = vmul.f32 %v9524_v12, %v7126_v37 }
0x1d65   : > { %4718 = vmatprep.subr.bf16.mxu0 %v10481_v28  ;;  %5443 = vmatpush3.bf16.msra.mxu1 %v10482_v7  ;;  %v4644_v28 = vmul.f32 %v9524_v12, %v7515_v34  ;;  %v10520_v7 = vld [vmem:[#allocation15_spill] sm:$0xff] }
0x1d66   : > { %5444 = vmatprep.subr.bf16.mxu1 %v10483_v30  ;;  %v10521_v30 = vld [vmem:[#allocation6_spill] sm:$0xff] }
0x1d67   : > { %4642 = vadd.xlane.f32.xlu1 %v4641_v15  ;;  %v4638_v15 = vmul.f32 %v9524_v12, %v7220_v19 }
0x1d68   : > { %4719 = vmatpush1.bf16.msra.mxu0 %v10484_v20  ;;  %v9596_v20 = vsub.f32 %v10521_v30, %v10520_v7 }
0x1d69   : > { %4720 = vmatprep.subr.bf16.mxu0 %v10485_v48  ;;  %5445 = vmatpush3.bf16.msra.mxu1 %v10486_v10  ;;  %v10522_v10 = vld [vmem:[#allocation68_spill] sm:$0xff] }
0x1d6a   : > { %5446 = vmatprep.subr.bf16.mxu1 %v10487_v58  ;;  %v2836_v48 = vmul.f32 1.442695, %v9596_v20  ;;  %v10523_v58 = vld [vmem:[#allocation67_spill] sm:$0xff] }
0x1d6c   : > { %4721 = vmatpush1.bf16.msra.mxu0 %v10488_v59  ;;  %v9601_v59 = vsub.f32 %v10523_v58, %v10522_v10  ;;  %6231 = vpow2.f32 %v2836_v48 }
0x1d6d   : > { %4722 = vmatprep.subr.bf16.mxu0 %v10489_v62  ;;  %5447 = vmatpush3.bf16.msra.mxu1 %v10490_v40  ;;  %v10524_v40 = vld [vmem:[#allocation40_spill] sm:$0xff] }
0x1d6e   : > { %5448 = vmatprep.subr.bf16.mxu1 %v10491_v39  ;;  %v3425_v62 = vmul.f32 1.442695, %v9601_v59  ;;  %v10525_v39 = vld [vmem:[#allocation26_spill] sm:$0xff] }
0x1d70   : > { %4723 = vmatpush1.bf16.msra.mxu0 %v10492_v38  ;;  %v9606_v38 = vsub.f32 %v10525_v39, %v10524_v40  ;;  %6233 = vpow2.f32 %v3425_v62 }
0x1d71   : > { %4724 = vmatprep.subr.bf16.mxu0 %v10493_v16  ;;  %5449 = vmatpush3.bf16.msra.mxu1 %v10494_v55 }
0x1d72   : > { %5450 = vmatprep.subr.bf16.mxu1 %v10495_v9  ;;  %v4015_v55 = vmul.f32 1.442695, %v9606_v38 }
0x1d74   : > { %4725 = vmatpush1.bf16.msra.mxu0 %v10496_v49  ;;  %6235 = vpow2.f32 %v4015_v55 }
0x1d75   : > { %4726 = vmatprep.subr.bf16.mxu0 %v10497_v11  ;;  %5451 = vmatpush3.bf16.msra.mxu1 %v10498_v57  ;;  %v10526_v57 = vld [vmem:[#allocation4_spill] sm:$0xff] }
0x1d76   : > { %5452 = vmatprep.subr.bf16.mxu1 %v10499_v8 }
0x1d78   : > { %4727 = vmatpush1.bf16.msra.mxu0 %v10500_v32 }
0x1d79   : > { %4728 = vmatprep.subr.bf16.mxu0 %v10501_v44  ;;  %5453 = vmatpush3.bf16.msra.mxu1 %v10502_v35 }
0x1d7a   : > { %4815 = vmatprep.subr.bf16.mxu1 %v10503_v60  ;;  %v6232_v60 = vpop.eup %6231 }
0x1d7c   : > { %4729 = vmatpush1.bf16.msra.mxu0 %v10504_v42 }
0x1d7d   : > { %4730 = vmatprep.subr.bf16.mxu0 %v10505_v5 }
0x1d80   : > { %4731 = vmatpush1.bf16.msra.mxu0 %v10506_v26 }
0x1d81   : > { %4732 = vmatprep.subr.bf16.mxu0 %v10507_v63 }
0x1d84   : > { %4733 = vmatpush1.bf16.msra.mxu0 %v10508_v6  ;;  %v6234_v6 = vpop.eup %6233 }
0x1d85   : > { %4734 = vmatprep.subr.bf16.mxu0 %v10509_v46 }
0x1d88   : > { %4735 = vmatpush1.bf16.msra.mxu0 %v10510_v21 }
0x1d89   : > { %4736 = vmatprep.subr.bf16.mxu0 %v10511_v61 }
0x1d8c   : > { %4737 = vmatpush1.bf16.msra.mxu0 %v10512_v45  ;;  %v6236_v45 = vpop.eup %6235 }
0x1d8d   : > { %4738 = vmatprep.subr.bf16.mxu0 %v10513_v17 }
0x1d90   : > { %4739 = vmatpush1.bf16.msra.mxu0 %v10514_v54 }
0x1d91   : > { %4740 = vmatprep.subr.bf16.mxu0 %v10515_v14 }
0x1d94   : > { %4741 = vmatpush1.bf16.msra.mxu0 %v10516_v52 }
0x1d95   : > { %4742 = vmatprep.subr.bf16.mxu0 %v10517_v1 }
0x1d98   : > { %4743 = vmatpush1.bf16.msra.mxu0 %v10518_v25 }
0x1de8   : > { %v4625_v16 = vpop.xlane.xlu1 %4624 }
0x1dec   : > { %v4631_v11 = vpop.xlane.xlu1 %4630 }
0x1df0   : > { %v4637_v5 = vpop.xlane.xlu1 %4636 }
0x1df4   : > { %v4643_v17 = vpop.xlane.xlu1 %4642 }
0x1e2f   : > { %v9583_v56 = vpop.f32.mrb[88].mxu1 }
0x1e30   : > { %v4597_v22 = vpop.f32.mrb[89].mxu1 }
0x1e31   : > { %v4598_v29 = vadd.f32 %v4597_v22, %v10519_v36  ;;  %v4599_v13 = vpop.f32.mrb[90].mxu1 }
0x1e32   : > { %v4600_v27 = vpop.f32.mrb[91].mxu1 }
0x1e33   : > { %4602 = vmax.xlane.f32.xlu0 %v4598_v29 }
0x1e37   : > { %4627 = vadd.xlane.f32.xlu0 %v4626_v4 }
0x1e3b   : > { %4633 = vadd.xlane.f32.xlu0 %v4632_v3 }
0x1e3f   : > { %4639 = vadd.xlane.f32.xlu0 %v4638_v15 }
0x1e43   : > { %4645 = vadd.xlane.f32.xlu0 %v4644_v28 }
0x1ec0   : > { %v4603_v9 = vpop.xlane.xlu0 %4602 }
0x1ec1   : > { %v9609_v49 = vsub.f32 %v4598_v29, %v4603_v9  ;;  %vm4612_vm11 = vcmp.ge.f32.partialorder %v4598_v29, %v4603_v9 }
0x1ec2   : > { %v4613_v8 = vsel %vm4612_vm11, %v10526_v57, 128.0 }
0x1ec3   : > { %4614 = vmin.xlane.f32.xlu1 %v4613_v8  ;;  %v4605_v32 = vmul.f32 1.442695, %v9609_v49 }
0x1ec4   : > { %v4628_v44 = vpop.xlane.xlu0 %4627 }
0x1ec5   : > { %v4647_v35 = vmax.f32 %v4625_v16, %v4628_v44  ;;  %6237 = vpow2.f32 %v4605_v32 }
0x1ec7   : > { %2838 = vadd.xlane.f32.xlu1 %v6232_v60  ;;  %v4648_v42 = vmax.f32 %v4647_v35, %v4631_v11 }
0x1ec8   : > { %v4634_v26 = vpop.xlane.xlu0 %4633 }
0x1ec9   : > { %v4649_v63 = vmax.f32 %v4648_v42, %v4634_v26 }
0x1ecb   : > { %3427 = vadd.xlane.f32.xlu1 %v6234_v6  ;;  %v4650_v46 = vmax.f32 %v4649_v63, %v4637_v5 }
0x1ecc   : > { %v4640_v21 = vpop.xlane.xlu0 %4639 }
0x1ecd   : > { %v4651_v61 = vmax.f32 %v4650_v46, %v4640_v21 }
0x1ecf   : > { %4017 = vadd.xlane.f32.xlu1 %v6236_v45  ;;  %v4652_v54 = vmax.f32 %v4651_v61, %v4643_v17  ;;  %v6238_v1 = vpop.eup %6237 }
0x1ed0   : > { %v4646_v14 = vpop.xlane.xlu0 %4645 }
0x1ed1   : > { %v4653_v52 = vmax.f32 %v4652_v54, %v4646_v14 }
0x1ed3   : > { %v4654_v25 = vsub.f32 %v4625_v16, %v4653_v52  ;;  %v4657_v22 = vsub.f32 %v4628_v44, %v4653_v52  ;;  %v4660_v29 = vsub.f32 %v4631_v11, %v4653_v52  ;;  %4607 = vadd.xlane.f32.xlu1 %v6238_v1  ;;  %v4663_v13 = vsub.f32 %v4634_v26, %v4653_v52 }
0x1ed4   : > { %v4666_v15 = vsub.f32 %v4637_v5, %v4653_v52  ;;  %v4669_v7 = vsub.f32 %v4640_v21, %v4653_v52  ;;  %v4672_v48 = vsub.f32 %v4643_v17, %v4653_v52  ;;  %v4675_v58 = vsub.f32 %v4646_v14, %v4653_v52 }
0x1ed5   : > { %v4655_v27 = vmul.f32 1.442695, %v4654_v25  ;;  %v4658_v4 = vmul.f32 1.442695, %v4657_v22  ;;  %v4661_v3 = vmul.f32 1.442695, %v4660_v29 }
0x1ed6   : > { %v4664_v28 = vmul.f32 1.442695, %v4663_v13  ;;  %v4667_v30 = vmul.f32 1.442695, %v4666_v15  ;;  %v4670_v10 = vmul.f32 1.442695, %v4669_v7 }
0x1ed7   : > { %6239 = vpow2.f32 %v4655_v27  ;;  %v4673_v62 = vmul.f32 1.442695, %v4672_v48  ;;  %v4676_v40 = vmul.f32 1.442695, %v4675_v58 }
0x1ed8   : > { %6241 = vpow2.f32 %v4658_v4 }
0x1ed9   : > { %6243 = vpow2.f32 %v4661_v3 }
0x1eda   : > { %6245 = vpow2.f32 %v4664_v28 }
0x1edb   : > { %6247 = vpow2.f32 %v4667_v30 }
0x1edc   : > { %6249 = vpow2.f32 %v4670_v10 }
0x1edd   : > { %6251 = vpow2.f32 %v4673_v62 }
0x1ede   : > { %6253 = vpow2.f32 %v4676_v40  ;;  %v6475_v40 = vld [vmem:[%s9737_s9 + $0x8] ss:$16 sps:$4 sm:$0xff]  }
0x1ee1   : > { %v6240_v39 = vpop.eup %6239 }
0x1ee2   : > { %v6242_v16 = vpop.eup %6241 }
0x1ee3   : > { %v4678_v55 = vadd.f32 %v6242_v16, %v6240_v39  ;;  %v6244_v9 = vpop.eup %6243 }
0x1ee4   : > { %v6246_v8 = vpop.eup %6245 }
0x1ee5   : > { %v4679_v11 = vadd.f32 %v6244_v9, %v4678_v55  ;;  %v6248_v44 = vpop.eup %6247  ;;  %v6478_v55 = vld [vmem:[%s9737_s9 + $0x4c] ss:$16 sps:$4 sm:$0xff]  }
0x1ee6   : > { %v6250_v60 = vpop.eup %6249 }
0x1ee7   : > { %v4680_v32 = vadd.f32 %v6246_v8, %v4679_v11  ;;  %v6252_v5 = vpop.eup %6251 }
0x1ee8   : > { %v6254_v63 = vpop.eup %6253 }
0x1ee9   : > { %v4681_v35 = vadd.f32 %v6248_v44, %v4680_v32 }
0x1eeb   : > { %v4682_v42 = vadd.f32 %v6250_v60, %v4681_v35 }
0x1eed   : > { %v4683_v26 = vadd.f32 %v6252_v5, %v4682_v42 }
0x1eef   : > { %v4684_v6 = vadd.f32 %v6254_v63, %v4683_v26 }
0x1ef1   : > { %6255 = vrcp.f32 %v4684_v6 }
0x1efb   : > { %v6256_v46 = vpop.eup %6255 }
0x1efc   : > { %v4687_v21 = vmul.f32 %v6256_v46, %v6240_v39  ;;  %v4689_v61 = vmul.f32 %v6256_v46, %v6242_v16  ;;  %v4692_v45 = vmul.f32 %v6256_v46, %v6244_v9  ;;  %v4695_v14 = vmul.f32 %v6256_v46, %v6246_v8  ;;  %v6479_v8 = vld [vmem:[%s9737_s9 + $0x48] ss:$16 sps:$4 sm:$0xff]  }
0x1efd   : > { %v4698_v25 = vmul.f32 %v6256_v46, %v6248_v44  ;;  %v4701_v13 = vmul.f32 %v6256_v46, %v6250_v60  ;;  %v4704_v3 = vmul.f32 %v6256_v46, %v6252_v5  ;;  %v4707_v7 = vmul.f32 %v6256_v46, %v6254_v63  ;;  %v6480_v44 = vld [vmem:[%s9737_s9 + $0x6c] ss:$16 sps:$4 sm:$0xff]  }
0x1efe   : > { %v4688_v17 = vmul.f32 %v4687_v21, %v10133_v41  ;;  %v4690_v54 = vmul.f32 %v4689_v61, %v7034_v43  ;;  %v4693_v1 = vmul.f32 %v4692_v45, %v7080_v50  ;;  %v4696_v29 = vmul.f32 %v4695_v14, %v7126_v37  ;;  %v6482_v5 = vld [vmem:[%s9737_s9 + $0x8c] ss:$16 sps:$4 sm:$0xff]   ;;  %v6485_v45 = vld [vmem:[%s9737_s9 + $0xa8] ss:$16 sps:$4 sm:$0xff]  }
0x1eff   : > { %v4699_v4 = vmul.f32 %v4698_v25, %v7172_v51  ;;  %v4702_v28 = vmul.f32 %v4701_v13, %v7220_v19  ;;  %v4705_v43 = vmul.f32 %v4704_v3, %v7310_v18  ;;  %v4708_v50 = vmul.f32 %v4707_v7, %v7515_v34  ;;  %v6484_v46 = vld [vmem:[%s9737_s9 + $0xac] ss:$16 sps:$4 sm:$0xff]  }
0x1f00   : > { %v4691_v52 = vadd.f32 %v4690_v54, %v4688_v17  ;;  %v6487_v17 = vld [vmem:[%s9737_s9 + $0xc8] ss:$16 sps:$4 sm:$0xff]  }
0x1f01   : > { %v6489_v54 = vld [vmem:[%s9737_s9 + $0xe8] ss:$16 sps:$4 sm:$0xff]  }
0x1f02   : > { %v4694_v22 = vadd.f32 %v4693_v1, %v4691_v52 }
0x1f04   : > { %v4697_v27 = vadd.f32 %v4696_v29, %v4694_v22 }
0x1f06   : > { %v4700_v15 = vadd.f32 %v4699_v4, %v4697_v27 }
0x1f08   : > { %v4703_v41 = vadd.f32 %v4702_v28, %v4700_v15 }
0x1f0a   : > { %v4706_v30 = vadd.f32 %v4705_v43, %v4703_v41 }
0x1f0c   : > { %v4709_v48 = vadd.f32 %v4708_v50, %v4706_v30 }
0x1f0e   : > { %v4711_v10 = vpack.c.bf16 %v4709_v48, %v4709_v48 }
0x1f10   : > { %4744 = vmatprep.mubr.bf16.mxu0 %v4711_v10  ;;  %4785 = vmatprep.mubr.bf16.mxu1 %v4711_v10 }
0x1f50   : > { %v4615_v37 = vpop.xlane.xlu1 %4614 }
0x1f51   : > { %v4616_v58 = vmin.f32 %v4615_v37, 127.0 }
0x1f53   : > { %v5730_v51 = vtrunc.f32 %v4616_v58 }
0x1f54   : > { %v2839_v62 = vpop.xlane.xlu1 %2838 }
0x1f55   : > { %v5731_v19 = vcvt.f32.s32 %v5730_v51  ;;  %6257 = vlog2.f32 %v2839_v62 }
0x1f57   : > { %vm4618_vm13 = vcmp.eq.s32.totalorder %v7832_v2, %v5731_v19  ;;  %v9626_v18 = vsel %vm4621_vm12, %v5731_v19, %v9480_v33  ;;  %v6476_v33 = vld [vmem:[%s9737_s9 + $0x2c] ss:$16 sps:$4 sm:$0xff]  }
0x1f58   : > { %vm5186_vm14 = vmpackc.low %vm4618_vm13, %vm4618_vm13  ;;  %v3428_v34 = vpop.xlane.xlu1 %3427 }
0x1f59   : > { %6259 = vlog2.f32 %v3428_v34  ;;  %5187 = vmatmul.mubr.msk.bf16.vlgmr.msra.gmra.mrb[92].mxu0 %vm5186_vm14, %v10187_v31  ;;  %5189 = vmatmul.mubr.msk.bf16.vlgmr.msra.gmra.mrb[92].mxu1 %vm5186_vm14, %v10187_v31  ;;  %v6477_v31 = vld [vmem:[%s9737_s9 + $0x28] ss:$16 sps:$4 sm:$0xff]  }
0x1f5a   : > { %4816 = vmatpush1.bf16.msra.mxu1 %v6475_v40  ;;  %4847 = vmatprep.mubr.bf16.mxu1 %v10069_v53 }
0x1f5b   : > { %4817 = vmatprep.subr.bf16.mxu1 %v6476_v33 }
0x1f5c   : > { %v4018_v39 = vpop.xlane.xlu1 %4017 }
0x1f5d   : > { %6261 = vlog2.f32 %v4018_v39  ;;  %v10527_v39 = vld [vmem:[#allocation31_spill] sm:$0xff] }
0x1f5e   : > { %4818 = vmatpush1.bf16.msra.mxu1 %v6477_v31  ;;  %v10528_v31 = vld [vmem:[#allocation3_spill] sm:$0xff] }
0x1f5f   : > { %v6258_v16 = vpop.eup %6257  ;;  %4819 = vmatprep.subr.bf16.mxu1 %v6478_v55  ;;  %v10530_v55 = vld [vmem:[#allocation41_spill] sm:$0xff] }
0x1f60   : > { %v2841_v53 = vmul.f32 0.6931472, %v6258_v16  ;;  %v4608_v9 = vpop.xlane.xlu1 %4607  ;;  %v3130_v16 = vsub.f32 %v10528_v31, %v10527_v39 }
0x1f61   : > { %6263 = vlog2.f32 %v4608_v9  ;;  %v10531_v9 = vld [vmem:[#allocation73_spill] sm:$0xff] }
0x1f62   : > { %v2842_v11 = vsub.f32 %v9596_v20, %v2841_v53  ;;  %4820 = vmatpush1.bf16.msra.mxu1 %v6479_v8  ;;  %v6481_v20 = vld [vmem:[%s9737_s9 + $0x68] ss:$16 sps:$4 sm:$0xff]  }
0x1f63   : > { %v6260_v32 = vpop.eup %6259  ;;  %4821 = vmatprep.subr.bf16.mxu1 %v6480_v44 }
0x1f64   : > { %4873 = vst [vmem:[%s9651_s17] sm:$0xff] %v2842_v11  ;;  %v3430_v35 = vmul.f32 0.6931472, %v6260_v32  ;;  %v10532_v11 = vld [vmem:[#allocation72_spill] sm:$0xff] }
0x1f65   : > { %v4309_v8 = vsub.f32 %v10532_v11, %v10531_v9 }
0x1f66   : > { %v3431_v60 = vsub.f32 %v9601_v59, %v3430_v35  ;;  %4822 = vmatpush1.bf16.msra.mxu1 %v6481_v20  ;;  %v6483_v59 = vld [vmem:[%s9737_s9 + $0x88] ss:$16 sps:$4 sm:$0xff]  }
0x1f67   : > { %v6262_v42 = vpop.eup %6261  ;;  %4823 = vmatprep.subr.bf16.mxu1 %v6482_v5  ;;  %v4310_v44 = vmul.f32 1.442695, %v4309_v8 }
0x1f68   : > { %4875 = vst [vmem:[%s9651_s17 + $0x10] sm:$0xff] %v3431_v60  ;;  %v4020_v26 = vmul.f32 0.6931472, %v6262_v42 }
0x1f6a   : > { %v4021_v63 = vsub.f32 %v9606_v38, %v4020_v26  ;;  %4824 = vmatpush1.bf16.msra.mxu1 %v6483_v59  ;;  %v6486_v38 = vld [vmem:[%s9737_s9 + $0xcc] ss:$16 sps:$4 sm:$0xff]  }
0x1f6b   : > { %v6264_v6 = vpop.eup %6263  ;;  %4825 = vmatprep.subr.bf16.mxu1 %v6484_v46 }
0x1f6c   : > { %4877 = vst [vmem:[%s9651_s17 + $0x20] sm:$0xff] %v4021_v63  ;;  %v4610_v21 = vmul.f32 0.6931472, %v6264_v6 }
0x1f6e   : > { %v4611_v61 = vsub.f32 %v9609_v49, %v4610_v21  ;;  %4826 = vmatpush1.bf16.msra.mxu1 %v6485_v45  ;;  %v6488_v49 = vld [vmem:[%s9737_s9 + $0xec] ss:$16 sps:$4 sm:$0xff]  }
0x1f6f   : > { %4827 = vmatprep.subr.bf16.mxu1 %v6486_v38 }
0x1f70   : > { %4879 = vst [vmem:[%s9651_s17 + $0x30] sm:$0xff] %v4611_v61 }
0x1f72   : > { %4828 = vmatpush1.bf16.msra.mxu1 %v6487_v17 }
0x1f73   : > { %4829 = vmatprep.subr.bf16.mxu1 %v6488_v49 }
0x1f76   : > { %4830 = vmatpush1.bf16.msra.mxu1 %v6489_v54 }
0x202c   : > { %v4746_v14 = vpop.f32.mrb[92].mxu0  ;;  %v5454_v52 = vpop.f32.mrb[92].mxu1 }
0x202d   : > { %v5683_v1 = vadd.f32 %v10479_v0, %v4746_v14  ;;  %v4748_v25 = vpop.f32.mrb[93].mxu0  ;;  %v5455_v22 = vpop.f32.mrb[93].mxu1  ;;  %v4596_v0 = vadd.f32 %v9583_v56, %v7900_v23  ;;  %v3131_v23 = vmul.f32 1.442695, %v3130_v16  ;;  %v10529_v56 = vld [vmem:[#allocation43_spill] sm:$0xff] }
0x202e   : > { %v5456_v29 = vadd.f32 %v5455_v22, %v5454_v52  ;;  %v4750_v13 = vpop.f32.mrb[94].mxu0  ;;  %v5457_v27 = vpop.f32.mrb[94].mxu1  ;;  %v5685_v28 = vadd.f32 %v7894_v47, %v4748_v25  ;;  %v3719_v53 = vsub.f32 %v10530_v55, %v10529_v56 }
0x202f   : > { %v5190_v4 = vmul.f32 -1.442695, %v5683_v1  ;;  %v4751_v3 = vpop.f32.mrb[95].mxu0  ;;  %v5458_v15 = vpop.f32.mrb[95].mxu1 }
0x2030   : > { %v5191_v7 = vmul.f32 -1.442695, %v5685_v28  ;;  %v4788_v10 = vadd.f32 %v5456_v29, %v7903_v24  ;;  %v3720_v24 = vmul.f32 1.442695, %v3719_v53 }
0x2031   : > { %6265 = vpow2.f32 %v5190_v4 }
0x2032   : > { %6267 = vpow2.f32 %v5191_v7 }
0x203b   : > { %v6266_v41 = vpop.eup %6265 }
0x203c   : > { %v4797_v43 = vadd.f32 1.0, %v6266_v41  ;;  %v6268_v30 = vpop.eup %6267 }
0x203d   : > { %v4804_v50 = vadd.f32 1.0, %v6268_v30 }
0x203e   : > { %6269 = vrcp.f32 %v4797_v43 }
0x203f   : > { %6271 = vrcp.f32 %v4804_v50 }
0x2048   : > { %v6270_v48 = vpop.eup %6269 }
0x2049   : > { %v4807_v37 = vmul.f32 %v6270_v48, %v4596_v0  ;;  %v6272_v51 = vpop.eup %6271 }
0x204a   : > { %v4810_v47 = vsub.f32 1.0, %v6272_v51  ;;  %v4812_v34 = vmul.f32 %v6272_v51, %v9524_v12 }
0x204b   : > { %v4808_v58 = vadd.f32 %v4807_v37, %v4788_v10 }
0x204d   : > { %6273 = vtanh.f32 %v4808_v58 }
0x204e   : > { %6275 = vpow2.f32 %v3131_v23 }
0x204f   : > { %6277 = vpow2.f32 %v3720_v24 }
0x2050   : > { %6279 = vpow2.f32 %v4310_v44 }
0x2057   : > { %v6274_v62 = vpop.eup %6273 }
0x2058   : > { %v4811_v19 = vmul.f32 %v6274_v62, %v4810_v47  ;;  %v6276_v42 = vpop.eup %6275 }
0x2059   : > { %v6278_v5 = vpop.eup %6277 }
0x205a   : > { %v4813_v40 = vadd.f32 %v4812_v34, %v4811_v19  ;;  %v6280_v26 = vpop.eup %6279 }
0x205c   : > { %v4814_v33 = vpack.c.bf16 %v4813_v40, %v4813_v40 }
0x205e   : > { %4848 = vmatmul.mubr.bf16.vlgmr.msra.gmra.mrb[96].mxu1 %v4814_v33 }
0x2131   : > { %v4849_v32 = vpop.f32.mrb[96].mxu1 }
0x2132   : > { %v4850_v35 = vpop.f32.mrb[97].mxu1 }
0x2133   : > { %v4851_v12 = vadd.f32 %v4850_v35, %v10519_v36  ;;  %v4852_v60 = vpop.f32.mrb[98].mxu1 }
0x2134   : > { %v4853_v20 = vpop.f32.mrb[99].mxu1 }
0x2135   : > { %4855 = vmax.xlane.f32.xlu0 %v4851_v12 }
0x2139   : > { %3133 = vadd.xlane.f32.xlu0 %v6276_v42 }
0x213d   : > { %3722 = vadd.xlane.f32.xlu0 %v6278_v5 }
0x2141   : > { %4312 = vadd.xlane.f32.xlu0 %v6280_v26 }
0x21c2   : > { %v4856_v63 = vpop.xlane.xlu0 %4855 }
0x21c3   : > { %v4857_v59 = vsub.f32 %v4851_v12, %v4856_v63  ;;  %vm4865_vm15 = vcmp.ge.f32.partialorder %v4851_v12, %v4856_v63 }
0x21c4   : > { %v4866_v6 = vsel %vm4865_vm15, %v10526_v57, 128.0 }
0x21c5   : > { %v4858_v46 = vmul.f32 1.442695, %v4857_v59  ;;  %4867 = vmin.xlane.f32.xlu1 %v4866_v6 }
0x21c6   : > { %v3134_v21 = vpop.xlane.xlu0 %3133 }
0x21c7   : > { %6281 = vpow2.f32 %v4858_v46 }
0x21c8   : > { %6283 = vlog2.f32 %v3134_v21 }
0x21ca   : > { %v3723_v36 = vpop.xlane.xlu0 %3722 }
0x21cb   : > { %6285 = vlog2.f32 %v3723_v36 }
0x21ce   : > { %v4313_v61 = vpop.xlane.xlu0 %4312 }
0x21cf   : > { %6287 = vlog2.f32 %v4313_v61 }
0x21d1   : > { %v6282_v45 = vpop.eup %6281 }
0x21d2   : > { %v6284_v38 = vpop.eup %6283  ;;  %4860 = vadd.xlane.f32.xlu0 %v6282_v45 }
0x21d3   : > { %v3136_v17 = vmul.f32 0.6931472, %v6284_v38 }
0x21d5   : > { %v6286_v49 = vpop.eup %6285  ;;  %v3137_v54 = vsub.f32 %v3130_v16, %v3136_v17 }
0x21d6   : > { %v3725_v57 = vmul.f32 0.6931472, %v6286_v49 }
0x21d7   : > { %4874 = vst [vmem:[%s9651_s17 + $0x8] sm:$0xff] %v3137_v54 }
0x21d8   : > { %v3726_v14 = vsub.f32 %v3719_v53, %v3725_v57 }
0x21d9   : > { %v6288_v52 = vpop.eup %6287 }
0x21da   : > { %4876 = vst [vmem:[%s9651_s17 + $0x18] sm:$0xff] %v3726_v14  ;;  %v4315_v1 = vmul.f32 0.6931472, %v6288_v52 }
0x21dc   : > { %v4316_v25 = vsub.f32 %v4309_v8, %v4315_v1 }
0x21de   : > { %4878 = vst [vmem:[%s9651_s17 + $0x28] sm:$0xff] %v4316_v25 }
0x2252   : > { %v4868_v22 = vpop.xlane.xlu1 %4867 }
0x2253   : > { %v4869_v29 = vmin.f32 %v4868_v22, 127.0 }
0x2255   : > { %v5732_v13 = vtrunc.f32 %v4869_v29 }
0x2257   : > { %v5733_v27 = vcvt.f32.s32 %v5732_v13 }
0x2259   : > { %v4872_v4 = vsel %vm4871_vm0, %v5733_v27, %v9626_v18 }
0x225a   : > { %4882 = vst.msk [vmem:[%s486_s16] sm:$0xff] %vm4881_vm1, %v4872_v4 }
0x225f   : > { %v4861_v3 = vpop.xlane.xlu0 %4860 }
0x2260   : > { %6289 = vlog2.f32 %v4861_v3 }
0x226a   : > { %v6290_v15 = vpop.eup %6289 }
0x226b   : > { %v4863_v28 = vmul.f32 0.6931472, %v6290_v15 }
0x226d   : > { %v4864_v7 = vsub.f32 %v4857_v59, %v4863_v28 }
0x226f   : > { %4880 = vst [vmem:[%s9651_s17 + $0x38] sm:$0xff] %v4864_v7 }
0x2270 PF: > { %p20_p9 = scmp.ge.s32.totalorder %s6600_s25, 4   ;;  %s10533_s21 = smov %s6508_s22 }
0x2271   : > { %s10534_s22 = smov %s6609_s28  ;;  %s10535_s23 = smov %s6600_s25 }
0x2272   :  { %22 = sbr.rel (!%p20_p9) target bundleno = 2 (0x2), region = 149 }

</bundles_post_ra>
